<compile_context>
chip_gen: v5e
topology: v5e:2x2
jax: 0.10.0
libtpu: 0.0.40
codegen_flags: <defaults>
</compile_context>

<pallas_src>
import functools

import jax
import jax.numpy as jnp
import numpy as np
from jax.experimental import pallas as pl
from jax.experimental.pallas import tpu as pltpu

_LANE = 128
_LEAKY_SLOPE = 0.2
_VMEM_LIMIT = 32 * 1024 * 1024


def _round_up(x, m):
    return ((x + m - 1) // m) * m


# ----------------------------- Pallas kernels ------------------------------

def _make_fused_gemm_kernel(pre_act, post_act):
    """(TM,K)bf16 @ (K,Np)bf16 + bias, f32 accumulation, with an optional
    elementwise prologue on the patch tile and an epilogue activation."""

    def kernel(x_ref, w_ref, b_ref, o_ref):
        x = x_ref[...]
        if pre_act is not None:
            xf = x.astype(jnp.float32)          # keep VPU math in f32 (v5e)
            if pre_act == "leaky":
                xf = jnp.where(xf >= 0, xf, _LEAKY_SLOPE * xf)
            elif pre_act == "relu":
                xf = jnp.maximum(xf, 0.0)
            x = xf.astype(jnp.bfloat16)
        acc = jnp.dot(x, w_ref[...], preferred_element_type=jnp.float32)
        acc = acc + b_ref[...]
        if post_act == "tanh":
            acc = jnp.tanh(acc)
        elif post_act == "relu":
            acc = jnp.maximum(acc, 0.0)
        elif post_act == "leaky":
            acc = jnp.where(acc >= 0, acc, _LEAKY_SLOPE * acc)
        o_ref[...] = acc

    return kernel


def _bn_stats_kernel(x_ref, s_ref, ss_ref):
    # Sequential-grid accumulation of per-channel sum / sum-of-squares.
    x = x_ref[...]

    @pl.when(pl.program_id(0) == 0)
    def _():
        s_ref[...] = jnp.zeros_like(s_ref)
        ss_ref[...] = jnp.zeros_like(ss_ref)

    s_ref[...] += jnp.sum(x, axis=0, keepdims=True)
    ss_ref[...] += jnp.sum(x * x, axis=0, keepdims=True)


def _bn_apply_kernel(x_ref, sc_ref, sh_ref, o_ref):
    o_ref[...] = x_ref[...] * sc_ref[...] + sh_ref[...]


def _bn_concat_kernel(skip_ref, x_ref, sc_ref, sh_ref, o_ref):
    # Fuses the BatchNorm affine with torch.cat([x, model(x)], 1): one
    # lane-dense full-width store of [skip | BN(h)].
    h = x_ref[...] * sc_ref[...] + sh_ref[...]
    o_ref[...] = jnp.concatenate([skip_ref[...], h], axis=-1)


# ------------------------------ GEMM wrapper --------------------------------

def _pick_tm(M, K):
    # Biggest M tile that keeps the bf16 patch tile under ~2 MiB (double
    # buffered -> ~4 MiB) while leaving >=2 grid steps for the large layers
    # (megacore on v7x).
    tm = 512 if M > 4096 else 256
    while tm > 16 and tm * K * 2 > (2 << 20):
        tm //= 2
    tm = min(tm, _round_up(M, 16))
    return max(16, tm)


def fused_gemm(x, w, b, pre_act=None, post_act=None):
    """act_post(act_pre(x) @ w + b).  x:(M,K), w:(K,N), b:(N,) -> (M,N) f32."""
    M, K = x.shape
    N = w.shape[1]
    Np = _round_up(max(N, _LANE), _LANE)
    tm = _pick_tm(M, K)
    Mp = _round_up(M, tm)

    xb = x.astype(jnp.bfloat16)
    if Mp != M:
        xb = jnp.pad(xb, ((0, Mp - M), (0, 0)))
    wb = jnp.pad(w.astype(jnp.bfloat16), ((0, 0), (0, Np - N)))
    bb = jnp.pad(b.astype(jnp.float32).reshape(1, N), ((0, 0), (0, Np - N)))

    out = pl.pallas_call(
        _make_fused_gemm_kernel(pre_act, post_act),
        out_shape=jax.ShapeDtypeStruct((Mp, Np), jnp.float32),
        grid=(Mp // tm,),
        in_specs=[
            pl.BlockSpec((tm, K), lambda i: (i, 0)),
            pl.BlockSpec((K, Np), lambda i: (0, 0)),
            pl.BlockSpec((1, Np), lambda i: (0, 0)),
        ],
        out_specs=pl.BlockSpec((tm, Np), lambda i: (i, 0)),
        compiler_params=pltpu.CompilerParams(
            dimension_semantics=("parallel",),
            vmem_limit_bytes=_VMEM_LIMIT,
        ),
    )(xb, wb, bb)
    return out[:M, :N]


# ------------------------------ conv wrappers --------------------------------

def conv_down(x, w, b, pre_act=None, post_act=None):
    """Conv2d(k=4, s=2, p=1) on NHWC.  w: PyTorch layout [Cout, Cin, 4, 4]."""
    N, H, W, Cin = x.shape
    Cout = w.shape[0]
    Ho, Wo = H // 2, W // 2
    xp = jnp.pad(x.astype(jnp.bfloat16), ((0, 0), (1, 1), (1, 1), (0, 0)))
    cols = [xp[:, kh:kh + 2 * Ho:2, kw:kw + 2 * Wo:2, :]
            for kh in range(4) for kw in range(4)]
    patches = jnp.stack(cols, axis=3).reshape(N * Ho * Wo, 16 * Cin)
    wk = jnp.transpose(w, (2, 3, 1, 0)).reshape(16 * Cin, Cout)  # (kh,kw,ci,co)
    y = fused_gemm(patches, wk, b, pre_act=pre_act, post_act=post_act)
    return y.reshape(N, Ho, Wo, Cout)


def convt_up(x, w, b, pre_act=None, post_act=None):
    """ConvTranspose2d(k=4, s=2, p=1) on NHWC via the 4-phase (output-parity)
    decomposition: one 3x3 stride-1 GEMM producing (py, px, Cout) channels,
    then a depth-to-space interleave.  w: PyTorch layout [Cin, Cout, 4, 4]."""
    N, H, W, Cin = x.shape
    Cout = w.shape[1]
    xp = jnp.pad(x.astype(jnp.bfloat16), ((0, 0), (1, 1), (1, 1), (0, 0)))
    cols = [xp[:, ty:ty + H, tx:tx + W, :]
            for ty in range(3) for tx in range(3)]
    patches = jnp.stack(cols, axis=3).reshape(N * H * W, 9 * Cin)

    # out[2m+py, 2n+px] = sum over the 2x2 taps (ty,tx) of that phase:
    #   xp[m+ty, n+tx] @ w[:, :, 3-2*ty+py, 3-2*tx+px]
    wk = jnp.zeros((3, 3, Cin, 2, 2, Cout), w.dtype)
    for py in (0, 1):
        for ty in (py, py + 1):
            ky = 3 - 2 * ty + py
            for px in (0, 1):
                for tx in (px, px + 1):
                    kx = 3 - 2 * tx + px
                    wk = wk.at[ty, tx, :, py, px, :].set(w[:, :, ky, kx])
    wk = wk.reshape(9 * Cin, 4 * Cout)
    b4 = jnp.tile(b, 4)  # (py, px, co) ordering

    y = fused_gemm(patches, wk, b4, pre_act=pre_act, post_act=post_act)
    y = y.reshape(N, H, W, 2, 2, Cout).transpose(0, 1, 3, 2, 4, 5)
    return y.reshape(N, 2 * H, 2 * W, Cout)


# ----------------------------- BatchNorm wrappers ----------------------------

def _bn_tile(M):
    return min(512, _round_up(M, 8))


def _bn_stats(xf):
    M, C = xf.shape
    tb = _bn_tile(M)
    Mp = _round_up(M, tb)
    if Mp != M:
        xf = jnp.pad(xf, ((0, Mp - M), (0, 0)))
    s, ss = pl.pallas_call(
        _bn_stats_kernel,
        out_shape=(jax.ShapeDtypeStruct((1, C), jnp.float32),
                   jax.ShapeDtypeStruct((1, C), jnp.float32)),
        grid=(Mp // tb,),
        in_specs=[pl.BlockSpec((tb, C), lambda i: (i, 0))],
        out_specs=(pl.BlockSpec((1, C), lambda i: (0, 0)),
                   pl.BlockSpec((1, C), lambda i: (0, 0))),
        compiler_params=pltpu.CompilerParams(
            dimension_semantics=("arbitrary",),
            vmem_limit_bytes=_VMEM_LIMIT,
        ),
    )(xf)
    return s, ss


def _bn_scale_shift(xf, gamma, beta, M, C, eps):
    s, ss = _bn_stats(xf)
    mean = s / M
    var = jnp.maximum(ss / M - mean * mean, 0.0)
    scale = gamma.reshape(1, C).astype(jnp.float32) * jax.lax.rsqrt(var + eps)
    shift = beta.reshape(1, C).astype(jnp.float32) - mean * scale
    return scale, shift


def batch_norm(x, gamma, beta, eps=1e-5):
    """Training-mode BatchNorm2d (batch statistics) on NHWC."""
    N, H, W, C = x.shape
    M = N * H * W
    xf = x.reshape(M, C).astype(jnp.float32)
    scale, shift = _bn_scale_shift(xf, gamma, beta, M, C, eps)

    tb = _bn_tile(M)
    Mp = _round_up(M, tb)
    xp = jnp.pad(xf, ((0, Mp - M), (0, 0))) if Mp != M else xf
    y = pl.pallas_call(
        _bn_apply_kernel,
        out_shape=jax.ShapeDtypeStruct((Mp, C), jnp.float32),
        grid=(Mp // tb,),
        in_specs=[pl.BlockSpec((tb, C), lambda i: (i, 0)),
                  pl.BlockSpec((1, C), lambda i: (0, 0)),
                  pl.BlockSpec((1, C), lambda i: (0, 0))],
        out_specs=pl.BlockSpec((tb, C), lambda i: (i, 0)),
        compiler_params=pltpu.CompilerParams(
            dimension_semantics=("parallel",),
            vmem_limit_bytes=_VMEM_LIMIT,
        ),
    )(xp, scale, shift)
    return y[:M].reshape(N, H, W, C)


def batch_norm_concat(skip, x, gamma, beta, eps=1e-5):
    """torch.cat([skip, BatchNorm(x)], channel) fused into one Pallas pass."""
    N, H, W, C = x.shape
    M = N * H * W
    xf = x.reshape(M, C).astype(jnp.float32)
    sf = skip.reshape(M, C).astype(jnp.float32)
    scale, shift = _bn_scale_shift(xf, gamma, beta, M, C, eps)

    tb = _bn_tile(M)
    Mp = _round_up(M, tb)
    if Mp != M:
        xf = jnp.pad(xf, ((0, Mp - M), (0, 0)))
        sf = jnp.pad(sf, ((0, Mp - M), (0, 0)))
    y = pl.pallas_call(
        _bn_concat_kernel,
        out_shape=jax.ShapeDtypeStruct((Mp, 2 * C), jnp.float32),
        grid=(Mp // tb,),
        in_specs=[pl.BlockSpec((tb, C), lambda i: (i, 0)),
                  pl.BlockSpec((tb, C), lambda i: (i, 0)),
                  pl.BlockSpec((1, C), lambda i: (0, 0)),
                  pl.BlockSpec((1, C), lambda i: (0, 0))],
        out_specs=pl.BlockSpec((tb, 2 * C), lambda i: (i, 0)),
        compiler_params=pltpu.CompilerParams(
            dimension_semantics=("parallel",),
            vmem_limit_bytes=_VMEM_LIMIT,
        ),
    )(sf, xf, scale, shift)
    return y[:M].reshape(N, H, W, 2 * C)


# ------------------------ pure-JAX reference ops (check) --------------------

def _ref_pre(x, pre_act):
    # Mirror the kernel's quantization: activation in f32 on bf16-quantized x.
    xb = x.astype(jnp.bfloat16).astype(jnp.float32)
    if pre_act == "leaky":
        xb = jnp.where(xb >= 0, xb, _LEAKY_SLOPE * xb)
    elif pre_act == "relu":
        xb = jnp.maximum(xb, 0.0)
    return xb.astype(jnp.bfloat16)


def _ref_post(y, post_act):
    if post_act == "tanh":
        return jnp.tanh(y)
    if post_act == "relu":
        return jnp.maximum(y, 0.0)
    return y


def ref_conv_down(x, w, b, pre_act=None, post_act=None):
    xb = _ref_pre(x, pre_act)
    wk = jnp.transpose(w, (2, 3, 1, 0)).astype(jnp.bfloat16)  # HWIO
    y = jax.lax.conv_general_dilated(
        xb, wk, (2, 2), ((1, 1), (1, 1)),
        dimension_numbers=("NHWC", "HWIO", "NHWC"),
        preferred_element_type=jnp.float32)
    return _ref_post(y + b, post_act)


def ref_convt_up(x, w, b, pre_act=None, post_act=None):
    xb = _ref_pre(x, pre_act)
    wk = jnp.transpose(w[:, :, ::-1, ::-1], (2, 3, 0, 1)).astype(jnp.bfloat16)
    y = jax.lax.conv_general_dilated(
        xb, wk, (1, 1), ((2, 2), (2, 2)), lhs_dilation=(2, 2),
        dimension_numbers=("NHWC", "HWIO", "NHWC"),
        preferred_element_type=jnp.float32)
    return _ref_post(y + b, post_act)


def ref_bn(x, gamma, beta, eps=1e-5):
    mean = jnp.mean(x, axis=(0, 1, 2), keepdims=True)
    var = jnp.mean(jnp.square(x - mean), axis=(0, 1, 2), keepdims=True)
    return (x - mean) * jax.lax.rsqrt(var + eps) * gamma + beta


def ref_bn_concat(skip, x, gamma, beta, eps=1e-5):
    return jnp.concatenate([skip, ref_bn(x, gamma, beta, eps)], axis=-1)


# ------------------------------ U-Net structure ------------------------------

def make_block_params(key, outer_nc, inner_nc, input_nc=None,
                      outermost=False, innermost=False):
    if input_nc is None:
        input_nc = outer_nc
    k1, k2, k3 = jax.random.split(key, 3)
    p = {"outermost": outermost, "innermost": innermost}
    # Conv2d(input_nc, inner_nc, 4, 2, 1, bias=False)  [BatchNorm => no bias]
    p["down_w"] = 0.02 * jax.random.normal(k1, (inner_nc, input_nc, 4, 4), jnp.float32)
    p["down_b"] = jnp.zeros((inner_nc,), jnp.float32)
    up_in = inner_nc if innermost else inner_nc * 2
    # ConvTranspose2d(up_in, outer_nc, 4, 2, 1)
    p["up_w"] = 0.02 * jax.random.normal(k2, (up_in, outer_nc, 4, 4), jnp.float32)
    if outermost:  # only the outermost upconv carries a bias
        p["up_b"] = 0.02 * jax.random.normal(k3, (outer_nc,), jnp.float32)
    else:
        p["up_b"] = jnp.zeros((outer_nc,), jnp.float32)
    if (not outermost) and (not innermost):
        p["dn_g"] = jnp.ones((inner_nc,), jnp.float32)
        p["dn_b"] = jnp.zeros((inner_nc,), jnp.float32)
    if not outermost:
        p["up_g"] = jnp.ones((outer_nc,), jnp.float32)
        p["up_bn_b"] = jnp.zeros((outer_nc,), jnp.float32)
    return p


def make_unet_params(key, input_nc, output_nc, num_downs, ngf):
    keys = jax.random.split(key, num_downs)
    ki = iter(range(num_downs))
    blocks = [make_block_params(keys[next(ki)], ngf * 8, ngf * 8, innermost=True)]
    for _ in range(num_downs - 5):
        blocks.append(make_block_params(keys[next(ki)], ngf * 8, ngf * 8))
    blocks.append(make_block_params(keys[next(ki)], ngf * 4, ngf * 8))
    blocks.append(make_block_params(keys[next(ki)], ngf * 2, ngf * 4))
    blocks.append(make_block_params(keys[next(ki)], ngf, ngf * 2))
    blocks.append(make_block_params(keys[next(ki)], output_nc, ngf,
                                    input_nc=input_nc, outermost=True))
    return blocks  # innermost -> outermost


def block_forward(ops, p, x, sub):
    if p["outermost"]:
        # downconv -> submodule -> [ReLU -> upconv -> Tanh] (fused)
        h = ops["conv_down"](x, p["down_w"], p["down_b"])
        h = sub(h)
        return ops["convt_up"](h, p["up_w"], p["up_b"],
                               pre_act="relu", post_act="tanh")
    if p["innermost"]:
        # [LeakyReLU -> downconv] -> [ReLU -> upconv] -> BN ; cat([x, .], 1)
        h = ops["conv_down"](x, p["down_w"], p["down_b"], pre_act="leaky")
        h = ops["convt_up"](h, p["up_w"], p["up_b"], pre_act="relu")
        return ops["bn_concat"](x, h, p["up_g"], p["up_bn_b"])
    # [LeakyReLU -> downconv] -> BN -> sub -> [ReLU -> upconv] -> BN ; cat
    h = ops["conv_down"](x, p["down_w"], p["down_b"], pre_act="leaky")
    h = ops["bn"](h, p["dn_g"], p["dn_b"])
    h = sub(h)
    h = ops["convt_up"](h, p["up_w"], p["up_b"], pre_act="relu")
    return ops["bn_concat"](x, h, p["up_g"], p["up_bn_b"])


def unet_forward(ops, blocks, x_nchw):
    x = jnp.transpose(x_nchw, (0, 2, 3, 1)).astype(jnp.float32)  # NCHW -> NHWC
    fwd = None
    for p in blocks:  # innermost outward
        fwd = (lambda pp, ss: (lambda h: block_forward(ops, pp, h, ss)))(p, fwd)
    y = fwd(x)
    return jnp.transpose(y, (0, 3, 1, 2))  # back to NCHW


# ----------------------------------- main ------------------------------------

if __name__ == "__main__":
    key = jax.random.PRNGKey(0)
    kp, kx = jax.random.split(key)

    input_nc, output_nc, num_downs, ngf = 3, 3, 5, 8
    spatial = 32  # must be divisible by 2**num_downs
    blocks = make_unet_params(kp, input_nc, output_nc, num_downs, ngf)
    x = jax.random.normal(kx, (2, input_nc, spatial, spatial), jnp.float32)

    pallas_ops = dict(conv_down=conv_down, convt_up=convt_up,
                      bn=batch_norm, bn_concat=batch_norm_concat)
    ref_ops = dict(conv_down=ref_conv_down, convt_up=ref_convt_up,
                   bn=ref_bn, bn_concat=ref_bn_concat)

    y = jax.jit(functools.partial(unet_forward, pallas_ops, blocks))(x)
    y = jax.block_until_ready(y)
    assert y.shape == (2, output_nc, spatial, spatial)

    # Silent correctness check against a pure-JAX (lax.conv) reference that
    # uses the same bf16 operand quantization for the convolutions.
    y_ref = jax.block_until_ready(
        jax.jit(functools.partial(unet_forward, ref_ops, blocks))(x))
    np.testing.assert_allclose(np.asarray(y), np.asarray(y_ref),
                               atol=2e-2, rtol=2e-2)

    print("KERNEL_OK")
</pallas_src>

<mosaic_0001>
module attributes {stable_mosaic.version = 11 : i64} {
  func.func @kernel(%arg0: i32, %arg1: memref<256x48xbf16, #tpu.memory_space<vmem>>, %arg2: memref<48x128xbf16, #tpu.memory_space<vmem>>, %arg3: memref<1x128xf32, #tpu.memory_space<vmem>>, %arg4: memref<256x128xf32, #tpu.memory_space<vmem>>) attributes {dimension_semantics = [#tpu.dimension_semantics<parallel>], iteration_bounds = array<i64: 2>, scalar_prefetch = 0 : i64, scratch_operands = 0 : i64, tpu.core_type = #tpu.core_type<tc>, window_params = [{transform_indices = @transform_0, window_bounds = array<i64: 256, 48>}, {pipeline_mode = #tpu.pipeline_mode<synchronous>, transform_indices = @transform_1, window_bounds = array<i64: 48, 128>}, {pipeline_mode = #tpu.pipeline_mode<synchronous>, transform_indices = @transform_2, window_bounds = array<i64: 1, 128>}, {transform_indices = @transform_3, window_bounds = array<i64: 256, 128>}]} {
    %c0 = arith.constant 0 : index
    %c0_0 = arith.constant 0 : index
    %0 = vector.load %arg1[%c0, %c0_0] : memref<256x48xbf16, #tpu.memory_space<vmem>>, vector<256x48xbf16>
    %c0_1 = arith.constant 0 : index
    %c0_2 = arith.constant 0 : index
    %1 = vector.load %arg2[%c0_1, %c0_2] : memref<48x128xbf16, #tpu.memory_space<vmem>>, vector<48x128xbf16>
    %cst = arith.constant dense<0.000000e+00> : vector<256x128xf32>
    %2 = tpu.matmul %0, %1, %cst {dimension_numbers = #tpu.dot_dimension_numbers<[1], [0], [0], [1], [0, 0, 1, 1], [], []>} : vector<256x48xbf16>, vector<48x128xbf16>, vector<256x128xf32> -> vector<256x128xf32>
    %c0_3 = arith.constant 0 : index
    %c0_4 = arith.constant 0 : index
    %3 = vector.load %arg3[%c0_3, %c0_4] : memref<1x128xf32, #tpu.memory_space<vmem>>, vector<1x128xf32>
    %4 = vector.broadcast %3 : vector<1x128xf32> to vector<256x128xf32>
    %5 = arith.addf %2, %4 : vector<256x128xf32>
    %c0_5 = arith.constant 0 : index
    %c0_6 = arith.constant 0 : index
    %6 = vector.load %arg4[%c0_5, %c0_6] : memref<256x128xf32, #tpu.memory_space<vmem>>, vector<256x128xf32>
    tpu.vector_store %arg4[%c0_5, %c0_6], %5 {strides = array<i32>} : memref<256x128xf32, #tpu.memory_space<vmem>>, vector<256x128xf32>,
    return
  }
  func.func @transform_0(%arg0: i32) -> (i32, i32) {
    %c0_i32 = arith.constant 0 : i32
    %c0_i32_0 = arith.constant 0 : i32
    return %arg0, %c0_i32 : i32, i32
  }
  func.func @transform_1(%arg0: i32) -> (i32, i32) {
    %c0_i32 = arith.constant 0 : i32
    %c0_i32_0 = arith.constant 0 : i32
    %c0_i32_1 = arith.constant 0 : i32
    return %c0_i32, %c0_i32_0 : i32, i32
  }
  func.func @transform_2(%arg0: i32) -> (i32, i32) {
    %c0_i32 = arith.constant 0 : i32
    %c0_i32_0 = arith.constant 0 : i32
    %c0_i32_1 = arith.constant 0 : i32
    return %c0_i32, %c0_i32_0 : i32, i32
  }
  func.func @transform_3(%arg0: i32) -> (i32, i32) {
    %c0_i32 = arith.constant 0 : i32
    %c0_i32_0 = arith.constant 0 : i32
    return %arg0, %c0_i32 : i32, i32
  }
}

module attributes {stable_mosaic.version = 11 : i64} {
  func.func @kernel(%arg0: i32, %arg1: memref<128x128xbf16, #tpu.memory_space<vmem>>, %arg2: memref<128x128xbf16, #tpu.memory_space<vmem>>, %arg3: memref<1x128xf32, #tpu.memory_space<vmem>>, %arg4: memref<128x128xf32, #tpu.memory_space<vmem>>) attributes {dimension_semantics = [#tpu.dimension_semantics<parallel>], iteration_bounds = array<i64: 1>, scalar_prefetch = 0 : i64, scratch_operands = 0 : i64, tpu.core_type = #tpu.core_type<tc>, window_params = [{transform_indices = @transform_0, window_bounds = array<i64: 128, 128>}, {pipeline_mode = #tpu.pipeline_mode<synchronous>, transform_indices = @transform_1, window_bounds = array<i64: 128, 128>}, {pipeline_mode = #tpu.pipeline_mode<synchronous>, transform_indices = @transform_2, window_bounds = array<i64: 1, 128>}, {transform_indices = @transform_3, window_bounds = array<i64: 128, 128>}]} {
    %c0 = arith.constant 0 : index
    %c0_0 = arith.constant 0 : index
    %0 = vector.load %arg1[%c0, %c0_0] : memref<128x128xbf16, #tpu.memory_space<vmem>>, vector<128x128xbf16>
    %1 = arith.extf %0 : vector<128x128xbf16> to vector<128x128xf32>
    %cst = arith.constant 0.000000e+00 : f32
    %2 = vector.broadcast %cst : f32 to vector<128x128xf32>
    %3 = arith.cmpf oge, %1, %2 : vector<128x128xf32>
    %cst_1 = arith.constant 2.000000e-01 : f32
    %4 = vector.broadcast %cst_1 : f32 to vector<128x128xf32>
    %5 = arith.mulf %4, %1 : vector<128x128xf32>
    %6 = arith.select %3, %1, %5 : vector<128x128xi1>, vector<128x128xf32>
    %7 = arith.truncf %6 : vector<128x128xf32> to vector<128x128xbf16>
    %c0_2 = arith.constant 0 : index
    %c0_3 = arith.constant 0 : index
    %8 = vector.load %arg2[%c0_2, %c0_3] : memref<128x128xbf16, #tpu.memory_space<vmem>>, vector<128x128xbf16>
    %cst_4 = arith.constant dense<0.000000e+00> : vector<128x128xf32>
    %9 = tpu.matmul %7, %8, %cst_4 {dimension_numbers = #tpu.dot_dimension_numbers<[1], [0], [0], [1], [0, 0, 1, 1], [], []>} : vector<128x128xbf16>, vector<128x128xbf16>, vector<128x128xf32> -> vector<128x128xf32>
    %c0_5 = arith.constant 0 : index
    %c0_6 = arith.constant 0 : index
    %10 = vector.load %arg3[%c0_5, %c0_6] : memref<1x128xf32, #tpu.memory_space<vmem>>, vector<1x128xf32>
    %11 = vector.broadcast %10 : vector<1x128xf32> to vector<128x128xf32>
    %12 = arith.addf %9, %11 : vector<128x128xf32>
    %c0_7 = arith.constant 0 : index
    %c0_8 = arith.constant 0 : index
    %13 = vector.load %arg4[%c0_7, %c0_8] : memref<128x128xf32, #tpu.memory_space<vmem>>, vector<128x128xf32>
    tpu.vector_store %arg4[%c0_7, %c0_8], %12 {strides = array<i32>} : memref<128x128xf32, #tpu.memory_space<vmem>>, vector<128x128xf32>,
    return
  }
  func.func @transform_0(%arg0: i32) -> (i32, i32) {
    %c0_i32 = arith.constant 0 : i32
    %c0_i32_0 = arith.constant 0 : i32
    return %arg0, %c0_i32 : i32, i32
  }
  func.func @transform_1(%arg0: i32) -> (i32, i32) {
    %c0_i32 = arith.constant 0 : i32
    %c0_i32_0 = arith.constant 0 : i32
    %c0_i32_1 = arith.constant 0 : i32
    return %c0_i32, %c0_i32_0 : i32, i32
  }
  func.func @transform_2(%arg0: i32) -> (i32, i32) {
    %c0_i32 = arith.constant 0 : i32
    %c0_i32_0 = arith.constant 0 : i32
    %c0_i32_1 = arith.constant 0 : i32
    return %c0_i32, %c0_i32_0 : i32, i32
  }
  func.func @transform_3(%arg0: i32) -> (i32, i32) {
    %c0_i32 = arith.constant 0 : i32
    %c0_i32_0 = arith.constant 0 : i32
    return %arg0, %c0_i32 : i32, i32
  }
}

module attributes {stable_mosaic.version = 11 : i64} {
  func.func @_bn_stats_kernel(%arg0: i32, %arg1: memref<128x16xf32, #tpu.memory_space<vmem>>, %arg2: memref<1x16xf32, #tpu.memory_space<vmem>>, %arg3: memref<1x16xf32, #tpu.memory_space<vmem>>) attributes {dimension_semantics = [#tpu.dimension_semantics<arbitrary>], iteration_bounds = array<i64: 1>, scalar_prefetch = 0 : i64, scratch_operands = 0 : i64, tpu.core_type = #tpu.core_type<tc>, window_params = [{transform_indices = @transform_0, window_bounds = array<i64: 128, 16>}, {pipeline_mode = #tpu.pipeline_mode<synchronous>, transform_indices = @transform_1, window_bounds = array<i64: 1, 16>}, {pipeline_mode = #tpu.pipeline_mode<synchronous>, transform_indices = @transform_2, window_bounds = array<i64: 1, 16>}]} {
    %c0 = arith.constant 0 : index
    %c0_0 = arith.constant 0 : index
    %0 = vector.load %arg1[%c0, %c0_0] : memref<128x16xf32, #tpu.memory_space<vmem>>, vector<128x16xf32>
    %c0_i32 = arith.constant 0 : i32
    %1 = arith.cmpi eq, %arg0, %c0_i32 : i32
    %2 = arith.extui %1 : i1 to i32
    %c0_i32_1 = arith.constant 0 : i32
    %3 = arith.cmpi ne, %2, %c0_i32_1 : i32
    scf.if %3 {
      %cst_11 = arith.constant 0.000000e+00 : f32
      %15 = vector.broadcast %cst_11 : f32 to vector<1x16xf32>
      %c0_12 = arith.constant 0 : index
      %c0_13 = arith.constant 0 : index
      %16 = vector.load %arg2[%c0_12, %c0_13] : memref<1x16xf32, #tpu.memory_space<vmem>>, vector<1x16xf32>
      tpu.vector_store %arg2[%c0_12, %c0_13], %15 {strides = array<i32>} : memref<1x16xf32, #tpu.memory_space<vmem>>, vector<1x16xf32>,
      %cst_14 = arith.constant 0.000000e+00 : f32
      %17 = vector.broadcast %cst_14 : f32 to vector<1x16xf32>
      %c0_15 = arith.constant 0 : index
      %c0_16 = arith.constant 0 : index
      %18 = vector.load %arg3[%c0_15, %c0_16] : memref<1x16xf32, #tpu.memory_space<vmem>>, vector<1x16xf32>
      tpu.vector_store %arg3[%c0_15, %c0_16], %17 {strides = array<i32>} : memref<1x16xf32, #tpu.memory_space<vmem>>, vector<1x16xf32>,
    } else {
    }
    %c0_2 = arith.constant 0 : index
    %c0_3 = arith.constant 0 : index
    %4 = vector.load %arg2[%c0_2, %c0_3] : memref<1x16xf32, #tpu.memory_space<vmem>>, vector<1x16xf32>
    %cst = arith.constant dense<0.000000e+00> : vector<16xf32>
    %5 = vector.multi_reduction <add>, %0, %cst [0] : vector<128x16xf32> to vector<16xf32>
    %6 = vector.shape_cast %5 : vector<16xf32> to vector<1x16xf32>
    %7 = arith.addf %4, %6 : vector<1x16xf32>
    %c0_4 = arith.constant 0 : index
    %c0_5 = arith.constant 0 : index
    %8 = vector.load %arg2[%c0_4, %c0_5] : memref<1x16xf32, #tpu.memory_space<vmem>>, vector<1x16xf32>
    tpu.vector_store %arg2[%c0_4, %c0_5], %7 {strides = array<i32>} : memref<1x16xf32, #tpu.memory_space<vmem>>, vector<1x16xf32>,
    %c0_6 = arith.constant 0 : index
    %c0_7 = arith.constant 0 : index
    %9 = vector.load %arg3[%c0_6, %c0_7] : memref<1x16xf32, #tpu.memory_space<vmem>>, vector<1x16xf32>
    %10 = arith.mulf %0, %0 : vector<128x16xf32>
    %cst_8 = arith.constant dense<0.000000e+00> : vector<16xf32>
    %11 = vector.multi_reduction <add>, %10, %cst_8 [0] : vector<128x16xf32> to vector<16xf32>
    %12 = vector.shape_cast %11 : vector<16xf32> to vector<1x16xf32>
    %13 = arith.addf %9, %12 : vector<1x16xf32>
    %c0_9 = arith.constant 0 : index
    %c0_10 = arith.constant 0 : index
    %14 = vector.load %arg3[%c0_9, %c0_10] : memref<1x16xf32, #tpu.memory_space<vmem>>, vector<1x16xf32>
    tpu.vector_store %arg3[%c0_9, %c0_10], %13 {strides = array<i32>} : memref<1x16xf32, #tpu.memory_space<vmem>>, vector<1x16xf32>,
    return
  }
  func.func @transform_0(%arg0: i32) -> (i32, i32) {
    %c0_i32 = arith.constant 0 : i32
    %c0_i32_0 = arith.constant 0 : i32
    return %arg0, %c0_i32 : i32, i32
  }
  func.func @transform_1(%arg0: i32) -> (i32, i32) {
    %c0_i32 = arith.constant 0 : i32
    %c0_i32_0 = arith.constant 0 : i32
    %c0_i32_1 = arith.constant 0 : i32
    return %c0_i32, %c0_i32_0 : i32, i32
  }
  func.func @transform_2(%arg0: i32) -> (i32, i32) {
    %c0_i32 = arith.constant 0 : i32
    %c0_i32_0 = arith.constant 0 : i32
    %c0_i32_1 = arith.constant 0 : i32
    return %c0_i32, %c0_i32_0 : i32, i32
  }
}

module attributes {stable_mosaic.version = 11 : i64} {
  func.func @_bn_apply_kernel(%arg0: i32, %arg1: memref<128x16xf32, #tpu.memory_space<vmem>>, %arg2: memref<1x16xf32, #tpu.memory_space<vmem>>, %arg3: memref<1x16xf32, #tpu.memory_space<vmem>>, %arg4: memref<128x16xf32, #tpu.memory_space<vmem>>) attributes {dimension_semantics = [#tpu.dimension_semantics<parallel>], iteration_bounds = array<i64: 1>, scalar_prefetch = 0 : i64, scratch_operands = 0 : i64, tpu.core_type = #tpu.core_type<tc>, window_params = [{transform_indices = @transform_0, window_bounds = array<i64: 128, 16>}, {pipeline_mode = #tpu.pipeline_mode<synchronous>, transform_indices = @transform_1, window_bounds = array<i64: 1, 16>}, {pipeline_mode = #tpu.pipeline_mode<synchronous>, transform_indices = @transform_2, window_bounds = array<i64: 1, 16>}, {transform_indices = @transform_3, window_bounds = array<i64: 128, 16>}]} {
    %c0 = arith.constant 0 : index
    %c0_0 = arith.constant 0 : index
    %0 = vector.load %arg1[%c0, %c0_0] : memref<128x16xf32, #tpu.memory_space<vmem>>, vector<128x16xf32>
    %c0_1 = arith.constant 0 : index
    %c0_2 = arith.constant 0 : index
    %1 = vector.load %arg2[%c0_1, %c0_2] : memref<1x16xf32, #tpu.memory_space<vmem>>, vector<1x16xf32>
    %2 = vector.broadcast %1 : vector<1x16xf32> to vector<128x16xf32>
    %3 = arith.mulf %0, %2 : vector<128x16xf32>
    %c0_3 = arith.constant 0 : index
    %c0_4 = arith.constant 0 : index
    %4 = vector.load %arg3[%c0_3, %c0_4] : memref<1x16xf32, #tpu.memory_space<vmem>>, vector<1x16xf32>
    %5 = vector.broadcast %4 : vector<1x16xf32> to vector<128x16xf32>
    %6 = arith.addf %3, %5 : vector<128x16xf32>
    %c0_5 = arith.constant 0 : index
    %c0_6 = arith.constant 0 : index
    %7 = vector.load %arg4[%c0_5, %c0_6] : memref<128x16xf32, #tpu.memory_space<vmem>>, vector<128x16xf32>
    tpu.vector_store %arg4[%c0_5, %c0_6], %6 {strides = array<i32>} : memref<128x16xf32, #tpu.memory_space<vmem>>, vector<128x16xf32>,
    return
  }
  func.func @transform_0(%arg0: i32) -> (i32, i32) {
    %c0_i32 = arith.constant 0 : i32
    %c0_i32_0 = arith.constant 0 : i32
    return %arg0, %c0_i32 : i32, i32
  }
  func.func @transform_1(%arg0: i32) -> (i32, i32) {
    %c0_i32 = arith.constant 0 : i32
    %c0_i32_0 = arith.constant 0 : i32
    %c0_i32_1 = arith.constant 0 : i32
    return %c0_i32, %c0_i32_0 : i32, i32
  }
  func.func @transform_2(%arg0: i32) -> (i32, i32) {
    %c0_i32 = arith.constant 0 : i32
    %c0_i32_0 = arith.constant 0 : i32
    %c0_i32_1 = arith.constant 0 : i32
    return %c0_i32, %c0_i32_0 : i32, i32
  }
  func.func @transform_3(%arg0: i32) -> (i32, i32) {
    %c0_i32 = arith.constant 0 : i32
    %c0_i32_0 = arith.constant 0 : i32
    return %arg0, %c0_i32 : i32, i32
  }
}

module attributes {stable_mosaic.version = 11 : i64} {
  func.func @_bn_stats_kernel(%arg0: i32, %arg1: memref<32x32xf32, #tpu.memory_space<vmem>>, %arg2: memref<1x32xf32, #tpu.memory_space<vmem>>, %arg3: memref<1x32xf32, #tpu.memory_space<vmem>>) attributes {dimension_semantics = [#tpu.dimension_semantics<arbitrary>], iteration_bounds = array<i64: 1>, scalar_prefetch = 0 : i64, scratch_operands = 0 : i64, tpu.core_type = #tpu.core_type<tc>, window_params = [{transform_indices = @transform_0, window_bounds = array<i64: 32, 32>}, {pipeline_mode = #tpu.pipeline_mode<synchronous>, transform_indices = @transform_1, window_bounds = array<i64: 1, 32>}, {pipeline_mode = #tpu.pipeline_mode<synchronous>, transform_indices = @transform_2, window_bounds = array<i64: 1, 32>}]} {
    %c0 = arith.constant 0 : index
    %c0_0 = arith.constant 0 : index
    %0 = vector.load %arg1[%c0, %c0_0] : memref<32x32xf32, #tpu.memory_space<vmem>>, vector<32x32xf32>
    %c0_i32 = arith.constant 0 : i32
    %1 = arith.cmpi eq, %arg0, %c0_i32 : i32
    %2 = arith.extui %1 : i1 to i32
    %c0_i32_1 = arith.constant 0 : i32
    %3 = arith.cmpi ne, %2, %c0_i32_1 : i32
    scf.if %3 {
      %cst_11 = arith.constant 0.000000e+00 : f32
      %15 = vector.broadcast %cst_11 : f32 to vector<1x32xf32>
      %c0_12 = arith.constant 0 : index
      %c0_13 = arith.constant 0 : index
      %16 = vector.load %arg2[%c0_12, %c0_13] : memref<1x32xf32, #tpu.memory_space<vmem>>, vector<1x32xf32>
      tpu.vector_store %arg2[%c0_12, %c0_13], %15 {strides = array<i32>} : memref<1x32xf32, #tpu.memory_space<vmem>>, vector<1x32xf32>,
      %cst_14 = arith.constant 0.000000e+00 : f32
      %17 = vector.broadcast %cst_14 : f32 to vector<1x32xf32>
      %c0_15 = arith.constant 0 : index
      %c0_16 = arith.constant 0 : index
      %18 = vector.load %arg3[%c0_15, %c0_16] : memref<1x32xf32, #tpu.memory_space<vmem>>, vector<1x32xf32>
      tpu.vector_store %arg3[%c0_15, %c0_16], %17 {strides = array<i32>} : memref<1x32xf32, #tpu.memory_space<vmem>>, vector<1x32xf32>,
    } else {
    }
    %c0_2 = arith.constant 0 : index
    %c0_3 = arith.constant 0 : index
    %4 = vector.load %arg2[%c0_2, %c0_3] : memref<1x32xf32, #tpu.memory_space<vmem>>, vector<1x32xf32>
    %cst = arith.constant dense<0.000000e+00> : vector<32xf32>
    %5 = vector.multi_reduction <add>, %0, %cst [0] : vector<32x32xf32> to vector<32xf32>
    %6 = vector.shape_cast %5 : vector<32xf32> to vector<1x32xf32>
    %7 = arith.addf %4, %6 : vector<1x32xf32>
    %c0_4 = arith.constant 0 : index
    %c0_5 = arith.constant 0 : index
    %8 = vector.load %arg2[%c0_4, %c0_5] : memref<1x32xf32, #tpu.memory_space<vmem>>, vector<1x32xf32>
    tpu.vector_store %arg2[%c0_4, %c0_5], %7 {strides = array<i32>} : memref<1x32xf32, #tpu.memory_space<vmem>>, vector<1x32xf32>,
    %c0_6 = arith.constant 0 : index
    %c0_7 = arith.constant 0 : index
    %9 = vector.load %arg3[%c0_6, %c0_7] : memref<1x32xf32, #tpu.memory_space<vmem>>, vector<1x32xf32>
    %10 = arith.mulf %0, %0 : vector<32x32xf32>
    %cst_8 = arith.constant dense<0.000000e+00> : vector<32xf32>
    %11 = vector.multi_reduction <add>, %10, %cst_8 [0] : vector<32x32xf32> to vector<32xf32>
    %12 = vector.shape_cast %11 : vector<32xf32> to vector<1x32xf32>
    %13 = arith.addf %9, %12 : vector<1x32xf32>
    %c0_9 = arith.constant 0 : index
    %c0_10 = arith.constant 0 : index
    %14 = vector.load %arg3[%c0_9, %c0_10] : memref<1x32xf32, #tpu.memory_space<vmem>>, vector<1x32xf32>
    tpu.vector_store %arg3[%c0_9, %c0_10], %13 {strides = array<i32>} : memref<1x32xf32, #tpu.memory_space<vmem>>, vector<1x32xf32>,
    return
  }
  func.func @transform_0(%arg0: i32) -> (i32, i32) {
    %c0_i32 = arith.constant 0 : i32
    %c0_i32_0 = arith.constant 0 : i32
    return %arg0, %c0_i32 : i32, i32
  }
  func.func @transform_1(%arg0: i32) -> (i32, i32) {
    %c0_i32 = arith.constant 0 : i32
    %c0_i32_0 = arith.constant 0 : i32
    %c0_i32_1 = arith.constant 0 : i32
    return %c0_i32, %c0_i32_0 : i32, i32
  }
  func.func @transform_2(%arg0: i32) -> (i32, i32) {
    %c0_i32 = arith.constant 0 : i32
    %c0_i32_0 = arith.constant 0 : i32
    %c0_i32_1 = arith.constant 0 : i32
    return %c0_i32, %c0_i32_0 : i32, i32
  }
}

module attributes {stable_mosaic.version = 11 : i64} {
  func.func @kernel(%arg0: i32, %arg1: memref<32x256xbf16, #tpu.memory_space<vmem>>, %arg2: memref<256x128xbf16, #tpu.memory_space<vmem>>, %arg3: memref<1x128xf32, #tpu.memory_space<vmem>>, %arg4: memref<32x128xf32, #tpu.memory_space<vmem>>) attributes {dimension_semantics = [#tpu.dimension_semantics<parallel>], iteration_bounds = array<i64: 1>, scalar_prefetch = 0 : i64, scratch_operands = 0 : i64, tpu.core_type = #tpu.core_type<tc>, window_params = [{transform_indices = @transform_0, window_bounds = array<i64: 32, 256>}, {pipeline_mode = #tpu.pipeline_mode<synchronous>, transform_indices = @transform_1, window_bounds = array<i64: 256, 128>}, {pipeline_mode = #tpu.pipeline_mode<synchronous>, transform_indices = @transform_2, window_bounds = array<i64: 1, 128>}, {transform_indices = @transform_3, window_bounds = array<i64: 32, 128>}]} {
    %c0 = arith.constant 0 : index
    %c0_0 = arith.constant 0 : index
    %0 = vector.load %arg1[%c0, %c0_0] : memref<32x256xbf16, #tpu.memory_space<vmem>>, vector<32x256xbf16>
    %1 = arith.extf %0 : vector<32x256xbf16> to vector<32x256xf32>
    %cst = arith.constant 0.000000e+00 : f32
    %2 = vector.broadcast %cst : f32 to vector<32x256xf32>
    %3 = arith.cmpf oge, %1, %2 : vector<32x256xf32>
    %cst_1 = arith.constant 2.000000e-01 : f32
    %4 = vector.broadcast %cst_1 : f32 to vector<32x256xf32>
    %5 = arith.mulf %4, %1 : vector<32x256xf32>
    %6 = arith.select %3, %1, %5 : vector<32x256xi1>, vector<32x256xf32>
    %7 = arith.truncf %6 : vector<32x256xf32> to vector<32x256xbf16>
    %c0_2 = arith.constant 0 : index
    %c0_3 = arith.constant 0 : index
    %8 = vector.load %arg2[%c0_2, %c0_3] : memref<256x128xbf16, #tpu.memory_space<vmem>>, vector<256x128xbf16>
    %cst_4 = arith.constant dense<0.000000e+00> : vector<32x128xf32>
    %9 = tpu.matmul %7, %8, %cst_4 {dimension_numbers = #tpu.dot_dimension_numbers<[1], [0], [0], [1], [0, 0, 1, 1], [], []>} : vector<32x256xbf16>, vector<256x128xbf16>, vector<32x128xf32> -> vector<32x128xf32>
    %c0_5 = arith.constant 0 : index
    %c0_6 = arith.constant 0 : index
    %10 = vector.load %arg3[%c0_5, %c0_6] : memref<1x128xf32, #tpu.memory_space<vmem>>, vector<1x128xf32>
    %11 = vector.broadcast %10 : vector<1x128xf32> to vector<32x128xf32>
    %12 = arith.addf %9, %11 : vector<32x128xf32>
    %c0_7 = arith.constant 0 : index
    %c0_8 = arith.constant 0 : index
    %13 = vector.load %arg4[%c0_7, %c0_8] : memref<32x128xf32, #tpu.memory_space<vmem>>, vector<32x128xf32>
    tpu.vector_store %arg4[%c0_7, %c0_8], %12 {strides = array<i32>} : memref<32x128xf32, #tpu.memory_space<vmem>>, vector<32x128xf32>,
    return
  }
  func.func @transform_0(%arg0: i32) -> (i32, i32) {
    %c0_i32 = arith.constant 0 : i32
    %c0_i32_0 = arith.constant 0 : i32
    return %arg0, %c0_i32 : i32, i32
  }
  func.func @transform_1(%arg0: i32) -> (i32, i32) {
    %c0_i32 = arith.constant 0 : i32
    %c0_i32_0 = arith.constant 0 : i32
    %c0_i32_1 = arith.constant 0 : i32
    return %c0_i32, %c0_i32_0 : i32, i32
  }
  func.func @transform_2(%arg0: i32) -> (i32, i32) {
    %c0_i32 = arith.constant 0 : i32
    %c0_i32_0 = arith.constant 0 : i32
    %c0_i32_1 = arith.constant 0 : i32
    return %c0_i32, %c0_i32_0 : i32, i32
  }
  func.func @transform_3(%arg0: i32) -> (i32, i32) {
    %c0_i32 = arith.constant 0 : i32
    %c0_i32_0 = arith.constant 0 : i32
    return %arg0, %c0_i32 : i32, i32
  }
}

module attributes {stable_mosaic.version = 11 : i64} {
  func.func @_bn_apply_kernel(%arg0: i32, %arg1: memref<32x32xf32, #tpu.memory_space<vmem>>, %arg2: memref<1x32xf32, #tpu.memory_space<vmem>>, %arg3: memref<1x32xf32, #tpu.memory_space<vmem>>, %arg4: memref<32x32xf32, #tpu.memory_space<vmem>>) attributes {dimension_semantics = [#tpu.dimension_semantics<parallel>], iteration_bounds = array<i64: 1>, scalar_prefetch = 0 : i64, scratch_operands = 0 : i64, tpu.core_type = #tpu.core_type<tc>, window_params = [{transform_indices = @transform_0, window_bounds = array<i64: 32, 32>}, {pipeline_mode = #tpu.pipeline_mode<synchronous>, transform_indices = @transform_1, window_bounds = array<i64: 1, 32>}, {pipeline_mode = #tpu.pipeline_mode<synchronous>, transform_indices = @transform_2, window_bounds = array<i64: 1, 32>}, {transform_indices = @transform_3, window_bounds = array<i64: 32, 32>}]} {
    %c0 = arith.constant 0 : index
    %c0_0 = arith.constant 0 : index
    %0 = vector.load %arg1[%c0, %c0_0] : memref<32x32xf32, #tpu.memory_space<vmem>>, vector<32x32xf32>
    %c0_1 = arith.constant 0 : index
    %c0_2 = arith.constant 0 : index
    %1 = vector.load %arg2[%c0_1, %c0_2] : memref<1x32xf32, #tpu.memory_space<vmem>>, vector<1x32xf32>
    %2 = vector.broadcast %1 : vector<1x32xf32> to vector<32x32xf32>
    %3 = arith.mulf %0, %2 : vector<32x32xf32>
    %c0_3 = arith.constant 0 : index
    %c0_4 = arith.constant 0 : index
    %4 = vector.load %arg3[%c0_3, %c0_4] : memref<1x32xf32, #tpu.memory_space<vmem>>, vector<1x32xf32>
    %5 = vector.broadcast %4 : vector<1x32xf32> to vector<32x32xf32>
    %6 = arith.addf %3, %5 : vector<32x32xf32>
    %c0_5 = arith.constant 0 : index
    %c0_6 = arith.constant 0 : index
    %7 = vector.load %arg4[%c0_5, %c0_6] : memref<32x32xf32, #tpu.memory_space<vmem>>, vector<32x32xf32>
    tpu.vector_store %arg4[%c0_5, %c0_6], %6 {strides = array<i32>} : memref<32x32xf32, #tpu.memory_space<vmem>>, vector<32x32xf32>,
    return
  }
  func.func @transform_0(%arg0: i32) -> (i32, i32) {
    %c0_i32 = arith.constant 0 : i32
    %c0_i32_0 = arith.constant 0 : i32
    return %arg0, %c0_i32 : i32, i32
  }
  func.func @transform_1(%arg0: i32) -> (i32, i32) {
    %c0_i32 = arith.constant 0 : i32
    %c0_i32_0 = arith.constant 0 : i32
    %c0_i32_1 = arith.constant 0 : i32
    return %c0_i32, %c0_i32_0 : i32, i32
  }
  func.func @transform_2(%arg0: i32) -> (i32, i32) {
    %c0_i32 = arith.constant 0 : i32
    %c0_i32_0 = arith.constant 0 : i32
    %c0_i32_1 = arith.constant 0 : i32
    return %c0_i32, %c0_i32_0 : i32, i32
  }
  func.func @transform_3(%arg0: i32) -> (i32, i32) {
    %c0_i32 = arith.constant 0 : i32
    %c0_i32_0 = arith.constant 0 : i32
    return %arg0, %c0_i32 : i32, i32
  }
}

module attributes {stable_mosaic.version = 11 : i64} {
  func.func @_bn_apply_kernel(%arg0: i32, %arg1: memref<8x64xf32, #tpu.memory_space<vmem>>, %arg2: memref<1x64xf32, #tpu.memory_space<vmem>>, %arg3: memref<1x64xf32, #tpu.memory_space<vmem>>, %arg4: memref<8x64xf32, #tpu.memory_space<vmem>>) attributes {dimension_semantics = [#tpu.dimension_semantics<parallel>], iteration_bounds = array<i64: 1>, scalar_prefetch = 0 : i64, scratch_operands = 0 : i64, tpu.core_type = #tpu.core_type<tc>, window_params = [{transform_indices = @transform_0, window_bounds = array<i64: 8, 64>}, {pipeline_mode = #tpu.pipeline_mode<synchronous>, transform_indices = @transform_1, window_bounds = array<i64: 1, 64>}, {pipeline_mode = #tpu.pipeline_mode<synchronous>, transform_indices = @transform_2, window_bounds = array<i64: 1, 64>}, {transform_indices = @transform_3, window_bounds = array<i64: 8, 64>}]} {
    %c0 = arith.constant 0 : index
    %c0_0 = arith.constant 0 : index
    %0 = vector.load %arg1[%c0, %c0_0] : memref<8x64xf32, #tpu.memory_space<vmem>>, vector<8x64xf32>
    %c0_1 = arith.constant 0 : index
    %c0_2 = arith.constant 0 : index
    %1 = vector.load %arg2[%c0_1, %c0_2] : memref<1x64xf32, #tpu.memory_space<vmem>>, vector<1x64xf32>
    %2 = vector.broadcast %1 : vector<1x64xf32> to vector<8x64xf32>
    %3 = arith.mulf %0, %2 : vector<8x64xf32>
    %c0_3 = arith.constant 0 : index
    %c0_4 = arith.constant 0 : index
    %4 = vector.load %arg3[%c0_3, %c0_4] : memref<1x64xf32, #tpu.memory_space<vmem>>, vector<1x64xf32>
    %5 = vector.broadcast %4 : vector<1x64xf32> to vector<8x64xf32>
    %6 = arith.addf %3, %5 : vector<8x64xf32>
    %c0_5 = arith.constant 0 : index
    %c0_6 = arith.constant 0 : index
    %7 = vector.load %arg4[%c0_5, %c0_6] : memref<8x64xf32, #tpu.memory_space<vmem>>, vector<8x64xf32>
    tpu.vector_store %arg4[%c0_5, %c0_6], %6 {strides = array<i32>} : memref<8x64xf32, #tpu.memory_space<vmem>>, vector<8x64xf32>,
    return
  }
  func.func @transform_0(%arg0: i32) -> (i32, i32) {
    %c0_i32 = arith.constant 0 : i32
    %c0_i32_0 = arith.constant 0 : i32
    return %arg0, %c0_i32 : i32, i32
  }
  func.func @transform_1(%arg0: i32) -> (i32, i32) {
    %c0_i32 = arith.constant 0 : i32
    %c0_i32_0 = arith.constant 0 : i32
    %c0_i32_1 = arith.constant 0 : i32
    return %c0_i32, %c0_i32_0 : i32, i32
  }
  func.func @transform_2(%arg0: i32) -> (i32, i32) {
    %c0_i32 = arith.constant 0 : i32
    %c0_i32_0 = arith.constant 0 : i32
    %c0_i32_1 = arith.constant 0 : i32
    return %c0_i32, %c0_i32_0 : i32, i32
  }
  func.func @transform_3(%arg0: i32) -> (i32, i32) {
    %c0_i32 = arith.constant 0 : i32
    %c0_i32_0 = arith.constant 0 : i32
    return %arg0, %c0_i32 : i32, i32
  }
}

module attributes {stable_mosaic.version = 11 : i64} {
  func.func @_bn_stats_kernel(%arg0: i32, %arg1: memref<8x64xf32, #tpu.memory_space<vmem>>, %arg2: memref<1x64xf32, #tpu.memory_space<vmem>>, %arg3: memref<1x64xf32, #tpu.memory_space<vmem>>) attributes {dimension_semantics = [#tpu.dimension_semantics<arbitrary>], iteration_bounds = array<i64: 1>, scalar_prefetch = 0 : i64, scratch_operands = 0 : i64, tpu.core_type = #tpu.core_type<tc>, window_params = [{transform_indices = @transform_0, window_bounds = array<i64: 8, 64>}, {pipeline_mode = #tpu.pipeline_mode<synchronous>, transform_indices = @transform_1, window_bounds = array<i64: 1, 64>}, {pipeline_mode = #tpu.pipeline_mode<synchronous>, transform_indices = @transform_2, window_bounds = array<i64: 1, 64>}]} {
    %c0 = arith.constant 0 : index
    %c0_0 = arith.constant 0 : index
    %0 = vector.load %arg1[%c0, %c0_0] : memref<8x64xf32, #tpu.memory_space<vmem>>, vector<8x64xf32>
    %c0_i32 = arith.constant 0 : i32
    %1 = arith.cmpi eq, %arg0, %c0_i32 : i32
    %2 = arith.extui %1 : i1 to i32
    %c0_i32_1 = arith.constant 0 : i32
    %3 = arith.cmpi ne, %2, %c0_i32_1 : i32
    scf.if %3 {
      %cst_11 = arith.constant 0.000000e+00 : f32
      %15 = vector.broadcast %cst_11 : f32 to vector<1x64xf32>
      %c0_12 = arith.constant 0 : index
      %c0_13 = arith.constant 0 : index
      %16 = vector.load %arg2[%c0_12, %c0_13] : memref<1x64xf32, #tpu.memory_space<vmem>>, vector<1x64xf32>
      tpu.vector_store %arg2[%c0_12, %c0_13], %15 {strides = array<i32>} : memref<1x64xf32, #tpu.memory_space<vmem>>, vector<1x64xf32>,
      %cst_14 = arith.constant 0.000000e+00 : f32
      %17 = vector.broadcast %cst_14 : f32 to vector<1x64xf32>
      %c0_15 = arith.constant 0 : index
      %c0_16 = arith.constant 0 : index
      %18 = vector.load %arg3[%c0_15, %c0_16] : memref<1x64xf32, #tpu.memory_space<vmem>>, vector<1x64xf32>
      tpu.vector_store %arg3[%c0_15, %c0_16], %17 {strides = array<i32>} : memref<1x64xf32, #tpu.memory_space<vmem>>, vector<1x64xf32>,
    } else {
    }
    %c0_2 = arith.constant 0 : index
    %c0_3 = arith.constant 0 : index
    %4 = vector.load %arg2[%c0_2, %c0_3] : memref<1x64xf32, #tpu.memory_space<vmem>>, vector<1x64xf32>
    %cst = arith.constant dense<0.000000e+00> : vector<64xf32>
    %5 = vector.multi_reduction <add>, %0, %cst [0] : vector<8x64xf32> to vector<64xf32>
    %6 = vector.shape_cast %5 : vector<64xf32> to vector<1x64xf32>
    %7 = arith.addf %4, %6 : vector<1x64xf32>
    %c0_4 = arith.constant 0 : index
    %c0_5 = arith.constant 0 : index
    %8 = vector.load %arg2[%c0_4, %c0_5] : memref<1x64xf32, #tpu.memory_space<vmem>>, vector<1x64xf32>
    tpu.vector_store %arg2[%c0_4, %c0_5], %7 {strides = array<i32>} : memref<1x64xf32, #tpu.memory_space<vmem>>, vector<1x64xf32>,
    %c0_6 = arith.constant 0 : index
    %c0_7 = arith.constant 0 : index
    %9 = vector.load %arg3[%c0_6, %c0_7] : memref<1x64xf32, #tpu.memory_space<vmem>>, vector<1x64xf32>
    %10 = arith.mulf %0, %0 : vector<8x64xf32>
    %cst_8 = arith.constant dense<0.000000e+00> : vector<64xf32>
    %11 = vector.multi_reduction <add>, %10, %cst_8 [0] : vector<8x64xf32> to vector<64xf32>
    %12 = vector.shape_cast %11 : vector<64xf32> to vector<1x64xf32>
    %13 = arith.addf %9, %12 : vector<1x64xf32>
    %c0_9 = arith.constant 0 : index
    %c0_10 = arith.constant 0 : index
    %14 = vector.load %arg3[%c0_9, %c0_10] : memref<1x64xf32, #tpu.memory_space<vmem>>, vector<1x64xf32>
    tpu.vector_store %arg3[%c0_9, %c0_10], %13 {strides = array<i32>} : memref<1x64xf32, #tpu.memory_space<vmem>>, vector<1x64xf32>,
    return
  }
  func.func @transform_0(%arg0: i32) -> (i32, i32) {
    %c0_i32 = arith.constant 0 : i32
    %c0_i32_0 = arith.constant 0 : i32
    return %arg0, %c0_i32 : i32, i32
  }
  func.func @transform_1(%arg0: i32) -> (i32, i32) {
    %c0_i32 = arith.constant 0 : i32
    %c0_i32_0 = arith.constant 0 : i32
    %c0_i32_1 = arith.constant 0 : i32
    return %c0_i32, %c0_i32_0 : i32, i32
  }
  func.func @transform_2(%arg0: i32) -> (i32, i32) {
    %c0_i32 = arith.constant 0 : i32
    %c0_i32_0 = arith.constant 0 : i32
    %c0_i32_1 = arith.constant 0 : i32
    return %c0_i32, %c0_i32_0 : i32, i32
  }
}

module attributes {stable_mosaic.version = 11 : i64} {
  func.func @kernel(%arg0: i32, %arg1: memref<16x512xbf16, #tpu.memory_space<vmem>>, %arg2: memref<512x128xbf16, #tpu.memory_space<vmem>>, %arg3: memref<1x128xf32, #tpu.memory_space<vmem>>, %arg4: memref<16x128xf32, #tpu.memory_space<vmem>>) attributes {dimension_semantics = [#tpu.dimension_semantics<parallel>], iteration_bounds = array<i64: 1>, scalar_prefetch = 0 : i64, scratch_operands = 0 : i64, tpu.core_type = #tpu.core_type<tc>, window_params = [{transform_indices = @transform_0, window_bounds = array<i64: 16, 512>}, {pipeline_mode = #tpu.pipeline_mode<synchronous>, transform_indices = @transform_1, window_bounds = array<i64: 512, 128>}, {pipeline_mode = #tpu.pipeline_mode<synchronous>, transform_indices = @transform_2, window_bounds = array<i64: 1, 128>}, {transform_indices = @transform_3, window_bounds = array<i64: 16, 128>}]} {
    %c0 = arith.constant 0 : index
    %c0_0 = arith.constant 0 : index
    %0 = vector.load %arg1[%c0, %c0_0] : memref<16x512xbf16, #tpu.memory_space<vmem>>, vector<16x512xbf16>
    %1 = arith.extf %0 : vector<16x512xbf16> to vector<16x512xf32>
    %cst = arith.constant 0.000000e+00 : f32
    %2 = vector.broadcast %cst : f32 to vector<16x512xf32>
    %3 = arith.cmpf oge, %1, %2 : vector<16x512xf32>
    %cst_1 = arith.constant 2.000000e-01 : f32
    %4 = vector.broadcast %cst_1 : f32 to vector<16x512xf32>
    %5 = arith.mulf %4, %1 : vector<16x512xf32>
    %6 = arith.select %3, %1, %5 : vector<16x512xi1>, vector<16x512xf32>
    %7 = arith.truncf %6 : vector<16x512xf32> to vector<16x512xbf16>
    %c0_2 = arith.constant 0 : index
    %c0_3 = arith.constant 0 : index
    %8 = vector.load %arg2[%c0_2, %c0_3] : memref<512x128xbf16, #tpu.memory_space<vmem>>, vector<512x128xbf16>
    %cst_4 = arith.constant dense<0.000000e+00> : vector<16x128xf32>
    %9 = tpu.matmul %7, %8, %cst_4 {dimension_numbers = #tpu.dot_dimension_numbers<[1], [0], [0], [1], [0, 0, 1, 1], [], []>} : vector<16x512xbf16>, vector<512x128xbf16>, vector<16x128xf32> -> vector<16x128xf32>
    %c0_5 = arith.constant 0 : index
    %c0_6 = arith.constant 0 : index
    %10 = vector.load %arg3[%c0_5, %c0_6] : memref<1x128xf32, #tpu.memory_space<vmem>>, vector<1x128xf32>
    %11 = vector.broadcast %10 : vector<1x128xf32> to vector<16x128xf32>
    %12 = arith.addf %9, %11 : vector<16x128xf32>
    %c0_7 = arith.constant 0 : index
    %c0_8 = arith.constant 0 : index
    %13 = vector.load %arg4[%c0_7, %c0_8] : memref<16x128xf32, #tpu.memory_space<vmem>>, vector<16x128xf32>
    tpu.vector_store %arg4[%c0_7, %c0_8], %12 {strides = array<i32>} : memref<16x128xf32, #tpu.memory_space<vmem>>, vector<16x128xf32>,
    return
  }
  func.func @transform_0(%arg0: i32) -> (i32, i32) {
    %c0_i32 = arith.constant 0 : i32
    %c0_i32_0 = arith.constant 0 : i32
    return %arg0, %c0_i32 : i32, i32
  }
  func.func @transform_1(%arg0: i32) -> (i32, i32) {
    %c0_i32 = arith.constant 0 : i32
    %c0_i32_0 = arith.constant 0 : i32
    %c0_i32_1 = arith.constant 0 : i32
    return %c0_i32, %c0_i32_0 : i32, i32
  }
  func.func @transform_2(%arg0: i32) -> (i32, i32) {
    %c0_i32 = arith.constant 0 : i32
    %c0_i32_0 = arith.constant 0 : i32
    %c0_i32_1 = arith.constant 0 : i32
    return %c0_i32, %c0_i32_0 : i32, i32
  }
  func.func @transform_3(%arg0: i32) -> (i32, i32) {
    %c0_i32 = arith.constant 0 : i32
    %c0_i32_0 = arith.constant 0 : i32
    return %arg0, %c0_i32 : i32, i32
  }
}

module attributes {stable_mosaic.version = 11 : i64} {
  func.func @kernel(%arg0: i32, %arg1: memref<16x1024xbf16, #tpu.memory_space<vmem>>, %arg2: memref<1024x128xbf16, #tpu.memory_space<vmem>>, %arg3: memref<1x128xf32, #tpu.memory_space<vmem>>, %arg4: memref<16x128xf32, #tpu.memory_space<vmem>>) attributes {dimension_semantics = [#tpu.dimension_semantics<parallel>], iteration_bounds = array<i64: 1>, scalar_prefetch = 0 : i64, scratch_operands = 0 : i64, tpu.core_type = #tpu.core_type<tc>, window_params = [{transform_indices = @transform_0, window_bounds = array<i64: 16, 1024>}, {pipeline_mode = #tpu.pipeline_mode<synchronous>, transform_indices = @transform_1, window_bounds = array<i64: 1024, 128>}, {pipeline_mode = #tpu.pipeline_mode<synchronous>, transform_indices = @transform_2, window_bounds = array<i64: 1, 128>}, {transform_indices = @transform_3, window_bounds = array<i64: 16, 128>}]} {
    %c0 = arith.constant 0 : index
    %c0_0 = arith.constant 0 : index
    %0 = vector.load %arg1[%c0, %c0_0] : memref<16x1024xbf16, #tpu.memory_space<vmem>>, vector<16x1024xbf16>
    %1 = arith.extf %0 : vector<16x1024xbf16> to vector<16x1024xf32>
    %cst = arith.constant 0.000000e+00 : f32
    %2 = vector.broadcast %cst : f32 to vector<16x1024xf32>
    %3 = arith.cmpf oge, %1, %2 : vector<16x1024xf32>
    %cst_1 = arith.constant 2.000000e-01 : f32
    %4 = vector.broadcast %cst_1 : f32 to vector<16x1024xf32>
    %5 = arith.mulf %4, %1 : vector<16x1024xf32>
    %6 = arith.select %3, %1, %5 : vector<16x1024xi1>, vector<16x1024xf32>
    %7 = arith.truncf %6 : vector<16x1024xf32> to vector<16x1024xbf16>
    %c0_2 = arith.constant 0 : index
    %c0_3 = arith.constant 0 : index
    %8 = vector.load %arg2[%c0_2, %c0_3] : memref<1024x128xbf16, #tpu.memory_space<vmem>>, vector<1024x128xbf16>
    %cst_4 = arith.constant dense<0.000000e+00> : vector<16x128xf32>
    %9 = tpu.matmul %7, %8, %cst_4 {dimension_numbers = #tpu.dot_dimension_numbers<[1], [0], [0], [1], [0, 0, 1, 1], [], []>} : vector<16x1024xbf16>, vector<1024x128xbf16>, vector<16x128xf32> -> vector<16x128xf32>
    %c0_5 = arith.constant 0 : index
    %c0_6 = arith.constant 0 : index
    %10 = vector.load %arg3[%c0_5, %c0_6] : memref<1x128xf32, #tpu.memory_space<vmem>>, vector<1x128xf32>
    %11 = vector.broadcast %10 : vector<1x128xf32> to vector<16x128xf32>
    %12 = arith.addf %9, %11 : vector<16x128xf32>
    %c0_7 = arith.constant 0 : index
    %c0_8 = arith.constant 0 : index
    %13 = vector.load %arg4[%c0_7, %c0_8] : memref<16x128xf32, #tpu.memory_space<vmem>>, vector<16x128xf32>
    tpu.vector_store %arg4[%c0_7, %c0_8], %12 {strides = array<i32>} : memref<16x128xf32, #tpu.memory_space<vmem>>, vector<16x128xf32>,
    return
  }
  func.func @transform_0(%arg0: i32) -> (i32, i32) {
    %c0_i32 = arith.constant 0 : i32
    %c0_i32_0 = arith.constant 0 : i32
    return %arg0, %c0_i32 : i32, i32
  }
  func.func @transform_1(%arg0: i32) -> (i32, i32) {
    %c0_i32 = arith.constant 0 : i32
    %c0_i32_0 = arith.constant 0 : i32
    %c0_i32_1 = arith.constant 0 : i32
    return %c0_i32, %c0_i32_0 : i32, i32
  }
  func.func @transform_2(%arg0: i32) -> (i32, i32) {
    %c0_i32 = arith.constant 0 : i32
    %c0_i32_0 = arith.constant 0 : i32
    %c0_i32_1 = arith.constant 0 : i32
    return %c0_i32, %c0_i32_0 : i32, i32
  }
  func.func @transform_3(%arg0: i32) -> (i32, i32) {
    %c0_i32 = arith.constant 0 : i32
    %c0_i32_0 = arith.constant 0 : i32
    return %arg0, %c0_i32 : i32, i32
  }
}

module attributes {stable_mosaic.version = 11 : i64} {
  func.func @_bn_concat_kernel(%arg0: i32, %arg1: memref<8x64xf32, #tpu.memory_space<vmem>>, %arg2: memref<8x64xf32, #tpu.memory_space<vmem>>, %arg3: memref<1x64xf32, #tpu.memory_space<vmem>>, %arg4: memref<1x64xf32, #tpu.memory_space<vmem>>, %arg5: memref<8x128xf32, #tpu.memory_space<vmem>>) attributes {dimension_semantics = [#tpu.dimension_semantics<parallel>], iteration_bounds = array<i64: 1>, scalar_prefetch = 0 : i64, scratch_operands = 0 : i64, tpu.core_type = #tpu.core_type<tc>, window_params = [{transform_indices = @transform_0, window_bounds = array<i64: 8, 64>}, {transform_indices = @transform_1, window_bounds = array<i64: 8, 64>}, {pipeline_mode = #tpu.pipeline_mode<synchronous>, transform_indices = @transform_2, window_bounds = array<i64: 1, 64>}, {pipeline_mode = #tpu.pipeline_mode<synchronous>, transform_indices = @transform_3, window_bounds = array<i64: 1, 64>}, {transform_indices = @transform_4, window_bounds = array<i64: 8, 128>}]} {
    %c0 = arith.constant 0 : index
    %c0_0 = arith.constant 0 : index
    %0 = vector.load %arg2[%c0, %c0_0] : memref<8x64xf32, #tpu.memory_space<vmem>>, vector<8x64xf32>
    %c0_1 = arith.constant 0 : index
    %c0_2 = arith.constant 0 : index
    %1 = vector.load %arg3[%c0_1, %c0_2] : memref<1x64xf32, #tpu.memory_space<vmem>>, vector<1x64xf32>
    %2 = vector.broadcast %1 : vector<1x64xf32> to vector<8x64xf32>
    %3 = arith.mulf %0, %2 : vector<8x64xf32>
    %c0_3 = arith.constant 0 : index
    %c0_4 = arith.constant 0 : index
    %4 = vector.load %arg4[%c0_3, %c0_4] : memref<1x64xf32, #tpu.memory_space<vmem>>, vector<1x64xf32>
    %5 = vector.broadcast %4 : vector<1x64xf32> to vector<8x64xf32>
    %6 = arith.addf %3, %5 : vector<8x64xf32>
    %c0_5 = arith.constant 0 : index
    %c0_6 = arith.constant 0 : index
    %7 = vector.load %arg1[%c0_5, %c0_6] : memref<8x64xf32, #tpu.memory_space<vmem>>, vector<8x64xf32>
    %8 = tpu.concatenate %7, %6 in 1 : vector<8x64xf32>, vector<8x64xf32> -> vector<8x128xf32>
    %c0_7 = arith.constant 0 : index
    %c0_8 = arith.constant 0 : index
    %9 = vector.load %arg5[%c0_7, %c0_8] : memref<8x128xf32, #tpu.memory_space<vmem>>, vector<8x128xf32>
    tpu.vector_store %arg5[%c0_7, %c0_8], %8 {strides = array<i32>} : memref<8x128xf32, #tpu.memory_space<vmem>>, vector<8x128xf32>,
    return
  }
  func.func @transform_0(%arg0: i32) -> (i32, i32) {
    %c0_i32 = arith.constant 0 : i32
    %c0_i32_0 = arith.constant 0 : i32
    return %arg0, %c0_i32 : i32, i32
  }
  func.func @transform_1(%arg0: i32) -> (i32, i32) {
    %c0_i32 = arith.constant 0 : i32
    %c0_i32_0 = arith.constant 0 : i32
    return %arg0, %c0_i32 : i32, i32
  }
  func.func @transform_2(%arg0: i32) -> (i32, i32) {
    %c0_i32 = arith.constant 0 : i32
    %c0_i32_0 = arith.constant 0 : i32
    %c0_i32_1 = arith.constant 0 : i32
    return %c0_i32, %c0_i32_0 : i32, i32
  }
  func.func @transform_3(%arg0: i32) -> (i32, i32) {
    %c0_i32 = arith.constant 0 : i32
    %c0_i32_0 = arith.constant 0 : i32
    %c0_i32_1 = arith.constant 0 : i32
    return %c0_i32, %c0_i32_0 : i32, i32
  }
  func.func @transform_4(%arg0: i32) -> (i32, i32) {
    %c0_i32 = arith.constant 0 : i32
    %c0_i32_0 = arith.constant 0 : i32
    return %arg0, %c0_i32 : i32, i32
  }
}

module attributes {stable_mosaic.version = 11 : i64} {
  func.func @kernel(%arg0: i32, %arg1: memref<16x576xbf16, #tpu.memory_space<vmem>>, %arg2: memref<576x256xbf16, #tpu.memory_space<vmem>>, %arg3: memref<1x256xf32, #tpu.memory_space<vmem>>, %arg4: memref<16x256xf32, #tpu.memory_space<vmem>>) attributes {dimension_semantics = [#tpu.dimension_semantics<parallel>], iteration_bounds = array<i64: 1>, scalar_prefetch = 0 : i64, scratch_operands = 0 : i64, tpu.core_type = #tpu.core_type<tc>, window_params = [{transform_indices = @transform_0, window_bounds = array<i64: 16, 576>}, {pipeline_mode = #tpu.pipeline_mode<synchronous>, transform_indices = @transform_1, window_bounds = array<i64: 576, 256>}, {pipeline_mode = #tpu.pipeline_mode<synchronous>, transform_indices = @transform_2, window_bounds = array<i64: 1, 256>}, {transform_indices = @transform_3, window_bounds = array<i64: 16, 256>}]} {
    %c0 = arith.constant 0 : index
    %c0_0 = arith.constant 0 : index
    %0 = vector.load %arg1[%c0, %c0_0] : memref<16x576xbf16, #tpu.memory_space<vmem>>, vector<16x576xbf16>
    %1 = arith.extf %0 : vector<16x576xbf16> to vector<16x576xf32>
    %cst = arith.constant 0.000000e+00 : f32
    %2 = vector.broadcast %cst : f32 to vector<16x576xf32>
    %3 = arith.maximumf %1, %2 : vector<16x576xf32>
    %4 = arith.truncf %3 : vector<16x576xf32> to vector<16x576xbf16>
    %c0_1 = arith.constant 0 : index
    %c0_2 = arith.constant 0 : index
    %5 = vector.load %arg2[%c0_1, %c0_2] : memref<576x256xbf16, #tpu.memory_space<vmem>>, vector<576x256xbf16>
    %cst_3 = arith.constant dense<0.000000e+00> : vector<16x256xf32>
    %6 = tpu.matmul %4, %5, %cst_3 {dimension_numbers = #tpu.dot_dimension_numbers<[1], [0], [0], [1], [0, 0, 1, 1], [], []>} : vector<16x576xbf16>, vector<576x256xbf16>, vector<16x256xf32> -> vector<16x256xf32>
    %c0_4 = arith.constant 0 : index
    %c0_5 = arith.constant 0 : index
    %7 = vector.load %arg3[%c0_4, %c0_5] : memref<1x256xf32, #tpu.memory_space<vmem>>, vector<1x256xf32>
    %8 = vector.broadcast %7 : vector<1x256xf32> to vector<16x256xf32>
    %9 = arith.addf %6, %8 : vector<16x256xf32>
    %c0_6 = arith.constant 0 : index
    %c0_7 = arith.constant 0 : index
    %10 = vector.load %arg4[%c0_6, %c0_7] : memref<16x256xf32, #tpu.memory_space<vmem>>, vector<16x256xf32>
    tpu.vector_store %arg4[%c0_6, %c0_7], %9 {strides = array<i32>} : memref<16x256xf32, #tpu.memory_space<vmem>>, vector<16x256xf32>,
    return
  }
  func.func @transform_0(%arg0: i32) -> (i32, i32) {
    %c0_i32 = arith.constant 0 : i32
    %c0_i32_0 = arith.constant 0 : i32
    return %arg0, %c0_i32 : i32, i32
  }
  func.func @transform_1(%arg0: i32) -> (i32, i32) {
    %c0_i32 = arith.constant 0 : i32
    %c0_i32_0 = arith.constant 0 : i32
    %c0_i32_1 = arith.constant 0 : i32
    return %c0_i32, %c0_i32_0 : i32, i32
  }
  func.func @transform_2(%arg0: i32) -> (i32, i32) {
    %c0_i32 = arith.constant 0 : i32
    %c0_i32_0 = arith.constant 0 : i32
    %c0_i32_1 = arith.constant 0 : i32
    return %c0_i32, %c0_i32_0 : i32, i32
  }
  func.func @transform_3(%arg0: i32) -> (i32, i32) {
    %c0_i32 = arith.constant 0 : i32
    %c0_i32_0 = arith.constant 0 : i32
    return %arg0, %c0_i32 : i32, i32
  }
}

module attributes {stable_mosaic.version = 11 : i64} {
  func.func @_bn_concat_kernel(%arg0: i32, %arg1: memref<32x32xf32, #tpu.memory_space<vmem>>, %arg2: memref<32x32xf32, #tpu.memory_space<vmem>>, %arg3: memref<1x32xf32, #tpu.memory_space<vmem>>, %arg4: memref<1x32xf32, #tpu.memory_space<vmem>>, %arg5: memref<32x64xf32, #tpu.memory_space<vmem>>) attributes {dimension_semantics = [#tpu.dimension_semantics<parallel>], iteration_bounds = array<i64: 1>, scalar_prefetch = 0 : i64, scratch_operands = 0 : i64, tpu.core_type = #tpu.core_type<tc>, window_params = [{transform_indices = @transform_0, window_bounds = array<i64: 32, 32>}, {transform_indices = @transform_1, window_bounds = array<i64: 32, 32>}, {pipeline_mode = #tpu.pipeline_mode<synchronous>, transform_indices = @transform_2, window_bounds = array<i64: 1, 32>}, {pipeline_mode = #tpu.pipeline_mode<synchronous>, transform_indices = @transform_3, window_bounds = array<i64: 1, 32>}, {transform_indices = @transform_4, window_bounds = array<i64: 32, 64>}]} {
    %c0 = arith.constant 0 : index
    %c0_0 = arith.constant 0 : index
    %0 = vector.load %arg2[%c0, %c0_0] : memref<32x32xf32, #tpu.memory_space<vmem>>, vector<32x32xf32>
    %c0_1 = arith.constant 0 : index
    %c0_2 = arith.constant 0 : index
    %1 = vector.load %arg3[%c0_1, %c0_2] : memref<1x32xf32, #tpu.memory_space<vmem>>, vector<1x32xf32>
    %2 = vector.broadcast %1 : vector<1x32xf32> to vector<32x32xf32>
    %3 = arith.mulf %0, %2 : vector<32x32xf32>
    %c0_3 = arith.constant 0 : index
    %c0_4 = arith.constant 0 : index
    %4 = vector.load %arg4[%c0_3, %c0_4] : memref<1x32xf32, #tpu.memory_space<vmem>>, vector<1x32xf32>
    %5 = vector.broadcast %4 : vector<1x32xf32> to vector<32x32xf32>
    %6 = arith.addf %3, %5 : vector<32x32xf32>
    %c0_5 = arith.constant 0 : index
    %c0_6 = arith.constant 0 : index
    %7 = vector.load %arg1[%c0_5, %c0_6] : memref<32x32xf32, #tpu.memory_space<vmem>>, vector<32x32xf32>
    %8 = tpu.concatenate %7, %6 in 1 : vector<32x32xf32>, vector<32x32xf32> -> vector<32x64xf32>
    %c0_7 = arith.constant 0 : index
    %c0_8 = arith.constant 0 : index
    %9 = vector.load %arg5[%c0_7, %c0_8] : memref<32x64xf32, #tpu.memory_space<vmem>>, vector<32x64xf32>
    tpu.vector_store %arg5[%c0_7, %c0_8], %8 {strides = array<i32>} : memref<32x64xf32, #tpu.memory_space<vmem>>, vector<32x64xf32>,
    return
  }
  func.func @transform_0(%arg0: i32) -> (i32, i32) {
    %c0_i32 = arith.constant 0 : i32
    %c0_i32_0 = arith.constant 0 : i32
    return %arg0, %c0_i32 : i32, i32
  }
  func.func @transform_1(%arg0: i32) -> (i32, i32) {
    %c0_i32 = arith.constant 0 : i32
    %c0_i32_0 = arith.constant 0 : i32
    return %arg0, %c0_i32 : i32, i32
  }
  func.func @transform_2(%arg0: i32) -> (i32, i32) {
    %c0_i32 = arith.constant 0 : i32
    %c0_i32_0 = arith.constant 0 : i32
    %c0_i32_1 = arith.constant 0 : i32
    return %c0_i32, %c0_i32_0 : i32, i32
  }
  func.func @transform_3(%arg0: i32) -> (i32, i32) {
    %c0_i32 = arith.constant 0 : i32
    %c0_i32_0 = arith.constant 0 : i32
    %c0_i32_1 = arith.constant 0 : i32
    return %c0_i32, %c0_i32_0 : i32, i32
  }
  func.func @transform_4(%arg0: i32) -> (i32, i32) {
    %c0_i32 = arith.constant 0 : i32
    %c0_i32_0 = arith.constant 0 : i32
    return %arg0, %c0_i32 : i32, i32
  }
}

module attributes {stable_mosaic.version = 11 : i64} {
  func.func @kernel(%arg0: i32, %arg1: memref<16x1152xbf16, #tpu.memory_space<vmem>>, %arg2: memref<1152x128xbf16, #tpu.memory_space<vmem>>, %arg3: memref<1x128xf32, #tpu.memory_space<vmem>>, %arg4: memref<16x128xf32, #tpu.memory_space<vmem>>) attributes {dimension_semantics = [#tpu.dimension_semantics<parallel>], iteration_bounds = array<i64: 1>, scalar_prefetch = 0 : i64, scratch_operands = 0 : i64, tpu.core_type = #tpu.core_type<tc>, window_params = [{transform_indices = @transform_0, window_bounds = array<i64: 16, 1152>}, {pipeline_mode = #tpu.pipeline_mode<synchronous>, transform_indices = @transform_1, window_bounds = array<i64: 1152, 128>}, {pipeline_mode = #tpu.pipeline_mode<synchronous>, transform_indices = @transform_2, window_bounds = array<i64: 1, 128>}, {transform_indices = @transform_3, window_bounds = array<i64: 16, 128>}]} {
    %c0 = arith.constant 0 : index
    %c0_0 = arith.constant 0 : index
    %0 = vector.load %arg1[%c0, %c0_0] : memref<16x1152xbf16, #tpu.memory_space<vmem>>, vector<16x1152xbf16>
    %1 = arith.extf %0 : vector<16x1152xbf16> to vector<16x1152xf32>
    %cst = arith.constant 0.000000e+00 : f32
    %2 = vector.broadcast %cst : f32 to vector<16x1152xf32>
    %3 = arith.maximumf %1, %2 : vector<16x1152xf32>
    %4 = arith.truncf %3 : vector<16x1152xf32> to vector<16x1152xbf16>
    %c0_1 = arith.constant 0 : index
    %c0_2 = arith.constant 0 : index
    %5 = vector.load %arg2[%c0_1, %c0_2] : memref<1152x128xbf16, #tpu.memory_space<vmem>>, vector<1152x128xbf16>
    %cst_3 = arith.constant dense<0.000000e+00> : vector<16x128xf32>
    %6 = tpu.matmul %4, %5, %cst_3 {dimension_numbers = #tpu.dot_dimension_numbers<[1], [0], [0], [1], [0, 0, 1, 1], [], []>} : vector<16x1152xbf16>, vector<1152x128xbf16>, vector<16x128xf32> -> vector<16x128xf32>
    %c0_4 = arith.constant 0 : index
    %c0_5 = arith.constant 0 : index
    %7 = vector.load %arg3[%c0_4, %c0_5] : memref<1x128xf32, #tpu.memory_space<vmem>>, vector<1x128xf32>
    %8 = vector.broadcast %7 : vector<1x128xf32> to vector<16x128xf32>
    %9 = arith.addf %6, %8 : vector<16x128xf32>
    %c0_6 = arith.constant 0 : index
    %c0_7 = arith.constant 0 : index
    %10 = vector.load %arg4[%c0_6, %c0_7] : memref<16x128xf32, #tpu.memory_space<vmem>>, vector<16x128xf32>
    tpu.vector_store %arg4[%c0_6, %c0_7], %9 {strides = array<i32>} : memref<16x128xf32, #tpu.memory_space<vmem>>, vector<16x128xf32>,
    return
  }
  func.func @transform_0(%arg0: i32) -> (i32, i32) {
    %c0_i32 = arith.constant 0 : i32
    %c0_i32_0 = arith.constant 0 : i32
    return %arg0, %c0_i32 : i32, i32
  }
  func.func @transform_1(%arg0: i32) -> (i32, i32) {
    %c0_i32 = arith.constant 0 : i32
    %c0_i32_0 = arith.constant 0 : i32
    %c0_i32_1 = arith.constant 0 : i32
    return %c0_i32, %c0_i32_0 : i32, i32
  }
  func.func @transform_2(%arg0: i32) -> (i32, i32) {
    %c0_i32 = arith.constant 0 : i32
    %c0_i32_0 = arith.constant 0 : i32
    %c0_i32_1 = arith.constant 0 : i32
    return %c0_i32, %c0_i32_0 : i32, i32
  }
  func.func @transform_3(%arg0: i32) -> (i32, i32) {
    %c0_i32 = arith.constant 0 : i32
    %c0_i32_0 = arith.constant 0 : i32
    return %arg0, %c0_i32 : i32, i32
  }
}

module attributes {stable_mosaic.version = 11 : i64} {
  func.func @kernel(%arg0: i32, %arg1: memref<32x576xbf16, #tpu.memory_space<vmem>>, %arg2: memref<576x128xbf16, #tpu.memory_space<vmem>>, %arg3: memref<1x128xf32, #tpu.memory_space<vmem>>, %arg4: memref<32x128xf32, #tpu.memory_space<vmem>>) attributes {dimension_semantics = [#tpu.dimension_semantics<parallel>], iteration_bounds = array<i64: 1>, scalar_prefetch = 0 : i64, scratch_operands = 0 : i64, tpu.core_type = #tpu.core_type<tc>, window_params = [{transform_indices = @transform_0, window_bounds = array<i64: 32, 576>}, {pipeline_mode = #tpu.pipeline_mode<synchronous>, transform_indices = @transform_1, window_bounds = array<i64: 576, 128>}, {pipeline_mode = #tpu.pipeline_mode<synchronous>, transform_indices = @transform_2, window_bounds = array<i64: 1, 128>}, {transform_indices = @transform_3, window_bounds = array<i64: 32, 128>}]} {
    %c0 = arith.constant 0 : index
    %c0_0 = arith.constant 0 : index
    %0 = vector.load %arg1[%c0, %c0_0] : memref<32x576xbf16, #tpu.memory_space<vmem>>, vector<32x576xbf16>
    %1 = arith.extf %0 : vector<32x576xbf16> to vector<32x576xf32>
    %cst = arith.constant 0.000000e+00 : f32
    %2 = vector.broadcast %cst : f32 to vector<32x576xf32>
    %3 = arith.maximumf %1, %2 : vector<32x576xf32>
    %4 = arith.truncf %3 : vector<32x576xf32> to vector<32x576xbf16>
    %c0_1 = arith.constant 0 : index
    %c0_2 = arith.constant 0 : index
    %5 = vector.load %arg2[%c0_1, %c0_2] : memref<576x128xbf16, #tpu.memory_space<vmem>>, vector<576x128xbf16>
    %cst_3 = arith.constant dense<0.000000e+00> : vector<32x128xf32>
    %6 = tpu.matmul %4, %5, %cst_3 {dimension_numbers = #tpu.dot_dimension_numbers<[1], [0], [0], [1], [0, 0, 1, 1], [], []>} : vector<32x576xbf16>, vector<576x128xbf16>, vector<32x128xf32> -> vector<32x128xf32>
    %c0_4 = arith.constant 0 : index
    %c0_5 = arith.constant 0 : index
    %7 = vector.load %arg3[%c0_4, %c0_5] : memref<1x128xf32, #tpu.memory_space<vmem>>, vector<1x128xf32>
    %8 = vector.broadcast %7 : vector<1x128xf32> to vector<32x128xf32>
    %9 = arith.addf %6, %8 : vector<32x128xf32>
    %c0_6 = arith.constant 0 : index
    %c0_7 = arith.constant 0 : index
    %10 = vector.load %arg4[%c0_6, %c0_7] : memref<32x128xf32, #tpu.memory_space<vmem>>, vector<32x128xf32>
    tpu.vector_store %arg4[%c0_6, %c0_7], %9 {strides = array<i32>} : memref<32x128xf32, #tpu.memory_space<vmem>>, vector<32x128xf32>,
    return
  }
  func.func @transform_0(%arg0: i32) -> (i32, i32) {
    %c0_i32 = arith.constant 0 : i32
    %c0_i32_0 = arith.constant 0 : i32
    return %arg0, %c0_i32 : i32, i32
  }
  func.func @transform_1(%arg0: i32) -> (i32, i32) {
    %c0_i32 = arith.constant 0 : i32
    %c0_i32_0 = arith.constant 0 : i32
    %c0_i32_1 = arith.constant 0 : i32
    return %c0_i32, %c0_i32_0 : i32, i32
  }
  func.func @transform_2(%arg0: i32) -> (i32, i32) {
    %c0_i32 = arith.constant 0 : i32
    %c0_i32_0 = arith.constant 0 : i32
    %c0_i32_1 = arith.constant 0 : i32
    return %c0_i32, %c0_i32_0 : i32, i32
  }
  func.func @transform_3(%arg0: i32) -> (i32, i32) {
    %c0_i32 = arith.constant 0 : i32
    %c0_i32_0 = arith.constant 0 : i32
    return %arg0, %c0_i32 : i32, i32
  }
}

module attributes {stable_mosaic.version = 11 : i64} {
  func.func @_bn_concat_kernel(%arg0: i32, %arg1: memref<128x16xf32, #tpu.memory_space<vmem>>, %arg2: memref<128x16xf32, #tpu.memory_space<vmem>>, %arg3: memref<1x16xf32, #tpu.memory_space<vmem>>, %arg4: memref<1x16xf32, #tpu.memory_space<vmem>>, %arg5: memref<128x32xf32, #tpu.memory_space<vmem>>) attributes {dimension_semantics = [#tpu.dimension_semantics<parallel>], iteration_bounds = array<i64: 1>, scalar_prefetch = 0 : i64, scratch_operands = 0 : i64, tpu.core_type = #tpu.core_type<tc>, window_params = [{transform_indices = @transform_0, window_bounds = array<i64: 128, 16>}, {transform_indices = @transform_1, window_bounds = array<i64: 128, 16>}, {pipeline_mode = #tpu.pipeline_mode<synchronous>, transform_indices = @transform_2, window_bounds = array<i64: 1, 16>}, {pipeline_mode = #tpu.pipeline_mode<synchronous>, transform_indices = @transform_3, window_bounds = array<i64: 1, 16>}, {transform_indices = @transform_4, window_bounds = array<i64: 128, 32>}]} {
    %c0 = arith.constant 0 : index
    %c0_0 = arith.constant 0 : index
    %0 = vector.load %arg2[%c0, %c0_0] : memref<128x16xf32, #tpu.memory_space<vmem>>, vector<128x16xf32>
    %c0_1 = arith.constant 0 : index
    %c0_2 = arith.constant 0 : index
    %1 = vector.load %arg3[%c0_1, %c0_2] : memref<1x16xf32, #tpu.memory_space<vmem>>, vector<1x16xf32>
    %2 = vector.broadcast %1 : vector<1x16xf32> to vector<128x16xf32>
    %3 = arith.mulf %0, %2 : vector<128x16xf32>
    %c0_3 = arith.constant 0 : index
    %c0_4 = arith.constant 0 : index
    %4 = vector.load %arg4[%c0_3, %c0_4] : memref<1x16xf32, #tpu.memory_space<vmem>>, vector<1x16xf32>
    %5 = vector.broadcast %4 : vector<1x16xf32> to vector<128x16xf32>
    %6 = arith.addf %3, %5 : vector<128x16xf32>
    %c0_5 = arith.constant 0 : index
    %c0_6 = arith.constant 0 : index
    %7 = vector.load %arg1[%c0_5, %c0_6] : memref<128x16xf32, #tpu.memory_space<vmem>>, vector<128x16xf32>
    %8 = tpu.concatenate %7, %6 in 1 : vector<128x16xf32>, vector<128x16xf32> -> vector<128x32xf32>
    %c0_7 = arith.constant 0 : index
    %c0_8 = arith.constant 0 : index
    %9 = vector.load %arg5[%c0_7, %c0_8] : memref<128x32xf32, #tpu.memory_space<vmem>>, vector<128x32xf32>
    tpu.vector_store %arg5[%c0_7, %c0_8], %8 {strides = array<i32>} : memref<128x32xf32, #tpu.memory_space<vmem>>, vector<128x32xf32>,
    return
  }
  func.func @transform_0(%arg0: i32) -> (i32, i32) {
    %c0_i32 = arith.constant 0 : i32
    %c0_i32_0 = arith.constant 0 : i32
    return %arg0, %c0_i32 : i32, i32
  }
  func.func @transform_1(%arg0: i32) -> (i32, i32) {
    %c0_i32 = arith.constant 0 : i32
    %c0_i32_0 = arith.constant 0 : i32
    return %arg0, %c0_i32 : i32, i32
  }
  func.func @transform_2(%arg0: i32) -> (i32, i32) {
    %c0_i32 = arith.constant 0 : i32
    %c0_i32_0 = arith.constant 0 : i32
    %c0_i32_1 = arith.constant 0 : i32
    return %c0_i32, %c0_i32_0 : i32, i32
  }
  func.func @transform_3(%arg0: i32) -> (i32, i32) {
    %c0_i32 = arith.constant 0 : i32
    %c0_i32_0 = arith.constant 0 : i32
    %c0_i32_1 = arith.constant 0 : i32
    return %c0_i32, %c0_i32_0 : i32, i32
  }
  func.func @transform_4(%arg0: i32) -> (i32, i32) {
    %c0_i32 = arith.constant 0 : i32
    %c0_i32_0 = arith.constant 0 : i32
    return %arg0, %c0_i32 : i32, i32
  }
}

module attributes {stable_mosaic.version = 11 : i64} {
  func.func @kernel(%arg0: i32, %arg1: memref<128x288xbf16, #tpu.memory_space<vmem>>, %arg2: memref<288x128xbf16, #tpu.memory_space<vmem>>, %arg3: memref<1x128xf32, #tpu.memory_space<vmem>>, %arg4: memref<128x128xf32, #tpu.memory_space<vmem>>) attributes {dimension_semantics = [#tpu.dimension_semantics<parallel>], iteration_bounds = array<i64: 1>, scalar_prefetch = 0 : i64, scratch_operands = 0 : i64, tpu.core_type = #tpu.core_type<tc>, window_params = [{transform_indices = @transform_0, window_bounds = array<i64: 128, 288>}, {pipeline_mode = #tpu.pipeline_mode<synchronous>, transform_indices = @transform_1, window_bounds = array<i64: 288, 128>}, {pipeline_mode = #tpu.pipeline_mode<synchronous>, transform_indices = @transform_2, window_bounds = array<i64: 1, 128>}, {transform_indices = @transform_3, window_bounds = array<i64: 128, 128>}]} {
    %c0 = arith.constant 0 : index
    %c0_0 = arith.constant 0 : index
    %0 = vector.load %arg1[%c0, %c0_0] : memref<128x288xbf16, #tpu.memory_space<vmem>>, vector<128x288xbf16>
    %1 = arith.extf %0 : vector<128x288xbf16> to vector<128x288xf32>
    %cst = arith.constant 0.000000e+00 : f32
    %2 = vector.broadcast %cst : f32 to vector<128x288xf32>
    %3 = arith.maximumf %1, %2 : vector<128x288xf32>
    %4 = arith.truncf %3 : vector<128x288xf32> to vector<128x288xbf16>
    %c0_1 = arith.constant 0 : index
    %c0_2 = arith.constant 0 : index
    %5 = vector.load %arg2[%c0_1, %c0_2] : memref<288x128xbf16, #tpu.memory_space<vmem>>, vector<288x128xbf16>
    %cst_3 = arith.constant dense<0.000000e+00> : vector<128x128xf32>
    %6 = tpu.matmul %4, %5, %cst_3 {dimension_numbers = #tpu.dot_dimension_numbers<[1], [0], [0], [1], [0, 0, 1, 1], [], []>} : vector<128x288xbf16>, vector<288x128xbf16>, vector<128x128xf32> -> vector<128x128xf32>
    %c0_4 = arith.constant 0 : index
    %c0_5 = arith.constant 0 : index
    %7 = vector.load %arg3[%c0_4, %c0_5] : memref<1x128xf32, #tpu.memory_space<vmem>>, vector<1x128xf32>
    %8 = vector.broadcast %7 : vector<1x128xf32> to vector<128x128xf32>
    %9 = arith.addf %6, %8 : vector<128x128xf32>
    %c0_6 = arith.constant 0 : index
    %c0_7 = arith.constant 0 : index
    %10 = vector.load %arg4[%c0_6, %c0_7] : memref<128x128xf32, #tpu.memory_space<vmem>>, vector<128x128xf32>
    tpu.vector_store %arg4[%c0_6, %c0_7], %9 {strides = array<i32>} : memref<128x128xf32, #tpu.memory_space<vmem>>, vector<128x128xf32>,
    return
  }
  func.func @transform_0(%arg0: i32) -> (i32, i32) {
    %c0_i32 = arith.constant 0 : i32
    %c0_i32_0 = arith.constant 0 : i32
    return %arg0, %c0_i32 : i32, i32
  }
  func.func @transform_1(%arg0: i32) -> (i32, i32) {
    %c0_i32 = arith.constant 0 : i32
    %c0_i32_0 = arith.constant 0 : i32
    %c0_i32_1 = arith.constant 0 : i32
    return %c0_i32, %c0_i32_0 : i32, i32
  }
  func.func @transform_2(%arg0: i32) -> (i32, i32) {
    %c0_i32 = arith.constant 0 : i32
    %c0_i32_0 = arith.constant 0 : i32
    %c0_i32_1 = arith.constant 0 : i32
    return %c0_i32, %c0_i32_0 : i32, i32
  }
  func.func @transform_3(%arg0: i32) -> (i32, i32) {
    %c0_i32 = arith.constant 0 : i32
    %c0_i32_0 = arith.constant 0 : i32
    return %arg0, %c0_i32 : i32, i32
  }
}

module attributes {stable_mosaic.version = 11 : i64} {
  func.func @_bn_stats_kernel(%arg0: i32, %arg1: memref<512x8xf32, #tpu.memory_space<vmem>>, %arg2: memref<1x8xf32, #tpu.memory_space<vmem>>, %arg3: memref<1x8xf32, #tpu.memory_space<vmem>>) attributes {dimension_semantics = [#tpu.dimension_semantics<arbitrary>], iteration_bounds = array<i64: 1>, scalar_prefetch = 0 : i64, scratch_operands = 0 : i64, tpu.core_type = #tpu.core_type<tc>, window_params = [{transform_indices = @transform_0, window_bounds = array<i64: 512, 8>}, {pipeline_mode = #tpu.pipeline_mode<synchronous>, transform_indices = @transform_1, window_bounds = array<i64: 1, 8>}, {pipeline_mode = #tpu.pipeline_mode<synchronous>, transform_indices = @transform_2, window_bounds = array<i64: 1, 8>}]} {
    %c0 = arith.constant 0 : index
    %c0_0 = arith.constant 0 : index
    %0 = vector.load %arg1[%c0, %c0_0] : memref<512x8xf32, #tpu.memory_space<vmem>>, vector<512x8xf32>
    %c0_i32 = arith.constant 0 : i32
    %1 = arith.cmpi eq, %arg0, %c0_i32 : i32
    %2 = arith.extui %1 : i1 to i32
    %c0_i32_1 = arith.constant 0 : i32
    %3 = arith.cmpi ne, %2, %c0_i32_1 : i32
    scf.if %3 {
      %cst_11 = arith.constant 0.000000e+00 : f32
      %15 = vector.broadcast %cst_11 : f32 to vector<1x8xf32>
      %c0_12 = arith.constant 0 : index
      %c0_13 = arith.constant 0 : index
      %16 = vector.load %arg2[%c0_12, %c0_13] : memref<1x8xf32, #tpu.memory_space<vmem>>, vector<1x8xf32>
      tpu.vector_store %arg2[%c0_12, %c0_13], %15 {strides = array<i32>} : memref<1x8xf32, #tpu.memory_space<vmem>>, vector<1x8xf32>,
      %cst_14 = arith.constant 0.000000e+00 : f32
      %17 = vector.broadcast %cst_14 : f32 to vector<1x8xf32>
      %c0_15 = arith.constant 0 : index
      %c0_16 = arith.constant 0 : index
      %18 = vector.load %arg3[%c0_15, %c0_16] : memref<1x8xf32, #tpu.memory_space<vmem>>, vector<1x8xf32>
      tpu.vector_store %arg3[%c0_15, %c0_16], %17 {strides = array<i32>} : memref<1x8xf32, #tpu.memory_space<vmem>>, vector<1x8xf32>,
    } else {
    }
    %c0_2 = arith.constant 0 : index
    %c0_3 = arith.constant 0 : index
    %4 = vector.load %arg2[%c0_2, %c0_3] : memref<1x8xf32, #tpu.memory_space<vmem>>, vector<1x8xf32>
    %cst = arith.constant dense<0.000000e+00> : vector<8xf32>
    %5 = vector.multi_reduction <add>, %0, %cst [0] : vector<512x8xf32> to vector<8xf32>
    %6 = vector.shape_cast %5 : vector<8xf32> to vector<1x8xf32>
    %7 = arith.addf %4, %6 : vector<1x8xf32>
    %c0_4 = arith.constant 0 : index
    %c0_5 = arith.constant 0 : index
    %8 = vector.load %arg2[%c0_4, %c0_5] : memref<1x8xf32, #tpu.memory_space<vmem>>, vector<1x8xf32>
    tpu.vector_store %arg2[%c0_4, %c0_5], %7 {strides = array<i32>} : memref<1x8xf32, #tpu.memory_space<vmem>>, vector<1x8xf32>,
    %c0_6 = arith.constant 0 : index
    %c0_7 = arith.constant 0 : index
    %9 = vector.load %arg3[%c0_6, %c0_7] : memref<1x8xf32, #tpu.memory_space<vmem>>, vector<1x8xf32>
    %10 = arith.mulf %0, %0 : vector<512x8xf32>
    %cst_8 = arith.constant dense<0.000000e+00> : vector<8xf32>
    %11 = vector.multi_reduction <add>, %10, %cst_8 [0] : vector<512x8xf32> to vector<8xf32>
    %12 = vector.shape_cast %11 : vector<8xf32> to vector<1x8xf32>
    %13 = arith.addf %9, %12 : vector<1x8xf32>
    %c0_9 = arith.constant 0 : index
    %c0_10 = arith.constant 0 : index
    %14 = vector.load %arg3[%c0_9, %c0_10] : memref<1x8xf32, #tpu.memory_space<vmem>>, vector<1x8xf32>
    tpu.vector_store %arg3[%c0_9, %c0_10], %13 {strides = array<i32>} : memref<1x8xf32, #tpu.memory_space<vmem>>, vector<1x8xf32>,
    return
  }
  func.func @transform_0(%arg0: i32) -> (i32, i32) {
    %c0_i32 = arith.constant 0 : i32
    %c0_i32_0 = arith.constant 0 : i32
    return %arg0, %c0_i32 : i32, i32
  }
  func.func @transform_1(%arg0: i32) -> (i32, i32) {
    %c0_i32 = arith.constant 0 : i32
    %c0_i32_0 = arith.constant 0 : i32
    %c0_i32_1 = arith.constant 0 : i32
    return %c0_i32, %c0_i32_0 : i32, i32
  }
  func.func @transform_2(%arg0: i32) -> (i32, i32) {
    %c0_i32 = arith.constant 0 : i32
    %c0_i32_0 = arith.constant 0 : i32
    %c0_i32_1 = arith.constant 0 : i32
    return %c0_i32, %c0_i32_0 : i32, i32
  }
}

module attributes {stable_mosaic.version = 11 : i64} {
  func.func @_bn_concat_kernel(%arg0: i32, %arg1: memref<512x8xf32, #tpu.memory_space<vmem>>, %arg2: memref<512x8xf32, #tpu.memory_space<vmem>>, %arg3: memref<1x8xf32, #tpu.memory_space<vmem>>, %arg4: memref<1x8xf32, #tpu.memory_space<vmem>>, %arg5: memref<512x16xf32, #tpu.memory_space<vmem>>) attributes {dimension_semantics = [#tpu.dimension_semantics<parallel>], iteration_bounds = array<i64: 1>, scalar_prefetch = 0 : i64, scratch_operands = 0 : i64, tpu.core_type = #tpu.core_type<tc>, window_params = [{transform_indices = @transform_0, window_bounds = array<i64: 512, 8>}, {transform_indices = @transform_1, window_bounds = array<i64: 512, 8>}, {pipeline_mode = #tpu.pipeline_mode<synchronous>, transform_indices = @transform_2, window_bounds = array<i64: 1, 8>}, {pipeline_mode = #tpu.pipeline_mode<synchronous>, transform_indices = @transform_3, window_bounds = array<i64: 1, 8>}, {transform_indices = @transform_4, window_bounds = array<i64: 512, 16>}]} {
    %c0 = arith.constant 0 : index
    %c0_0 = arith.constant 0 : index
    %0 = vector.load %arg2[%c0, %c0_0] : memref<512x8xf32, #tpu.memory_space<vmem>>, vector<512x8xf32>
    %c0_1 = arith.constant 0 : index
    %c0_2 = arith.constant 0 : index
    %1 = vector.load %arg3[%c0_1, %c0_2] : memref<1x8xf32, #tpu.memory_space<vmem>>, vector<1x8xf32>
    %2 = vector.broadcast %1 : vector<1x8xf32> to vector<512x8xf32>
    %3 = arith.mulf %0, %2 : vector<512x8xf32>
    %c0_3 = arith.constant 0 : index
    %c0_4 = arith.constant 0 : index
    %4 = vector.load %arg4[%c0_3, %c0_4] : memref<1x8xf32, #tpu.memory_space<vmem>>, vector<1x8xf32>
    %5 = vector.broadcast %4 : vector<1x8xf32> to vector<512x8xf32>
    %6 = arith.addf %3, %5 : vector<512x8xf32>
    %c0_5 = arith.constant 0 : index
    %c0_6 = arith.constant 0 : index
    %7 = vector.load %arg1[%c0_5, %c0_6] : memref<512x8xf32, #tpu.memory_space<vmem>>, vector<512x8xf32>
    %8 = tpu.concatenate %7, %6 in 1 : vector<512x8xf32>, vector<512x8xf32> -> vector<512x16xf32>
    %c0_7 = arith.constant 0 : index
    %c0_8 = arith.constant 0 : index
    %9 = vector.load %arg5[%c0_7, %c0_8] : memref<512x16xf32, #tpu.memory_space<vmem>>, vector<512x16xf32>
    tpu.vector_store %arg5[%c0_7, %c0_8], %8 {strides = array<i32>} : memref<512x16xf32, #tpu.memory_space<vmem>>, vector<512x16xf32>,
    return
  }
  func.func @transform_0(%arg0: i32) -> (i32, i32) {
    %c0_i32 = arith.constant 0 : i32
    %c0_i32_0 = arith.constant 0 : i32
    return %arg0, %c0_i32 : i32, i32
  }
  func.func @transform_1(%arg0: i32) -> (i32, i32) {
    %c0_i32 = arith.constant 0 : i32
    %c0_i32_0 = arith.constant 0 : i32
    return %arg0, %c0_i32 : i32, i32
  }
  func.func @transform_2(%arg0: i32) -> (i32, i32) {
    %c0_i32 = arith.constant 0 : i32
    %c0_i32_0 = arith.constant 0 : i32
    %c0_i32_1 = arith.constant 0 : i32
    return %c0_i32, %c0_i32_0 : i32, i32
  }
  func.func @transform_3(%arg0: i32) -> (i32, i32) {
    %c0_i32 = arith.constant 0 : i32
    %c0_i32_0 = arith.constant 0 : i32
    %c0_i32_1 = arith.constant 0 : i32
    return %c0_i32, %c0_i32_0 : i32, i32
  }
  func.func @transform_4(%arg0: i32) -> (i32, i32) {
    %c0_i32 = arith.constant 0 : i32
    %c0_i32_0 = arith.constant 0 : i32
    return %arg0, %c0_i32 : i32, i32
  }
}

module attributes {stable_mosaic.version = 11 : i64} {
  func.func @kernel(%arg0: i32, %arg1: memref<256x144xbf16, #tpu.memory_space<vmem>>, %arg2: memref<144x128xbf16, #tpu.memory_space<vmem>>, %arg3: memref<1x128xf32, #tpu.memory_space<vmem>>, %arg4: memref<256x128xf32, #tpu.memory_space<vmem>>) attributes {dimension_semantics = [#tpu.dimension_semantics<parallel>], iteration_bounds = array<i64: 2>, scalar_prefetch = 0 : i64, scratch_operands = 0 : i64, tpu.core_type = #tpu.core_type<tc>, window_params = [{transform_indices = @transform_0, window_bounds = array<i64: 256, 144>}, {pipeline_mode = #tpu.pipeline_mode<synchronous>, transform_indices = @transform_1, window_bounds = array<i64: 144, 128>}, {pipeline_mode = #tpu.pipeline_mode<synchronous>, transform_indices = @transform_2, window_bounds = array<i64: 1, 128>}, {transform_indices = @transform_3, window_bounds = array<i64: 256, 128>}]} {
    %c0 = arith.constant 0 : index
    %c0_0 = arith.constant 0 : index
    %0 = vector.load %arg1[%c0, %c0_0] : memref<256x144xbf16, #tpu.memory_space<vmem>>, vector<256x144xbf16>
    %1 = arith.extf %0 : vector<256x144xbf16> to vector<256x144xf32>
    %cst = arith.constant 0.000000e+00 : f32
    %2 = vector.broadcast %cst : f32 to vector<256x144xf32>
    %3 = arith.maximumf %1, %2 : vector<256x144xf32>
    %4 = arith.truncf %3 : vector<256x144xf32> to vector<256x144xbf16>
    %c0_1 = arith.constant 0 : index
    %c0_2 = arith.constant 0 : index
    %5 = vector.load %arg2[%c0_1, %c0_2] : memref<144x128xbf16, #tpu.memory_space<vmem>>, vector<144x128xbf16>
    %cst_3 = arith.constant dense<0.000000e+00> : vector<256x128xf32>
    %6 = tpu.matmul %4, %5, %cst_3 {dimension_numbers = #tpu.dot_dimension_numbers<[1], [0], [0], [1], [0, 0, 1, 1], [], []>} : vector<256x144xbf16>, vector<144x128xbf16>, vector<256x128xf32> -> vector<256x128xf32>
    %c0_4 = arith.constant 0 : index
    %c0_5 = arith.constant 0 : index
    %7 = vector.load %arg3[%c0_4, %c0_5] : memref<1x128xf32, #tpu.memory_space<vmem>>, vector<1x128xf32>
    %8 = vector.broadcast %7 : vector<1x128xf32> to vector<256x128xf32>
    %9 = arith.addf %6, %8 : vector<256x128xf32>
    %10 = math.tanh %9 : vector<256x128xf32>
    %c0_6 = arith.constant 0 : index
    %c0_7 = arith.constant 0 : index
    %11 = vector.load %arg4[%c0_6, %c0_7] : memref<256x128xf32, #tpu.memory_space<vmem>>, vector<256x128xf32>
    tpu.vector_store %arg4[%c0_6, %c0_7], %10 {strides = array<i32>} : memref<256x128xf32, #tpu.memory_space<vmem>>, vector<256x128xf32>,
    return
  }
  func.func @transform_0(%arg0: i32) -> (i32, i32) {
    %c0_i32 = arith.constant 0 : i32
    %c0_i32_0 = arith.constant 0 : i32
    return %arg0, %c0_i32 : i32, i32
  }
  func.func @transform_1(%arg0: i32) -> (i32, i32) {
    %c0_i32 = arith.constant 0 : i32
    %c0_i32_0 = arith.constant 0 : i32
    %c0_i32_1 = arith.constant 0 : i32
    return %c0_i32, %c0_i32_0 : i32, i32
  }
  func.func @transform_2(%arg0: i32) -> (i32, i32) {
    %c0_i32 = arith.constant 0 : i32
    %c0_i32_0 = arith.constant 0 : i32
    %c0_i32_1 = arith.constant 0 : i32
    return %c0_i32, %c0_i32_0 : i32, i32
  }
  func.func @transform_3(%arg0: i32) -> (i32, i32) {
    %c0_i32 = arith.constant 0 : i32
    %c0_i32_0 = arith.constant 0 : i32
    return %arg0, %c0_i32 : i32, i32
  }
}

</mosaic_0001>

<bundles_post_ra>
// kernel: unet_forward.24
= control target key start
LH: loop header
LB: loop body
LE: loop exit
PB: predicated region body
PF: predicated region fallthrough
CT: control target
= control target key end

     0   :  { %s709_s12 = smov 0   ;;  %s844_s0 = inlined_call_operand.vmem [shape: bf16[512,48], index: 0, kind: input, shape index: {}]   ;;  %s845_s1 = inlined_call_operand.vmem [shape: bf16[48,128], index: 1, kind: input, shape index: {}]   ;;  %s846_s2 = inlined_call_operand.vmem [shape: f32[1,128], index: 2, kind: input, shape index: {}]   ;;  %s847_s3 = inlined_call_operand.vmem [shape: f32[512,128], index: 3, kind: output, shape index: {}]  }
   0x1 LB: > { %s541_s13 = sadd.s32 4294967295, %s687_s12   ;;  %p545_p0 = scmp.ge.s32.totalorder %s687_s12, 1  ;;  %s687_s12 = sphi %s709_s12, %s13_s12  }
   0x2   : > { %p138_p1 = scmp.lt.s32.totalorder %s687_s12, 3 }
   0x4   : > { %p139_p2 = pnand %p545_p0, %p138_p1 }
   0x5   : > { %s546_s16 = sshll.u32 (!%p139_p2), %s541_s13, 5 }
   0x6   : > { %142 = sbr.rel (%p139_p2) target bundleno = 216 (0xd8), region = 32  ;;  %p163_p3 = scmp.lt.s32.totalorder (!%p139_p2), %s546_s16, 63 }
   0xb   : > { %v662_v0 = vld [vmem:[%s845_s1 + $0x10] sm:$0xff]  ;;  %v661_v1 = vld [vmem:[%s845_s1 + $0x8] sm:$0xff]  ;;  %s849_s16 = smov (!%p163_p3, %s546_s16), 63  ;;  %v660_v2 = vld [vmem:[%s845_s1] sm:$0xff]  ;;  %vm315_vm0 = vcmask 392192  }
   0xc   : > { %369 = vmatpush.bf16.msra.mxu0 %v662_v0  ;;  %663 = vmatpush.bf16.msra.mxu1 %v662_v0  ;;  %s547_s19 = sshll.u32 %s849_s16, 2  ;;  %s549_s25 = sshll.u32 %s849_s16, 3  ;;  %v770_v19 = vld [vmem:[%s846_s2] ss:$0 sm:$0xff] }
   0xd   : > { %664 = vmatpush.bf16.msra.mxu2 %v662_v0  ;;  %665 = vmatpush.bf16.msra.mxu3 %v662_v0  ;;  %s732_s24 = scalar_lea.vmem %s844_s0, %s547_s19  ;;  %s775_s30 = scalar_lea.vmem %s847_s3, %s549_s25 }
   0xe   : > { %v644_v3 = vld [vmem:[%s732_s24] sm:$0xff]  ;;  %v645_v7 = vld [vmem:[%s732_s24 + $0x8] sm:$0xff]  ;;  %v646_v11 = vld [vmem:[%s732_s24 + $0x10] sm:$0xff] }
   0xf   : > { %v648_v4 = vld [vmem:[%s732_s24 + $0x20] sm:$0xff]  ;;  %v649_v8 = vld [vmem:[%s732_s24 + $0x28] sm:$0xff]  ;;  %v650_v12 = vld [vmem:[%s732_s24 + $0x30] sm:$0xff] }
  0x10   : > { %370 = vmatpush.bf16.msra.mxu0 %v661_v1  ;;  %666 = vmatpush.bf16.msra.mxu1 %v661_v1  ;;  %v652_v5 = vld [vmem:[%s732_s24 + $0x40] sm:$0xff]  ;;  %v653_v9 = vld [vmem:[%s732_s24 + $0x48] sm:$0xff]  ;;  %v654_v13 = vld [vmem:[%s732_s24 + $0x50] sm:$0xff] }
  0x11   : > { %667 = vmatpush.bf16.msra.mxu2 %v661_v1  ;;  %668 = vmatpush.bf16.msra.mxu3 %v661_v1  ;;  %v656_v6 = vld [vmem:[%s732_s24 + $0x60] sm:$0xff]  ;;  %v657_v10 = vld [vmem:[%s732_s24 + $0x68] sm:$0xff]  ;;  %v658_v14 = vld [vmem:[%s732_s24 + $0x70] sm:$0xff] }
  0x12   : > { %v647_v15 = vld [vmem:[%s732_s24 + $0x18] sm:$0xff] }
  0x13   : > { %v651_v16 = vld [vmem:[%s732_s24 + $0x38] sm:$0xff] }
  0x14   : > { %371 = vmatpush.bf16.msra.mxu0 %v660_v2  ;;  %669 = vmatpush.bf16.msra.mxu1 %v660_v2  ;;  %v655_v17 = vld [vmem:[%s732_s24 + $0x58] sm:$0xff] }
  0x15   : > { %670 = vmatpush.bf16.msra.mxu2 %v660_v2  ;;  %671 = vmatpush.bf16.msra.mxu3 %v660_v2  ;;  %v659_v18 = vld [vmem:[%s732_s24 + $0x78] sm:$0xff] }
  0x17   : > { %626 = vmatmul.msk.bf16.vlgmr.msra.gmra.mxu0 %vm315_vm0, %v644_v3  ;;  %630 = vmatmul.msk.bf16.vlgmr.msra.gmra.mxu1 %vm315_vm0, %v648_v4 }
  0x18   : > { %634 = vmatmul.msk.bf16.vlgmr.msra.gmra.mxu2 %vm315_vm0, %v652_v5  ;;  %638 = vmatmul.msk.bf16.vlgmr.msra.gmra.mxu3 %vm315_vm0, %v656_v6 }
  0x27   : > { %627 = vmatmul.msk.bf16.gmra.mxu0 %vm315_vm0, %v645_v7  ;;  %631 = vmatmul.msk.bf16.gmra.mxu1 %vm315_vm0, %v649_v8 }
  0x28   : > { %635 = vmatmul.msk.bf16.gmra.mxu2 %vm315_vm0, %v653_v9  ;;  %639 = vmatmul.msk.bf16.gmra.mxu3 %vm315_vm0, %v657_v10 }
  0x37   : > { %628 = vmatmul.msk.bf16.gmra.mxu0 %vm315_vm0, %v646_v11  ;;  %632 = vmatmul.msk.bf16.gmra.mxu1 %vm315_vm0, %v650_v12 }
  0x38   : > { %636 = vmatmul.msk.bf16.gmra.mxu2 %vm315_vm0, %v654_v13  ;;  %640 = vmatmul.msk.bf16.gmra.mxu3 %vm315_vm0, %v658_v14 }
  0x47   : > { %629 = vmatmul.msk.bf16.gmra.mxu0 %vm315_vm0, %v647_v15  ;;  %633 = vmatmul.msk.bf16.gmra.mxu1 %vm315_vm0, %v651_v16 }
  0x48   : > { %637 = vmatmul.msk.bf16.gmra.mxu2 %vm315_vm0, %v655_v17  ;;  %641 = vmatmul.msk.bf16.gmra.mxu3 %vm315_vm0, %v659_v18 }
  0x94   : > { %v373_v20 = vpop.f32.mrf.mxu0  ;;  %v393_v21 = vpop.f32.mrf.mxu1 }
  0x95   : > { %v374_v22 = vadd.f32 %v770_v19, %v373_v20  ;;  %v394_v23 = vadd.f32 %v770_v19, %v393_v21 }
  0x97   : > { %453 = vst [vmem:[%s775_s30] sm:$0xff] %v374_v22 }
  0x98   : > { %461 = vst [vmem:[%s775_s30 + $0x40] sm:$0xff] %v394_v23 }
  0x9b   : > { %v413_v24 = vpop.f32.mrf.mxu2  ;;  %v433_v25 = vpop.f32.mrf.mxu3 }
  0x9c   : > { %v414_v26 = vadd.f32 %v770_v19, %v413_v24  ;;  %v434_v27 = vadd.f32 %v770_v19, %v433_v25  ;;  %v375_v28 = vpop.f32.mrf.mxu0  ;;  %v395_v29 = vpop.f32.mrf.mxu1 }
  0x9d   : > { %v376_v30 = vadd.f32 %v770_v19, %v375_v28  ;;  %v396_v31 = vadd.f32 %v770_v19, %v395_v29 }
  0x9e   : > { %469 = vst [vmem:[%s775_s30 + $0x80] sm:$0xff] %v414_v26 }
  0x9f   : > { %477 = vst [vmem:[%s775_s30 + $0xc0] sm:$0xff] %v434_v27 }
  0xa0   : > { %454 = vst [vmem:[%s775_s30 + $0x8] sm:$0xff] %v376_v30 }
  0xa1   : > { %462 = vst [vmem:[%s775_s30 + $0x48] sm:$0xff] %v396_v31 }
  0xa3   : > { %v415_v32 = vpop.f32.mrf.mxu2  ;;  %v435_v33 = vpop.f32.mrf.mxu3 }
  0xa4   : > { %v416_v34 = vadd.f32 %v770_v19, %v415_v32  ;;  %v436_v35 = vadd.f32 %v770_v19, %v435_v33  ;;  %v378_v36 = vpop.f32.mrf.mxu0  ;;  %v398_v37 = vpop.f32.mrf.mxu1 }
  0xa5   : > { %v379_v38 = vadd.f32 %v770_v19, %v378_v36  ;;  %v399_v39 = vadd.f32 %v770_v19, %v398_v37 }
  0xa6   : > { %470 = vst [vmem:[%s775_s30 + $0x88] sm:$0xff] %v416_v34 }
  0xa7   : > { %478 = vst [vmem:[%s775_s30 + $0xc8] sm:$0xff] %v436_v35 }
  0xa8   : > { %455 = vst [vmem:[%s775_s30 + $0x10] sm:$0xff] %v379_v38 }
  0xa9   : > { %463 = vst [vmem:[%s775_s30 + $0x50] sm:$0xff] %v399_v39 }
  0xab   : > { %v418_v40 = vpop.f32.mrf.mxu2  ;;  %v438_v41 = vpop.f32.mrf.mxu3 }
  0xac   : > { %v419_v42 = vadd.f32 %v770_v19, %v418_v40  ;;  %v439_v43 = vadd.f32 %v770_v19, %v438_v41  ;;  %v380_v44 = vpop.f32.mrf.mxu0  ;;  %v400_v45 = vpop.f32.mrf.mxu1 }
  0xad   : > { %v381_v46 = vadd.f32 %v770_v19, %v380_v44  ;;  %v401_v47 = vadd.f32 %v770_v19, %v400_v45 }
  0xae   : > { %471 = vst [vmem:[%s775_s30 + $0x90] sm:$0xff] %v419_v42 }
  0xaf   : > { %479 = vst [vmem:[%s775_s30 + $0xd0] sm:$0xff] %v439_v43 }
  0xb0   : > { %456 = vst [vmem:[%s775_s30 + $0x18] sm:$0xff] %v381_v46 }
  0xb1   : > { %464 = vst [vmem:[%s775_s30 + $0x58] sm:$0xff] %v401_v47 }
  0xb3   : > { %v420_v48 = vpop.f32.mrf.mxu2  ;;  %v440_v49 = vpop.f32.mrf.mxu3 }
  0xb4   : > { %v421_v50 = vadd.f32 %v770_v19, %v420_v48  ;;  %v441_v51 = vadd.f32 %v770_v19, %v440_v49  ;;  %v383_v52 = vpop.f32.mrf.mxu0  ;;  %v403_v53 = vpop.f32.mrf.mxu1 }
  0xb5   : > { %v384_v54 = vadd.f32 %v770_v19, %v383_v52  ;;  %v404_v55 = vadd.f32 %v770_v19, %v403_v53 }
  0xb6   : > { %472 = vst [vmem:[%s775_s30 + $0x98] sm:$0xff] %v421_v50 }
  0xb7   : > { %480 = vst [vmem:[%s775_s30 + $0xd8] sm:$0xff] %v441_v51 }
  0xb8   : > { %457 = vst [vmem:[%s775_s30 + $0x20] sm:$0xff] %v384_v54 }
  0xb9   : > { %465 = vst [vmem:[%s775_s30 + $0x60] sm:$0xff] %v404_v55 }
  0xbb   : > { %v423_v56 = vpop.f32.mrf.mxu2  ;;  %v443_v57 = vpop.f32.mrf.mxu3 }
  0xbc   : > { %v424_v58 = vadd.f32 %v770_v19, %v423_v56  ;;  %v444_v59 = vadd.f32 %v770_v19, %v443_v57  ;;  %v385_v60 = vpop.f32.mrf.mxu0  ;;  %v405_v61 = vpop.f32.mrf.mxu1 }
  0xbd   : > { %v386_v62 = vadd.f32 %v770_v19, %v385_v60  ;;  %v406_v63 = vadd.f32 %v770_v19, %v405_v61 }
  0xbe   : > { %473 = vst [vmem:[%s775_s30 + $0xa0] sm:$0xff] %v424_v58 }
  0xbf   : > { %481 = vst [vmem:[%s775_s30 + $0xe0] sm:$0xff] %v444_v59 }
  0xc0   : > { %458 = vst [vmem:[%s775_s30 + $0x28] sm:$0xff] %v386_v62 }
  0xc1   : > { %466 = vst [vmem:[%s775_s30 + $0x68] sm:$0xff] %v406_v63 }
  0xc3   : > { %v425_v0 = vpop.f32.mrf.mxu2  ;;  %v445_v1 = vpop.f32.mrf.mxu3 }
  0xc4   : > { %v426_v2 = vadd.f32 %v770_v19, %v425_v0  ;;  %v446_v3 = vadd.f32 %v770_v19, %v445_v1  ;;  %v388_v4 = vpop.f32.mrf.mxu0  ;;  %v408_v5 = vpop.f32.mrf.mxu1 }
  0xc5   : > { %v389_v6 = vadd.f32 %v770_v19, %v388_v4  ;;  %v409_v7 = vadd.f32 %v770_v19, %v408_v5 }
  0xc6   : > { %474 = vst [vmem:[%s775_s30 + $0xa8] sm:$0xff] %v426_v2 }
  0xc7   : > { %482 = vst [vmem:[%s775_s30 + $0xe8] sm:$0xff] %v446_v3 }
  0xc8   : > { %459 = vst [vmem:[%s775_s30 + $0x30] sm:$0xff] %v389_v6 }
  0xc9   : > { %467 = vst [vmem:[%s775_s30 + $0x70] sm:$0xff] %v409_v7 }
  0xcb   : > { %v428_v8 = vpop.f32.mrf.mxu2  ;;  %v448_v9 = vpop.f32.mrf.mxu3 }
  0xcc   : > { %v429_v10 = vadd.f32 %v770_v19, %v428_v8  ;;  %v449_v11 = vadd.f32 %v770_v19, %v448_v9  ;;  %v390_v12 = vpop.f32.mrf.mxu0  ;;  %v410_v13 = vpop.f32.mrf.mxu1 }
  0xcd   : > { %v391_v14 = vadd.f32 %v770_v19, %v390_v12  ;;  %v411_v15 = vadd.f32 %v770_v19, %v410_v13 }
  0xce   : > { %475 = vst [vmem:[%s775_s30 + $0xb0] sm:$0xff] %v429_v10 }
  0xcf   : > { %483 = vst [vmem:[%s775_s30 + $0xf0] sm:$0xff] %v449_v11 }
  0xd0   : > { %460 = vst [vmem:[%s775_s30 + $0x38] sm:$0xff] %v391_v14 }
  0xd1   : > { %468 = vst [vmem:[%s775_s30 + $0x78] sm:$0xff] %v411_v15 }
  0xd3   : > { %v430_v16 = vpop.f32.mrf.mxu2  ;;  %v450_v17 = vpop.f32.mrf.mxu3 }
  0xd4   : > { %v431_v18 = vadd.f32 %v770_v19, %v430_v16  ;;  %v451_v20 = vadd.f32 %v770_v19, %v450_v17 }
  0xd6   : > { %476 = vst [vmem:[%s775_s30 + $0xb8] sm:$0xff] %v431_v18 }
  0xd7   : > { %484 = vst [vmem:[%s775_s30 + $0xf8] sm:$0xff] %v451_v20 }
  0xd8 PF: > { %s13_s12 = sadd.s32 1, %s687_s12  }
  0xd9   : > { %p10_p4 = scmp.ge.s32.totalorder %s13_s12, 4  }
  0xdb   :  { %12 = sbr.rel (!%p10_p4) target bundleno = 1 (0x1), region = 62 }

// kernel: unet_forward.25
= control target key start
LH: loop header
LB: loop body
LE: loop exit
PB: predicated region body
PF: predicated region fallthrough
CT: control target
= control target key end

     0   :  { %s469_s1 = inlined_call_operand.vmem [shape: bf16[128,128], index: 1, kind: input, shape index: {}]   ;;  %s470_s2 = inlined_call_operand.vmem [shape: f32[1,128], index: 2, kind: input, shape index: {}]   ;;  %s471_s0 = inlined_call_operand.vmem [shape: bf16[128,128], index: 0, kind: input, shape index: {}]   ;;  %s472_s3 = inlined_call_operand.vmem [shape: f32[128,128], index: 3, kind: output, shape index: {}]  }
   0x1   :  { %v278_v0 = vld [vmem:[%s469_s1 + $0x38] sm:$0xff]  ;;  %v277_v1 = vld [vmem:[%s469_s1 + $0x30] sm:$0xff]  ;;  %v276_v2 = vld [vmem:[%s469_s1 + $0x28] sm:$0xff] }
   0x2   :  { %170 = vmatpush.bf16.msra.mxu0 %v278_v0  ;;  %318 = vmatpush.bf16.msra.mxu1 %v278_v0  ;;  %v275_v3 = vld [vmem:[%s469_s1 + $0x20] sm:$0xff]  ;;  %v274_v5 = vld [vmem:[%s469_s1 + $0x18] sm:$0xff]  ;;  %v312_v6 = vld [vmem:[%s471_s0 + $0x10] sm:$0xff]  }
   0x3   :  { %319 = vmatpush.bf16.msra.mxu2 %v278_v0  ;;  %320 = vmatpush.bf16.msra.mxu3 %v278_v0  ;;  %v280_v4 = vld [vmem:[%s471_s0] sm:$0xff]   ;;  %v316_v9 = vld [vmem:[%s471_s0 + $0x30] sm:$0xff]   ;;  %v289_v11 = vunpack.c.l.bf16 %v312_v6  ;;  %v290_v13 = vunpack.c.h.bf16 %v312_v6  ;;  %v272_v18 = vld [vmem:[%s469_s1 + $0x8] sm:$0xff] }
   0x4   :  { %v314_v7 = vld [vmem:[%s471_s0 + $0x20] sm:$0xff]   ;;  %v281_v8 = vunpack.c.l.bf16 %v280_v4  ;;  %v282_v10 = vunpack.c.h.bf16 %v280_v4  ;;  %v273_v12 = vld [vmem:[%s469_s1 + $0x10] sm:$0xff]  ;;  %v305_v16 = vunpack.c.l.bf16 %v316_v9  ;;  %v306_v17 = vunpack.c.h.bf16 %v316_v9  ;;  %v311_v38 = vld [vmem:[%s471_s0 + $0x8] sm:$0xff]  }
   0x5   :  { %v297_v14 = vunpack.c.l.bf16 %v314_v7  ;;  %v298_v15 = vunpack.c.h.bf16 %v314_v7  ;;  %vm50_vm2 = vcmp.ge.f32.partialorder %v289_v11, 0.0  ;;  %v66_v21 = vmul.f32 0.2, %v289_v11  ;;  %v271_v29 = vld [vmem:[%s469_s1] sm:$0xff]  ;;  %v313_v41 = vld [vmem:[%s471_s0 + $0x18] sm:$0xff]   ;;  %v315_v42 = vld [vmem:[%s471_s0 + $0x28] sm:$0xff]  }
   0x6   :  { %171 = vmatpush.bf16.msra.mxu0 %v277_v1  ;;  %321 = vmatpush.bf16.msra.mxu1 %v277_v1  ;;  %vm46_vm0 = vcmp.ge.f32.partialorder %v281_v8, 0.0  ;;  %v62_v19 = vmul.f32 0.2, %v281_v8  ;;  %vm47_vm1 = vcmp.ge.f32.partialorder %v282_v10, 0.0  ;;  %v63_v20 = vmul.f32 0.2, %v282_v10 }
   0x7   :  { %322 = vmatpush.bf16.msra.mxu2 %v277_v1  ;;  %323 = vmatpush.bf16.msra.mxu3 %v277_v1  ;;  %vm51_vm3 = vcmp.ge.f32.partialorder %v290_v13, 0.0  ;;  %v67_v22 = vmul.f32 0.2, %v290_v13  ;;  %vm54_vm4 = vcmp.ge.f32.partialorder %v297_v14, 0.0  ;;  %v70_v23 = vmul.f32 0.2, %v297_v14 }
   0x8   :  { %v71_v24 = vmul.f32 0.2, %v298_v15  ;;  %v74_v25 = vmul.f32 0.2, %v305_v16  ;;  %v75_v26 = vmul.f32 0.2, %v306_v17  ;;  %v78_v27 = vsel %vm46_vm0, %v281_v8, %v62_v19 }
   0x9   :  { %vm55_vm5 = vcmp.ge.f32.partialorder %v298_v15, 0.0  ;;  %vm58_vm6 = vcmp.ge.f32.partialorder %v305_v16, 0.0  ;;  %vm59_vm7 = vcmp.ge.f32.partialorder %v306_v17, 0.0  ;;  %v79_v28 = vsel %vm47_vm1, %v282_v10, %v63_v20  ;;  %v317_v45 = vld [vmem:[%s471_s0 + $0x38] sm:$0xff]   ;;  %v342_v8 = vld [vmem:[%s470_s2] ss:$0 sm:$0xff] }
   0xa   :  { %172 = vmatpush.bf16.msra.mxu0 %v276_v2  ;;  %324 = vmatpush.bf16.msra.mxu1 %v276_v2  ;;  %v82_v30 = vsel %vm50_vm2, %v289_v11, %v66_v21  ;;  %v83_v31 = vsel %vm51_vm3, %v290_v13, %v67_v22  ;;  %v86_v32 = vsel %vm54_vm4, %v297_v14, %v70_v23  ;;  %v285_v43 = vunpack.c.l.bf16 %v311_v38 }
   0xb   :  { %325 = vmatpush.bf16.msra.mxu2 %v276_v2  ;;  %326 = vmatpush.bf16.msra.mxu3 %v276_v2  ;;  %v87_v33 = vsel %vm55_vm5, %v298_v15, %v71_v24  ;;  %v90_v34 = vsel %vm58_vm6, %v305_v16, %v74_v25  ;;  %v91_v35 = vsel %vm59_vm7, %v306_v17, %v75_v26  ;;  %v286_v44 = vunpack.c.h.bf16 %v311_v38 }
   0xc   :  { %v94_v36 = vpack.c.bf16 %v79_v28, %v78_v27  ;;  %v96_v37 = vpack.c.bf16 %v83_v31, %v82_v30  ;;  %v98_v39 = vpack.c.bf16 %v87_v33, %v86_v32  ;;  %v100_v40 = vpack.c.bf16 %v91_v35, %v90_v34 }
   0xd   :  { %v293_v46 = vunpack.c.l.bf16 %v313_v41  ;;  %v294_v47 = vunpack.c.h.bf16 %v313_v41  ;;  %v301_v48 = vunpack.c.l.bf16 %v315_v42  ;;  %v302_v49 = vunpack.c.h.bf16 %v315_v42 }
   0xe   :  { %173 = vmatpush.bf16.msra.mxu0 %v275_v3  ;;  %327 = vmatpush.bf16.msra.mxu1 %v275_v3  ;;  %v309_v50 = vunpack.c.l.bf16 %v317_v45  ;;  %v310_v51 = vunpack.c.h.bf16 %v317_v45  ;;  %vm48_vm8 = vcmp.ge.f32.partialorder %v285_v43, 0.0  ;;  %vm49_vm9 = vcmp.ge.f32.partialorder %v286_v44, 0.0 }
   0xf   :  { %328 = vmatpush.bf16.msra.mxu2 %v275_v3  ;;  %329 = vmatpush.bf16.msra.mxu3 %v275_v3  ;;  %v64_v52 = vmul.f32 0.2, %v285_v43  ;;  %v65_v53 = vmul.f32 0.2, %v286_v44  ;;  %vm52_vm10 = vcmp.ge.f32.partialorder %v293_v46, 0.0  ;;  %vm53_vm11 = vcmp.ge.f32.partialorder %v294_v47, 0.0 }
  0x10   :  { %v68_v54 = vmul.f32 0.2, %v293_v46  ;;  %v69_v55 = vmul.f32 0.2, %v294_v47  ;;  %v72_v56 = vmul.f32 0.2, %v301_v48 }
  0x11   :  { %v73_v57 = vmul.f32 0.2, %v302_v49  ;;  %v76_v58 = vmul.f32 0.2, %v309_v50  ;;  %v77_v59 = vmul.f32 0.2, %v310_v51  ;;  %v80_v60 = vsel %vm48_vm8, %v285_v43, %v64_v52 }
  0x12   :  { %174 = vmatpush.bf16.msra.mxu0 %v274_v5  ;;  %330 = vmatpush.bf16.msra.mxu1 %v274_v5  ;;  %vm56_vm12 = vcmp.ge.f32.partialorder %v301_v48, 0.0  ;;  %vm57_vm13 = vcmp.ge.f32.partialorder %v302_v49, 0.0  ;;  %vm60_vm14 = vcmp.ge.f32.partialorder %v309_v50, 0.0  ;;  %vm61_vm15 = vcmp.ge.f32.partialorder %v310_v51, 0.0 }
  0x13   :  { %331 = vmatpush.bf16.msra.mxu2 %v274_v5  ;;  %332 = vmatpush.bf16.msra.mxu3 %v274_v5  ;;  %v81_v61 = vsel %vm49_vm9, %v286_v44, %v65_v53  ;;  %v84_v62 = vsel %vm52_vm10, %v293_v46, %v68_v54  ;;  %v85_v63 = vsel %vm53_vm11, %v294_v47, %v69_v55 }
  0x14   :  { %v88_v0 = vsel %vm56_vm12, %v301_v48, %v72_v56  ;;  %v89_v1 = vsel %vm57_vm13, %v302_v49, %v73_v57  ;;  %v92_v2 = vsel %vm60_vm14, %v309_v50, %v76_v58  ;;  %v93_v3 = vsel %vm61_vm15, %v310_v51, %v77_v59 }
  0x15   :  { %v95_v4 = vpack.c.bf16 %v81_v61, %v80_v60  ;;  %v97_v5 = vpack.c.bf16 %v85_v63, %v84_v62  ;;  %v99_v6 = vpack.c.bf16 %v89_v1, %v88_v0  ;;  %v101_v7 = vpack.c.bf16 %v93_v3, %v92_v2 }
  0x16   :  { %175 = vmatpush.bf16.msra.mxu0 %v273_v12  ;;  %333 = vmatpush.bf16.msra.mxu1 %v273_v12 }
  0x17   :  { %334 = vmatpush.bf16.msra.mxu2 %v273_v12  ;;  %335 = vmatpush.bf16.msra.mxu3 %v273_v12 }
  0x1a   :  { %176 = vmatpush.bf16.msra.mxu0 %v272_v18  ;;  %336 = vmatpush.bf16.msra.mxu1 %v272_v18 }
  0x1b   :  { %337 = vmatpush.bf16.msra.mxu2 %v272_v18  ;;  %338 = vmatpush.bf16.msra.mxu3 %v272_v18 }
  0x1e   :  { %177 = vmatpush.bf16.msra.mxu0 %v271_v29  ;;  %339 = vmatpush.bf16.msra.mxu1 %v271_v29 }
  0x1f   :  { %340 = vmatpush.bf16.msra.mxu2 %v271_v29  ;;  %341 = vmatpush.bf16.msra.mxu3 %v271_v29 }
  0x21   :  { %178 = vmatmul.bf16.vlgmr.msra.gmra.mxu0 %v94_v36  ;;  %188 = vmatmul.bf16.vlgmr.msra.gmra.mxu1 %v96_v37 }
  0x22   :  { %198 = vmatmul.bf16.vlgmr.msra.gmra.mxu2 %v98_v39  ;;  %208 = vmatmul.bf16.vlgmr.msra.gmra.mxu3 %v100_v40 }
  0x31   :  { %183 = vmatmul.bf16.gmra.mxu0 %v95_v4  ;;  %193 = vmatmul.bf16.gmra.mxu1 %v97_v5 }
  0x32   :  { %203 = vmatmul.bf16.gmra.mxu2 %v99_v6  ;;  %213 = vmatmul.bf16.gmra.mxu3 %v101_v7 }
  0x9e   :  { %v179_v9 = vpop.f32.mrf.mxu0  ;;  %v189_v10 = vpop.f32.mrf.mxu1 }
  0x9f   :  { %v180_v11 = vadd.f32 %v342_v8, %v179_v9  ;;  %v190_v12 = vadd.f32 %v342_v8, %v189_v10 }
  0xa1   :  { %219 = vst [vmem:[%s472_s3] sm:$0xff] %v180_v11 }
  0xa2   :  { %223 = vst [vmem:[%s472_s3 + $0x20] sm:$0xff] %v190_v12 }
  0xa5   :  { %v199_v13 = vpop.f32.mrf.mxu2  ;;  %v209_v14 = vpop.f32.mrf.mxu3 }
  0xa6   :  { %v200_v15 = vadd.f32 %v342_v8, %v199_v13  ;;  %v210_v16 = vadd.f32 %v342_v8, %v209_v14  ;;  %v181_v17 = vpop.f32.mrf.mxu0  ;;  %v191_v18 = vpop.f32.mrf.mxu1 }
  0xa7   :  { %v182_v19 = vadd.f32 %v342_v8, %v181_v17  ;;  %v192_v20 = vadd.f32 %v342_v8, %v191_v18 }
  0xa8   :  { %227 = vst [vmem:[%s472_s3 + $0x40] sm:$0xff] %v200_v15 }
  0xa9   :  { %231 = vst [vmem:[%s472_s3 + $0x60] sm:$0xff] %v210_v16 }
  0xaa   :  { %220 = vst [vmem:[%s472_s3 + $0x8] sm:$0xff] %v182_v19 }
  0xab   :  { %224 = vst [vmem:[%s472_s3 + $0x28] sm:$0xff] %v192_v20 }
  0xad   :  { %v201_v21 = vpop.f32.mrf.mxu2  ;;  %v211_v22 = vpop.f32.mrf.mxu3 }
  0xae   :  { %v202_v23 = vadd.f32 %v342_v8, %v201_v21  ;;  %v212_v24 = vadd.f32 %v342_v8, %v211_v22  ;;  %v184_v25 = vpop.f32.mrf.mxu0  ;;  %v194_v26 = vpop.f32.mrf.mxu1 }
  0xaf   :  { %v185_v27 = vadd.f32 %v342_v8, %v184_v25  ;;  %v195_v28 = vadd.f32 %v342_v8, %v194_v26 }
  0xb0   :  { %228 = vst [vmem:[%s472_s3 + $0x48] sm:$0xff] %v202_v23 }
  0xb1   :  { %232 = vst [vmem:[%s472_s3 + $0x68] sm:$0xff] %v212_v24 }
  0xb2   :  { %221 = vst [vmem:[%s472_s3 + $0x10] sm:$0xff] %v185_v27 }
  0xb3   :  { %225 = vst [vmem:[%s472_s3 + $0x30] sm:$0xff] %v195_v28 }
  0xb5   :  { %v204_v29 = vpop.f32.mrf.mxu2  ;;  %v214_v30 = vpop.f32.mrf.mxu3 }
  0xb6   :  { %v205_v31 = vadd.f32 %v342_v8, %v204_v29  ;;  %v215_v32 = vadd.f32 %v342_v8, %v214_v30  ;;  %v186_v33 = vpop.f32.mrf.mxu0  ;;  %v196_v34 = vpop.f32.mrf.mxu1 }
  0xb7   :  { %v187_v35 = vadd.f32 %v342_v8, %v186_v33  ;;  %v197_v36 = vadd.f32 %v342_v8, %v196_v34 }
  0xb8   :  { %229 = vst [vmem:[%s472_s3 + $0x50] sm:$0xff] %v205_v31 }
  0xb9   :  { %233 = vst [vmem:[%s472_s3 + $0x70] sm:$0xff] %v215_v32 }
  0xba   :  { %222 = vst [vmem:[%s472_s3 + $0x18] sm:$0xff] %v187_v35 }
  0xbb   :  { %226 = vst [vmem:[%s472_s3 + $0x38] sm:$0xff] %v197_v36 }
  0xbd   :  { %v206_v37 = vpop.f32.mrf.mxu2  ;;  %v216_v38 = vpop.f32.mrf.mxu3 }
  0xbe   :  { %v207_v39 = vadd.f32 %v342_v8, %v206_v37  ;;  %v217_v40 = vadd.f32 %v342_v8, %v216_v38 }
  0xc0   :  { %230 = vst [vmem:[%s472_s3 + $0x58] sm:$0xff] %v207_v39 }
  0xc1   :  { %234 = vst [vmem:[%s472_s3 + $0x78] sm:$0xff] %v217_v40 }

// kernel: unet_forward.26
= control target key start
LH: loop header
LB: loop body
LE: loop exit
PB: predicated region body
PF: predicated region fallthrough
CT: control target
= control target key end

     0   :  { %vm30_vm0 = vcmask 122880   ;;  %vm34_vm1 = vcmask 130048   ;;  %v140_v3 = vmov 0.0   ;;  %s258_s0 = inlined_call_operand.vmem [shape: f32[128,16], index: 0, kind: input, shape index: {}]   ;;  %s259_s1 = inlined_call_operand.vmem [shape: f32[1,16], index: 1, kind: output, shape index: {0}]   ;;  %s260_s2 = inlined_call_operand.vmem [shape: f32[1,16], index: 2, kind: output, shape index: {1}]  }
   0x1   :  { %v10_v0 = vld [vmem:[%s258_s0] sm:$0xff]  ;;  %v11_v1 = vld [vmem:[%s258_s0 + $0x8] sm:$0xff]  ;;  %v12_v2 = vld [vmem:[%s258_s0 + $0x10] sm:$0xff]  ;;  %31 = vst.msk [vmem:[%s259_s1] sm:$0x1] %vm30_vm0, %v140_v3 }
   0x2   :  { %v35_v4 = vsel %vm34_vm1, %v10_v0, 0.0  ;;  %v36_v5 = vsel %vm34_vm1, %v11_v1, 0.0  ;;  %v38_v6 = vsel %vm34_vm1, %v12_v2, 0.0  ;;  %v13_v7 = vld [vmem:[%s258_s0 + $0x18] sm:$0xff]  ;;  %v14_v10 = vld [vmem:[%s258_s0 + $0x20] sm:$0xff]  ;;  %v15_v13 = vld [vmem:[%s258_s0 + $0x28] sm:$0xff]  ;;  %v76_v15 = vmul.f32 %v10_v0, %v10_v0 }
   0x3   :  { %v37_v8 = vadd.f32 %v36_v5, %v35_v4  ;;  %v40_v9 = vsel %vm34_vm1, %v13_v7, 0.0  ;;  %v42_v12 = vsel %vm34_vm1, %v14_v10, 0.0  ;;  %32 = vst.msk [vmem:[%s260_s2] sm:$0x1] %vm30_vm0, %v140_v3  ;;  %v77_v16 = vmul.f32 %v11_v1, %v11_v1  ;;  %v16_v19 = vld [vmem:[%s258_s0 + $0x30] sm:$0xff]  ;;  %v17_v24 = vld [vmem:[%s258_s0 + $0x38] sm:$0xff] }
   0x4   :  { %v78_v17 = vmul.f32 %v12_v2, %v12_v2  ;;  %v44_v18 = vsel %vm34_vm1, %v15_v13, 0.0  ;;  %v79_v21 = vmul.f32 %v13_v7, %v13_v7  ;;  %v46_v22 = vsel %vm34_vm1, %v16_v19, 0.0  ;;  %v18_v31 = vld [vmem:[%s258_s0 + $0x40] sm:$0xff]  ;;  %v19_v37 = vld [vmem:[%s258_s0 + $0x48] sm:$0xff]  ;;  %v20_v43 = vld [vmem:[%s258_s0 + $0x50] sm:$0xff] }
   0x5   :  { %v39_v11 = vadd.f32 %v38_v6, %v37_v8  ;;  %v80_v23 = vmul.f32 %v14_v10, %v14_v10  ;;  %v92_v26 = vsel %vm34_vm1, %v76_v15, 0.0  ;;  %v93_v27 = vsel %vm34_vm1, %v77_v16, 0.0  ;;  %v21_v49 = vld [vmem:[%s258_s0 + $0x58] sm:$0xff]  ;;  %v22_v55 = vld [vmem:[%s258_s0 + $0x60] sm:$0xff]  ;;  %v23_v61 = vld [vmem:[%s258_s0 + $0x68] sm:$0xff] }
   0x6   :  { %v95_v28 = vsel %vm34_vm1, %v78_v17, 0.0  ;;  %v48_v29 = vsel %vm34_vm1, %v17_v24, 0.0  ;;  %v94_v30 = vadd.f32 %v93_v27, %v92_v26  ;;  %v81_v33 = vmul.f32 %v15_v13, %v15_v13  ;;  %v24_v3 = vld [vmem:[%s258_s0 + $0x70] sm:$0xff] }
   0x7   :  { %v41_v14 = vadd.f32 %v40_v9, %v39_v11  ;;  %v97_v34 = vsel %vm34_vm1, %v79_v21, 0.0  ;;  %v50_v35 = vsel %vm34_vm1, %v18_v31, 0.0  ;;  %v82_v39 = vmul.f32 %v16_v19, %v16_v19  ;;  %v25_v9 = vld [vmem:[%s258_s0 + $0x78] sm:$0xff] }
   0x8   :  { %v96_v36 = vadd.f32 %v95_v28, %v94_v30  ;;  %v99_v40 = vsel %vm34_vm1, %v80_v23, 0.0  ;;  %v52_v41 = vsel %vm34_vm1, %v19_v37, 0.0  ;;  %v83_v45 = vmul.f32 %v17_v24, %v17_v24 }
   0x9   :  { %v43_v20 = vadd.f32 %v42_v12, %v41_v14  ;;  %v101_v46 = vsel %vm34_vm1, %v81_v33, 0.0  ;;  %v54_v47 = vsel %vm34_vm1, %v20_v43, 0.0  ;;  %v84_v51 = vmul.f32 %v18_v31, %v18_v31 }
   0xa   :  { %v98_v42 = vadd.f32 %v97_v34, %v96_v36  ;;  %v103_v52 = vsel %vm34_vm1, %v82_v39, 0.0  ;;  %v56_v53 = vsel %vm34_vm1, %v21_v49, 0.0  ;;  %v85_v57 = vmul.f32 %v19_v37, %v19_v37  ;;  %v33_v36 = vld [vmem:[%s259_s1] sm:$0x1] }
   0xb   :  { %v45_v25 = vadd.f32 %v44_v18, %v43_v20  ;;  %v105_v58 = vsel %vm34_vm1, %v83_v45, 0.0  ;;  %v58_v59 = vsel %vm34_vm1, %v22_v55, 0.0  ;;  %v86_v63 = vmul.f32 %v20_v43, %v20_v43 }
   0xc   :  { %v100_v48 = vadd.f32 %v99_v40, %v98_v42  ;;  %v107_v0 = vsel %vm34_vm1, %v84_v51, 0.0  ;;  %v60_v1 = vsel %vm34_vm1, %v23_v61, 0.0  ;;  %v87_v5 = vmul.f32 %v21_v49, %v21_v49 }
   0xd   :  { %v47_v32 = vadd.f32 %v46_v22, %v45_v25  ;;  %v109_v6 = vsel %vm34_vm1, %v85_v57, 0.0  ;;  %v62_v7 = vsel %vm34_vm1, %v24_v3, 0.0  ;;  %v88_v11 = vmul.f32 %v22_v55, %v22_v55 }
   0xe   :  { %v102_v54 = vadd.f32 %v101_v46, %v100_v48  ;;  %v111_v12 = vsel %vm34_vm1, %v86_v63, 0.0  ;;  %v64_v13 = vsel %vm34_vm1, %v25_v9, 0.0  ;;  %v89_v16 = vmul.f32 %v23_v61, %v23_v61 }
   0xf   :  { %v49_v38 = vadd.f32 %v48_v29, %v47_v32  ;;  %v113_v17 = vsel %vm34_vm1, %v87_v5, 0.0  ;;  %v90_v20 = vmul.f32 %v24_v3, %v24_v3  ;;  %v115_v21 = vsel %vm34_vm1, %v88_v11, 0.0 }
  0x10   :  { %v104_v60 = vadd.f32 %v103_v52, %v102_v54  ;;  %v91_v24 = vmul.f32 %v25_v9, %v25_v9  ;;  %v117_v25 = vsel %vm34_vm1, %v89_v16, 0.0 }
  0x11   :  { %v51_v44 = vadd.f32 %v50_v35, %v49_v38  ;;  %v119_v28 = vsel %vm34_vm1, %v90_v20, 0.0 }
  0x12   :  { %v106_v2 = vadd.f32 %v105_v58, %v104_v60  ;;  %v121_v31 = vsel %vm34_vm1, %v91_v24, 0.0 }
  0x13   :  { %v53_v50 = vadd.f32 %v52_v41, %v51_v44  ;;  %v75_v44 = vld [vmem:[%s260_s2] sm:$0x1] }
  0x14   :  { %v108_v8 = vadd.f32 %v107_v0, %v106_v2 }
  0x15   :  { %v55_v56 = vadd.f32 %v54_v47, %v53_v50 }
  0x16   :  { %v110_v14 = vadd.f32 %v109_v6, %v108_v8 }
  0x17   :  { %v57_v62 = vadd.f32 %v56_v53, %v55_v56 }
  0x18   :  { %v112_v18 = vadd.f32 %v111_v12, %v110_v14 }
  0x19   :  { %v59_v4 = vadd.f32 %v58_v59, %v57_v62 }
  0x1a   :  { %v114_v22 = vadd.f32 %v113_v17, %v112_v18 }
  0x1b   :  { %v61_v10 = vadd.f32 %v60_v1, %v59_v4 }
  0x1c   :  { %v116_v26 = vadd.f32 %v115_v21, %v114_v22 }
  0x1d   :  { %v63_v15 = vadd.f32 %v62_v7, %v61_v10 }
  0x1e   :  { %v118_v29 = vadd.f32 %v117_v25, %v116_v26 }
  0x1f   :  { %v65_v19 = vadd.f32 %v64_v13, %v63_v15 }
  0x20   :  { %v120_v32 = vadd.f32 %v119_v28, %v118_v29 }
  0x21   :  { %v66_v23 = vrot.slane %v65_v19, 4 }
  0x22   :  { %v122_v34 = vadd.f32 %v121_v31, %v120_v32 }
  0x23   :  { %v67_v27 = vadd.f32 %v66_v23, %v65_v19 }
  0x24   :  { %v123_v37 = vrot.slane %v122_v34, 4 }
  0x25   :  { %v68_v30 = vrot.slane %v67_v27, 2 }
  0x26   :  { %v124_v39 = vadd.f32 %v123_v37, %v122_v34 }
  0x27   :  { %v69_v33 = vadd.f32 %v68_v30, %v67_v27 }
  0x28   :  { %v125_v41 = vrot.slane %v124_v39, 2 }
  0x29   :  { %v70_v35 = vrot.slane %v69_v33, 1 }
  0x2a   :  { %v126_v42 = vadd.f32 %v125_v41, %v124_v39 }
  0x2b   :  { %v71_v38 = vadd.f32 %v70_v35, %v69_v33 }
  0x2c   :  { %v127_v43 = vrot.slane %v126_v42, 1 }
  0x2d   :  { %v72_v40 = vadd.f32 %v71_v38, %v33_v36 }
  0x2e   :  { %v128_v45 = vadd.f32 %v127_v43, %v126_v42 }
  0x2f   :  { %74 = vst.msk [vmem:[%s259_s1] sm:$0x1] %vm30_vm0, %v72_v40 }
  0x30   :  { %v129_v46 = vadd.f32 %v128_v45, %v75_v44 }
  0x32   :  { %130 = vst.msk [vmem:[%s260_s2] sm:$0x1] %vm30_vm0, %v129_v46 }

// kernel: unet_forward.27
= control target key start
LH: loop header
LB: loop body
LE: loop exit
PB: predicated region body
PF: predicated region fallthrough
CT: control target
= control target key end

     0   :  { %vm70_vm0 = vcmask 130048   ;;  %s231_s0 = inlined_call_operand.vmem [shape: f32[128,16], index: 0, kind: input, shape index: {}]   ;;  %s232_s1 = inlined_call_operand.vmem [shape: f32[1,16], index: 1, kind: input, shape index: {}]   ;;  %s233_s2 = inlined_call_operand.vmem [shape: f32[1,16], index: 2, kind: input, shape index: {}]   ;;  %s234_s3 = inlined_call_operand.vmem [shape: f32[128,16], index: 3, kind: output, shape index: {}]  }
   0x1   :  { %v14_v0 = vld [vmem:[%s231_s0] sm:$0xff]  ;;  %v15_v3 = vld [vmem:[%s231_s0 + $0x8] sm:$0xff]  ;;  %v16_v6 = vld [vmem:[%s231_s0 + $0x10] sm:$0xff] }
   0x2   :  { %v91_v1 = vld [vmem:[%s232_s1] ss:$0 sm:$0xff]  ;;  %v17_v7 = vld [vmem:[%s231_s0 + $0x18] sm:$0xff]  ;;  %v19_v12 = vld [vmem:[%s231_s0 + $0x28] sm:$0xff] }
   0x3   :  { %v92_v2 = vld [vmem:[%s233_s2] ss:$0 sm:$0xff]  ;;  %v34_v4 = vmul.f32 %v91_v1, %v14_v0  ;;  %v35_v5 = vmul.f32 %v91_v1, %v15_v3  ;;  %v36_v9 = vmul.f32 %v91_v1, %v16_v6  ;;  %v37_v10 = vmul.f32 %v91_v1, %v17_v7  ;;  %v20_v13 = vld [vmem:[%s231_s0 + $0x30] sm:$0xff]  ;;  %v21_v14 = vld [vmem:[%s231_s0 + $0x38] sm:$0xff] }
   0x4   :  { %v18_v8 = vld [vmem:[%s231_s0 + $0x20] sm:$0xff]  ;;  %v39_v17 = vmul.f32 %v91_v1, %v19_v12  ;;  %v40_v18 = vmul.f32 %v91_v1, %v20_v13  ;;  %v23_v20 = vld [vmem:[%s231_s0 + $0x48] sm:$0xff]  ;;  %v41_v23 = vmul.f32 %v91_v1, %v21_v14  ;;  %v24_v24 = vld [vmem:[%s231_s0 + $0x50] sm:$0xff] }
   0x5   :  { %v38_v11 = vmul.f32 %v91_v1, %v18_v8  ;;  %v54_v15 = vadd.f32 %v92_v2, %v34_v4  ;;  %v55_v16 = vadd.f32 %v92_v2, %v35_v5  ;;  %v22_v19 = vld [vmem:[%s231_s0 + $0x40] sm:$0xff]  ;;  %v56_v21 = vadd.f32 %v92_v2, %v36_v9  ;;  %v25_v27 = vld [vmem:[%s231_s0 + $0x58] sm:$0xff]  ;;  %v27_v33 = vld [vmem:[%s231_s0 + $0x68] sm:$0xff] }
   0x6   :  { %v57_v22 = vadd.f32 %v92_v2, %v37_v10  ;;  %v42_v26 = vmul.f32 %v91_v1, %v22_v19  ;;  %v59_v28 = vadd.f32 %v92_v2, %v39_v17  ;;  %v43_v29 = vmul.f32 %v91_v1, %v23_v20  ;;  %v26_v30 = vld [vmem:[%s231_s0 + $0x60] sm:$0xff]  ;;  %v28_v36 = vld [vmem:[%s231_s0 + $0x70] sm:$0xff]  ;;  %v29_v39 = vld [vmem:[%s231_s0 + $0x78] sm:$0xff] }
   0x7   :  { %71 = vst.msk [vmem:[%s234_s3] sm:$0xff] %vm70_vm0, %v54_v15  ;;  %v58_v25 = vadd.f32 %v92_v2, %v38_v11  ;;  %v60_v31 = vadd.f32 %v92_v2, %v40_v18  ;;  %v44_v32 = vmul.f32 %v91_v1, %v24_v24  ;;  %v61_v34 = vadd.f32 %v92_v2, %v41_v23 }
   0x8   :  { %72 = vst.msk [vmem:[%s234_s3 + $0x8] sm:$0xff] %vm70_vm0, %v55_v16  ;;  %v45_v35 = vmul.f32 %v91_v1, %v25_v27  ;;  %v62_v37 = vadd.f32 %v92_v2, %v42_v26  ;;  %v46_v38 = vmul.f32 %v91_v1, %v26_v30  ;;  %v63_v40 = vadd.f32 %v92_v2, %v43_v29 }
   0x9   :  { %73 = vst.msk [vmem:[%s234_s3 + $0x10] sm:$0xff] %vm70_vm0, %v56_v21  ;;  %v47_v41 = vmul.f32 %v91_v1, %v27_v33  ;;  %v64_v42 = vadd.f32 %v92_v2, %v44_v32  ;;  %v48_v43 = vmul.f32 %v91_v1, %v28_v36  ;;  %v49_v45 = vmul.f32 %v91_v1, %v29_v39 }
   0xa   :  { %74 = vst.msk [vmem:[%s234_s3 + $0x18] sm:$0xff] %vm70_vm0, %v57_v22  ;;  %v65_v44 = vadd.f32 %v92_v2, %v45_v35  ;;  %v66_v46 = vadd.f32 %v92_v2, %v46_v38 }
   0xb   :  { %75 = vst.msk [vmem:[%s234_s3 + $0x20] sm:$0xff] %vm70_vm0, %v58_v25  ;;  %v67_v47 = vadd.f32 %v92_v2, %v47_v41  ;;  %v68_v48 = vadd.f32 %v92_v2, %v48_v43  ;;  %v69_v49 = vadd.f32 %v92_v2, %v49_v45 }
   0xc   :  { %76 = vst.msk [vmem:[%s234_s3 + $0x28] sm:$0xff] %vm70_vm0, %v59_v28 }
   0xd   :  { %77 = vst.msk [vmem:[%s234_s3 + $0x30] sm:$0xff] %vm70_vm0, %v60_v31 }
   0xe   :  { %78 = vst.msk [vmem:[%s234_s3 + $0x38] sm:$0xff] %vm70_vm0, %v61_v34 }
   0xf   :  { %79 = vst.msk [vmem:[%s234_s3 + $0x40] sm:$0xff] %vm70_vm0, %v62_v37 }
  0x10   :  { %80 = vst.msk [vmem:[%s234_s3 + $0x48] sm:$0xff] %vm70_vm0, %v63_v40 }
  0x11   :  { %81 = vst.msk [vmem:[%s234_s3 + $0x50] sm:$0xff] %vm70_vm0, %v64_v42 }
  0x12   :  { %82 = vst.msk [vmem:[%s234_s3 + $0x58] sm:$0xff] %vm70_vm0, %v65_v44 }
  0x13   :  { %83 = vst.msk [vmem:[%s234_s3 + $0x60] sm:$0xff] %vm70_vm0, %v66_v46 }
  0x14   :  { %84 = vst.msk [vmem:[%s234_s3 + $0x68] sm:$0xff] %vm70_vm0, %v67_v47 }
  0x15   :  { %85 = vst.msk [vmem:[%s234_s3 + $0x70] sm:$0xff] %vm70_vm0, %v68_v48 }
  0x16   :  { %86 = vst.msk [vmem:[%s234_s3 + $0x78] sm:$0xff] %vm70_vm0, %v69_v49 }

// kernel: unet_forward.29
= control target key start
LH: loop header
LB: loop body
LE: loop exit
PB: predicated region body
PF: predicated region fallthrough
CT: control target
= control target key end

     0   :  { %vm18_vm0 = vcmask 253952   ;;  %vm22_vm1 = vcmask 261120   ;;  %v68_v3 = vmov 0.0   ;;  %s126_s0 = inlined_call_operand.vmem [shape: f32[32,32], index: 0, kind: input, shape index: {}]   ;;  %s127_s1 = inlined_call_operand.vmem [shape: f32[1,32], index: 1, kind: output, shape index: {0}]   ;;  %s128_s2 = inlined_call_operand.vmem [shape: f32[1,32], index: 2, kind: output, shape index: {1}]  }
   0x1   :  { %v10_v0 = vld [vmem:[%s126_s0] sm:$0xff]  ;;  %v11_v1 = vld [vmem:[%s126_s0 + $0x8] sm:$0xff]  ;;  %v12_v2 = vld [vmem:[%s126_s0 + $0x10] sm:$0xff]  ;;  %19 = vst.msk [vmem:[%s127_s1] sm:$0x1] %vm18_vm0, %v68_v3 }
   0x2   :  { %v13_v4 = vld [vmem:[%s126_s0 + $0x18] sm:$0xff]  ;;  %v23_v5 = vsel %vm22_vm1, %v10_v0, 0.0  ;;  %v24_v6 = vsel %vm22_vm1, %v11_v1, 0.0  ;;  %v26_v7 = vsel %vm22_vm1, %v12_v2, 0.0  ;;  %20 = vst.msk [vmem:[%s128_s2] sm:$0x1] %vm18_vm0, %v68_v3  ;;  %v40_v8 = vmul.f32 %v10_v0, %v10_v0 }
   0x3   :  { %v25_v9 = vadd.f32 %v24_v6, %v23_v5  ;;  %v41_v10 = vmul.f32 %v11_v1, %v11_v1  ;;  %v42_v11 = vmul.f32 %v12_v2, %v12_v2  ;;  %v28_v12 = vsel %vm22_vm1, %v13_v4, 0.0 }
   0x4   :  { %v43_v13 = vmul.f32 %v13_v4, %v13_v4  ;;  %v44_v14 = vsel %vm22_vm1, %v40_v8, 0.0 }
   0x5   :  { %v27_v15 = vadd.f32 %v26_v7, %v25_v9  ;;  %v45_v16 = vsel %vm22_vm1, %v41_v10, 0.0  ;;  %v47_v17 = vsel %vm22_vm1, %v42_v11, 0.0 }
   0x6   :  { %v46_v18 = vadd.f32 %v45_v16, %v44_v14  ;;  %v49_v20 = vsel %vm22_vm1, %v43_v13, 0.0 }
   0x7   :  { %v29_v19 = vadd.f32 %v28_v12, %v27_v15 }
   0x8   :  { %v48_v21 = vadd.f32 %v47_v17, %v46_v18  ;;  %v21_v31 = vld [vmem:[%s127_s1] sm:$0x1] }
   0x9   :  { %v30_v22 = vrot.slane %v29_v19, 4  ;;  %v39_v36 = vld [vmem:[%s128_s2] sm:$0x1] }
   0xa   :  { %v50_v23 = vadd.f32 %v49_v20, %v48_v21 }
   0xb   :  { %v31_v24 = vadd.f32 %v30_v22, %v29_v19 }
   0xc   :  { %v51_v25 = vrot.slane %v50_v23, 4 }
   0xd   :  { %v32_v26 = vrot.slane %v31_v24, 2 }
   0xe   :  { %v52_v27 = vadd.f32 %v51_v25, %v50_v23 }
   0xf   :  { %v33_v28 = vadd.f32 %v32_v26, %v31_v24 }
  0x10   :  { %v53_v29 = vrot.slane %v52_v27, 2 }
  0x11   :  { %v34_v30 = vrot.slane %v33_v28, 1 }
  0x12   :  { %v54_v32 = vadd.f32 %v53_v29, %v52_v27 }
  0x13   :  { %v35_v33 = vadd.f32 %v34_v30, %v33_v28 }
  0x14   :  { %v55_v34 = vrot.slane %v54_v32, 1 }
  0x15   :  { %v36_v35 = vadd.f32 %v35_v33, %v21_v31 }
  0x16   :  { %v56_v37 = vadd.f32 %v55_v34, %v54_v32 }
  0x17   :  { %38 = vst.msk [vmem:[%s127_s1] sm:$0x1] %vm18_vm0, %v36_v35 }
  0x18   :  { %v57_v38 = vadd.f32 %v56_v37, %v39_v36 }
  0x1a   :  { %58 = vst.msk [vmem:[%s128_s2] sm:$0x1] %vm18_vm0, %v57_v38 }

// kernel: unet_forward.30
= control target key start
LH: loop header
LB: loop body
LE: loop exit
PB: predicated region body
PF: predicated region fallthrough
CT: control target
= control target key end

     0   :  { %vm34_vm0 = vcmask 261120   ;;  %s95_s0 = inlined_call_operand.vmem [shape: f32[32,32], index: 0, kind: input, shape index: {}]   ;;  %s96_s1 = inlined_call_operand.vmem [shape: f32[1,32], index: 1, kind: input, shape index: {}]   ;;  %s97_s2 = inlined_call_operand.vmem [shape: f32[1,32], index: 2, kind: input, shape index: {}]   ;;  %s98_s3 = inlined_call_operand.vmem [shape: f32[32,32], index: 3, kind: output, shape index: {}]  }
   0x1   :  { %v14_v0 = vld [vmem:[%s95_s0] sm:$0xff]  ;;  %v15_v3 = vld [vmem:[%s95_s0 + $0x8] sm:$0xff]  ;;  %v16_v6 = vld [vmem:[%s95_s0 + $0x10] sm:$0xff] }
   0x2   :  { %v43_v1 = vld [vmem:[%s96_s1] ss:$0 sm:$0xff]  ;;  %v17_v7 = vld [vmem:[%s95_s0 + $0x18] sm:$0xff] }
   0x3   :  { %v44_v2 = vld [vmem:[%s97_s2] ss:$0 sm:$0xff]  ;;  %v22_v4 = vmul.f32 %v43_v1, %v14_v0  ;;  %v23_v5 = vmul.f32 %v43_v1, %v15_v3  ;;  %v24_v8 = vmul.f32 %v43_v1, %v16_v6  ;;  %v25_v9 = vmul.f32 %v43_v1, %v17_v7 }
   0x5   :  { %v30_v10 = vadd.f32 %v44_v2, %v22_v4  ;;  %v31_v11 = vadd.f32 %v44_v2, %v23_v5  ;;  %v32_v12 = vadd.f32 %v44_v2, %v24_v8  ;;  %v33_v13 = vadd.f32 %v44_v2, %v25_v9 }
   0x7   :  { %35 = vst.msk [vmem:[%s98_s3] sm:$0xff] %vm34_vm0, %v30_v10 }
   0x8   :  { %36 = vst.msk [vmem:[%s98_s3 + $0x8] sm:$0xff] %vm34_vm0, %v31_v11 }
   0x9   :  { %37 = vst.msk [vmem:[%s98_s3 + $0x10] sm:$0xff] %vm34_vm0, %v32_v12 }
   0xa   :  { %38 = vst.msk [vmem:[%s98_s3 + $0x18] sm:$0xff] %vm34_vm0, %v33_v13 }

// kernel: unet_forward.28
= control target key start
LH: loop header
LB: loop body
LE: loop exit
PB: predicated region body
PF: predicated region fallthrough
CT: control target
= control target key end

     0   :  { %s429_s1 = inlined_call_operand.vmem [shape: bf16[256,128], index: 1, kind: input, shape index: {}]   ;;  %s430_s2 = inlined_call_operand.vmem [shape: f32[1,128], index: 2, kind: input, shape index: {}]   ;;  %s431_s0 = inlined_call_operand.vmem [shape: bf16[32,256], index: 0, kind: input, shape index: {}]   ;;  %s432_s3 = inlined_call_operand.vmem [shape: f32[32,128], index: 3, kind: output, shape index: {}]  }
   0x1   :  { %v303_v0 = vld [vmem:[%s429_s1 + $0x38] sm:$0xff]  ;;  %v302_v2 = vld [vmem:[%s429_s1 + $0x30] sm:$0xff]  ;;  %v301_v4 = vld [vmem:[%s429_s1 + $0x28] sm:$0xff] }
   0x2   :  { %v311_v1 = vld [vmem:[%s429_s1 + $0x78] sm:$0xff]  ;;  %186 = vmatpush.bf16.msra.mxu0 %v303_v0  ;;  %312 = vmatpush.bf16.msra.mxu2 %v303_v0  ;;  %v310_v3 = vld [vmem:[%s429_s1 + $0x70] sm:$0xff]  ;;  %v309_v5 = vld [vmem:[%s429_s1 + $0x68] sm:$0xff] }
   0x3   :  { %205 = vmatpush.bf16.msra.mxu1 %v311_v1  ;;  %320 = vmatpush.bf16.msra.mxu3 %v311_v1  ;;  %v300_v6 = vld [vmem:[%s429_s1 + $0x20] sm:$0xff]  ;;  %v299_v9 = vld [vmem:[%s429_s1 + $0x18] sm:$0xff]  ;;  %v15_v10 = vld [vmem:[%s431_s0 + $0x8] sm:$0xff] }
   0x4   :  { %v308_v7 = vld [vmem:[%s429_s1 + $0x60] sm:$0xff]  ;;  %v16_v11 = vld [vmem:[%s431_s0 + $0x10] sm:$0xff]  ;;  %v307_v12 = vld [vmem:[%s429_s1 + $0x58] sm:$0xff]  ;;  %v20_v15 = vunpack.c.l.bf16 %v15_v10  ;;  %v21_v21 = vunpack.c.h.bf16 %v15_v10 }
   0x5   :  { %v14_v8 = vld [vmem:[%s431_s0] sm:$0xff]  ;;  %v17_v13 = vld [vmem:[%s431_s0 + $0x18] sm:$0xff]  ;;  %v22_v16 = vunpack.c.l.bf16 %v16_v11  ;;  %v298_v17 = vld [vmem:[%s429_s1 + $0x10] sm:$0xff]  ;;  %v23_v22 = vunpack.c.h.bf16 %v16_v11 }
   0x6   :  { %187 = vmatpush.bf16.msra.mxu0 %v302_v2  ;;  %313 = vmatpush.bf16.msra.mxu2 %v302_v2  ;;  %v18_v14 = vunpack.c.l.bf16 %v14_v8  ;;  %v24_v18 = vunpack.c.l.bf16 %v17_v13  ;;  %v19_v19 = vunpack.c.h.bf16 %v14_v8  ;;  %v306_v20 = vld [vmem:[%s429_s1 + $0x50] sm:$0xff]  ;;  %v25_v23 = vunpack.c.h.bf16 %v17_v13  ;;  %v297_v24 = vld [vmem:[%s429_s1 + $0x8] sm:$0xff]  ;;  %v296_v36 = vld [vmem:[%s429_s1] sm:$0xff] }
   0x7   :  { %206 = vmatpush.bf16.msra.mxu1 %v310_v3  ;;  %321 = vmatpush.bf16.msra.mxu3 %v310_v3  ;;  %v305_v26 = vld [vmem:[%s429_s1 + $0x48] sm:$0xff]  ;;  %vm28_vm1 = vcmp.ge.f32.partialorder %v20_v15, 0.0  ;;  %v36_v27 = vmul.f32 0.2, %v20_v15  ;;  %vm30_vm2 = vcmp.ge.f32.partialorder %v22_v16, 0.0  ;;  %vm29_vm5 = vcmp.ge.f32.partialorder %v21_v21, 0.0 }
   0x8   :  { %vm26_vm0 = vcmp.ge.f32.partialorder %v18_v14, 0.0  ;;  %v34_v25 = vmul.f32 0.2, %v18_v14  ;;  %v38_v28 = vmul.f32 0.2, %v22_v16  ;;  %vm32_vm3 = vcmp.ge.f32.partialorder %v24_v18, 0.0 }
   0x9   :  { %v40_v29 = vmul.f32 0.2, %v24_v18  ;;  %vm27_vm4 = vcmp.ge.f32.partialorder %v19_v19, 0.0  ;;  %v35_v30 = vmul.f32 0.2, %v19_v19  ;;  %vm31_vm6 = vcmp.ge.f32.partialorder %v23_v22, 0.0 }
   0xa   :  { %188 = vmatpush.bf16.msra.mxu0 %v301_v4  ;;  %314 = vmatpush.bf16.msra.mxu2 %v301_v4  ;;  %v37_v31 = vmul.f32 0.2, %v21_v21  ;;  %v39_v32 = vmul.f32 0.2, %v23_v22  ;;  %v41_v33 = vmul.f32 0.2, %v25_v23  ;;  %v42_v34 = vsel %vm26_vm0, %v18_v14, %v34_v25 }
   0xb   :  { %207 = vmatpush.bf16.msra.mxu1 %v309_v5  ;;  %322 = vmatpush.bf16.msra.mxu3 %v309_v5  ;;  %vm33_vm7 = vcmp.ge.f32.partialorder %v25_v23, 0.0  ;;  %v44_v35 = vsel %vm28_vm1, %v20_v15, %v36_v27  ;;  %v46_v37 = vsel %vm30_vm2, %v22_v16, %v38_v28  ;;  %v48_v38 = vsel %vm32_vm3, %v24_v18, %v40_v29  ;;  %v304_v40 = vld [vmem:[%s429_s1 + $0x40] sm:$0xff] }
   0xc   :  { %v43_v39 = vsel %vm27_vm4, %v19_v19, %v35_v30  ;;  %v45_v41 = vsel %vm29_vm5, %v21_v21, %v37_v31  ;;  %v47_v42 = vsel %vm31_vm6, %v23_v22, %v39_v32  ;;  %v49_v43 = vsel %vm33_vm7, %v25_v23, %v41_v33  ;;  %v328_v48 = vld [vmem:[%s430_s2] ss:$0 sm:$0xff] }
   0xd   :  { %v50_v44 = vpack.c.bf16 %v44_v35, %v42_v34  ;;  %v52_v45 = vpack.c.bf16 %v48_v38, %v46_v37  ;;  %v51_v46 = vpack.c.bf16 %v45_v41, %v43_v39  ;;  %v53_v47 = vpack.c.bf16 %v49_v43, %v47_v42 }
   0xe   :  { %189 = vmatpush.bf16.msra.mxu0 %v300_v6  ;;  %315 = vmatpush.bf16.msra.mxu2 %v300_v6 }
   0xf   :  { %208 = vmatpush.bf16.msra.mxu1 %v308_v7  ;;  %323 = vmatpush.bf16.msra.mxu3 %v308_v7 }
  0x12   :  { %190 = vmatpush.bf16.msra.mxu0 %v299_v9  ;;  %316 = vmatpush.bf16.msra.mxu2 %v299_v9 }
  0x13   :  { %209 = vmatpush.bf16.msra.mxu1 %v307_v12  ;;  %324 = vmatpush.bf16.msra.mxu3 %v307_v12 }
  0x16   :  { %191 = vmatpush.bf16.msra.mxu0 %v298_v17  ;;  %317 = vmatpush.bf16.msra.mxu2 %v298_v17 }
  0x17   :  { %210 = vmatpush.bf16.msra.mxu1 %v306_v20  ;;  %325 = vmatpush.bf16.msra.mxu3 %v306_v20 }
  0x1a   :  { %192 = vmatpush.bf16.msra.mxu0 %v297_v24  ;;  %318 = vmatpush.bf16.msra.mxu2 %v297_v24 }
  0x1b   :  { %211 = vmatpush.bf16.msra.mxu1 %v305_v26  ;;  %326 = vmatpush.bf16.msra.mxu3 %v305_v26 }
  0x1e   :  { %193 = vmatpush.bf16.msra.mxu0 %v296_v36  ;;  %319 = vmatpush.bf16.msra.mxu2 %v296_v36 }
  0x1f   :  { %212 = vmatpush.bf16.msra.mxu1 %v304_v40  ;;  %327 = vmatpush.bf16.msra.mxu3 %v304_v40 }
  0x21   :  { %194 = vmatmul.bf16.vlgmr.msra.gmra.mxu0 %v50_v44  ;;  %199 = vmatmul.bf16.vlgmr.msra.gmra.mxu2 %v52_v45 }
  0x22   :  { %213 = vmatmul.bf16.vlgmr.msra.gmra.mxu1 %v51_v46  ;;  %218 = vmatmul.bf16.vlgmr.msra.gmra.mxu3 %v53_v47 }
  0x9e   :  { %v195_v49 = vpop.f32.mrf.mxu0 }
  0x9f   :  { %v196_v50 = vadd.f32 %v328_v48, %v195_v49  ;;  %v214_v51 = vpop.f32.mrf.mxu1 }
  0xa1   :  { %v215_v52 = vadd.f32 %v214_v51, %v196_v50 }
  0xa3   :  { %224 = vst [vmem:[%s432_s3] sm:$0xff] %v215_v52 }
  0xa4   :  { %v200_v53 = vpop.f32.mrf.mxu2 }
  0xa5   :  { %v201_v54 = vadd.f32 %v328_v48, %v200_v53  ;;  %v219_v55 = vpop.f32.mrf.mxu3 }
  0xa6   :  { %v197_v56 = vpop.f32.mrf.mxu0 }
  0xa7   :  { %v220_v57 = vadd.f32 %v219_v55, %v201_v54  ;;  %v198_v58 = vadd.f32 %v328_v48, %v197_v56  ;;  %v216_v59 = vpop.f32.mrf.mxu1 }
  0xa9   :  { %226 = vst [vmem:[%s432_s3 + $0x10] sm:$0xff] %v220_v57  ;;  %v217_v60 = vadd.f32 %v216_v59, %v198_v58 }
  0xab   :  { %225 = vst [vmem:[%s432_s3 + $0x8] sm:$0xff] %v217_v60 }
  0xac   :  { %v202_v61 = vpop.f32.mrf.mxu2 }
  0xad   :  { %v203_v62 = vadd.f32 %v328_v48, %v202_v61  ;;  %v221_v63 = vpop.f32.mrf.mxu3 }
  0xaf   :  { %v222_v0 = vadd.f32 %v221_v63, %v203_v62 }
  0xb1   :  { %227 = vst [vmem:[%s432_s3 + $0x18] sm:$0xff] %v222_v0 }

// kernel: unet_forward.33
= control target key start
LH: loop header
LB: loop body
LE: loop exit
PB: predicated region body
PF: predicated region fallthrough
CT: control target
= control target key end

     0   :  { %vm25_vm0 = vcmask 523264   ;;  %s65_s0 = inlined_call_operand.vmem [shape: f32[8,64], index: 0, kind: input, shape index: {}]   ;;  %s66_s1 = inlined_call_operand.vmem [shape: f32[1,64], index: 1, kind: input, shape index: {}]   ;;  %s67_s2 = inlined_call_operand.vmem [shape: f32[1,64], index: 2, kind: input, shape index: {}]   ;;  %s68_s3 = inlined_call_operand.vmem [shape: f32[8,64], index: 3, kind: output, shape index: {}]  }
   0x1   :  { %v14_v0 = vld [vmem:[%s65_s0] sm:$0xff] }
   0x2   :  { %v31_v1 = vld [vmem:[%s66_s1] ss:$0 sm:$0xff] }
   0x3   :  { %v32_v2 = vld [vmem:[%s67_s2] ss:$0 sm:$0xff]  ;;  %v19_v3 = vmul.f32 %v31_v1, %v14_v0 }
   0x5   :  { %v24_v4 = vadd.f32 %v32_v2, %v19_v3 }
   0x7   :  { %26 = vst.msk [vmem:[%s68_s3] sm:$0xff] %vm25_vm0, %v24_v4 }

// kernel: unet_forward.32
= control target key start
LH: loop header
LB: loop body
LE: loop exit
PB: predicated region body
PF: predicated region fallthrough
CT: control target
= control target key end

     0   :  { %vm15_vm0 = vcmask 516096   ;;  %vm19_vm1 = vcmask 523264   ;;  %v50_v1 = vmov 0.0   ;;  %s91_s0 = inlined_call_operand.vmem [shape: f32[8,64], index: 0, kind: input, shape index: {}]   ;;  %s92_s1 = inlined_call_operand.vmem [shape: f32[1,64], index: 1, kind: output, shape index: {0}]   ;;  %s93_s2 = inlined_call_operand.vmem [shape: f32[1,64], index: 2, kind: output, shape index: {1}]  }
   0x1   :  { %v10_v0 = vld [vmem:[%s91_s0] sm:$0xff]  ;;  %16 = vst.msk [vmem:[%s92_s1] sm:$0x1] %vm15_vm0, %v50_v1 }
   0x2   :  { %v20_v2 = vsel %vm19_vm1, %v10_v0, 0.0  ;;  %17 = vst.msk [vmem:[%s93_s2] sm:$0x1] %vm15_vm0, %v50_v1  ;;  %v31_v3 = vmul.f32 %v10_v0, %v10_v0 }
   0x3   :  { %v21_v4 = vrot.slane %v20_v2, 4 }
   0x4   :  { %v32_v5 = vsel %vm19_vm1, %v31_v3, 0.0 }
   0x5   :  { %v22_v6 = vadd.f32 %v21_v4, %v20_v2  ;;  %v33_v7 = vrot.slane %v32_v5, 4 }
   0x7   :  { %v23_v8 = vrot.slane %v22_v6, 2  ;;  %v34_v9 = vadd.f32 %v33_v7, %v32_v5 }
   0x8   :  { %v18_v14 = vld [vmem:[%s92_s1] sm:$0x1] }
   0x9   :  { %v24_v10 = vadd.f32 %v23_v8, %v22_v6  ;;  %v35_v11 = vrot.slane %v34_v9, 2  ;;  %v30_v17 = vld [vmem:[%s93_s2] sm:$0x1] }
   0xb   :  { %v25_v12 = vrot.slane %v24_v10, 1  ;;  %v36_v13 = vadd.f32 %v35_v11, %v34_v9 }
   0xd   :  { %v26_v15 = vadd.f32 %v25_v12, %v24_v10  ;;  %v37_v16 = vrot.slane %v36_v13, 1 }
   0xf   :  { %v27_v18 = vadd.f32 %v26_v15, %v18_v14  ;;  %v38_v19 = vadd.f32 %v37_v16, %v36_v13 }
  0x11   :  { %29 = vst.msk [vmem:[%s92_s1] sm:$0x1] %vm15_vm0, %v27_v18  ;;  %v39_v20 = vadd.f32 %v38_v19, %v30_v17 }
  0x13   :  { %40 = vst.msk [vmem:[%s93_s2] sm:$0x1] %vm15_vm0, %v39_v20 }

// kernel: tile.7
= control target key start
LH: loop header
LB: loop body
LE: loop exit
PB: predicated region body
PF: predicated region fallthrough
CT: control target
= control target key end

     0   :  { %s26_s0 = inlined_call_operand.<no memory space> [shape: f32[], index: 0, kind: input, shape index: {}]   ;;  %s27_s1 = inlined_call_operand.vmem [shape: f32[1,256], index: 1, kind: output, shape index: {}]  }
   0x1   :  { %v2_v0 = vstv %s26_s0 }
   0x2   :  { %3 = vst [vmem:[%s27_s1] sm:$0x1] %v2_v0 }
   0x3   :  { %6 = vst [vmem:[%s27_s1 + $0x1] sm:$0x1] %v2_v0 }

// kernel: unet_forward.31
= control target key start
LH: loop header
LB: loop body
LE: loop exit
PB: predicated region body
PF: predicated region fallthrough
CT: control target
= control target key end

     0   :  { %s682_s1 = inlined_call_operand.vmem [shape: bf16[512,128], index: 1, kind: input, shape index: {}]   ;;  %s683_s0 = inlined_call_operand.vmem [shape: bf16[16,512], index: 0, kind: input, shape index: {}]   ;;  %s684_s2 = inlined_call_operand.vmem [shape: f32[1,128], index: 2, kind: input, shape index: {}]   ;;  %s685_s3 = inlined_call_operand.vmem [shape: f32[16,128], index: 3, kind: output, shape index: {}]  }
   0x1   :  { %v511_v0 = vld [vmem:[%s682_s1 + $0x38] sm:$0xff]  ;;  %v510_v4 = vld [vmem:[%s682_s1 + $0x30] sm:$0xff]  ;;  %v509_v8 = vld [vmem:[%s682_s1 + $0x28] sm:$0xff] }
   0x2   :  { %v519_v1 = vld [vmem:[%s682_s1 + $0x78] sm:$0xff]  ;;  %314 = vmatpush.bf16.msra.mxu0 %v511_v0  ;;  %v518_v5 = vld [vmem:[%s682_s1 + $0x70] sm:$0xff]  ;;  %v517_v9 = vld [vmem:[%s682_s1 + $0x68] sm:$0xff] }
   0x3   :  { %v527_v2 = vld [vmem:[%s682_s1 + $0xb8] sm:$0xff]  ;;  %328 = vmatpush.bf16.msra.mxu1 %v519_v1  ;;  %v526_v6 = vld [vmem:[%s682_s1 + $0xb0] sm:$0xff]  ;;  %v525_v10 = vld [vmem:[%s682_s1 + $0xa8] sm:$0xff] }
   0x4   :  { %v535_v3 = vld [vmem:[%s682_s1 + $0xf8] sm:$0xff]  ;;  %342 = vmatpush.bf16.msra.mxu2 %v527_v2  ;;  %v534_v7 = vld [vmem:[%s682_s1 + $0xf0] sm:$0xff]  ;;  %v533_v11 = vld [vmem:[%s682_s1 + $0xe8] sm:$0xff] }
   0x5   :  { %356 = vmatpush.bf16.msra.mxu3 %v535_v3  ;;  %v508_v12 = vld [vmem:[%s682_s1 + $0x20] sm:$0xff]  ;;  %v507_v17 = vld [vmem:[%s682_s1 + $0x18] sm:$0xff]  ;;  %v16_v19 = vld [vmem:[%s683_s0 + $0x10] sm:$0xff] }
   0x6   :  { %315 = vmatpush.bf16.msra.mxu0 %v510_v4  ;;  %v516_v13 = vld [vmem:[%s682_s1 + $0x60] sm:$0xff]  ;;  %v515_v18 = vld [vmem:[%s682_s1 + $0x58] sm:$0xff]  ;;  %v15_v22 = vld [vmem:[%s683_s0 + $0x8] sm:$0xff]  ;;  %v22_v25 = vunpack.c.l.bf16 %v16_v19  ;;  %v23_v29 = vunpack.c.h.bf16 %v16_v19 }
   0x7   :  { %329 = vmatpush.bf16.msra.mxu1 %v518_v5  ;;  %v524_v14 = vld [vmem:[%s682_s1 + $0xa0] sm:$0xff]  ;;  %v523_v20 = vld [vmem:[%s682_s1 + $0x98] sm:$0xff]  ;;  %v506_v27 = vld [vmem:[%s682_s1 + $0x10] sm:$0xff]  ;;  %v20_v30 = vunpack.c.l.bf16 %v15_v22  ;;  %v21_v34 = vunpack.c.h.bf16 %v15_v22 }
   0x8   :  { %343 = vmatpush.bf16.msra.mxu2 %v526_v6  ;;  %v532_v15 = vld [vmem:[%s682_s1 + $0xe0] sm:$0xff]  ;;  %v531_v21 = vld [vmem:[%s682_s1 + $0xd8] sm:$0xff]  ;;  %v514_v28 = vld [vmem:[%s682_s1 + $0x50] sm:$0xff]  ;;  %vm30_vm1 = vcmp.ge.f32.partialorder %v22_v25, 0.0  ;;  %v38_v41 = vmul.f32 0.2, %v22_v25 }
   0x9   :  { %357 = vmatpush.bf16.msra.mxu3 %v534_v7  ;;  %v14_v16 = vld [vmem:[%s683_s0] sm:$0xff]  ;;  %v17_v24 = vld [vmem:[%s683_s0 + $0x18] sm:$0xff]  ;;  %v522_v31 = vld [vmem:[%s682_s1 + $0x90] sm:$0xff]  ;;  %vm31_vm3 = vcmp.ge.f32.partialorder %v23_v29, 0.0  ;;  %v39_v43 = vmul.f32 0.2, %v23_v29 }
   0xa   :  { %316 = vmatpush.bf16.msra.mxu0 %v509_v8  ;;  %v18_v23 = vunpack.c.l.bf16 %v14_v16  ;;  %v19_v26 = vunpack.c.h.bf16 %v14_v16  ;;  %v530_v32 = vld [vmem:[%s682_s1 + $0xd0] sm:$0xff]  ;;  %v24_v33 = vunpack.c.l.bf16 %v17_v24  ;;  %v25_v35 = vunpack.c.h.bf16 %v17_v24  ;;  %v505_v36 = vld [vmem:[%s682_s1 + $0x8] sm:$0xff]  ;;  %v504_v50 = vld [vmem:[%s682_s1] sm:$0xff] }
   0xb   :  { %330 = vmatpush.bf16.msra.mxu1 %v517_v9  ;;  %v513_v37 = vld [vmem:[%s682_s1 + $0x48] sm:$0xff]  ;;  %vm28_vm4 = vcmp.ge.f32.partialorder %v20_v30, 0.0  ;;  %v36_v44 = vmul.f32 0.2, %v20_v30  ;;  %v37_v46 = vmul.f32 0.2, %v21_v34  ;;  %v46_v52 = vsel %vm30_vm1, %v22_v25, %v38_v41 }
   0xc   :  { %344 = vmatpush.bf16.msra.mxu2 %v525_v10  ;;  %vm26_vm0 = vcmp.ge.f32.partialorder %v18_v23, 0.0  ;;  %v34_v38 = vmul.f32 0.2, %v18_v23  ;;  %v521_v39 = vld [vmem:[%s682_s1 + $0x88] sm:$0xff]  ;;  %vm27_vm2 = vcmp.ge.f32.partialorder %v19_v26, 0.0  ;;  %vm32_vm5 = vcmp.ge.f32.partialorder %v24_v33, 0.0 }
   0xd   :  { %358 = vmatpush.bf16.msra.mxu3 %v533_v11  ;;  %v529_v40 = vld [vmem:[%s682_s1 + $0xc8] sm:$0xff]  ;;  %v35_v42 = vmul.f32 0.2, %v19_v26  ;;  %v40_v45 = vmul.f32 0.2, %v24_v33  ;;  %vm29_vm6 = vcmp.ge.f32.partialorder %v21_v34, 0.0  ;;  %v47_v53 = vsel %vm31_vm3, %v23_v29, %v39_v43 }
   0xe   :  { %317 = vmatpush.bf16.msra.mxu0 %v508_v12  ;;  %v41_v47 = vmul.f32 0.2, %v25_v35  ;;  %vm33_vm7 = vcmp.ge.f32.partialorder %v25_v35, 0.0  ;;  %v42_v48 = vsel %vm26_vm0, %v18_v23, %v34_v38  ;;  %v512_v51 = vld [vmem:[%s682_s1 + $0x40] sm:$0xff]  ;;  %v44_v54 = vsel %vm28_vm4, %v20_v30, %v36_v44 }
   0xf   :  { %331 = vmatpush.bf16.msra.mxu1 %v516_v13  ;;  %v43_v49 = vsel %vm27_vm2, %v19_v26, %v35_v42  ;;  %v520_v55 = vld [vmem:[%s682_s1 + $0x80] sm:$0xff]  ;;  %v48_v57 = vsel %vm32_vm5, %v24_v33, %v40_v45  ;;  %v45_v58 = vsel %vm29_vm6, %v21_v34, %v37_v46  ;;  %v50_v60 = vpack.c.bf16 %v46_v52, %v42_v48 }
  0x10   :  { %345 = vmatpush.bf16.msra.mxu2 %v524_v14  ;;  %v528_v56 = vld [vmem:[%s682_s1 + $0xc0] sm:$0xff]  ;;  %v49_v59 = vsel %vm33_vm7, %v25_v35, %v41_v47  ;;  %v51_v61 = vpack.c.bf16 %v47_v53, %v43_v49  ;;  %v52_v62 = vpack.c.bf16 %v48_v57, %v44_v54 }
  0x11   :  { %359 = vmatpush.bf16.msra.mxu3 %v532_v15  ;;  %v53_v63 = vpack.c.bf16 %v49_v59, %v45_v58  ;;  %v536_v0 = vld [vmem:[%s684_s2] ss:$0 sm:$0xff] }
  0x12   :  { %318 = vmatpush.bf16.msra.mxu0 %v507_v17 }
  0x13   :  { %332 = vmatpush.bf16.msra.mxu1 %v515_v18 }
  0x14   :  { %346 = vmatpush.bf16.msra.mxu2 %v523_v20 }
  0x15   :  { %360 = vmatpush.bf16.msra.mxu3 %v531_v21 }
  0x16   :  { %319 = vmatpush.bf16.msra.mxu0 %v506_v27 }
  0x17   :  { %333 = vmatpush.bf16.msra.mxu1 %v514_v28 }
  0x18   :  { %347 = vmatpush.bf16.msra.mxu2 %v522_v31 }
  0x19   :  { %361 = vmatpush.bf16.msra.mxu3 %v530_v32 }
  0x1a   :  { %320 = vmatpush.bf16.msra.mxu0 %v505_v36 }
  0x1b   :  { %334 = vmatpush.bf16.msra.mxu1 %v513_v37 }
  0x1c   :  { %348 = vmatpush.bf16.msra.mxu2 %v521_v39 }
  0x1d   :  { %362 = vmatpush.bf16.msra.mxu3 %v529_v40 }
  0x1e   :  { %321 = vmatpush.bf16.msra.mxu0 %v504_v50 }
  0x1f   :  { %335 = vmatpush.bf16.msra.mxu1 %v512_v51 }
  0x20   :  { %349 = vmatpush.bf16.msra.mxu2 %v520_v55 }
  0x21   :  { %363 = vmatpush.bf16.msra.mxu3 %v528_v56  ;;  %322 = vmatmul.bf16.vlgmr.msra.gmra.mxu0 %v50_v60 }
  0x22   :  { %336 = vmatmul.bf16.vlgmr.msra.gmra.mxu1 %v51_v61 }
  0x23   :  { %350 = vmatmul.bf16.vlgmr.msra.gmra.mxu2 %v52_v62 }
  0x24   :  { %364 = vmatmul.bf16.vlgmr.msra.gmra.mxu3 %v53_v63 }
  0x9e   :  { %v323_v1 = vpop.f32.mrf.mxu0 }
  0x9f   :  { %v324_v2 = vadd.f32 %v536_v0, %v323_v1  ;;  %v337_v3 = vpop.f32.mrf.mxu1 }
  0xa1   :  { %v338_v4 = vadd.f32 %v337_v3, %v324_v2 }
  0xa6   :  { %v351_v5 = vpop.f32.mrf.mxu2  ;;  %v325_v8 = vpop.f32.mrf.mxu0 }
  0xa7   :  { %v365_v6 = vpop.f32.mrf.mxu3  ;;  %v352_v7 = vadd.f32 %v351_v5, %v338_v4  ;;  %v326_v10 = vadd.f32 %v536_v0, %v325_v8  ;;  %v339_v11 = vpop.f32.mrf.mxu1 }
  0xa9   :  { %v366_v9 = vadd.f32 %v365_v6, %v352_v7  ;;  %v340_v12 = vadd.f32 %v339_v11, %v326_v10 }
  0xab   :  { %370 = vst [vmem:[%s685_s3] sm:$0xff] %v366_v9 }
  0xae   :  { %v353_v13 = vpop.f32.mrf.mxu2 }
  0xaf   :  { %v354_v14 = vadd.f32 %v353_v13, %v340_v12  ;;  %v367_v15 = vpop.f32.mrf.mxu3 }
  0xb1   :  { %v368_v16 = vadd.f32 %v367_v15, %v354_v14 }
  0xb3   :  { %371 = vst [vmem:[%s685_s3 + $0x8] sm:$0xff] %v368_v16 }

// kernel: unet_forward.37
= control target key start
LH: loop header
LB: loop body
LE: loop exit
PB: predicated region body
PF: predicated region fallthrough
CT: control target
= control target key end

     0   :  { %s43_s21 = smov 64   ;;  %vm33_vm0 = vcmask 523264   ;;  %s84_s1 = inlined_call_operand.vmem [shape: f32[8,64], index: 1, kind: input, shape index: {}]   ;;  %s85_s2 = inlined_call_operand.vmem [shape: f32[1,64], index: 2, kind: input, shape index: {}]   ;;  %s86_s3 = inlined_call_operand.vmem [shape: f32[1,64], index: 3, kind: input, shape index: {}]   ;;  %s87_s0 = inlined_call_operand.vmem [shape: f32[8,64], index: 0, kind: input, shape index: {}]   ;;  %s88_s4 = inlined_call_operand.vmem [shape: f32[8,128], index: 4, kind: output, shape index: {}]  }
   0x1   :  { %v17_v0 = vld [vmem:[%s84_s1] sm:$0xff] }
   0x2   :  { %v41_v1 = vld [vmem:[%s85_s2] ss:$0 sm:$0xff] }
   0x3   :  { %v42_v2 = vld [vmem:[%s86_s3] ss:$0 sm:$0xff]  ;;  %v22_v3 = vmul.f32 %v41_v1, %v17_v0 }
   0x4   :  { %v28_v5 = vld [vmem:[%s87_s0] sm:$0xff] }
   0x5   :  { %v27_v4 = vadd.f32 %v42_v2, %v22_v3 }
   0x7   :  { %30 = vrot.lane.b32.xlu0 %v27_v4, %s43_s21 }
  0x79   :  { %v31_v6 = vpop.permute.xlu0 %30 }
  0x7a   :  { %v34_v7 = vsel %vm33_vm0, %v28_v5, %v31_v6 }
  0x7b   :  { %35 = vst [vmem:[%s88_s4] sm:$0xff] %v34_v7 }

// kernel: tile.6
= control target key start
LH: loop header
LB: loop body
LE: loop exit
PB: predicated region body
PF: predicated region fallthrough
CT: control target
= control target key end

     0   :  { %s20_s0 = inlined_call_operand.<no memory space> [shape: f32[], index: 0, kind: input, shape index: {}]   ;;  %s21_s1 = inlined_call_operand.vmem [shape: f32[1,128], index: 1, kind: output, shape index: {}]  }
   0x1   :  { %v2_v0 = vstv %s20_s0 }
   0x2   :  { %3 = vst [vmem:[%s21_s1] sm:$0x1] %v2_v0 }

// kernel: unet_forward.34
= control target key start
LH: loop header
LB: loop body
LE: loop exit
PB: predicated region body
PF: predicated region fallthrough
CT: control target
= control target key end

     0   :  { %s1310_s1 = inlined_call_operand.vmem [shape: bf16[1024,128], index: 1, kind: input, shape index: {}]   ;;  %s1311_s0 = inlined_call_operand.vmem [shape: bf16[16,1024], index: 0, kind: input, shape index: {}]   ;;  %s1312_s2 = inlined_call_operand.vmem [shape: f32[1,128], index: 2, kind: input, shape index: {}]   ;;  %s1313_s3 = inlined_call_operand.vmem [shape: f32[16,128], index: 3, kind: output, shape index: {}]  }
   0x1   :  { %v991_v0 = vld [vmem:[%s1310_s1 + $0x38] sm:$0xff]  ;;  %v990_v4 = vld [vmem:[%s1310_s1 + $0x30] sm:$0xff]  ;;  %v989_v8 = vld [vmem:[%s1310_s1 + $0x28] sm:$0xff] }
   0x2   :  { %v999_v1 = vld [vmem:[%s1310_s1 + $0x78] sm:$0xff]  ;;  %610 = vmatpush.bf16.msra.mxu0 %v991_v0  ;;  %v998_v5 = vld [vmem:[%s1310_s1 + $0x70] sm:$0xff]  ;;  %v997_v9 = vld [vmem:[%s1310_s1 + $0x68] sm:$0xff] }
   0x3   :  { %v1007_v2 = vld [vmem:[%s1310_s1 + $0xb8] sm:$0xff]  ;;  %624 = vmatpush.bf16.msra.mxu1 %v999_v1  ;;  %v1006_v6 = vld [vmem:[%s1310_s1 + $0xb0] sm:$0xff]  ;;  %v1005_v10 = vld [vmem:[%s1310_s1 + $0xa8] sm:$0xff] }
   0x4   :  { %v1015_v3 = vld [vmem:[%s1310_s1 + $0xf8] sm:$0xff]  ;;  %638 = vmatpush.bf16.msra.mxu2 %v1007_v2  ;;  %v1014_v7 = vld [vmem:[%s1310_s1 + $0xf0] sm:$0xff]  ;;  %v1013_v11 = vld [vmem:[%s1310_s1 + $0xe8] sm:$0xff] }
   0x5   :  { %652 = vmatpush.bf16.msra.mxu3 %v1015_v3  ;;  %v988_v12 = vld [vmem:[%s1310_s1 + $0x20] sm:$0xff]  ;;  %v987_v16 = vld [vmem:[%s1310_s1 + $0x18] sm:$0xff]  ;;  %v15_v18 = vld [vmem:[%s1311_s0 + $0x8] sm:$0xff] }
   0x6   :  { %611 = vmatpush.bf16.msra.mxu0 %v990_v4  ;;  %v996_v13 = vld [vmem:[%s1310_s1 + $0x60] sm:$0xff]  ;;  %v995_v17 = vld [vmem:[%s1310_s1 + $0x58] sm:$0xff]  ;;  %v19_v19 = vld [vmem:[%s1311_s0 + $0x28] sm:$0xff]  ;;  %v24_v24 = vunpack.c.l.bf16 %v15_v18  ;;  %v25_v28 = vunpack.c.h.bf16 %v15_v18 }
   0x7   :  { %625 = vmatpush.bf16.msra.mxu1 %v998_v5  ;;  %v1004_v14 = vld [vmem:[%s1310_s1 + $0xa0] sm:$0xff]  ;;  %v1003_v20 = vld [vmem:[%s1310_s1 + $0x98] sm:$0xff]  ;;  %v32_v25 = vunpack.c.l.bf16 %v19_v19  ;;  %v986_v26 = vld [vmem:[%s1310_s1 + $0x10] sm:$0xff]  ;;  %v33_v33 = vunpack.c.h.bf16 %v19_v19 }
   0x8   :  { %639 = vmatpush.bf16.msra.mxu2 %v1006_v6  ;;  %v1012_v15 = vld [vmem:[%s1310_s1 + $0xe0] sm:$0xff]  ;;  %v1011_v21 = vld [vmem:[%s1310_s1 + $0xd8] sm:$0xff]  ;;  %v994_v27 = vld [vmem:[%s1310_s1 + $0x50] sm:$0xff]  ;;  %vm40_vm0 = vcmp.ge.f32.partialorder %v24_v24, 0.0  ;;  %v56_v39 = vmul.f32 0.2, %v24_v24 }
   0x9   :  { %653 = vmatpush.bf16.msra.mxu3 %v1014_v7  ;;  %v14_v22 = vld [vmem:[%s1311_s0] sm:$0xff]  ;;  %v1002_v29 = vld [vmem:[%s1310_s1 + $0x90] sm:$0xff]  ;;  %v985_v34 = vld [vmem:[%s1310_s1 + $0x8] sm:$0xff]  ;;  %vm48_vm1 = vcmp.ge.f32.partialorder %v32_v25, 0.0  ;;  %v64_v41 = vmul.f32 0.2, %v32_v25 }
   0xa   :  { %612 = vmatpush.bf16.msra.mxu0 %v989_v8  ;;  %v18_v23 = vld [vmem:[%s1311_s0 + $0x20] sm:$0xff]  ;;  %v1010_v30 = vld [vmem:[%s1310_s1 + $0xd0] sm:$0xff]  ;;  %v22_v31 = vunpack.c.l.bf16 %v14_v22  ;;  %v993_v35 = vld [vmem:[%s1310_s1 + $0x48] sm:$0xff]  ;;  %v23_v36 = vunpack.c.h.bf16 %v14_v22  ;;  %v57_v42 = vmul.f32 0.2, %v25_v28  ;;  %vm41_vm4 = vcmp.ge.f32.partialorder %v25_v28, 0.0 }
   0xb   :  { %626 = vmatpush.bf16.msra.mxu1 %v997_v9  ;;  %v30_v32 = vunpack.c.l.bf16 %v18_v23  ;;  %v1001_v37 = vld [vmem:[%s1310_s1 + $0x88] sm:$0xff]  ;;  %v31_v40 = vunpack.c.h.bf16 %v18_v23  ;;  %v65_v45 = vmul.f32 0.2, %v33_v33  ;;  %vm49_vm5 = vcmp.ge.f32.partialorder %v33_v33, 0.0  ;;  %v984_v48 = vld [vmem:[%s1310_s1] sm:$0xff]  ;;  %v1023_v56 = vld [vmem:[%s1310_s1 + $0x138] sm:$0xff] }
   0xc   :  { %640 = vmatpush.bf16.msra.mxu2 %v1005_v10  ;;  %v1009_v38 = vld [vmem:[%s1310_s1 + $0xc8] sm:$0xff]  ;;  %v54_v43 = vmul.f32 0.2, %v22_v31  ;;  %vm38_vm2 = vcmp.ge.f32.partialorder %v22_v31, 0.0  ;;  %v55_v46 = vmul.f32 0.2, %v23_v36  ;;  %v72_v50 = vsel %vm40_vm0, %v24_v24, %v56_v39 }
   0xd   :  { %654 = vmatpush.bf16.msra.mxu3 %v1013_v11  ;;  %v62_v44 = vmul.f32 0.2, %v30_v32  ;;  %vm46_vm3 = vcmp.ge.f32.partialorder %v30_v32, 0.0  ;;  %v63_v47 = vmul.f32 0.2, %v31_v40  ;;  %vm39_vm6 = vcmp.ge.f32.partialorder %v23_v36, 0.0 }
   0xe   :  { %613 = vmatpush.bf16.msra.mxu0 %v988_v12  ;;  %vm47_vm7 = vcmp.ge.f32.partialorder %v31_v40, 0.0  ;;  %v992_v49 = vld [vmem:[%s1310_s1 + $0x40] sm:$0xff]  ;;  %v80_v53 = vsel %vm48_vm1, %v32_v25, %v64_v41  ;;  %v70_v54 = vsel %vm38_vm2, %v22_v31, %v54_v43  ;;  %v1031_v57 = vld [vmem:[%s1310_s1 + $0x178] sm:$0xff]  ;;  %v73_v58 = vsel %vm41_vm4, %v25_v28, %v57_v42  ;;  %v1022_v4 = vld [vmem:[%s1310_s1 + $0x130] sm:$0xff] }
   0xf   :  { %627 = vmatpush.bf16.msra.mxu1 %v996_v13  ;;  %v1000_v51 = vld [vmem:[%s1310_s1 + $0x80] sm:$0xff]  ;;  %v78_v55 = vsel %vm46_vm3, %v30_v32, %v62_v44  ;;  %v81_v59 = vsel %vm49_vm5, %v33_v33, %v65_v45  ;;  %v71_v60 = vsel %vm39_vm6, %v23_v36, %v55_v46  ;;  %v79_v61 = vsel %vm47_vm7, %v31_v40, %v63_v47  ;;  %v1039_v62 = vld [vmem:[%s1310_s1 + $0x1b8] sm:$0xff]  ;;  %v1030_v5 = vld [vmem:[%s1310_s1 + $0x170] sm:$0xff] }
  0x10   :  { %641 = vmatpush.bf16.msra.mxu2 %v1004_v14  ;;  %v1008_v52 = vld [vmem:[%s1310_s1 + $0xc0] sm:$0xff]  ;;  %v1047_v63 = vld [vmem:[%s1310_s1 + $0x1f8] sm:$0xff]  ;;  %v88_v0 = vpack.c.bf16 %v80_v53, %v72_v50  ;;  %v86_v1 = vpack.c.bf16 %v78_v55, %v70_v54  ;;  %v89_v2 = vpack.c.bf16 %v81_v59, %v73_v58  ;;  %v87_v3 = vpack.c.bf16 %v79_v61, %v71_v60  ;;  %v1038_v6 = vld [vmem:[%s1310_s1 + $0x1b0] sm:$0xff] }
  0x11   :  { %655 = vmatpush.bf16.msra.mxu3 %v1012_v15  ;;  %v1046_v7 = vld [vmem:[%s1310_s1 + $0x1f0] sm:$0xff]  ;;  %v1021_v8 = vld [vmem:[%s1310_s1 + $0x128] sm:$0xff]  ;;  %v1020_v12 = vld [vmem:[%s1310_s1 + $0x120] sm:$0xff] }
  0x12   :  { %614 = vmatpush.bf16.msra.mxu0 %v987_v16  ;;  %v1029_v9 = vld [vmem:[%s1310_s1 + $0x168] sm:$0xff]  ;;  %v1028_v13 = vld [vmem:[%s1310_s1 + $0x160] sm:$0xff]  ;;  %v16_v16 = vld [vmem:[%s1311_s0 + $0x10] sm:$0xff] }
  0x13   :  { %628 = vmatpush.bf16.msra.mxu1 %v995_v17  ;;  %v1037_v10 = vld [vmem:[%s1310_s1 + $0x1a8] sm:$0xff]  ;;  %v1036_v14 = vld [vmem:[%s1310_s1 + $0x1a0] sm:$0xff]  ;;  %v1019_v17 = vld [vmem:[%s1310_s1 + $0x118] sm:$0xff]  ;;  %v26_v23 = vunpack.c.l.bf16 %v16_v16 }
  0x14   :  { %642 = vmatpush.bf16.msra.mxu2 %v1003_v20  ;;  %v1045_v11 = vld [vmem:[%s1310_s1 + $0x1e8] sm:$0xff]  ;;  %v1044_v15 = vld [vmem:[%s1310_s1 + $0x1e0] sm:$0xff]  ;;  %v1027_v18 = vld [vmem:[%s1310_s1 + $0x158] sm:$0xff] }
  0x15   :  { %656 = vmatpush.bf16.msra.mxu3 %v1011_v21  ;;  %v20_v19 = vld [vmem:[%s1311_s0 + $0x30] sm:$0xff]  ;;  %v1035_v20 = vld [vmem:[%s1310_s1 + $0x198] sm:$0xff]  ;;  %v1017_v36 = vld [vmem:[%s1310_s1 + $0x108] sm:$0xff]  ;;  %vm42_vm8 = vcmp.ge.f32.partialorder %v26_v23, 0.0 }
  0x16   :  { %615 = vmatpush.bf16.msra.mxu0 %v986_v26  ;;  %v1043_v21 = vld [vmem:[%s1310_s1 + $0x1d8] sm:$0xff]  ;;  %v34_v25 = vunpack.c.l.bf16 %v20_v19  ;;  %v27_v26 = vunpack.c.h.bf16 %v16_v16  ;;  %v1026_v28 = vld [vmem:[%s1310_s1 + $0x150] sm:$0xff]  ;;  %v1033_v39 = vld [vmem:[%s1310_s1 + $0x188] sm:$0xff] }
  0x17   :  { %629 = vmatpush.bf16.msra.mxu1 %v994_v27  ;;  %v17_v22 = vld [vmem:[%s1311_s0 + $0x18] sm:$0xff]  ;;  %v1018_v27 = vld [vmem:[%s1310_s1 + $0x110] sm:$0xff]  ;;  %v1041_v40 = vld [vmem:[%s1310_s1 + $0x1c8] sm:$0xff] }
  0x18   :  { %643 = vmatpush.bf16.msra.mxu2 %v1002_v29  ;;  %v21_v24 = vld [vmem:[%s1311_s0 + $0x38] sm:$0xff]  ;;  %v35_v29 = vunpack.c.h.bf16 %v20_v19  ;;  %v1034_v31 = vld [vmem:[%s1310_s1 + $0x190] sm:$0xff]  ;;  %vm50_vm9 = vcmp.ge.f32.partialorder %v34_v25, 0.0  ;;  %v66_v41 = vmul.f32 0.2, %v34_v25  ;;  %vm43_vm10 = vcmp.ge.f32.partialorder %v27_v26, 0.0 }
  0x19   :  { %657 = vmatpush.bf16.msra.mxu3 %v1010_v30  ;;  %v28_v30 = vunpack.c.l.bf16 %v17_v22  ;;  %v1042_v32 = vld [vmem:[%s1310_s1 + $0x1d0] sm:$0xff]  ;;  %v36_v33 = vunpack.c.l.bf16 %v21_v24  ;;  %v59_v42 = vmul.f32 0.2, %v27_v26  ;;  %v1016_v50 = vld [vmem:[%s1310_s1 + $0x100] sm:$0xff] }
  0x1a   :  { %616 = vmatpush.bf16.msra.mxu0 %v985_v34  ;;  %v29_v34 = vunpack.c.h.bf16 %v17_v22  ;;  %vm51_vm11 = vcmp.ge.f32.partialorder %v35_v29, 0.0  ;;  %v67_v43 = vmul.f32 0.2, %v35_v29  ;;  %v1032_v55 = vld [vmem:[%s1310_s1 + $0x180] sm:$0xff] }
  0x1b   :  { %630 = vmatpush.bf16.msra.mxu1 %v993_v35  ;;  %v37_v35 = vunpack.c.h.bf16 %v21_v24  ;;  %vm44_vm12 = vcmp.ge.f32.partialorder %v28_v30, 0.0  ;;  %v60_v44 = vmul.f32 0.2, %v28_v30  ;;  %v68_v45 = vmul.f32 0.2, %v36_v33 }
  0x1c   :  { %644 = vmatpush.bf16.msra.mxu2 %v1001_v37  ;;  %v1025_v37 = vld [vmem:[%s1310_s1 + $0x148] sm:$0xff]  ;;  %v61_v46 = vmul.f32 0.2, %v29_v34  ;;  %vm52_vm13 = vcmp.ge.f32.partialorder %v36_v33, 0.0  ;;  %vm45_vm14 = vcmp.ge.f32.partialorder %v29_v34, 0.0  ;;  %v83_v53 = vsel %vm51_vm11, %v35_v29, %v67_v43 }
  0x1d   :  { %658 = vmatpush.bf16.msra.mxu3 %v1009_v38  ;;  %v58_v38 = vmul.f32 0.2, %v26_v23  ;;  %v69_v47 = vmul.f32 0.2, %v37_v35  ;;  %vm53_vm15 = vcmp.ge.f32.partialorder %v37_v35, 0.0  ;;  %v76_v54 = vsel %vm44_vm12, %v28_v30, %v60_v44 }
  0x1e   :  { %617 = vmatpush.bf16.msra.mxu0 %v984_v48  ;;  %v77_v58 = vsel %vm45_vm14, %v29_v34, %v61_v46 }
  0x1f   :  { %631 = vmatpush.bf16.msra.mxu1 %v992_v49  ;;  %v74_v48 = vsel %vm42_vm8, %v26_v23, %v58_v38  ;;  %v82_v49 = vsel %vm50_vm9, %v34_v25, %v66_v41  ;;  %v85_v59 = vsel %vm53_vm15, %v37_v35, %v69_v47 }
  0x20   :  { %645 = vmatpush.bf16.msra.mxu2 %v1000_v51  ;;  %v1024_v51 = vld [vmem:[%s1310_s1 + $0x140] sm:$0xff]  ;;  %v90_v60 = vpack.c.bf16 %v82_v49, %v74_v48 }
  0x21   :  { %659 = vmatpush.bf16.msra.mxu3 %v1008_v52  ;;  %618 = vmatmul.bf16.vlgmr.msra.gmra.mxu0 %v86_v1  ;;  %v75_v52 = vsel %vm43_vm10, %v27_v26, %v59_v42  ;;  %v1048_v1 = vld [vmem:[%s1312_s2] ss:$0 sm:$0xff] }
  0x22   :  { %666 = vmatpush.bf16.msrb.mxu0 %v1023_v56  ;;  %632 = vmatmul.bf16.vlgmr.msra.gmra.mxu1 %v87_v3  ;;  %v1040_v56 = vld [vmem:[%s1310_s1 + $0x1c0] sm:$0xff]  ;;  %v91_v61 = vpack.c.bf16 %v83_v53, %v75_v52 }
  0x23   :  { %680 = vmatpush.bf16.msrb.mxu1 %v1031_v57  ;;  %646 = vmatmul.bf16.vlgmr.msra.gmra.mxu2 %v88_v0  ;;  %v84_v57 = vsel %vm52_vm13, %v36_v33, %v68_v45 }
  0x24   :  { %694 = vmatpush.bf16.msrb.mxu2 %v1039_v62  ;;  %660 = vmatmul.bf16.vlgmr.msra.gmra.mxu3 %v89_v2  ;;  %v92_v62 = vpack.c.bf16 %v84_v57, %v76_v54 }
  0x25   :  { %708 = vmatpush.bf16.msrb.mxu3 %v1047_v63  ;;  %v93_v63 = vpack.c.bf16 %v85_v59, %v77_v58 }
  0x26   :  { %667 = vmatpush.bf16.msrb.mxu0 %v1022_v4 }
  0x27   :  { %681 = vmatpush.bf16.msrb.mxu1 %v1030_v5 }
  0x28   :  { %695 = vmatpush.bf16.msrb.mxu2 %v1038_v6 }
  0x29   :  { %709 = vmatpush.bf16.msrb.mxu3 %v1046_v7 }
  0x2a   :  { %668 = vmatpush.bf16.msrb.mxu0 %v1021_v8 }
  0x2b   :  { %682 = vmatpush.bf16.msrb.mxu1 %v1029_v9 }
  0x2c   :  { %696 = vmatpush.bf16.msrb.mxu2 %v1037_v10 }
  0x2d   :  { %710 = vmatpush.bf16.msrb.mxu3 %v1045_v11 }
  0x2e   :  { %669 = vmatpush.bf16.msrb.mxu0 %v1020_v12 }
  0x2f   :  { %683 = vmatpush.bf16.msrb.mxu1 %v1028_v13 }
  0x30   :  { %697 = vmatpush.bf16.msrb.mxu2 %v1036_v14 }
  0x31   :  { %711 = vmatpush.bf16.msrb.mxu3 %v1044_v15 }
  0x32   :  { %670 = vmatpush.bf16.msrb.mxu0 %v1019_v17 }
  0x33   :  { %684 = vmatpush.bf16.msrb.mxu1 %v1027_v18 }
  0x34   :  { %698 = vmatpush.bf16.msrb.mxu2 %v1035_v20 }
  0x35   :  { %712 = vmatpush.bf16.msrb.mxu3 %v1043_v21 }
  0x36   :  { %671 = vmatpush.bf16.msrb.mxu0 %v1018_v27 }
  0x37   :  { %685 = vmatpush.bf16.msrb.mxu1 %v1026_v28 }
  0x38   :  { %699 = vmatpush.bf16.msrb.mxu2 %v1034_v31 }
  0x39   :  { %713 = vmatpush.bf16.msrb.mxu3 %v1042_v32 }
  0x3a   :  { %672 = vmatpush.bf16.msrb.mxu0 %v1017_v36 }
  0x3b   :  { %686 = vmatpush.bf16.msrb.mxu1 %v1025_v37 }
  0x3c   :  { %700 = vmatpush.bf16.msrb.mxu2 %v1033_v39 }
  0x3d   :  { %714 = vmatpush.bf16.msrb.mxu3 %v1041_v40 }
  0x3e   :  { %673 = vmatpush.bf16.msrb.mxu0 %v1016_v50 }
  0x3f   :  { %687 = vmatpush.bf16.msrb.mxu1 %v1024_v51 }
  0x40   :  { %701 = vmatpush.bf16.msrb.mxu2 %v1032_v55 }
  0x41   :  { %715 = vmatpush.bf16.msrb.mxu3 %v1040_v56  ;;  %674 = vmatmul.bf16.vlgmr.msrb.gmra.mxu0 %v90_v60 }
  0x42   :  { %688 = vmatmul.bf16.vlgmr.msrb.gmra.mxu1 %v91_v61 }
  0x43   :  { %702 = vmatmul.bf16.vlgmr.msrb.gmra.mxu2 %v92_v62 }
  0x44   :  { %716 = vmatmul.bf16.vlgmr.msrb.gmra.mxu3 %v93_v63 }
  0x9e   :  { %v619_v0 = vpop.f32.mrf.mxu0 }
  0x9f   :  { %v633_v2 = vpop.f32.mrf.mxu1  ;;  %v620_v3 = vadd.f32 %v1048_v1, %v619_v0 }
  0xa1   :  { %v634_v6 = vadd.f32 %v633_v2, %v620_v3 }
  0xa6   :  { %v647_v4 = vpop.f32.mrf.mxu2  ;;  %v621_v7 = vpop.f32.mrf.mxu0 }
  0xa7   :  { %v661_v5 = vpop.f32.mrf.mxu3  ;;  %v635_v8 = vpop.f32.mrf.mxu1  ;;  %v648_v9 = vadd.f32 %v647_v4, %v634_v6  ;;  %v622_v10 = vadd.f32 %v1048_v1, %v621_v7 }
  0xa9   :  { %v662_v13 = vadd.f32 %v661_v5, %v648_v9  ;;  %v636_v14 = vadd.f32 %v635_v8, %v622_v10 }
  0xae   :  { %v649_v11 = vpop.f32.mrf.mxu2 }
  0xaf   :  { %v663_v12 = vpop.f32.mrf.mxu3  ;;  %v650_v18 = vadd.f32 %v649_v11, %v636_v14 }
  0xb1   :  { %v664_v22 = vadd.f32 %v663_v12, %v650_v18 }
  0xbe   :  { %v675_v15 = vpop.f32.mrf.mxu0 }
  0xbf   :  { %v676_v16 = vadd.f32 %v675_v15, %v662_v13  ;;  %v689_v17 = vpop.f32.mrf.mxu1 }
  0xc1   :  { %v690_v19 = vadd.f32 %v689_v17, %v676_v16 }
  0xc6   :  { %v703_v20 = vpop.f32.mrf.mxu2  ;;  %v677_v24 = vpop.f32.mrf.mxu0 }
  0xc7   :  { %v717_v21 = vpop.f32.mrf.mxu3  ;;  %v704_v23 = vadd.f32 %v703_v20, %v690_v19  ;;  %v678_v26 = vadd.f32 %v677_v24, %v664_v22  ;;  %v691_v27 = vpop.f32.mrf.mxu1 }
  0xc9   :  { %v718_v25 = vadd.f32 %v717_v21, %v704_v23  ;;  %v692_v28 = vadd.f32 %v691_v27, %v678_v26 }
  0xcb   :  { %722 = vst [vmem:[%s1313_s3] sm:$0xff] %v718_v25 }
  0xce   :  { %v705_v29 = vpop.f32.mrf.mxu2 }
  0xcf   :  { %v706_v30 = vadd.f32 %v705_v29, %v692_v28  ;;  %v719_v31 = vpop.f32.mrf.mxu3 }
  0xd1   :  { %v720_v32 = vadd.f32 %v719_v31, %v706_v30 }
  0xd3   :  { %723 = vst [vmem:[%s1313_s3 + $0x8] sm:$0xff] %v720_v32 }

// kernel: unet_forward.35
= control target key start
LH: loop header
LB: loop body
LE: loop exit
PB: predicated region body
PF: predicated region fallthrough
CT: control target
= control target key end

     0   :  { %vm484_vm0 = vcmask 523264   ;;  %s1505_s1 = inlined_call_operand.vmem [shape: bf16[576,256], index: 1, kind: input, shape index: {}]   ;;  %s1506_s0 = inlined_call_operand.vmem [shape: bf16[16,576], index: 0, kind: input, shape index: {}]   ;;  %s1507_s2 = inlined_call_operand.vmem [shape: f32[1,256], index: 2, kind: input, shape index: {}]   ;;  %s1508_s3 = inlined_call_operand.vmem [shape: f32[16,256], index: 3, kind: output, shape index: {}]  }
   0x1   :  { %v694_v0 = vld [vmem:[%s1505_s1 + $0x70] sm:$0xf]  ;;  %v941_v1 = vld [vmem:[%s1505_s1 + $0x74] sm:$0xf0]  ;;  %v686_v11 = vld [vmem:[%s1505_s1 + $0x60] sm:$0xf] }
   0x2   :  { %v758_v2 = vld [vmem:[%s1505_s1 + $0xf0] sm:$0xf]  ;;  %v695_v3 = vor.u32 %v941_v1, %v694_v0  ;;  %v957_v4 = vld [vmem:[%s1505_s1 + $0xf4] sm:$0xf0]  ;;  %v939_v13 = vld [vmem:[%s1505_s1 + $0x64] sm:$0xf0] }
   0x3   :  { %v822_v5 = vld [vmem:[%s1505_s1 + $0x170] sm:$0xf]  ;;  %v973_v6 = vld [vmem:[%s1505_s1 + $0x174] sm:$0xf0]  ;;  %v759_v7 = vor.u32 %v957_v4, %v758_v2  ;;  %v750_v14 = vld [vmem:[%s1505_s1 + $0xe0] sm:$0xf]  ;;  %v687_v16 = vor.u32 %v939_v13, %v686_v11 }
   0x4   :  { %v823_v8 = vor.u32 %v973_v6, %v822_v5  ;;  %v886_v9 = vld [vmem:[%s1505_s1 + $0x1f0] sm:$0xf]  ;;  %v989_v10 = vld [vmem:[%s1505_s1 + $0x1f4] sm:$0xf0]  ;;  %488 = vmatpush.bf16.msra.mxu0 %v695_v3  ;;  %v955_v15 = vld [vmem:[%s1505_s1 + $0xe4] sm:$0xf0] }
   0x5   :  { %v887_v12 = vor.u32 %v989_v10, %v886_v9  ;;  %502 = vmatpush.bf16.msra.mxu1 %v759_v7  ;;  %v751_v17 = vor.u32 %v955_v15, %v750_v14  ;;  %v814_v18 = vld [vmem:[%s1505_s1 + $0x160] sm:$0xf]  ;;  %v971_v19 = vld [vmem:[%s1505_s1 + $0x164] sm:$0xf0]  ;;  %v678_v23 = vld [vmem:[%s1505_s1 + $0x50] sm:$0xf] }
   0x6   :  { %516 = vmatpush.bf16.msra.mxu2 %v823_v8  ;;  %v878_v20 = vld [vmem:[%s1505_s1 + $0x1e0] sm:$0xf]  ;;  %v815_v21 = vor.u32 %v971_v19, %v814_v18  ;;  %v987_v22 = vld [vmem:[%s1505_s1 + $0x1e4] sm:$0xf0]  ;;  %v937_v24 = vld [vmem:[%s1505_s1 + $0x54] sm:$0xf0] }
   0x7   :  { %530 = vmatpush.bf16.msra.mxu3 %v887_v12  ;;  %v879_v25 = vor.u32 %v987_v22, %v878_v20  ;;  %v742_v26 = vld [vmem:[%s1505_s1 + $0xd0] sm:$0xf]  ;;  %v953_v27 = vld [vmem:[%s1505_s1 + $0xd4] sm:$0xf0]  ;;  %v679_v29 = vor.u32 %v937_v24, %v678_v23  ;;  %v670_v35 = vld [vmem:[%s1505_s1 + $0x40] sm:$0xf] }
   0x8   :  { %v806_v28 = vld [vmem:[%s1505_s1 + $0x150] sm:$0xf]  ;;  %489 = vmatpush.bf16.msra.mxu0 %v687_v16  ;;  %v969_v30 = vld [vmem:[%s1505_s1 + $0x154] sm:$0xf0]  ;;  %v743_v33 = vor.u32 %v953_v27, %v742_v26  ;;  %v935_v36 = vld [vmem:[%s1505_s1 + $0x44] sm:$0xf0] }
   0x9   :  { %v870_v31 = vld [vmem:[%s1505_s1 + $0x1d0] sm:$0xf]  ;;  %v985_v32 = vld [vmem:[%s1505_s1 + $0x1d4] sm:$0xf0]  ;;  %503 = vmatpush.bf16.msra.mxu1 %v751_v17  ;;  %v807_v34 = vor.u32 %v969_v30, %v806_v28  ;;  %v734_v37 = vld [vmem:[%s1505_s1 + $0xc0] sm:$0xf]  ;;  %v671_v44 = vor.u32 %v935_v36, %v670_v35 }
   0xa   :  { %517 = vmatpush.bf16.msra.mxu2 %v815_v21  ;;  %v871_v38 = vor.u32 %v985_v32, %v870_v31  ;;  %v951_v39 = vld [vmem:[%s1505_s1 + $0xc4] sm:$0xf0]  ;;  %v798_v40 = vld [vmem:[%s1505_s1 + $0x140] sm:$0xf]  ;;  %v662_v47 = vld [vmem:[%s1505_s1 + $0x30] sm:$0xf] }
   0xb   :  { %531 = vmatpush.bf16.msra.mxu3 %v879_v25  ;;  %v967_v41 = vld [vmem:[%s1505_s1 + $0x144] sm:$0xf0]  ;;  %v862_v42 = vld [vmem:[%s1505_s1 + $0x1c0] sm:$0xf]  ;;  %v735_v45 = vor.u32 %v951_v39, %v734_v37  ;;  %v933_v48 = vld [vmem:[%s1505_s1 + $0x34] sm:$0xf0] }
   0xc   :  { %v983_v43 = vld [vmem:[%s1505_s1 + $0x1c4] sm:$0xf0]  ;;  %490 = vmatpush.bf16.msra.mxu0 %v679_v29  ;;  %v799_v46 = vor.u32 %v967_v41, %v798_v40  ;;  %v726_v49 = vld [vmem:[%s1505_s1 + $0xb0] sm:$0xf]  ;;  %v949_v51 = vld [vmem:[%s1505_s1 + $0xb4] sm:$0xf0]  ;;  %v663_v56 = vor.u32 %v933_v48, %v662_v47 }
   0xd   :  { %504 = vmatpush.bf16.msra.mxu1 %v743_v33  ;;  %v863_v50 = vor.u32 %v983_v43, %v862_v42  ;;  %v790_v52 = vld [vmem:[%s1505_s1 + $0x130] sm:$0xf]  ;;  %v965_v53 = vld [vmem:[%s1505_s1 + $0x134] sm:$0xf0]  ;;  %v727_v57 = vor.u32 %v949_v51, %v726_v49  ;;  %v654_v59 = vld [vmem:[%s1505_s1 + $0x20] sm:$0xf] }
   0xe   :  { %518 = vmatpush.bf16.msra.mxu2 %v807_v34  ;;  %v854_v54 = vld [vmem:[%s1505_s1 + $0x1b0] sm:$0xf]  ;;  %v981_v55 = vld [vmem:[%s1505_s1 + $0x1b4] sm:$0xf0]  ;;  %v791_v58 = vor.u32 %v965_v53, %v790_v52  ;;  %v931_v60 = vld [vmem:[%s1505_s1 + $0x24] sm:$0xf0] }
   0xf   :  { %532 = vmatpush.bf16.msra.mxu3 %v871_v38  ;;  %v718_v61 = vld [vmem:[%s1505_s1 + $0xa0] sm:$0xf]  ;;  %v855_v62 = vor.u32 %v981_v55, %v854_v54  ;;  %v947_v63 = vld [vmem:[%s1505_s1 + $0xa4] sm:$0xf0]  ;;  %v655_v4 = vor.u32 %v931_v60, %v654_v59  ;;  %v646_v5 = vld [vmem:[%s1505_s1 + $0x10] sm:$0xf] }
  0x10   :  { %491 = vmatpush.bf16.msra.mxu0 %v671_v44  ;;  %v782_v0 = vld [vmem:[%s1505_s1 + $0x120] sm:$0xf]  ;;  %v963_v1 = vld [vmem:[%s1505_s1 + $0x124] sm:$0xf0]  ;;  %v929_v6 = vld [vmem:[%s1505_s1 + $0x14] sm:$0xf0]  ;;  %v719_v7 = vor.u32 %v947_v63, %v718_v61 }
  0x11   :  { %505 = vmatpush.bf16.msra.mxu1 %v735_v45  ;;  %v846_v2 = vld [vmem:[%s1505_s1 + $0x1a0] sm:$0xf]  ;;  %v979_v3 = vld [vmem:[%s1505_s1 + $0x1a4] sm:$0xf0]  ;;  %v783_v8 = vor.u32 %v963_v1, %v782_v0  ;;  %v710_v9 = vld [vmem:[%s1505_s1 + $0x90] sm:$0xf]  ;;  %v647_v19 = vor.u32 %v929_v6, %v646_v5 }
  0x12   :  { %519 = vmatpush.bf16.msra.mxu2 %v799_v46  ;;  %v945_v10 = vld [vmem:[%s1505_s1 + $0x94] sm:$0xf0]  ;;  %v774_v11 = vld [vmem:[%s1505_s1 + $0x110] sm:$0xf]  ;;  %v847_v12 = vor.u32 %v979_v3, %v846_v2  ;;  %v638_v16 = vld [vmem:[%s1505_s1] sm:$0xf] }
  0x13   :  { %533 = vmatpush.bf16.msra.mxu3 %v863_v50  ;;  %v961_v13 = vld [vmem:[%s1505_s1 + $0x114] sm:$0xf0]  ;;  %v838_v14 = vld [vmem:[%s1505_s1 + $0x190] sm:$0xf]  ;;  %v927_v17 = vld [vmem:[%s1505_s1 + $0x4] sm:$0xf0]  ;;  %v711_v23 = vor.u32 %v945_v10, %v710_v9 }
  0x14   :  { %492 = vmatpush.bf16.msra.mxu0 %v663_v56  ;;  %v977_v15 = vld [vmem:[%s1505_s1 + $0x194] sm:$0xf0]  ;;  %v702_v18 = vld [vmem:[%s1505_s1 + $0x80] sm:$0xf]  ;;  %v943_v20 = vld [vmem:[%s1505_s1 + $0x84] sm:$0xf0]  ;;  %v775_v24 = vor.u32 %v961_v13, %v774_v11  ;;  %v639_v38 = vor.u32 %v927_v17, %v638_v16 }
  0x15   :  { %506 = vmatpush.bf16.msra.mxu1 %v727_v57  ;;  %v766_v21 = vld [vmem:[%s1505_s1 + $0x100] sm:$0xf]  ;;  %v959_v22 = vld [vmem:[%s1505_s1 + $0x104] sm:$0xf0]  ;;  %v839_v25 = vor.u32 %v977_v15, %v838_v14  ;;  %v18_v29 = vld [vmem:[%s1506_s0 + $0x14] sm:$0xff]  ;;  %v703_v45 = vor.u32 %v943_v20, %v702_v18 }
  0x16   :  { %520 = vmatpush.bf16.msra.mxu2 %v791_v58  ;;  %v830_v26 = vld [vmem:[%s1505_s1 + $0x180] sm:$0xf]  ;;  %v975_v27 = vld [vmem:[%s1505_s1 + $0x184] sm:$0xf0]  ;;  %v918_v31 = vld [vmem:[%s1505_s1 + $0x230] sm:$0xf]  ;;  %v26_v34 = vunpack.c.l.bf16 %v18_v29  ;;  %v767_v46 = vor.u32 %v959_v22, %v766_v21  ;;  %v27_v55 = vunpack.c.h.bf16 %v18_v29 }
  0x17   :  { %534 = vmatpush.bf16.msra.mxu3 %v855_v62  ;;  %v15_v28 = vld [vmem:[%s1506_s0] sm:$0xff]  ;;  %v16_v30 = vld [vmem:[%s1506_s0 + $0x8] sm:$0xff]  ;;  %v997_v32 = vld [vmem:[%s1505_s1 + $0x234] sm:$0xf0]  ;;  %v831_v56 = vor.u32 %v975_v27, %v830_v26 }
  0x18   :  { %493 = vmatpush.bf16.msra.mxu0 %v655_v4  ;;  %v21_v33 = vunpack.c.l.bf16 %v15_v28  ;;  %v19_v35 = vld [vmem:[%s1506_s0 + $0x1c] sm:$0xff]  ;;  %v23_v36 = vunpack.c.l.bf16 %v16_v30  ;;  %v24_v37 = vunpack.c.h.bf16 %v16_v30  ;;  %v940_v39 = vld [vmem:[%s1505_s1 + $0x74] sm:$0xf]  ;;  %v22_v44 = vunpack.c.h.bf16 %v15_v28  ;;  %v995_v63 = vld [vmem:[%s1505_s1 + $0x224] sm:$0xf0] }
  0x19   :  { %507 = vmatpush.bf16.msra.mxu1 %v719_v7  ;;  %v696_v40 = vld [vmem:[%s1505_s1 + $0x78] sm:$0xf0]  ;;  %v956_v41 = vld [vmem:[%s1505_s1 + $0xf4] sm:$0xf]  ;;  %v28_v42 = vunpack.c.l.bf16 %v19_v35  ;;  %v29_v43 = vunpack.c.h.bf16 %v19_v35  ;;  %v36_v50 = vmax.f32 %v26_v34, 0.0  ;;  %v919_v57 = vor.u32 %v997_v32, %v918_v31 }
  0x1a   :  { %521 = vmatpush.bf16.msra.mxu2 %v783_v8  ;;  %v760_v47 = vld [vmem:[%s1505_s1 + $0xf8] sm:$0xf0]  ;;  %v972_v48 = vld [vmem:[%s1505_s1 + $0x174] sm:$0xf]  ;;  %v31_v49 = vmax.f32 %v21_v33, 0.0  ;;  %v33_v52 = vmax.f32 %v23_v36, 0.0  ;;  %v699_v61 = vor.u32 %v940_v39, %v696_v40 }
  0x1b   :  { %535 = vmatpush.bf16.msra.mxu3 %v847_v12  ;;  %v824_v51 = vld [vmem:[%s1505_s1 + $0x178] sm:$0xf0]  ;;  %v38_v53 = vmax.f32 %v28_v42, 0.0  ;;  %v34_v54 = vmax.f32 %v24_v37, 0.0  ;;  %v910_v58 = vld [vmem:[%s1505_s1 + $0x220] sm:$0xf]  ;;  %v763_v62 = vor.u32 %v956_v41, %v760_v47 }
  0x1c   :  { %494 = vmatpush.bf16.msra.mxu0 %v647_v19  ;;  %v39_v59 = vmax.f32 %v29_v43, 0.0  ;;  %v32_v60 = vmax.f32 %v22_v44, 0.0  ;;  %v938_v0 = vld [vmem:[%s1505_s1 + $0x64] sm:$0xf]  ;;  %v37_v1 = vmax.f32 %v27_v55, 0.0  ;;  %v827_v2 = vor.u32 %v972_v48, %v824_v51 }
  0x1d   :  { %508 = vmatpush.bf16.msra.mxu1 %v711_v23  ;;  %v1255_v3 = vpack.c.bf16 %v36_v50, %v31_v49  ;;  %v688_v4 = vld [vmem:[%s1505_s1 + $0x68] sm:$0xf0]  ;;  %v954_v5 = vld [vmem:[%s1505_s1 + $0xe4] sm:$0xf]  ;;  %v1266_v7 = vpack.c.bf16 %v38_v53, %v33_v52  ;;  %v911_v11 = vor.u32 %v995_v63, %v910_v58  ;;  %v902_v15 = vld [vmem:[%s1505_s1 + $0x210] sm:$0xf] }
  0x1e   :  { %522 = vmatpush.bf16.msra.mxu2 %v775_v24  ;;  %v752_v6 = vld [vmem:[%s1505_s1 + $0xe8] sm:$0xf0]  ;;  %v970_v8 = vld [vmem:[%s1505_s1 + $0x164] sm:$0xf]  ;;  %v1274_v10 = vpack.c.bf16 %v39_v59, %v34_v54  ;;  %v1276_v12 = vpack.c.bf16 %v37_v1, %v32_v60  ;;  %v691_v13 = vor.u32 %v938_v0, %v688_v4  ;;  %v993_v16 = vld [vmem:[%s1505_s1 + $0x214] sm:$0xf0] }
  0x1f   :  { %536 = vmatpush.bf16.msra.mxu3 %v839_v25  ;;  %v816_v9 = vld [vmem:[%s1505_s1 + $0x168] sm:$0xf0]  ;;  %v755_v14 = vor.u32 %v954_v5, %v752_v6  ;;  %v936_v17 = vld [vmem:[%s1505_s1 + $0x54] sm:$0xf]  ;;  %v680_v19 = vld [vmem:[%s1505_s1 + $0x58] sm:$0xf0]  ;;  %v903_v24 = vor.u32 %v993_v16, %v902_v15 }
  0x20   :  { %495 = vmatpush.bf16.msra.mxu0 %v639_v38  ;;  %v819_v18 = vor.u32 %v970_v8, %v816_v9  ;;  %v952_v20 = vld [vmem:[%s1505_s1 + $0xd4] sm:$0xf]  ;;  %v744_v21 = vld [vmem:[%s1505_s1 + $0xd8] sm:$0xf0]  ;;  %v894_v25 = vld [vmem:[%s1505_s1 + $0x200] sm:$0xf]  ;;  %v683_v28 = vor.u32 %v936_v17, %v680_v19 }
  0x21   :  { %509 = vmatpush.bf16.msra.mxu1 %v703_v45  ;;  %v968_v22 = vld [vmem:[%s1505_s1 + $0x154] sm:$0xf]  ;;  %v808_v23 = vld [vmem:[%s1505_s1 + $0x158] sm:$0xf0]  ;;  %v991_v26 = vld [vmem:[%s1505_s1 + $0x204] sm:$0xf0]  ;;  %v747_v29 = vor.u32 %v952_v20, %v744_v21 }
  0x22   :  { %523 = vmatpush.bf16.msra.mxu2 %v767_v46  ;;  %v934_v27 = vld [vmem:[%s1505_s1 + $0x44] sm:$0xf]  ;;  %v672_v30 = vld [vmem:[%s1505_s1 + $0x48] sm:$0xf0]  ;;  %v17_v31 = vld [vmem:[%s1506_s0 + $0x10] sm:$0xf]  ;;  %v811_v33 = vor.u32 %v968_v22, %v808_v23  ;;  %v895_v42 = vor.u32 %v991_v26, %v894_v25 }
  0x23   :  { %537 = vmatpush.bf16.msra.mxu3 %v831_v56  ;;  %496 = vmatmul.bf16.vlgmr.msra.gmra.mxu0 %v1255_v3  ;;  %v20_v32 = vld [vmem:[%s1506_s0 + $0x24] sm:$0xf]  ;;  %v736_v35 = vld [vmem:[%s1505_s1 + $0xc8] sm:$0xf0]  ;;  %v988_v38 = vld [vmem:[%s1505_s1 + $0x1f4] sm:$0xf]  ;;  %v25_v40 = vunpack.c.l.bf16 %v17_v31  ;;  %v675_v43 = vor.u32 %v934_v27, %v672_v30 }
  0x24   :  { %548 = vmatpush.bf16.msrb.mxu0 %v919_v57  ;;  %510 = vmatmul.bf16.vlgmr.msra.gmra.mxu1 %v1276_v12  ;;  %v950_v34 = vld [vmem:[%s1505_s1 + $0xc4] sm:$0xf]  ;;  %v800_v37 = vld [vmem:[%s1505_s1 + $0x148] sm:$0xf0]  ;;  %v888_v39 = vld [vmem:[%s1505_s1 + $0x1f8] sm:$0xf0]  ;;  %v30_v41 = vunpack.c.l.bf16 %v20_v32 }
  0x25   :  { %558 = vmatpush.bf16.msrb.mxu1 %v699_v61  ;;  %524 = vmatmul.bf16.vlgmr.msra.gmra.mxu2 %v1266_v7  ;;  %v966_v36 = vld [vmem:[%s1505_s1 + $0x144] sm:$0xf]  ;;  %v739_v44 = vor.u32 %v950_v34, %v736_v35  ;;  %v932_v45 = vld [vmem:[%s1505_s1 + $0x34] sm:$0xf]  ;;  %v664_v46 = vld [vmem:[%s1505_s1 + $0x38] sm:$0xf0]  ;;  %v891_v49 = vor.u32 %v988_v38, %v888_v39 }
  0x26   :  { %572 = vmatpush.bf16.msrb.mxu2 %v763_v62  ;;  %538 = vmatmul.bf16.vlgmr.msra.gmra.mxu3 %v1274_v10  ;;  %v948_v47 = vld [vmem:[%s1505_s1 + $0xb4] sm:$0xf]  ;;  %v803_v48 = vor.u32 %v966_v36, %v800_v37  ;;  %v728_v50 = vld [vmem:[%s1505_s1 + $0xb8] sm:$0xf0]  ;;  %v986_v53 = vld [vmem:[%s1505_s1 + $0x1e4] sm:$0xf]  ;;  %v667_v57 = vor.u32 %v932_v45, %v664_v46 }
  0x27   :  { %586 = vmatpush.bf16.msrb.mxu3 %v827_v2  ;;  %v964_v51 = vld [vmem:[%s1505_s1 + $0x134] sm:$0xf]  ;;  %v792_v52 = vld [vmem:[%s1505_s1 + $0x138] sm:$0xf0]  ;;  %v880_v54 = vld [vmem:[%s1505_s1 + $0x1e8] sm:$0xf0]  ;;  %v731_v58 = vor.u32 %v948_v47, %v728_v50 }
  0x28   :  { %549 = vmatpush.bf16.msrb.mxu0 %v911_v11  ;;  %v35_v55 = vmax.f32 %v25_v40, 0.0  ;;  %v40_v56 = vmax.f32 %v30_v41, 0.0  ;;  %v930_v59 = vld [vmem:[%s1505_s1 + $0x24] sm:$0xf]  ;;  %v656_v60 = vld [vmem:[%s1505_s1 + $0x28] sm:$0xf0]  ;;  %v795_v61 = vor.u32 %v964_v51, %v792_v52  ;;  %v883_v62 = vor.u32 %v986_v53, %v880_v54 }
  0x29   :  { %559 = vmatpush.bf16.msrb.mxu1 %v691_v13  ;;  %v946_v63 = vld [vmem:[%s1505_s1 + $0xa4] sm:$0xf]  ;;  %v720_v0 = vld [vmem:[%s1505_s1 + $0xa8] sm:$0xf0]  ;;  %v984_v5 = vld [vmem:[%s1505_s1 + $0x1d4] sm:$0xf]  ;;  %v659_v8 = vor.u32 %v930_v59, %v656_v60 }
  0x2a   :  { %573 = vmatpush.bf16.msrb.mxu2 %v755_v14  ;;  %v962_v1 = vld [vmem:[%s1505_s1 + $0x124] sm:$0xf]  ;;  %v1381_v2 = vpack.c.bf16 %v40_v56, %v35_v55  ;;  %v784_v4 = vld [vmem:[%s1505_s1 + $0x128] sm:$0xf0]  ;;  %v872_v6 = vld [vmem:[%s1505_s1 + $0x1d8] sm:$0xf0]  ;;  %v723_v9 = vor.u32 %v946_v63, %v720_v0 }
  0x2b   :  { %587 = vmatpush.bf16.msrb.mxu3 %v819_v18  ;;  %v928_v11 = vld [vmem:[%s1505_s1 + $0x14] sm:$0xf]  ;;  %v648_v13 = vld [vmem:[%s1505_s1 + $0x18] sm:$0xf0]  ;;  %v787_v14 = vor.u32 %v962_v1, %v784_v4  ;;  %v875_v15 = vor.u32 %v984_v5, %v872_v6  ;;  %v982_v20 = vld [vmem:[%s1505_s1 + $0x1c4] sm:$0xf] }
  0x2c   :  { %550 = vmatpush.bf16.msrb.mxu0 %v903_v24  ;;  %v944_v16 = vld [vmem:[%s1505_s1 + $0x94] sm:$0xf]  ;;  %v712_v17 = vld [vmem:[%s1505_s1 + $0x98] sm:$0xf0]  ;;  %v864_v21 = vld [vmem:[%s1505_s1 + $0x1c8] sm:$0xf0]  ;;  %v651_v22 = vor.u32 %v928_v11, %v648_v13 }
  0x2d   :  { %560 = vmatpush.bf16.msrb.mxu1 %v683_v28  ;;  %v960_v18 = vld [vmem:[%s1505_s1 + $0x114] sm:$0xf]  ;;  %v776_v19 = vld [vmem:[%s1505_s1 + $0x118] sm:$0xf0]  ;;  %v715_v23 = vor.u32 %v944_v16, %v712_v17  ;;  %v926_v24 = vld [vmem:[%s1505_s1 + $0x4] sm:$0xf]  ;;  %v867_v27 = vor.u32 %v982_v20, %v864_v21 }
  0x2e   :  { %574 = vmatpush.bf16.msrb.mxu2 %v747_v29  ;;  %v640_v25 = vld [vmem:[%s1505_s1 + $0x8] sm:$0xf0]  ;;  %v779_v26 = vor.u32 %v960_v18, %v776_v19  ;;  %v942_v28 = vld [vmem:[%s1505_s1 + $0x84] sm:$0xf]  ;;  %v980_v32 = vld [vmem:[%s1505_s1 + $0x1b4] sm:$0xf] }
  0x2f   :  { %588 = vmatpush.bf16.msrb.mxu3 %v811_v33  ;;  %v704_v29 = vld [vmem:[%s1505_s1 + $0x88] sm:$0xf0]  ;;  %v958_v30 = vld [vmem:[%s1505_s1 + $0x104] sm:$0xf]  ;;  %v856_v33 = vld [vmem:[%s1505_s1 + $0x1b8] sm:$0xf0]  ;;  %v643_v36 = vor.u32 %v926_v24, %v640_v25 }
  0x30   :  { %551 = vmatpush.bf16.msrb.mxu0 %v895_v42  ;;  %v768_v31 = vld [vmem:[%s1505_s1 + $0x108] sm:$0xf0]  ;;  %v996_v34 = vld [vmem:[%s1505_s1 + $0x234] sm:$0xf]  ;;  %v920_v35 = vld [vmem:[%s1505_s1 + $0x238] sm:$0xf0]  ;;  %v707_v37 = vor.u32 %v942_v28, %v704_v29  ;;  %v859_v39 = vor.u32 %v980_v32, %v856_v33 }
  0x31   :  { %561 = vmatpush.bf16.msrb.mxu1 %v675_v43  ;;  %v771_v38 = vor.u32 %v958_v30, %v768_v31  ;;  %v923_v40 = vor.u32 %v996_v34, %v920_v35  ;;  %v978_v41 = vld [vmem:[%s1505_s1 + $0x1a4] sm:$0xf]  ;;  %v848_v42 = vld [vmem:[%s1505_s1 + $0x1a8] sm:$0xf0]  ;;  %v976_v47 = vld [vmem:[%s1505_s1 + $0x194] sm:$0xf] }
  0x32   :  { %575 = vmatpush.bf16.msrb.mxu2 %v739_v44  ;;  %v994_v43 = vld [vmem:[%s1505_s1 + $0x224] sm:$0xf]  ;;  %v912_v44 = vld [vmem:[%s1505_s1 + $0x228] sm:$0xf0]  ;;  %v851_v45 = vor.u32 %v978_v41, %v848_v42  ;;  %v904_v50 = vld [vmem:[%s1505_s1 + $0x218] sm:$0xf0] }
  0x33   :  { %589 = vmatpush.bf16.msrb.mxu3 %v803_v48  ;;  %924 = vmatmul.msk.bf16.vlgmr.msrb.gmra.mxu0 %vm484_vm0, %v1381_v2  ;;  %v915_v46 = vor.u32 %v994_v43, %v912_v44  ;;  %v840_v48 = vld [vmem:[%s1505_s1 + $0x198] sm:$0xf0]  ;;  %v990_v53 = vld [vmem:[%s1505_s1 + $0x204] sm:$0xf]  ;;  %v118_v56 = vld [vmem:[%s1507_s2] sm:$0x3] }
  0x34   :  { %600 = vmatpush.bf16.msra.mxu0 %v891_v49  ;;  %v992_v49 = vld [vmem:[%s1505_s1 + $0x214] sm:$0xf]  ;;  %v843_v51 = vor.u32 %v976_v47, %v840_v48  ;;  %v121_v18 = vperm.slane %v118_v56, 1 }
  0x35   :  { %562 = vmatpush.bf16.msrb.mxu1 %v667_v57  ;;  %v907_v52 = vor.u32 %v992_v49, %v904_v50  ;;  %v120_v57 = vperm.slane %v118_v56, 0 }
  0x36   :  { %576 = vmatpush.bf16.msrb.mxu2 %v731_v58 }
  0x37   :  { %590 = vmatpush.bf16.msrb.mxu3 %v795_v61 }
  0x38   :  { %601 = vmatpush.bf16.msra.mxu0 %v883_v62 }
  0x39   :  { %563 = vmatpush.bf16.msrb.mxu1 %v659_v8 }
  0x3a   :  { %577 = vmatpush.bf16.msrb.mxu2 %v723_v9 }
  0x3b   :  { %591 = vmatpush.bf16.msrb.mxu3 %v787_v14 }
  0x3c   :  { %602 = vmatpush.bf16.msra.mxu0 %v875_v15 }
  0x3d   :  { %564 = vmatpush.bf16.msrb.mxu1 %v651_v22 }
  0x3e   :  { %578 = vmatpush.bf16.msrb.mxu2 %v715_v23 }
  0x3f   :  { %592 = vmatpush.bf16.msrb.mxu3 %v779_v26 }
  0x40   :  { %603 = vmatpush.bf16.msra.mxu0 %v867_v27 }
  0x41   :  { %565 = vmatpush.bf16.msrb.mxu1 %v643_v36 }
  0x42   :  { %579 = vmatpush.bf16.msrb.mxu2 %v707_v37 }
  0x43   :  { %593 = vmatpush.bf16.msrb.mxu3 %v771_v38 }
  0x44   :  { %604 = vmatpush.bf16.msra.mxu0 %v859_v39  ;;  %566 = vmatmul.bf16.vlgmr.msrb.gmra.mxu1 %v1255_v3  ;;  %v974_v3 = vld [vmem:[%s1505_s1 + $0x184] sm:$0xf] }
  0x45   :  { %618 = vmatpush.bf16.msra.mxu1 %v923_v40  ;;  %580 = vmatmul.bf16.vlgmr.msrb.gmra.mxu2 %v1276_v12  ;;  %v832_v12 = vld [vmem:[%s1505_s1 + $0x188] sm:$0xf0] }
  0x46   :  { %594 = vmatmul.bf16.vlgmr.msrb.gmra.mxu3 %v1266_v7  ;;  %v896_v7 = vld [vmem:[%s1505_s1 + $0x208] sm:$0xf0]  ;;  %v835_v54 = vor.u32 %v974_v3, %v832_v12 }
  0x47   :  { %v899_v55 = vor.u32 %v990_v53, %v896_v7 }
  0x48   :  { %605 = vmatpush.bf16.msra.mxu0 %v851_v45 }
  0x49   :  { %619 = vmatpush.bf16.msra.mxu1 %v915_v46 }
  0x4c   :  { %606 = vmatpush.bf16.msra.mxu0 %v843_v51 }
  0x4d   :  { %620 = vmatpush.bf16.msra.mxu1 %v907_v52 }
  0x50   :  { %607 = vmatpush.bf16.msra.mxu0 %v835_v54 }
  0x51   :  { %621 = vmatpush.bf16.msra.mxu1 %v899_v55 }
  0x53   :  { %608 = vmatmul.bf16.vlgmr.msra.gmra.mxu0 %v1274_v10 }
  0x54   :  { %925 = vmatmul.msk.bf16.vlgmr.msra.gmra.mxu1 %vm484_vm0, %v1381_v2 }
  0xa0   :  { %v497_v58 = vpop.f32.mrf.mxu0 }
  0xa1   :  { %v498_v59 = vadd.f32 %v497_v58, %v120_v57  ;;  %v511_v60 = vpop.f32.mrf.mxu1 }
  0xa3   :  { %v512_v61 = vadd.f32 %v511_v60, %v498_v59 }
  0xa8   :  { %v525_v62 = vpop.f32.mrf.mxu2  ;;  %v499_v63 = vpop.f32.mrf.mxu0 }
  0xa9   :  { %v526_v0 = vadd.f32 %v525_v62, %v512_v61  ;;  %v539_v1 = vpop.f32.mrf.mxu3  ;;  %v500_v4 = vadd.f32 %v499_v63, %v120_v57  ;;  %v513_v5 = vpop.f32.mrf.mxu1 }
  0xab   :  { %v540_v6 = vadd.f32 %v539_v1, %v526_v0  ;;  %v514_v10 = vadd.f32 %v513_v5, %v500_v4 }
  0xb0   :  { %v527_v8 = vpop.f32.mrf.mxu2  ;;  %v553_v9 = vpop.f32.mrf.mxu0 }
  0xb1   :  { %v554_v2 = vadd.f32 %v553_v9, %v540_v6  ;;  %v528_v11 = vadd.f32 %v527_v8, %v514_v10  ;;  %v541_v13 = vpop.f32.mrf.mxu3 }
  0xb3   :  { %628 = vst [vmem:[%s1508_s3] sm:$0xff] %v554_v2  ;;  %v542_v14 = vadd.f32 %v541_v13, %v528_v11 }
  0xb8   :  { %v555_v15 = vpop.f32.mrf.mxu0 }
  0xb9   :  { %v556_v16 = vadd.f32 %v555_v15, %v542_v14 }
  0xbb   :  { %630 = vst [vmem:[%s1508_s3 + $0x10] sm:$0xff] %v556_v16 }
  0xc1   :  { %v567_v17 = vpop.f32.mrf.mxu1 }
  0xc2   :  { %v568_v19 = vadd.f32 %v567_v17, %v121_v18 }
  0xc8   :  { %v581_v20 = vpop.f32.mrf.mxu2 }
  0xc9   :  { %v582_v21 = vadd.f32 %v581_v20, %v568_v19  ;;  %v569_v22 = vpop.f32.mrf.mxu1  ;;  %v595_v23 = vpop.f32.mrf.mxu3 }
  0xca   :  { %v570_v26 = vadd.f32 %v569_v22, %v121_v18 }
  0xcb   :  { %v596_v24 = vadd.f32 %v595_v23, %v582_v21 }
  0xd0   :  { %v609_v25 = vpop.f32.mrf.mxu0  ;;  %v583_v28 = vpop.f32.mrf.mxu2 }
  0xd1   :  { %v610_v27 = vadd.f32 %v609_v25, %v596_v24  ;;  %v584_v29 = vadd.f32 %v583_v28, %v570_v26  ;;  %v623_v30 = vpop.f32.mrf.mxu1  ;;  %v597_v32 = vpop.f32.mrf.mxu3 }
  0xd3   :  { %v624_v31 = vadd.f32 %v623_v30, %v610_v27  ;;  %v598_v33 = vadd.f32 %v597_v32, %v584_v29 }
  0xd5   :  { %629 = vst [vmem:[%s1508_s3 + $0x8] sm:$0xff] %v624_v31 }
  0xd8   :  { %v611_v34 = vpop.f32.mrf.mxu0 }
  0xd9   :  { %v612_v35 = vadd.f32 %v611_v34, %v598_v33  ;;  %v625_v36 = vpop.f32.mrf.mxu1 }
  0xdb   :  { %v626_v37 = vadd.f32 %v625_v36, %v612_v35 }
  0xdd   :  { %631 = vst [vmem:[%s1508_s3 + $0x18] sm:$0xff] %v626_v37 }

// kernel: unet_forward.40
= control target key start
LH: loop header
LB: loop body
LE: loop exit
PB: predicated region body
PF: predicated region fallthrough
CT: control target
= control target key end

     0   :  { %vm57_vm0 = vcmask 261120   ;;  %vm62_vm1 = vcmask 523264   ;;  %s146_s1 = inlined_call_operand.vmem [shape: f32[32,32], index: 1, kind: input, shape index: {}]   ;;  %s147_s2 = inlined_call_operand.vmem [shape: f32[1,32], index: 2, kind: input, shape index: {}]   ;;  %s148_s3 = inlined_call_operand.vmem [shape: f32[1,32], index: 3, kind: input, shape index: {}]   ;;  %s149_s0 = inlined_call_operand.vmem [shape: f32[32,32], index: 0, kind: input, shape index: {}]   ;;  %s150_s4 = inlined_call_operand.vmem [shape: f32[32,64], index: 4, kind: output, shape index: {}]  }
   0x1   :  { %v19_v0 = vld [vmem:[%s146_s1 + $0x10] sm:$0xff]  ;;  %v72_v1 = vld [vmem:[%s147_s2] ss:$0 sm:$0xff]  ;;  %v20_v6 = vld [vmem:[%s146_s1 + $0x18] sm:$0xff]  ;;  %s74_s2 = smov 32  }
   0x2   :  { %v73_v2 = vld [vmem:[%s148_s3] ss:$0 sm:$0xff]  ;;  %v27_v4 = vmul.f32 %v72_v1, %v19_v0  ;;  %v18_v7 = vld [vmem:[%s146_s1 + $0x8] sm:$0xff]  ;;  %v28_v10 = vmul.f32 %v72_v1, %v20_v6  ;;  %v39_v14 = vld [vmem:[%s149_s0 + $0x10] sm:$0xff] }
   0x3   :  { %v17_v3 = vld [vmem:[%s146_s1] sm:$0xff]  ;;  %v26_v11 = vmul.f32 %v72_v1, %v18_v7  ;;  %v40_v20 = vld [vmem:[%s149_s0 + $0x18] sm:$0xff]  ;;  %v38_v21 = vld [vmem:[%s149_s0 + $0x8] sm:$0xff] }
   0x4   :  { %v25_v5 = vmul.f32 %v72_v1, %v17_v3  ;;  %v35_v8 = vadd.f32 %v73_v2, %v27_v4  ;;  %v36_v12 = vadd.f32 %v73_v2, %v28_v10  ;;  %v37_v15 = vld [vmem:[%s149_s0] sm:$0xff] }
   0x5   :  { %v34_v13 = vadd.f32 %v73_v2, %v26_v11 }
   0x6   :  { %v33_v9 = vadd.f32 %v73_v2, %v25_v5  ;;  %49 = vrot.lane.b32.xlu1 %v35_v8, %s74_s2 }
   0x8   :  { %45 = vrot.lane.b32.xlu0 %v33_v9, %s74_s2 }
   0xe   :  { %51 = vrot.lane.b32.xlu1 %v36_v12, %s74_s2 }
  0x10   :  { %47 = vrot.lane.b32.xlu0 %v34_v13, %s74_s2 }
  0x78   :  { %v50_v16 = vpop.permute.xlu1 %49 }
  0x79   :  { %v60_v18 = vsel %vm57_vm0, %v39_v14, %v50_v16 }
  0x7a   :  { %v46_v17 = vpop.permute.xlu0 %45  ;;  %65 = vst.msk [vmem:[%s150_s4 + $0x10] sm:$0xff] %vm62_vm1, %v60_v18 }
  0x7b   :  { %v58_v19 = vsel %vm57_vm0, %v37_v15, %v46_v17 }
  0x7c   :  { %63 = vst.msk [vmem:[%s150_s4] sm:$0xff] %vm62_vm1, %v58_v19 }
  0x80   :  { %v52_v22 = vpop.permute.xlu1 %51 }
  0x81   :  { %v61_v24 = vsel %vm57_vm0, %v40_v20, %v52_v22 }
  0x82   :  { %v48_v23 = vpop.permute.xlu0 %47  ;;  %66 = vst.msk [vmem:[%s150_s4 + $0x18] sm:$0xff] %vm62_vm1, %v61_v24 }
  0x83   :  { %v59_v25 = vsel %vm57_vm0, %v38_v21, %v48_v23 }
  0x84   :  { %64 = vst.msk [vmem:[%s150_s4 + $0x8] sm:$0xff] %vm62_vm1, %v59_v25 }

// kernel: unet_forward.38
= control target key start
LH: loop header
LB: loop body
LE: loop exit
PB: predicated region body
PF: predicated region fallthrough
CT: control target
= control target key end

     0   :  { %s1417_s1 = inlined_call_operand.vmem [shape: bf16[1152,128], index: 1, kind: input, shape index: {}]   ;;  %s1418_s0 = inlined_call_operand.vmem [shape: bf16[16,1152], index: 0, kind: input, shape index: {}]   ;;  %s1419_s2 = inlined_call_operand.vmem [shape: f32[1,128], index: 2, kind: input, shape index: {}]   ;;  %s1420_s3 = inlined_call_operand.vmem [shape: f32[16,128], index: 3, kind: output, shape index: {}]  }
   0x1   :  { %v1076_v0 = vld [vmem:[%s1417_s1 + $0x38] sm:$0xff]  ;;  %v1075_v4 = vld [vmem:[%s1417_s1 + $0x30] sm:$0xff]  ;;  %v1074_v8 = vld [vmem:[%s1417_s1 + $0x28] sm:$0xff] }
   0x2   :  { %v1092_v1 = vld [vmem:[%s1417_s1 + $0xb8] sm:$0xff]  ;;  %649 = vmatpush.bf16.msra.mxu0 %v1076_v0  ;;  %v1091_v5 = vld [vmem:[%s1417_s1 + $0xb0] sm:$0xff]  ;;  %v1090_v9 = vld [vmem:[%s1417_s1 + $0xa8] sm:$0xff] }
   0x3   :  { %v1084_v2 = vld [vmem:[%s1417_s1 + $0x78] sm:$0xff]  ;;  %677 = vmatpush.bf16.msra.mxu2 %v1092_v1  ;;  %v1083_v6 = vld [vmem:[%s1417_s1 + $0x70] sm:$0xff]  ;;  %v1082_v10 = vld [vmem:[%s1417_s1 + $0x68] sm:$0xff] }
   0x4   :  { %v1100_v3 = vld [vmem:[%s1417_s1 + $0xf8] sm:$0xff]  ;;  %663 = vmatpush.bf16.msra.mxu1 %v1084_v2  ;;  %v1099_v7 = vld [vmem:[%s1417_s1 + $0xf0] sm:$0xff]  ;;  %v1098_v11 = vld [vmem:[%s1417_s1 + $0xe8] sm:$0xff] }
   0x5   :  { %691 = vmatpush.bf16.msra.mxu3 %v1100_v3  ;;  %v1073_v12 = vld [vmem:[%s1417_s1 + $0x20] sm:$0xff]  ;;  %v1072_v16 = vld [vmem:[%s1417_s1 + $0x18] sm:$0xff]  ;;  %v1071_v20 = vld [vmem:[%s1417_s1 + $0x10] sm:$0xff] }
   0x6   :  { %650 = vmatpush.bf16.msra.mxu0 %v1075_v4  ;;  %v1089_v13 = vld [vmem:[%s1417_s1 + $0xa0] sm:$0xff]  ;;  %v1088_v17 = vld [vmem:[%s1417_s1 + $0x98] sm:$0xff]  ;;  %v1087_v21 = vld [vmem:[%s1417_s1 + $0x90] sm:$0xff] }
   0x7   :  { %678 = vmatpush.bf16.msra.mxu2 %v1091_v5  ;;  %v1081_v14 = vld [vmem:[%s1417_s1 + $0x60] sm:$0xff]  ;;  %v1080_v18 = vld [vmem:[%s1417_s1 + $0x58] sm:$0xff]  ;;  %v1079_v22 = vld [vmem:[%s1417_s1 + $0x50] sm:$0xff] }
   0x8   :  { %664 = vmatpush.bf16.msra.mxu1 %v1083_v6  ;;  %v1097_v15 = vld [vmem:[%s1417_s1 + $0xe0] sm:$0xff]  ;;  %v1096_v19 = vld [vmem:[%s1417_s1 + $0xd8] sm:$0xff]  ;;  %v1095_v23 = vld [vmem:[%s1417_s1 + $0xd0] sm:$0xff] }
   0x9   :  { %692 = vmatpush.bf16.msra.mxu3 %v1099_v7  ;;  %v14_v24 = vld [vmem:[%s1418_s0] sm:$0xff]  ;;  %v15_v26 = vld [vmem:[%s1418_s0 + $0x8] sm:$0xff]  ;;  %v1108_v46 = vld [vmem:[%s1417_s1 + $0x138] sm:$0xff] }
   0xa   :  { %651 = vmatpush.bf16.msra.mxu0 %v1074_v8  ;;  %v19_v25 = vld [vmem:[%s1418_s0 + $0x24] sm:$0xff]  ;;  %v20_v27 = vld [vmem:[%s1418_s0 + $0x2c] sm:$0xff]  ;;  %v24_v30 = vunpack.c.l.bf16 %v14_v24  ;;  %v26_v32 = vunpack.c.l.bf16 %v15_v26  ;;  %v25_v36 = vunpack.c.h.bf16 %v14_v24  ;;  %v27_v38 = vunpack.c.h.bf16 %v15_v26  ;;  %v1124_v47 = vld [vmem:[%s1417_s1 + $0x1b8] sm:$0xff] }
   0xb   :  { %679 = vmatpush.bf16.msra.mxu2 %v1090_v9  ;;  %v1070_v28 = vld [vmem:[%s1417_s1 + $0x8] sm:$0xff]  ;;  %v33_v31 = vunpack.c.l.bf16 %v19_v25  ;;  %v35_v33 = vunpack.c.l.bf16 %v20_v27  ;;  %v34_v37 = vunpack.c.h.bf16 %v19_v25  ;;  %v36_v39 = vunpack.c.h.bf16 %v20_v27  ;;  %v1069_v40 = vld [vmem:[%s1417_s1] sm:$0xff]  ;;  %v1116_v54 = vld [vmem:[%s1417_s1 + $0x178] sm:$0xff] }
   0xc   :  { %665 = vmatpush.bf16.msra.mxu1 %v1082_v10  ;;  %v1086_v29 = vld [vmem:[%s1417_s1 + $0x88] sm:$0xff]  ;;  %v1085_v41 = vld [vmem:[%s1417_s1 + $0x80] sm:$0xff]  ;;  %v42_v42 = vmax.f32 %v24_v30, 0.0  ;;  %v44_v44 = vmax.f32 %v26_v32, 0.0  ;;  %v43_v50 = vmax.f32 %v25_v36, 0.0  ;;  %v45_v52 = vmax.f32 %v27_v38, 0.0 }
   0xd   :  { %693 = vmatpush.bf16.msra.mxu3 %v1098_v11  ;;  %v1078_v34 = vld [vmem:[%s1417_s1 + $0x48] sm:$0xff]  ;;  %v51_v43 = vmax.f32 %v33_v31, 0.0  ;;  %v53_v45 = vmax.f32 %v35_v33, 0.0  ;;  %v1077_v48 = vld [vmem:[%s1417_s1 + $0x40] sm:$0xff]  ;;  %v52_v51 = vmax.f32 %v34_v37, 0.0  ;;  %v54_v53 = vmax.f32 %v36_v39, 0.0 }
   0xe   :  { %652 = vmatpush.bf16.msra.mxu0 %v1073_v12  ;;  %v1094_v35 = vld [vmem:[%s1417_s1 + $0xc8] sm:$0xff]  ;;  %v1093_v49 = vld [vmem:[%s1417_s1 + $0xc0] sm:$0xff]  ;;  %v1132_v55 = vld [vmem:[%s1417_s1 + $0x1f8] sm:$0xff] }
   0xf   :  { %680 = vmatpush.bf16.msra.mxu2 %v1089_v13  ;;  %v60_v56 = vpack.c.bf16 %v51_v43, %v42_v42  ;;  %v62_v57 = vpack.c.bf16 %v53_v45, %v44_v44  ;;  %v1107_v58 = vld [vmem:[%s1417_s1 + $0x130] sm:$0xff]  ;;  %v61_v60 = vpack.c.bf16 %v52_v51, %v43_v50  ;;  %v63_v61 = vpack.c.bf16 %v54_v53, %v45_v52  ;;  %v1106_v0 = vld [vmem:[%s1417_s1 + $0x128] sm:$0xff]  ;;  %v1105_v4 = vld [vmem:[%s1417_s1 + $0x120] sm:$0xff] }
  0x10   :  { %666 = vmatpush.bf16.msra.mxu1 %v1081_v14  ;;  %v1123_v59 = vld [vmem:[%s1417_s1 + $0x1b0] sm:$0xff]  ;;  %v1122_v1 = vld [vmem:[%s1417_s1 + $0x1a8] sm:$0xff]  ;;  %v1121_v5 = vld [vmem:[%s1417_s1 + $0x1a0] sm:$0xff] }
  0x11   :  { %694 = vmatpush.bf16.msra.mxu3 %v1097_v15  ;;  %v1115_v62 = vld [vmem:[%s1417_s1 + $0x170] sm:$0xff]  ;;  %v1114_v2 = vld [vmem:[%s1417_s1 + $0x168] sm:$0xff]  ;;  %v1113_v6 = vld [vmem:[%s1417_s1 + $0x160] sm:$0xff] }
  0x12   :  { %653 = vmatpush.bf16.msra.mxu0 %v1072_v16  ;;  %v1131_v63 = vld [vmem:[%s1417_s1 + $0x1f0] sm:$0xff]  ;;  %v1130_v3 = vld [vmem:[%s1417_s1 + $0x1e8] sm:$0xff]  ;;  %v1129_v7 = vld [vmem:[%s1417_s1 + $0x1e0] sm:$0xff] }
  0x13   :  { %681 = vmatpush.bf16.msra.mxu2 %v1088_v17  ;;  %v1104_v8 = vld [vmem:[%s1417_s1 + $0x118] sm:$0xff]  ;;  %v1103_v12 = vld [vmem:[%s1417_s1 + $0x110] sm:$0xff]  ;;  %v1102_v24 = vld [vmem:[%s1417_s1 + $0x108] sm:$0xff] }
  0x14   :  { %667 = vmatpush.bf16.msra.mxu1 %v1080_v18  ;;  %v1120_v9 = vld [vmem:[%s1417_s1 + $0x198] sm:$0xff]  ;;  %v1119_v13 = vld [vmem:[%s1417_s1 + $0x190] sm:$0xff]  ;;  %v1118_v25 = vld [vmem:[%s1417_s1 + $0x188] sm:$0xff] }
  0x15   :  { %695 = vmatpush.bf16.msra.mxu3 %v1096_v19  ;;  %v1112_v10 = vld [vmem:[%s1417_s1 + $0x158] sm:$0xff]  ;;  %v16_v14 = vld [vmem:[%s1418_s0 + $0x10] sm:$0xff]  ;;  %v1110_v30 = vld [vmem:[%s1417_s1 + $0x148] sm:$0xff] }
  0x16   :  { %654 = vmatpush.bf16.msra.mxu0 %v1071_v20  ;;  %v1128_v11 = vld [vmem:[%s1417_s1 + $0x1d8] sm:$0xff]  ;;  %v1111_v18 = vld [vmem:[%s1417_s1 + $0x150] sm:$0xff]  ;;  %v28_v20 = vunpack.c.l.bf16 %v16_v14  ;;  %v29_v26 = vunpack.c.h.bf16 %v16_v14  ;;  %v1126_v31 = vld [vmem:[%s1417_s1 + $0x1c8] sm:$0xff] }
  0x17   :  { %682 = vmatpush.bf16.msra.mxu2 %v1087_v21  ;;  %v21_v15 = vld [vmem:[%s1418_s0 + $0x34] sm:$0xff]  ;;  %v22_v17 = vld [vmem:[%s1418_s0 + $0x3c] sm:$0xff]  ;;  %v1138_v50 = vld [vmem:[%s1417_s1 + $0x228] sm:$0xff] }
  0x18   :  { %668 = vmatpush.bf16.msra.mxu1 %v1079_v22  ;;  %v17_v16 = vld [vmem:[%s1418_s0 + $0x18] sm:$0xff]  ;;  %v1127_v19 = vld [vmem:[%s1417_s1 + $0x1d0] sm:$0xff]  ;;  %v37_v21 = vunpack.c.l.bf16 %v21_v15  ;;  %v38_v27 = vunpack.c.h.bf16 %v21_v15  ;;  %v46_v32 = vmax.f32 %v28_v20, 0.0  ;;  %v1101_v36 = vld [vmem:[%s1417_s1 + $0x100] sm:$0xff]  ;;  %v47_v39 = vmax.f32 %v29_v26, 0.0 }
  0x19   :  { %696 = vmatpush.bf16.msra.mxu3 %v1095_v23  ;;  %v30_v22 = vunpack.c.l.bf16 %v17_v16  ;;  %v39_v23 = vunpack.c.l.bf16 %v22_v17  ;;  %v1117_v37 = vld [vmem:[%s1417_s1 + $0x180] sm:$0xff]  ;;  %v1140_v38 = vld [vmem:[%s1417_s1 + $0x238] sm:$0xff]  ;;  %v1135_v53 = vld [vmem:[%s1417_s1 + $0x210] sm:$0xff] }
  0x1a   :  { %655 = vmatpush.bf16.msra.mxu0 %v1070_v28  ;;  %v31_v28 = vunpack.c.h.bf16 %v17_v16  ;;  %v55_v33 = vmax.f32 %v37_v21, 0.0  ;;  %v1109_v43 = vld [vmem:[%s1417_s1 + $0x140] sm:$0xff]  ;;  %v1136_v52 = vld [vmem:[%s1417_s1 + $0x218] sm:$0xff] }
  0x1b   :  { %683 = vmatpush.bf16.msra.mxu2 %v1086_v29  ;;  %v40_v29 = vunpack.c.h.bf16 %v22_v17  ;;  %v1125_v44 = vld [vmem:[%s1417_s1 + $0x1c0] sm:$0xff] }
  0x1c   :  { %669 = vmatpush.bf16.msra.mxu1 %v1078_v34  ;;  %v48_v34 = vmax.f32 %v30_v22, 0.0  ;;  %v64_v45 = vpack.c.bf16 %v55_v33, %v46_v32  ;;  %v1137_v51 = vld [vmem:[%s1417_s1 + $0x220] sm:$0xff] }
  0x1d   :  { %697 = vmatpush.bf16.msra.mxu3 %v1094_v35  ;;  %v57_v35 = vmax.f32 %v39_v23, 0.0  ;;  %v58_v42 = vmax.f32 %v40_v29, 0.0 }
  0x1e   :  { %656 = vmatpush.bf16.msra.mxu0 %v1069_v40  ;;  %v56_v40 = vmax.f32 %v38_v27, 0.0 }
  0x1f   :  { %684 = vmatpush.bf16.msra.mxu2 %v1085_v41  ;;  %v49_v41 = vmax.f32 %v31_v28, 0.0 }
  0x20   :  { %670 = vmatpush.bf16.msra.mxu1 %v1077_v48 }
  0x21   :  { %698 = vmatpush.bf16.msra.mxu3 %v1093_v49  ;;  %657 = vmatmul.bf16.vlgmr.msra.gmra.mxu0 %v60_v56  ;;  %v67_v48 = vpack.c.bf16 %v58_v42, %v49_v41  ;;  %v1139_v49 = vld [vmem:[%s1417_s1 + $0x230] sm:$0xff] }
  0x22   :  { %705 = vmatpush.bf16.msrb.mxu0 %v1108_v46  ;;  %685 = vmatmul.bf16.vlgmr.msra.gmra.mxu2 %v62_v57  ;;  %v66_v46 = vpack.c.bf16 %v57_v35, %v48_v34 }
  0x23   :  { %733 = vmatpush.bf16.msrb.mxu2 %v1124_v47  ;;  %671 = vmatmul.bf16.vlgmr.msra.gmra.mxu1 %v61_v60  ;;  %v65_v47 = vpack.c.bf16 %v56_v40, %v47_v39 }
  0x24   :  { %719 = vmatpush.bf16.msrb.mxu1 %v1116_v54  ;;  %699 = vmatmul.bf16.vlgmr.msra.gmra.mxu3 %v63_v61  ;;  %v18_v54 = vld [vmem:[%s1418_s0 + $0x20] sm:$0xf] }
  0x25   :  { %747 = vmatpush.bf16.msrb.mxu3 %v1132_v55  ;;  %v23_v55 = vld [vmem:[%s1418_s0 + $0x44] sm:$0xf]  ;;  %v32_v56 = vunpack.c.l.bf16 %v18_v54 }
  0x26   :  { %706 = vmatpush.bf16.msrb.mxu0 %v1107_v58  ;;  %v41_v57 = vunpack.c.l.bf16 %v23_v55  ;;  %v1134_v58 = vld [vmem:[%s1417_s1 + $0x208] sm:$0xff]  ;;  %v1133_v61 = vld [vmem:[%s1417_s1 + $0x200] sm:$0xff] }
  0x27   :  { %734 = vmatpush.bf16.msrb.mxu2 %v1123_v59  ;;  %v50_v59 = vmax.f32 %v32_v56, 0.0 }
  0x28   :  { %720 = vmatpush.bf16.msrb.mxu1 %v1115_v62  ;;  %v59_v60 = vmax.f32 %v41_v57, 0.0 }
  0x29   :  { %748 = vmatpush.bf16.msrb.mxu3 %v1131_v63 }
  0x2a   :  { %707 = vmatpush.bf16.msrb.mxu0 %v1106_v0  ;;  %v68_v62 = vpack.c.bf16 %v59_v60, %v50_v59  ;;  %v1141_v0 = vld [vmem:[%s1419_s2] ss:$0 sm:$0xff] }
  0x2b   :  { %735 = vmatpush.bf16.msrb.mxu2 %v1122_v1 }
  0x2c   :  { %721 = vmatpush.bf16.msrb.mxu1 %v1114_v2 }
  0x2d   :  { %749 = vmatpush.bf16.msrb.mxu3 %v1130_v3 }
  0x2e   :  { %708 = vmatpush.bf16.msrb.mxu0 %v1105_v4 }
  0x2f   :  { %736 = vmatpush.bf16.msrb.mxu2 %v1121_v5 }
  0x30   :  { %722 = vmatpush.bf16.msrb.mxu1 %v1113_v6 }
  0x31   :  { %750 = vmatpush.bf16.msrb.mxu3 %v1129_v7 }
  0x32   :  { %709 = vmatpush.bf16.msrb.mxu0 %v1104_v8 }
  0x33   :  { %737 = vmatpush.bf16.msrb.mxu2 %v1120_v9 }
  0x34   :  { %723 = vmatpush.bf16.msrb.mxu1 %v1112_v10 }
  0x35   :  { %751 = vmatpush.bf16.msrb.mxu3 %v1128_v11 }
  0x36   :  { %710 = vmatpush.bf16.msrb.mxu0 %v1103_v12 }
  0x37   :  { %738 = vmatpush.bf16.msrb.mxu2 %v1119_v13 }
  0x38   :  { %724 = vmatpush.bf16.msrb.mxu1 %v1111_v18 }
  0x39   :  { %752 = vmatpush.bf16.msrb.mxu3 %v1127_v19 }
  0x3a   :  { %711 = vmatpush.bf16.msrb.mxu0 %v1102_v24 }
  0x3b   :  { %739 = vmatpush.bf16.msrb.mxu2 %v1118_v25 }
  0x3c   :  { %725 = vmatpush.bf16.msrb.mxu1 %v1110_v30 }
  0x3d   :  { %753 = vmatpush.bf16.msrb.mxu3 %v1126_v31 }
  0x3e   :  { %712 = vmatpush.bf16.msrb.mxu0 %v1101_v36 }
  0x3f   :  { %740 = vmatpush.bf16.msrb.mxu2 %v1117_v37 }
  0x40   :  { %726 = vmatpush.bf16.msrb.mxu1 %v1109_v43 }
  0x41   :  { %754 = vmatpush.bf16.msrb.mxu3 %v1125_v44  ;;  %713 = vmatmul.bf16.vlgmr.msrb.gmra.mxu0 %v64_v45 }
  0x42   :  { %761 = vmatpush.bf16.msra.mxu0 %v1140_v38  ;;  %741 = vmatmul.bf16.vlgmr.msrb.gmra.mxu2 %v66_v46 }
  0x43   :  { %727 = vmatmul.bf16.vlgmr.msrb.gmra.mxu1 %v65_v47 }
  0x44   :  { %755 = vmatmul.bf16.vlgmr.msrb.gmra.mxu3 %v67_v48 }
  0x46   :  { %762 = vmatpush.bf16.msra.mxu0 %v1139_v49 }
  0x4a   :  { %763 = vmatpush.bf16.msra.mxu0 %v1138_v50 }
  0x4e   :  { %764 = vmatpush.bf16.msra.mxu0 %v1137_v51 }
  0x52   :  { %765 = vmatpush.bf16.msra.mxu0 %v1136_v52 }
  0x56   :  { %766 = vmatpush.bf16.msra.mxu0 %v1135_v53 }
  0x5a   :  { %767 = vmatpush.bf16.msra.mxu0 %v1134_v58 }
  0x5e   :  { %768 = vmatpush.bf16.msra.mxu0 %v1133_v61 }
  0x61   :  { %769 = vmatmul.bf16.vlgmr.msra.gmra.mxu0 %v68_v62 }
  0x9e   :  { %v658_v63 = vpop.f32.mrf.mxu0 }
  0x9f   :  { %v659_v3 = vadd.f32 %v1141_v0, %v658_v63 }
  0xa0   :  { %v672_v1 = vpop.f32.mrf.mxu1 }
  0xa1   :  { %v673_v6 = vadd.f32 %v672_v1, %v659_v3 }
  0xa5   :  { %v686_v2 = vpop.f32.mrf.mxu2 }
  0xa6   :  { %v660_v4 = vpop.f32.mrf.mxu0  ;;  %v687_v8 = vadd.f32 %v686_v2, %v673_v6 }
  0xa7   :  { %v700_v5 = vpop.f32.mrf.mxu3  ;;  %v661_v11 = vadd.f32 %v1141_v0, %v660_v4 }
  0xa8   :  { %v674_v7 = vpop.f32.mrf.mxu1  ;;  %v701_v12 = vadd.f32 %v700_v5, %v687_v8 }
  0xa9   :  { %v675_v14 = vadd.f32 %v674_v7, %v661_v11 }
  0xad   :  { %v688_v9 = vpop.f32.mrf.mxu2 }
  0xae   :  { %v689_v18 = vadd.f32 %v688_v9, %v675_v14 }
  0xaf   :  { %v702_v13 = vpop.f32.mrf.mxu3 }
  0xb0   :  { %v703_v22 = vadd.f32 %v702_v13, %v689_v18 }
  0xbe   :  { %v714_v10 = vpop.f32.mrf.mxu0 }
  0xbf   :  { %v715_v15 = vadd.f32 %v714_v10, %v701_v12 }
  0xc0   :  { %v728_v16 = vpop.f32.mrf.mxu1 }
  0xc1   :  { %v729_v19 = vadd.f32 %v728_v16, %v715_v15 }
  0xc5   :  { %v742_v17 = vpop.f32.mrf.mxu2 }
  0xc6   :  { %v716_v20 = vpop.f32.mrf.mxu0  ;;  %v743_v23 = vadd.f32 %v742_v17, %v729_v19 }
  0xc7   :  { %v756_v21 = vpop.f32.mrf.mxu3  ;;  %v717_v24 = vadd.f32 %v716_v20, %v703_v22 }
  0xc8   :  { %v730_v25 = vpop.f32.mrf.mxu1  ;;  %v757_v26 = vadd.f32 %v756_v21, %v743_v23 }
  0xc9   :  { %v731_v29 = vadd.f32 %v730_v25, %v717_v24 }
  0xcd   :  { %v744_v27 = vpop.f32.mrf.mxu2 }
  0xce   :  { %v745_v31 = vadd.f32 %v744_v27, %v731_v29 }
  0xcf   :  { %v758_v32 = vpop.f32.mrf.mxu3 }
  0xd0   :  { %v759_v33 = vadd.f32 %v758_v32, %v745_v31 }
  0xde   :  { %v770_v28 = vpop.f32.mrf.mxu0 }
  0xdf   :  { %v771_v30 = vadd.f32 %v770_v28, %v757_v26 }
  0xe1   :  { %775 = vst [vmem:[%s1420_s3] sm:$0xff] %v771_v30 }
  0xe6   :  { %v772_v34 = vpop.f32.mrf.mxu0 }
  0xe7   :  { %v773_v35 = vadd.f32 %v772_v34, %v759_v33 }
  0xe9   :  { %776 = vst [vmem:[%s1420_s3 + $0x8] sm:$0xff] %v773_v35 }

// kernel: unet_forward.41
= control target key start
LH: loop header
LB: loop body
LE: loop exit
PB: predicated region body
PF: predicated region fallthrough
CT: control target
= control target key end

     0   :  { %vm369_vm0 = vcmask 523264   ;;  %s845_s1 = inlined_call_operand.vmem [shape: bf16[576,128], index: 1, kind: input, shape index: {}]   ;;  %s846_s2 = inlined_call_operand.vmem [shape: f32[1,128], index: 2, kind: input, shape index: {}]   ;;  %s847_s0 = inlined_call_operand.vmem [shape: bf16[32,576], index: 0, kind: input, shape index: {}]   ;;  %s848_s3 = inlined_call_operand.vmem [shape: f32[32,128], index: 3, kind: output, shape index: {}]  }
   0x1   :  { %v632_v0 = vld [vmem:[%s845_s1 + $0x38] sm:$0xff]  ;;  %v631_v4 = vld [vmem:[%s845_s1 + $0x30] sm:$0xff]  ;;  %v630_v8 = vld [vmem:[%s845_s1 + $0x28] sm:$0xff] }
   0x2   :  { %v640_v1 = vld [vmem:[%s845_s1 + $0x78] sm:$0xff]  ;;  %376 = vmatpush.bf16.msra.mxu0 %v632_v0  ;;  %v639_v5 = vld [vmem:[%s845_s1 + $0x70] sm:$0xff]  ;;  %v638_v9 = vld [vmem:[%s845_s1 + $0x68] sm:$0xff] }
   0x3   :  { %v648_v2 = vld [vmem:[%s845_s1 + $0xb8] sm:$0xff]  ;;  %395 = vmatpush.bf16.msra.mxu1 %v640_v1  ;;  %v647_v6 = vld [vmem:[%s845_s1 + $0xb0] sm:$0xff]  ;;  %v646_v10 = vld [vmem:[%s845_s1 + $0xa8] sm:$0xff] }
   0x4   :  { %v656_v3 = vld [vmem:[%s845_s1 + $0xf8] sm:$0xff]  ;;  %414 = vmatpush.bf16.msra.mxu2 %v648_v2  ;;  %v655_v7 = vld [vmem:[%s845_s1 + $0xf0] sm:$0xff]  ;;  %v654_v11 = vld [vmem:[%s845_s1 + $0xe8] sm:$0xff] }
   0x5   :  { %433 = vmatpush.bf16.msra.mxu3 %v656_v3  ;;  %v629_v12 = vld [vmem:[%s845_s1 + $0x20] sm:$0xff]  ;;  %v628_v16 = vld [vmem:[%s845_s1 + $0x18] sm:$0xff]  ;;  %v627_v20 = vld [vmem:[%s845_s1 + $0x10] sm:$0xff] }
   0x6   :  { %377 = vmatpush.bf16.msra.mxu0 %v631_v4  ;;  %v637_v13 = vld [vmem:[%s845_s1 + $0x60] sm:$0xff]  ;;  %v636_v17 = vld [vmem:[%s845_s1 + $0x58] sm:$0xff]  ;;  %v635_v21 = vld [vmem:[%s845_s1 + $0x50] sm:$0xff] }
   0x7   :  { %396 = vmatpush.bf16.msra.mxu1 %v639_v5  ;;  %v645_v14 = vld [vmem:[%s845_s1 + $0xa0] sm:$0xff]  ;;  %v644_v18 = vld [vmem:[%s845_s1 + $0x98] sm:$0xff]  ;;  %v643_v22 = vld [vmem:[%s845_s1 + $0x90] sm:$0xff] }
   0x8   :  { %415 = vmatpush.bf16.msra.mxu2 %v647_v6  ;;  %v653_v15 = vld [vmem:[%s845_s1 + $0xe0] sm:$0xff]  ;;  %v652_v19 = vld [vmem:[%s845_s1 + $0xd8] sm:$0xff]  ;;  %v651_v25 = vld [vmem:[%s845_s1 + $0xd0] sm:$0xff] }
   0x9   :  { %434 = vmatpush.bf16.msra.mxu3 %v655_v7  ;;  %v15_v23 = vld [vmem:[%s847_s0] sm:$0xff]  ;;  %v18_v24 = vld [vmem:[%s847_s0 + $0x14] sm:$0xff]  ;;  %v16_v26 = vld [vmem:[%s847_s0 + $0x8] sm:$0xff] }
   0xa   :  { %378 = vmatpush.bf16.msra.mxu0 %v630_v8  ;;  %v19_v27 = vld [vmem:[%s847_s0 + $0x1c] sm:$0xff]  ;;  %v27_v28 = vunpack.c.l.bf16 %v15_v23  ;;  %v32_v29 = vunpack.c.l.bf16 %v18_v24  ;;  %v28_v30 = vunpack.c.h.bf16 %v15_v23  ;;  %v33_v31 = vunpack.c.h.bf16 %v18_v24  ;;  %v626_v32 = vld [vmem:[%s845_s1 + $0x8] sm:$0xff]  ;;  %v659_v57 = vld [vmem:[%s845_s1 + $0x110] sm:$0xff] }
   0xb   :  { %397 = vmatpush.bf16.msra.mxu1 %v638_v9  ;;  %v634_v33 = vld [vmem:[%s845_s1 + $0x48] sm:$0xff]  ;;  %v29_v34 = vunpack.c.l.bf16 %v16_v26  ;;  %v34_v35 = vunpack.c.l.bf16 %v19_v27  ;;  %v30_v36 = vunpack.c.h.bf16 %v16_v26  ;;  %v35_v37 = vunpack.c.h.bf16 %v19_v27  ;;  %v625_v44 = vld [vmem:[%s845_s1] sm:$0xff]  ;;  %v660_v52 = vld [vmem:[%s845_s1 + $0x118] sm:$0xff] }
   0xc   :  { %416 = vmatpush.bf16.msra.mxu2 %v646_v10  ;;  %v642_v38 = vld [vmem:[%s845_s1 + $0x88] sm:$0xff]  ;;  %v47_v40 = vmax.f32 %v27_v28, 0.0  ;;  %v52_v41 = vmax.f32 %v32_v29, 0.0  ;;  %v48_v42 = vmax.f32 %v28_v30, 0.0  ;;  %v53_v43 = vmax.f32 %v33_v31, 0.0  ;;  %v633_v45 = vld [vmem:[%s845_s1 + $0x40] sm:$0xff] }
   0xd   :  { %435 = vmatpush.bf16.msra.mxu3 %v654_v11  ;;  %v650_v39 = vld [vmem:[%s845_s1 + $0xc8] sm:$0xff]  ;;  %v49_v46 = vmax.f32 %v29_v34, 0.0  ;;  %v54_v47 = vmax.f32 %v34_v35, 0.0  ;;  %v50_v48 = vmax.f32 %v30_v36, 0.0  ;;  %v55_v49 = vmax.f32 %v35_v37, 0.0  ;;  %v641_v50 = vld [vmem:[%s845_s1 + $0x80] sm:$0xff] }
   0xe   :  { %379 = vmatpush.bf16.msra.mxu0 %v629_v12  ;;  %v649_v51 = vld [vmem:[%s845_s1 + $0xc0] sm:$0xff]  ;;  %v67_v53 = vpack.c.bf16 %v52_v41, %v47_v40  ;;  %v68_v54 = vpack.c.bf16 %v53_v43, %v48_v42  ;;  %v21_v58 = vld [vmem:[%s847_s0 + $0x28] sm:$0xff]  ;;  %v22_v60 = vld [vmem:[%s847_s0 + $0x30] sm:$0xff] }
   0xf   :  { %398 = vmatpush.bf16.msra.mxu1 %v637_v13  ;;  %v69_v55 = vpack.c.bf16 %v54_v47, %v49_v46  ;;  %v70_v56 = vpack.c.bf16 %v55_v49, %v50_v48  ;;  %v24_v59 = vld [vmem:[%s847_s0 + $0x3c] sm:$0xff]  ;;  %v25_v61 = vld [vmem:[%s847_s0 + $0x44] sm:$0xff]  ;;  %v37_v63 = vunpack.c.l.bf16 %v21_v58  ;;  %v38_v1 = vunpack.c.h.bf16 %v21_v58  ;;  %v26_v23 = vld [vmem:[%s847_s0 + $0x4c] sm:$0xf] }
  0x10   :  { %417 = vmatpush.bf16.msra.mxu2 %v645_v14  ;;  %v658_v62 = vld [vmem:[%s845_s1 + $0x108] sm:$0xff]  ;;  %v42_v0 = vunpack.c.l.bf16 %v24_v59  ;;  %v43_v2 = vunpack.c.h.bf16 %v24_v59  ;;  %v39_v3 = vunpack.c.l.bf16 %v22_v60  ;;  %v44_v4 = vunpack.c.l.bf16 %v25_v61  ;;  %v657_v7 = vld [vmem:[%s845_s1 + $0x100] sm:$0xff] }
  0x11   :  { %436 = vmatpush.bf16.msra.mxu3 %v653_v15  ;;  %v40_v5 = vunpack.c.h.bf16 %v22_v60  ;;  %v45_v6 = vunpack.c.h.bf16 %v25_v61  ;;  %v57_v8 = vmax.f32 %v37_v63, 0.0  ;;  %v58_v10 = vmax.f32 %v38_v1, 0.0  ;;  %v665_v43 = vld [vmem:[%s846_s2] ss:$0 sm:$0xff] }
  0x12   :  { %380 = vmatpush.bf16.msra.mxu0 %v628_v16  ;;  %v62_v9 = vmax.f32 %v42_v0, 0.0  ;;  %v63_v11 = vmax.f32 %v43_v2, 0.0  ;;  %v59_v12 = vmax.f32 %v39_v3, 0.0  ;;  %v64_v13 = vmax.f32 %v44_v4, 0.0 }
  0x13   :  { %399 = vmatpush.bf16.msra.mxu1 %v636_v17  ;;  %v60_v14 = vmax.f32 %v40_v5, 0.0  ;;  %v65_v15 = vmax.f32 %v45_v6, 0.0  ;;  %v46_v27 = vunpack.c.l.bf16 %v26_v23 }
  0x14   :  { %418 = vmatpush.bf16.msra.mxu2 %v644_v18  ;;  %v72_v16 = vpack.c.bf16 %v62_v9, %v57_v8  ;;  %v73_v17 = vpack.c.bf16 %v63_v11, %v58_v10  ;;  %v74_v18 = vpack.c.bf16 %v64_v13, %v59_v12 }
  0x15   :  { %437 = vmatpush.bf16.msra.mxu3 %v652_v19  ;;  %v75_v19 = vpack.c.bf16 %v65_v15, %v60_v14  ;;  %v66_v31 = vmax.f32 %v46_v27, 0.0 }
  0x16   :  { %381 = vmatpush.bf16.msra.mxu0 %v627_v20  ;;  %v17_v20 = vld [vmem:[%s847_s0 + $0x10] sm:$0xf] }
  0x17   :  { %400 = vmatpush.bf16.msra.mxu1 %v635_v21  ;;  %v20_v21 = vld [vmem:[%s847_s0 + $0x24] sm:$0xf]  ;;  %v31_v24 = vunpack.c.l.bf16 %v17_v20 }
  0x18   :  { %419 = vmatpush.bf16.msra.mxu2 %v643_v22  ;;  %v23_v22 = vld [vmem:[%s847_s0 + $0x38] sm:$0xf] }
  0x19   :  { %438 = vmatpush.bf16.msra.mxu3 %v651_v25  ;;  %v36_v25 = vunpack.c.l.bf16 %v20_v21  ;;  %v41_v26 = vunpack.c.l.bf16 %v23_v22  ;;  %v51_v28 = vmax.f32 %v31_v24, 0.0 }
  0x1a   :  { %382 = vmatpush.bf16.msra.mxu0 %v626_v32 }
  0x1b   :  { %401 = vmatpush.bf16.msra.mxu1 %v634_v33  ;;  %v56_v29 = vmax.f32 %v36_v25, 0.0  ;;  %v61_v30 = vmax.f32 %v41_v26, 0.0 }
  0x1c   :  { %420 = vmatpush.bf16.msra.mxu2 %v642_v38 }
  0x1d   :  { %439 = vmatpush.bf16.msra.mxu3 %v650_v39  ;;  %v71_v32 = vpack.c.bf16 %v56_v29, %v51_v28  ;;  %v76_v33 = vpack.c.bf16 %v66_v31, %v61_v30 }
  0x1e   :  { %383 = vmatpush.bf16.msra.mxu0 %v625_v44 }
  0x1f   :  { %402 = vmatpush.bf16.msra.mxu1 %v633_v45 }
  0x20   :  { %421 = vmatpush.bf16.msra.mxu2 %v641_v50 }
  0x21   :  { %440 = vmatpush.bf16.msra.mxu3 %v649_v51  ;;  %384 = vmatmul.bf16.vlgmr.msra.gmra.mxu0 %v67_v53 }
  0x22   :  { %456 = vmatpush.bf16.msrb.mxu0 %v660_v52  ;;  %403 = vmatmul.bf16.vlgmr.msra.gmra.mxu1 %v68_v54 }
  0x23   :  { %661 = vmatpush.bf16.msrb.mxu1 %v660_v52  ;;  %422 = vmatmul.bf16.vlgmr.msra.gmra.mxu2 %v69_v55 }
  0x24   :  { %441 = vmatmul.bf16.vlgmr.msra.gmra.mxu3 %v70_v56 }
  0x26   :  { %457 = vmatpush.bf16.msrb.mxu0 %v659_v57 }
  0x27   :  { %662 = vmatpush.bf16.msrb.mxu1 %v659_v57 }
  0x2a   :  { %458 = vmatpush.bf16.msrb.mxu0 %v658_v62 }
  0x2b   :  { %663 = vmatpush.bf16.msrb.mxu1 %v658_v62 }
  0x2e   :  { %459 = vmatpush.bf16.msrb.mxu0 %v657_v7 }
  0x2f   :  { %664 = vmatpush.bf16.msrb.mxu1 %v657_v7 }
  0x31   :  { %389 = vmatmul.bf16.gmra.mxu0 %v72_v16 }
  0x32   :  { %408 = vmatmul.bf16.gmra.mxu1 %v73_v17 }
  0x33   :  { %427 = vmatmul.bf16.gmra.mxu2 %v74_v18 }
  0x34   :  { %446 = vmatmul.bf16.gmra.mxu3 %v75_v19 }
  0x41   :  { %623 = vmatmul.msk.bf16.vlgmr.msrb.gmra.mxu0 %vm369_vm0, %v71_v32 }
  0x42   :  { %624 = vmatmul.msk.bf16.vlgmr.msrb.gmra.mxu1 %vm369_vm0, %v76_v33 }
  0x9e   :  { %v385_v34 = vpop.f32.mrf.mxu0 }
  0x9f   :  { %v404_v35 = vpop.f32.mrf.mxu1  ;;  %v386_v45 = vadd.f32 %v665_v43, %v385_v34 }
  0xa1   :  { %v405_v50 = vadd.f32 %v404_v35, %v386_v45 }
  0xa6   :  { %v423_v36 = vpop.f32.mrf.mxu2  ;;  %v387_v38 = vpop.f32.mrf.mxu0 }
  0xa7   :  { %v442_v37 = vpop.f32.mrf.mxu3  ;;  %v406_v39 = vpop.f32.mrf.mxu1  ;;  %v424_v52 = vadd.f32 %v423_v36, %v405_v50  ;;  %v388_v55 = vadd.f32 %v665_v43, %v387_v38 }
  0xa9   :  { %v443_v57 = vadd.f32 %v442_v37, %v424_v52  ;;  %v407_v62 = vadd.f32 %v406_v39, %v388_v55 }
  0xae   :  { %v425_v40 = vpop.f32.mrf.mxu2  ;;  %v390_v41 = vpop.f32.mrf.mxu0 }
  0xaf   :  { %v409_v42 = vpop.f32.mrf.mxu1  ;;  %v444_v44 = vpop.f32.mrf.mxu3  ;;  %v391_v46 = vadd.f32 %v665_v43, %v390_v41  ;;  %v426_v2 = vadd.f32 %v425_v40, %v407_v62 }
  0xb1   :  { %v410_v51 = vadd.f32 %v409_v42, %v391_v46  ;;  %v445_v5 = vadd.f32 %v444_v44, %v426_v2 }
  0xb6   :  { %v428_v47 = vpop.f32.mrf.mxu2  ;;  %v392_v48 = vpop.f32.mrf.mxu0 }
  0xb7   :  { %v411_v49 = vpop.f32.mrf.mxu1  ;;  %v429_v53 = vadd.f32 %v428_v47, %v410_v51  ;;  %v447_v54 = vpop.f32.mrf.mxu3  ;;  %v393_v56 = vadd.f32 %v665_v43, %v392_v48 }
  0xb9   :  { %v448_v58 = vadd.f32 %v447_v54, %v429_v53  ;;  %v412_v63 = vadd.f32 %v411_v49, %v393_v56 }
  0xbe   :  { %v430_v59 = vpop.f32.mrf.mxu2  ;;  %v461_v60 = vpop.f32.mrf.mxu0 }
  0xbf   :  { %v466_v61 = vpop.f32.mrf.mxu1  ;;  %v462_v0 = vadd.f32 %v461_v60, %v443_v57  ;;  %v431_v3 = vadd.f32 %v430_v59, %v412_v63  ;;  %v449_v4 = vpop.f32.mrf.mxu3 }
  0xc0   :  { %v467_v1 = vadd.f32 %v466_v61, %v448_v58 }
  0xc1   :  { %471 = vst [vmem:[%s848_s3] sm:$0xff] %v462_v0  ;;  %v450_v6 = vadd.f32 %v449_v4, %v431_v3 }
  0xc2   :  { %473 = vst [vmem:[%s848_s3 + $0x10] sm:$0xff] %v467_v1 }
  0xc6   :  { %v463_v7 = vpop.f32.mrf.mxu0 }
  0xc7   :  { %v468_v8 = vpop.f32.mrf.mxu1  ;;  %v464_v9 = vadd.f32 %v463_v7, %v445_v5 }
  0xc8   :  { %v469_v10 = vadd.f32 %v468_v8, %v450_v6 }
  0xc9   :  { %472 = vst [vmem:[%s848_s3 + $0x8] sm:$0xff] %v464_v9 }
  0xca   :  { %474 = vst [vmem:[%s848_s3 + $0x18] sm:$0xff] %v469_v10 }

// kernel: unet_forward.43
= control target key start
LH: loop header
LB: loop body
LE: loop exit
PB: predicated region body
PF: predicated region fallthrough
CT: control target
= control target key end

     0   :  { %vm153_vm0 = vcmask 130048   ;;  %vm170_vm1 = vcmask 261120   ;;  %s436_s1 = inlined_call_operand.vmem [shape: f32[128,16], index: 1, kind: input, shape index: {}]   ;;  %s437_s2 = inlined_call_operand.vmem [shape: f32[1,16], index: 2, kind: input, shape index: {}]   ;;  %s438_s3 = inlined_call_operand.vmem [shape: f32[1,16], index: 3, kind: input, shape index: {}]   ;;  %s439_s0 = inlined_call_operand.vmem [shape: f32[128,16], index: 0, kind: input, shape index: {}]   ;;  %s440_s4 = inlined_call_operand.vmem [shape: f32[128,32], index: 4, kind: output, shape index: {}]  }
   0x1   :  { %v17_v0 = vld [vmem:[%s436_s1] sm:$0xff]  ;;  %v19_v3 = vld [vmem:[%s436_s1 + $0x10] sm:$0xff]  ;;  %v18_v6 = vld [vmem:[%s436_s1 + $0x8] sm:$0xff] }
   0x2   :  { %v192_v1 = vld [vmem:[%s437_s2] ss:$0 sm:$0xff]  ;;  %v20_v7 = vld [vmem:[%s436_s1 + $0x18] sm:$0xff]  ;;  %v22_v14 = vld [vmem:[%s436_s1 + $0x28] sm:$0xff] }
   0x3   :  { %v229_v2 = vld [vmem:[%s438_s3] ss:$0 sm:$0xff]  ;;  %v37_v4 = vmul.f32 %v192_v1, %v17_v0  ;;  %v39_v5 = vmul.f32 %v192_v1, %v19_v3  ;;  %s194_s3 = smov 16   ;;  %v38_v12 = vmul.f32 %v192_v1, %v18_v6  ;;  %v40_v13 = vmul.f32 %v192_v1, %v20_v7  ;;  %v23_v19 = vld [vmem:[%s436_s1 + $0x30] sm:$0xff]  ;;  %v24_v20 = vld [vmem:[%s436_s1 + $0x38] sm:$0xff] }
   0x4   :  { %v21_v8 = vld [vmem:[%s436_s1 + $0x20] sm:$0xff]  ;;  %v42_v16 = vmul.f32 %v192_v1, %v22_v14  ;;  %v43_v22 = vmul.f32 %v192_v1, %v23_v19  ;;  %v44_v23 = vmul.f32 %v192_v1, %v24_v20  ;;  %v26_v28 = vld [vmem:[%s436_s1 + $0x48] sm:$0xff]  ;;  %v27_v29 = vld [vmem:[%s436_s1 + $0x50] sm:$0xff] }
   0x5   :  { %v57_v9 = vadd.f32 %v229_v2, %v37_v4  ;;  %v59_v10 = vadd.f32 %v229_v2, %v39_v5  ;;  %v41_v11 = vmul.f32 %v192_v1, %v21_v8  ;;  %v58_v17 = vadd.f32 %v229_v2, %v38_v12  ;;  %v25_v24 = vld [vmem:[%s436_s1 + $0x40] sm:$0xff]  ;;  %v28_v33 = vld [vmem:[%s436_s1 + $0x58] sm:$0xff]  ;;  %v30_v38 = vld [vmem:[%s436_s1 + $0x68] sm:$0xff] }
   0x6   :  { %v60_v18 = vadd.f32 %v229_v2, %v40_v13  ;;  %v62_v21 = vadd.f32 %v229_v2, %v42_v16  ;;  %v45_v25 = vmul.f32 %v192_v1, %v25_v24  ;;  %v63_v26 = vadd.f32 %v229_v2, %v43_v22  ;;  %v29_v37 = vld [vmem:[%s436_s1 + $0x60] sm:$0xff]  ;;  %v31_v42 = vld [vmem:[%s436_s1 + $0x70] sm:$0xff]  ;;  %v32_v46 = vld [vmem:[%s436_s1 + $0x78] sm:$0xff] }
   0x7   :  { %105 = vrot.lane.b32.xlu0 %v57_v9, %s194_s3  ;;  %109 = vrot.lane.b32.xlu1 %v59_v10, %s194_s3  ;;  %v61_v15 = vadd.f32 %v229_v2, %v41_v11  ;;  %v64_v27 = vadd.f32 %v229_v2, %v44_v23  ;;  %v46_v31 = vmul.f32 %v192_v1, %v26_v28  ;;  %v77_v50 = vld [vmem:[%s439_s0 + $0x20] sm:$0xff]  ;;  %v78_v53 = vld [vmem:[%s439_s0 + $0x28] sm:$0xff] }
   0x8   :  { %v65_v30 = vadd.f32 %v229_v2, %v45_v25  ;;  %v47_v32 = vmul.f32 %v192_v1, %v27_v29  ;;  %v48_v34 = vmul.f32 %v192_v1, %v28_v33  ;;  %v49_v40 = vmul.f32 %v192_v1, %v29_v37  ;;  %v81_v56 = vld [vmem:[%s439_s0 + $0x40] sm:$0xff]  ;;  %v75_v60 = vld [vmem:[%s439_s0 + $0x10] sm:$0xff]  ;;  %v74_v4 = vld [vmem:[%s439_s0 + $0x8] sm:$0xff] }
   0x9   :  { %113 = vrot.lane.b32.xlu2 %v61_v15, %s194_s3  ;;  %v66_v35 = vadd.f32 %v229_v2, %v46_v31  ;;  %v50_v41 = vmul.f32 %v192_v1, %v30_v38  ;;  %v51_v43 = vmul.f32 %v192_v1, %v31_v42  ;;  %v52_v48 = vmul.f32 %v192_v1, %v32_v46  ;;  %v73_v59 = vld [vmem:[%s439_s0] sm:$0xff]  ;;  %v84_v1 = vld [vmem:[%s439_s0 + $0x58] sm:$0xff]  ;;  %v87_v10 = vld [vmem:[%s439_s0 + $0x70] sm:$0xff] }
   0xa   :  { %v67_v36 = vadd.f32 %v229_v2, %v47_v32  ;;  %v68_v39 = vadd.f32 %v229_v2, %v48_v34  ;;  %v69_v44 = vadd.f32 %v229_v2, %v49_v40  ;;  %v76_v5 = vld [vmem:[%s439_s0 + $0x18] sm:$0xff]  ;;  %v79_v13 = vld [vmem:[%s439_s0 + $0x30] sm:$0xff]  ;;  %v82_v19 = vld [vmem:[%s439_s0 + $0x48] sm:$0xff] }
   0xb   :  { %v70_v45 = vadd.f32 %v229_v2, %v50_v41  ;;  %v71_v47 = vadd.f32 %v229_v2, %v51_v43  ;;  %v72_v49 = vadd.f32 %v229_v2, %v52_v48  ;;  %v80_v14 = vld [vmem:[%s439_s0 + $0x38] sm:$0xff]  ;;  %v83_v20 = vld [vmem:[%s439_s0 + $0x50] sm:$0xff]  ;;  %v85_v25 = vld [vmem:[%s439_s0 + $0x60] sm:$0xff] }
   0xc   :  { %v88_v31 = vld [vmem:[%s439_s0 + $0x78] sm:$0xff] }
   0xf   :  { %107 = vrot.lane.b32.xlu0 %v58_v17, %s194_s3  ;;  %111 = vrot.lane.b32.xlu1 %v60_v18, %s194_s3 }
  0x11   :  { %115 = vrot.lane.b32.xlu2 %v62_v21, %s194_s3 }
  0x17   :  { %117 = vrot.lane.b32.xlu0 %v63_v26, %s194_s3  ;;  %119 = vrot.lane.b32.xlu1 %v64_v27, %s194_s3  ;;  %v86_v26 = vld [vmem:[%s439_s0 + $0x68] sm:$0xff] }
  0x19   :  { %121 = vrot.lane.b32.xlu2 %v65_v30, %s194_s3 }
  0x1f   :  { %123 = vrot.lane.b32.xlu0 %v66_v35, %s194_s3  ;;  %125 = vrot.lane.b32.xlu1 %v67_v36, %s194_s3 }
  0x21   :  { %127 = vrot.lane.b32.xlu2 %v68_v39, %s194_s3 }
  0x27   :  { %129 = vrot.lane.b32.xlu0 %v69_v44, %s194_s3  ;;  %131 = vrot.lane.b32.xlu1 %v70_v45, %s194_s3 }
  0x29   :  { %133 = vrot.lane.b32.xlu2 %v71_v47, %s194_s3 }
  0x2f   :  { %135 = vrot.lane.b32.xlu0 %v72_v49, %s194_s3 }
  0x63   :  { %v114_v51 = vpop.permute.xlu2 %113 }
  0x64   :  { %v158_v52 = vsel %vm153_vm0, %v77_v50, %v114_v51 }
  0x65   :  { %175 = vst.msk [vmem:[%s440_s4 + $0x20] sm:$0xff] %vm170_vm1, %v158_v52 }
  0x6b   :  { %v116_v54 = vpop.permute.xlu2 %115 }
  0x6c   :  { %v159_v55 = vsel %vm153_vm0, %v78_v53, %v116_v54 }
  0x6d   :  { %176 = vst.msk [vmem:[%s440_s4 + $0x28] sm:$0xff] %vm170_vm1, %v159_v55 }
  0x73   :  { %v122_v57 = vpop.permute.xlu2 %121 }
  0x74   :  { %v162_v58 = vsel %vm153_vm0, %v81_v56, %v122_v57 }
  0x75   :  { %179 = vst.msk [vmem:[%s440_s4 + $0x40] sm:$0xff] %vm170_vm1, %v162_v58 }
  0x79   :  { %v106_v61 = vpop.permute.xlu0 %105  ;;  %v110_v62 = vpop.permute.xlu1 %109 }
  0x7a   :  { %v154_v63 = vsel %vm153_vm0, %v73_v59, %v106_v61  ;;  %v156_v0 = vsel %vm153_vm0, %v75_v60, %v110_v62 }
  0x7b   :  { %171 = vst.msk [vmem:[%s440_s4] sm:$0xff] %vm170_vm1, %v154_v63  ;;  %v128_v2 = vpop.permute.xlu2 %127 }
  0x7c   :  { %173 = vst.msk [vmem:[%s440_s4 + $0x10] sm:$0xff] %vm170_vm1, %v156_v0  ;;  %v165_v3 = vsel %vm153_vm0, %v84_v1, %v128_v2 }
  0x7d   :  { %182 = vst.msk [vmem:[%s440_s4 + $0x58] sm:$0xff] %vm170_vm1, %v165_v3 }
  0x81   :  { %v108_v6 = vpop.permute.xlu0 %107  ;;  %v112_v7 = vpop.permute.xlu1 %111 }
  0x82   :  { %v155_v8 = vsel %vm153_vm0, %v74_v4, %v108_v6  ;;  %v157_v9 = vsel %vm153_vm0, %v76_v5, %v112_v7 }
  0x83   :  { %172 = vst.msk [vmem:[%s440_s4 + $0x8] sm:$0xff] %vm170_vm1, %v155_v8  ;;  %v134_v11 = vpop.permute.xlu2 %133 }
  0x84   :  { %174 = vst.msk [vmem:[%s440_s4 + $0x18] sm:$0xff] %vm170_vm1, %v157_v9  ;;  %v168_v12 = vsel %vm153_vm0, %v87_v10, %v134_v11 }
  0x85   :  { %185 = vst.msk [vmem:[%s440_s4 + $0x70] sm:$0xff] %vm170_vm1, %v168_v12 }
  0x89   :  { %v118_v15 = vpop.permute.xlu0 %117  ;;  %v120_v16 = vpop.permute.xlu1 %119 }
  0x8a   :  { %v160_v17 = vsel %vm153_vm0, %v79_v13, %v118_v15  ;;  %v161_v18 = vsel %vm153_vm0, %v80_v14, %v120_v16 }
  0x8b   :  { %177 = vst.msk [vmem:[%s440_s4 + $0x30] sm:$0xff] %vm170_vm1, %v160_v17 }
  0x8c   :  { %178 = vst.msk [vmem:[%s440_s4 + $0x38] sm:$0xff] %vm170_vm1, %v161_v18 }
  0x91   :  { %v124_v21 = vpop.permute.xlu0 %123  ;;  %v126_v22 = vpop.permute.xlu1 %125 }
  0x92   :  { %v163_v23 = vsel %vm153_vm0, %v82_v19, %v124_v21  ;;  %v164_v24 = vsel %vm153_vm0, %v83_v20, %v126_v22 }
  0x93   :  { %180 = vst.msk [vmem:[%s440_s4 + $0x48] sm:$0xff] %vm170_vm1, %v163_v23 }
  0x94   :  { %181 = vst.msk [vmem:[%s440_s4 + $0x50] sm:$0xff] %vm170_vm1, %v164_v24 }
  0x99   :  { %v130_v27 = vpop.permute.xlu0 %129  ;;  %v132_v28 = vpop.permute.xlu1 %131 }
  0x9a   :  { %v166_v29 = vsel %vm153_vm0, %v85_v25, %v130_v27  ;;  %v167_v30 = vsel %vm153_vm0, %v86_v26, %v132_v28 }
  0x9b   :  { %183 = vst.msk [vmem:[%s440_s4 + $0x60] sm:$0xff] %vm170_vm1, %v166_v29 }
  0x9c   :  { %184 = vst.msk [vmem:[%s440_s4 + $0x68] sm:$0xff] %vm170_vm1, %v167_v30 }
  0xa1   :  { %v136_v32 = vpop.permute.xlu0 %135 }
  0xa2   :  { %v169_v33 = vsel %vm153_vm0, %v88_v31, %v136_v32 }
  0xa3   :  { %186 = vst.msk [vmem:[%s440_s4 + $0x78] sm:$0xff] %vm170_vm1, %v169_v33 }

// kernel: unet_forward.44
= control target key start
LH: loop header
LB: loop body
LE: loop exit
PB: predicated region body
PF: predicated region fallthrough
CT: control target
= control target key end

     0   :  { %vm315_vm0 = vcmask 261120   ;;  %s917_s1 = inlined_call_operand.vmem [shape: bf16[288,128], index: 1, kind: input, shape index: {}]   ;;  %s918_s0 = inlined_call_operand.vmem [shape: bf16[128,288], index: 0, kind: input, shape index: {}]   ;;  %s919_s2 = inlined_call_operand.vmem [shape: f32[1,128], index: 2, kind: input, shape index: {}]   ;;  %s920_s3 = inlined_call_operand.vmem [shape: f32[128,128], index: 3, kind: output, shape index: {}]  }
   0x1   :  { %v594_v0 = vld [vmem:[%s917_s1 + $0x38] sm:$0xff]  ;;  %v604_v1 = vld [vmem:[%s917_s1 + $0x88] sm:$0xff]  ;;  %v593_v3 = vld [vmem:[%s917_s1 + $0x30] sm:$0xff] }
   0x2   :  { %v651_v2 = vld [vmem:[%s917_s1 + $0x78] sm:$0xff]  ;;  %340 = vmatpush.bf16.msra.mxu0 %v594_v0  ;;  %605 = vmatpush.bf16.msra.mxu3 %v594_v0  ;;  %v16_v4 = vld [vmem:[%s918_s0 + $0x8] sm:$0xf]  ;;  %v18_v5 = vld [vmem:[%s918_s0 + $0x14] sm:$0xf] }
   0x3   :  { %444 = vmatpush.bf16.msra.mxu2 %v604_v1  ;;  %389 = vmatpush.bf16.msra.mxu1 %v651_v2  ;;  %v603_v6 = vld [vmem:[%s917_s1 + $0x80] sm:$0xff]  ;;  %v669_v7 = vld [vmem:[%s917_s1 + $0x70] sm:$0xff]  ;;  %v49_v8 = vunpack.c.l.bf16 %v16_v4  ;;  %v52_v9 = vunpack.c.l.bf16 %v18_v5  ;;  %v592_v12 = vld [vmem:[%s917_s1 + $0x28] sm:$0xff] }
   0x4   :  { %v678_v14 = vld [vmem:[%s917_s1 + $0x68] sm:$0xff]  ;;  %v591_v15 = vld [vmem:[%s917_s1 + $0x20] sm:$0xff]  ;;  %v590_v19 = vld [vmem:[%s917_s1 + $0x18] sm:$0xff] }
   0x5   :  { %v97_v10 = vmax.f32 %v49_v8, 0.0  ;;  %v100_v11 = vmax.f32 %v52_v9, 0.0  ;;  %v688_v16 = vld [vmem:[%s917_s1 + $0x60] sm:$0xff]  ;;  %v22_v18 = vld [vmem:[%s918_s0 + $0x2c] sm:$0xf]  ;;  %v703_v22 = vld [vmem:[%s917_s1 + $0x58] sm:$0xff] }
   0x6   :  { %341 = vmatpush.bf16.msra.mxu0 %v593_v3  ;;  %606 = vmatpush.bf16.msra.mxu3 %v593_v3  ;;  %v20_v17 = vld [vmem:[%s918_s0 + $0x20] sm:$0xf]  ;;  %v58_v21 = vunpack.c.l.bf16 %v22_v18  ;;  %v589_v23 = vld [vmem:[%s917_s1 + $0x10] sm:$0xff]  ;;  %v588_v35 = vld [vmem:[%s917_s1 + $0x8] sm:$0xff] }
   0x7   :  { %445 = vmatpush.bf16.msra.mxu2 %v603_v6  ;;  %390 = vmatpush.bf16.msra.mxu1 %v669_v7  ;;  %v145_v13 = vpack.c.bf16 %v100_v11, %v97_v10  ;;  %v55_v20 = vunpack.c.l.bf16 %v20_v17  ;;  %v15_v26 = vld [vmem:[%s918_s0] sm:$0xff]  ;;  %v17_v27 = vld [vmem:[%s918_s0 + $0xc] sm:$0xff]  ;;  %v24_v48 = vld [vmem:[%s918_s0 + $0x38] sm:$0xf] }
   0x8   :  { %v106_v25 = vmax.f32 %v58_v21, 0.0  ;;  %v718_v28 = vld [vmem:[%s917_s1 + $0x50] sm:$0xff]  ;;  %v728_v30 = vld [vmem:[%s918_s0 + $0x9c] sm:$0xff]  ;;  %v47_v31 = vunpack.c.l.bf16 %v15_v26  ;;  %v50_v32 = vunpack.c.l.bf16 %v17_v27  ;;  %v48_v33 = vunpack.c.h.bf16 %v15_v26  ;;  %v739_v39 = vld [vmem:[%s917_s1 + $0x48] sm:$0xff] }
   0x9   :  { %v103_v24 = vmax.f32 %v55_v20, 0.0  ;;  %v723_v29 = vld [vmem:[%s918_s0 + $0x90] sm:$0xff]  ;;  %v86_v37 = vunpack.c.l.bf16 %v728_v30  ;;  %v51_v38 = vunpack.c.h.bf16 %v17_v27  ;;  %v587_v42 = vld [vmem:[%s917_s1] sm:$0xff]  ;;  %v61_v53 = vunpack.c.l.bf16 %v24_v48  ;;  %v19_v57 = vld [vmem:[%s918_s0 + $0x18] sm:$0xff] }
   0xa   :  { %579 = vmatmul.msk.bf16.vlgmr.msra.gmra.mxu2 %vm315_vm0, %v145_v13  ;;  %342 = vmatpush.bf16.msra.mxu0 %v592_v12  ;;  %v83_v36 = vunpack.c.l.bf16 %v723_v29  ;;  %v95_v40 = vmax.f32 %v47_v31, 0.0  ;;  %v98_v41 = vmax.f32 %v50_v32, 0.0  ;;  %v96_v45 = vmax.f32 %v48_v33, 0.0  ;;  %v749_v47 = vld [vmem:[%s917_s1 + $0x40] sm:$0xff]  ;;  %v768_v59 = vld [vmem:[%s918_s0 + $0xa8] sm:$0xff]  ;;  %v773_v60 = vld [vmem:[%s918_s0 + $0xb4] sm:$0xff] }
   0xb   :  { %607 = vmatpush.bf16.msra.mxu3 %v592_v12  ;;  %391 = vmatpush.bf16.msra.mxu1 %v678_v14  ;;  %v148_v34 = vpack.c.bf16 %v106_v25, %v103_v24  ;;  %v134_v44 = vmax.f32 %v86_v37, 0.0  ;;  %v99_v46 = vmax.f32 %v51_v38, 0.0  ;;  %v26_v49 = vld [vmem:[%s918_s0 + $0x44] sm:$0xf]  ;;  %v109_v55 = vmax.f32 %v61_v53, 0.0  ;;  %v23_v20 = vld [vmem:[%s918_s0 + $0x30] sm:$0xff] }
   0xc   :  { %v131_v43 = vmax.f32 %v83_v36, 0.0  ;;  %v143_v50 = vpack.c.bf16 %v98_v41, %v95_v40  ;;  %v64_v54 = vunpack.c.l.bf16 %v26_v49  ;;  %v21_v58 = vld [vmem:[%s918_s0 + $0x24] sm:$0xff]  ;;  %v53_v61 = vunpack.c.l.bf16 %v19_v57  ;;  %v30_v11 = vld [vmem:[%s918_s0 + $0x5c] sm:$0xf] }
   0xd   :  { %v144_v52 = vpack.c.bf16 %v99_v46, %v96_v45  ;;  %v56_v62 = vunpack.c.l.bf16 %v21_v58  ;;  %v89_v63 = vunpack.c.l.bf16 %v768_v59  ;;  %v92_v1 = vunpack.c.l.bf16 %v773_v60 }
   0xe   :  { %343 = vmatpush.bf16.msra.mxu0 %v591_v15  ;;  %v161_v51 = vpack.c.bf16 %v134_v44, %v131_v43  ;;  %v112_v56 = vmax.f32 %v64_v54, 0.0  ;;  %v57_v3 = vunpack.c.h.bf16 %v21_v58  ;;  %v101_v4 = vmax.f32 %v53_v61, 0.0  ;;  %v27_v43 = vld [vmem:[%s918_s0 + $0x48] sm:$0xff]  ;;  %v29_v44 = vld [vmem:[%s918_s0 + $0x54] sm:$0xff]  ;;  %v36_v58 = vld [vmem:[%s918_s0 + $0x80] sm:$0xf] }
   0xf   :  { %608 = vmatpush.bf16.msra.mxu3 %v591_v15  ;;  %392 = vmatpush.bf16.msra.mxu1 %v688_v16  ;;  %v104_v5 = vmax.f32 %v56_v62, 0.0  ;;  %v137_v6 = vmax.f32 %v89_v63, 0.0  ;;  %v140_v8 = vmax.f32 %v92_v1, 0.0  ;;  %v70_v17 = vunpack.c.l.bf16 %v30_v11 }
  0x10   :  { %v151_v0 = vpack.c.bf16 %v112_v56, %v109_v55  ;;  %v105_v10 = vmax.f32 %v57_v3, 0.0  ;;  %v84_v21 = vunpack.c.h.bf16 %v723_v29  ;;  %v60_v26 = vunpack.c.h.bf16 %v23_v20  ;;  %v34_v29 = vld [vmem:[%s918_s0 + $0x74] sm:$0xf]  ;;  %v31_v3 = vld [vmem:[%s918_s0 + $0x60] sm:$0xff] }
  0x11   :  { %v146_v12 = vpack.c.bf16 %v104_v5, %v101_v4  ;;  %v164_v13 = vpack.c.bf16 %v140_v8, %v137_v6  ;;  %v76_v38 = vunpack.c.l.bf16 %v34_v29  ;;  %v65_v46 = vunpack.c.l.bf16 %v27_v43  ;;  %v33_v4 = vld [vmem:[%s918_s0 + $0x6c] sm:$0xff] }
  0x12   :  { %344 = vmatpush.bf16.msra.mxu0 %v590_v19  ;;  %v132_v33 = vmax.f32 %v84_v21, 0.0  ;;  %v90_v48 = vunpack.c.h.bf16 %v768_v59  ;;  %v93_v49 = vunpack.c.h.bf16 %v773_v60  ;;  %v38_v59 = vld [vmem:[%s918_s0 + $0x8c] sm:$0xf]  ;;  %v79_v63 = vunpack.c.l.bf16 %v36_v58 }
  0x13   :  { %609 = vmatpush.bf16.msra.mxu3 %v590_v19  ;;  %393 = vmatpush.bf16.msra.mxu1 %v703_v22  ;;  %v118_v19 = vmax.f32 %v70_v17, 0.0  ;;  %v71_v5 = vunpack.c.l.bf16 %v31_v3  ;;  %v74_v6 = vunpack.c.l.bf16 %v33_v4 }
  0x14   :  { %v138_v54 = vmax.f32 %v90_v48, 0.0  ;;  %v141_v55 = vmax.f32 %v93_v49, 0.0  ;;  %v127_v1 = vmax.f32 %v79_v63, 0.0 }
  0x15   :  { %v122_v11 = vmax.f32 %v74_v6, 0.0 }
  0x16   :  { %345 = vmatpush.bf16.msra.mxu0 %v589_v23  ;;  %v165_v60 = vpack.c.bf16 %v141_v55, %v138_v54 }
  0x17   :  { %610 = vmatpush.bf16.msra.mxu3 %v589_v23  ;;  %394 = vmatpush.bf16.msra.mxu1 %v718_v28  ;;  %v87_v23 = vunpack.c.h.bf16 %v728_v30 }
  0x1a   :  { %580 = vmatmul.msk.bf16.gmra.mxu2 %vm315_vm0, %v148_v34  ;;  %346 = vmatpush.bf16.msra.mxu0 %v588_v35  ;;  %v135_v34 = vmax.f32 %v87_v23, 0.0  ;;  %v35_v23 = vld [vmem:[%s918_s0 + $0x78] sm:$0xff] }
  0x1b   :  { %611 = vmatpush.bf16.msra.mxu3 %v588_v35  ;;  %395 = vmatpush.bf16.msra.mxu1 %v739_v39  ;;  %v108_v35 = vmax.f32 %v60_v26, 0.0 }
  0x1e   :  { %347 = vmatpush.bf16.msra.mxu0 %v587_v42 }
  0x1f   :  { %612 = vmatpush.bf16.msra.mxu3 %v587_v42  ;;  %396 = vmatpush.bf16.msra.mxu1 %v749_v47  ;;  %v124_v42 = vmax.f32 %v76_v38, 0.0 }
  0x21   :  { %348 = vmatmul.bf16.vlgmr.msra.gmra.mxu0 %v143_v50  ;;  %v66_v50 = vunpack.c.h.bf16 %v27_v43 }
  0x22   :  { %378 = vmatmul.bf16.vlgmr.msra.gmra.mxu3 %v161_v51  ;;  %397 = vmatmul.bf16.vlgmr.msra.gmra.mxu1 %v144_v52  ;;  %v69_v51 = vunpack.c.h.bf16 %v29_v44  ;;  %v113_v52 = vmax.f32 %v65_v46, 0.0 }
  0x23   :  { %613 = vmatpush.bf16.msrb.mxu3 %v651_v2  ;;  %v54_v2 = vunpack.c.h.bf16 %v19_v57  ;;  %v114_v56 = vmax.f32 %v66_v50, 0.0 }
  0x24   :  { %v117_v57 = vmax.f32 %v69_v51, 0.0 }
  0x25   :  { %v102_v9 = vmax.f32 %v54_v2, 0.0 }
  0x26   :  { %v153_v62 = vpack.c.bf16 %v117_v57, %v114_v56 }
  0x27   :  { %614 = vmatpush.bf16.msrb.mxu3 %v669_v7  ;;  %v28_v7 = vld [vmem:[%s918_s0 + $0x50] sm:$0xf] }
  0x28   :  { %v67_v15 = vunpack.c.l.bf16 %v28_v7  ;;  %v119_v7 = vmax.f32 %v71_v5, 0.0 }
  0x2a   :  { %581 = vmatmul.msk.bf16.gmra.mxu2 %vm315_vm0, %v151_v0  ;;  %v115_v18 = vmax.f32 %v67_v15, 0.0  ;;  %v82_v0 = vunpack.c.l.bf16 %v38_v59  ;;  %v42_v15 = vld [vmem:[%s918_s0 + $0xa4] sm:$0xf]  ;;  %v155_v17 = vpack.c.bf16 %v122_v11, %v119_v7 }
  0x2b   :  { %615 = vmatpush.bf16.msrb.mxu3 %v678_v14  ;;  %v147_v14 = vpack.c.bf16 %v105_v10, %v102_v9  ;;  %v72_v9 = vunpack.c.h.bf16 %v31_v3  ;;  %v75_v10 = vunpack.c.h.bf16 %v33_v4 }
  0x2c   :  { %v154_v25 = vpack.c.bf16 %v118_v19, %v115_v18  ;;  %v130_v2 = vmax.f32 %v82_v0, 0.0 }
  0x2e   :  { %v160_v8 = vpack.c.bf16 %v130_v2, %v127_v1 }
  0x2f   :  { %616 = vmatpush.bf16.msrb.mxu3 %v688_v16  ;;  %v25_v16 = vld [vmem:[%s918_s0 + $0x3c] sm:$0xff] }
  0x30   :  { %v62_v24 = vunpack.c.l.bf16 %v25_v16  ;;  %v63_v27 = vunpack.c.h.bf16 %v25_v16 }
  0x31   :  { %353 = vmatmul.bf16.gmra.mxu0 %v146_v12  ;;  %v120_v12 = vmax.f32 %v72_v9, 0.0 }
  0x32   :  { %383 = vmatmul.bf16.gmra.mxu3 %v164_v13  ;;  %402 = vmatmul.bf16.gmra.mxu1 %v147_v14  ;;  %v110_v32 = vmax.f32 %v62_v24, 0.0  ;;  %v111_v36 = vmax.f32 %v63_v27, 0.0  ;;  %v123_v13 = vmax.f32 %v75_v10, 0.0  ;;  %v40_v14 = vld [vmem:[%s918_s0 + $0x98] sm:$0xf]  ;;  %v77_v24 = vunpack.c.l.bf16 %v35_v23 }
  0x33   :  { %617 = vmatpush.bf16.msrb.mxu3 %v703_v22  ;;  %v59_v22 = vunpack.c.l.bf16 %v23_v20  ;;  %v85_v19 = vunpack.c.l.bf16 %v40_v14  ;;  %v88_v20 = vunpack.c.l.bf16 %v42_v15  ;;  %v78_v27 = vunpack.c.h.bf16 %v35_v23 }
  0x34   :  { %v150_v40 = vpack.c.bf16 %v111_v36, %v108_v35  ;;  %v156_v18 = vpack.c.bf16 %v123_v13, %v120_v12  ;;  %v44_v36 = vld [vmem:[%s918_s0 + $0xb0] sm:$0xf] }
  0x35   :  { %v107_v31 = vmax.f32 %v59_v22, 0.0  ;;  %v133_v16 = vmax.f32 %v85_v19, 0.0  ;;  %v136_v21 = vmax.f32 %v88_v20, 0.0  ;;  %v37_v22 = vld [vmem:[%s918_s0 + $0x84] sm:$0xff] }
  0x37   :  { %618 = vmatpush.bf16.msrb.mxu3 %v718_v28  ;;  %v32_v28 = vld [vmem:[%s918_s0 + $0x68] sm:$0xf]  ;;  %v149_v30 = vpack.c.bf16 %v110_v32, %v107_v31  ;;  %v163_v26 = vpack.c.bf16 %v136_v21, %v133_v16  ;;  %v81_v31 = vunpack.c.h.bf16 %v37_v22  ;;  %v125_v32 = vmax.f32 %v77_v24, 0.0 }
  0x38   :  { %v73_v37 = vunpack.c.l.bf16 %v32_v28  ;;  %v46_v28 = vld [vmem:[%s918_s0 + $0xbc] sm:$0xf] }
  0x39   :  { %v129_v35 = vmax.f32 %v81_v31, 0.0  ;;  %v94_v38 = vunpack.c.l.bf16 %v46_v28 }
  0x3a   :  { %582 = vmatmul.msk.bf16.gmra.mxu2 %vm315_vm0, %v154_v25  ;;  %v121_v41 = vmax.f32 %v73_v37, 0.0  ;;  %v80_v25 = vunpack.c.l.bf16 %v37_v22  ;;  %v91_v37 = vunpack.c.l.bf16 %v44_v36 }
  0x3b   :  { %619 = vmatpush.bf16.msrb.mxu3 %v739_v39  ;;  %v162_v39 = vpack.c.bf16 %v135_v34, %v132_v33  ;;  %v126_v34 = vmax.f32 %v78_v27, 0.0 }
  0x3c   :  { %v157_v45 = vpack.c.bf16 %v124_v42, %v121_v41  ;;  %v128_v33 = vmax.f32 %v80_v25, 0.0 }
  0x3e   :  { %v158_v29 = vpack.c.bf16 %v128_v33, %v125_v32 }
  0x3f   :  { %620 = vmatpush.bf16.msrb.mxu3 %v749_v47  ;;  %v68_v47 = vunpack.c.l.bf16 %v29_v44  ;;  %v851_v44 = vld [vmem:[%s919_s2] ss:$0 sm:$0xff] }
  0x41   :  { %358 = vmatmul.bf16.gmra.mxu0 %v149_v30  ;;  %v116_v53 = vmax.f32 %v68_v47, 0.0  ;;  %v159_v30 = vpack.c.bf16 %v129_v35, %v126_v34 }
  0x42   :  { %427 = vmatmul.bf16.vlgmr.msrb.gmra.mxu3 %v162_v39  ;;  %407 = vmatmul.bf16.gmra.mxu1 %v150_v40  ;;  %v139_v39 = vmax.f32 %v91_v37, 0.0  ;;  %v142_v40 = vmax.f32 %v94_v38, 0.0 }
  0x43   :  { %v152_v61 = vpack.c.bf16 %v116_v53, %v113_v52 }
  0x44   :  { %v166_v41 = vpack.c.bf16 %v142_v40, %v139_v39 }
  0x4a   :  { %583 = vmatmul.msk.bf16.gmra.mxu2 %vm315_vm0, %v157_v45 }
  0x51   :  { %363 = vmatmul.bf16.gmra.mxu0 %v152_v61 }
  0x52   :  { %432 = vmatmul.bf16.gmra.mxu3 %v165_v60  ;;  %412 = vmatmul.bf16.gmra.mxu1 %v153_v62 }
  0x5a   :  { %584 = vmatmul.msk.bf16.gmra.mxu2 %vm315_vm0, %v160_v8 }
  0x61   :  { %368 = vmatmul.bf16.gmra.mxu0 %v155_v17 }
  0x62   :  { %417 = vmatmul.bf16.gmra.mxu1 %v156_v18 }
  0x6a   :  { %585 = vmatmul.msk.bf16.gmra.mxu2 %vm315_vm0, %v163_v26 }
  0x71   :  { %373 = vmatmul.bf16.gmra.mxu0 %v158_v29 }
  0x72   :  { %422 = vmatmul.bf16.gmra.mxu1 %v159_v30 }
  0x7a   :  { %586 = vmatmul.msk.bf16.gmra.mxu2 %vm315_vm0, %v166_v41 }
  0x8d   :  { %v447_v42 = vpop.f32.mrf.mxu2 }
  0x95   :  { %v449_v43 = vpop.f32.mrf.mxu2 }
  0x9d   :  { %v452_v45 = vpop.f32.mrf.mxu2 }
  0x9e   :  { %v349_v46 = vpop.f32.mrf.mxu0 }
  0x9f   :  { %v350_v47 = vadd.f32 %v851_v44, %v349_v46  ;;  %v398_v48 = vpop.f32.mrf.mxu1 }
  0xa1   :  { %v399_v49 = vadd.f32 %v398_v48, %v350_v47 }
  0xa3   :  { %v448_v50 = vadd.f32 %v447_v42, %v399_v49 }
  0xa5   :  { %487 = vst [vmem:[%s920_s3] sm:$0xff] %v448_v50  ;;  %v454_v51 = vpop.f32.mrf.mxu2  ;;  %v379_v4 = vpop.f32.mrf.mxu3 }
  0xa6   :  { %v351_v52 = vpop.f32.mrf.mxu0 }
  0xa7   :  { %v352_v53 = vadd.f32 %v851_v44, %v351_v52  ;;  %v400_v54 = vpop.f32.mrf.mxu1 }
  0xa9   :  { %v401_v55 = vadd.f32 %v400_v54, %v352_v53 }
  0xab   :  { %v450_v56 = vadd.f32 %v449_v43, %v401_v55 }
  0xad   :  { %488 = vst [vmem:[%s920_s3 + $0x8] sm:$0xff] %v450_v56  ;;  %v457_v57 = vpop.f32.mrf.mxu2  ;;  %v381_v12 = vpop.f32.mrf.mxu3 }
  0xae   :  { %v354_v58 = vpop.f32.mrf.mxu0  ;;  %v382_v55 = vadd.f32 %v851_v44, %v381_v12 }
  0xaf   :  { %v355_v59 = vadd.f32 %v851_v44, %v354_v58  ;;  %v403_v61 = vpop.f32.mrf.mxu1 }
  0xb1   :  { %v404_v60 = vadd.f32 %v403_v61, %v355_v59 }
  0xb3   :  { %v453_v62 = vadd.f32 %v452_v45, %v404_v60  ;;  %v380_v45 = vadd.f32 %v851_v44, %v379_v4 }
  0xb5   :  { %489 = vst [vmem:[%s920_s3 + $0x10] sm:$0xff] %v453_v62  ;;  %v459_v63 = vpop.f32.mrf.mxu2  ;;  %v384_v21 = vpop.f32.mrf.mxu3 }
  0xb6   :  { %v356_v0 = vpop.f32.mrf.mxu0 }
  0xb7   :  { %v357_v1 = vadd.f32 %v851_v44, %v356_v0  ;;  %v405_v2 = vpop.f32.mrf.mxu1 }
  0xb9   :  { %v406_v3 = vadd.f32 %v405_v2, %v357_v1  ;;  %v385_v1 = vadd.f32 %v851_v44, %v384_v21 }
  0xbb   :  { %v455_v5 = vadd.f32 %v454_v51, %v406_v3 }
  0xbd   :  { %490 = vst [vmem:[%s920_s3 + $0x18] sm:$0xff] %v455_v5  ;;  %v462_v6 = vpop.f32.mrf.mxu2  ;;  %v386_v33 = vpop.f32.mrf.mxu3 }
  0xbe   :  { %v359_v8 = vpop.f32.mrf.mxu0 }
  0xbf   :  { %v360_v9 = vadd.f32 %v851_v44, %v359_v8  ;;  %v408_v10 = vpop.f32.mrf.mxu1  ;;  %v387_v8 = vadd.f32 %v851_v44, %v386_v33 }
  0xc1   :  { %v409_v7 = vadd.f32 %v408_v10, %v360_v9 }
  0xc3   :  { %v458_v11 = vadd.f32 %v457_v57, %v409_v7 }
  0xc5   :  { %491 = vst [vmem:[%s920_s3 + $0x20] sm:$0xff] %v458_v11  ;;  %v464_v13 = vpop.f32.mrf.mxu2  ;;  %v428_v38 = vpop.f32.mrf.mxu3 }
  0xc6   :  { %v361_v14 = vpop.f32.mrf.mxu0  ;;  %v429_v48 = vadd.f32 %v428_v38, %v380_v45 }
  0xc7   :  { %v362_v15 = vadd.f32 %v851_v44, %v361_v14  ;;  %v410_v17 = vpop.f32.mrf.mxu1 }
  0xc9   :  { %v411_v18 = vadd.f32 %v410_v17, %v362_v15 }
  0xcb   :  { %v460_v19 = vadd.f32 %v459_v63, %v411_v18 }
  0xcd   :  { %492 = vst [vmem:[%s920_s3 + $0x28] sm:$0xff] %v460_v19  ;;  %v467_v20 = vpop.f32.mrf.mxu2  ;;  %v430_v49 = vpop.f32.mrf.mxu3 }
  0xce   :  { %v364_v16 = vpop.f32.mrf.mxu0  ;;  %v431_v58 = vadd.f32 %v430_v49, %v382_v55 }
  0xcf   :  { %v365_v23 = vadd.f32 %v851_v44, %v364_v16  ;;  %v413_v22 = vpop.f32.mrf.mxu1 }
  0xd1   :  { %v414_v24 = vadd.f32 %v413_v22, %v365_v23 }
  0xd3   :  { %v463_v25 = vadd.f32 %v462_v6, %v414_v24 }
  0xd5   :  { %493 = vst [vmem:[%s920_s3 + $0x30] sm:$0xff] %v463_v25  ;;  %v469_v26 = vpop.f32.mrf.mxu2  ;;  %v433_v62 = vpop.f32.mrf.mxu3 }
  0xd6   :  { %v366_v27 = vpop.f32.mrf.mxu0  ;;  %v434_v4 = vadd.f32 %v433_v62, %v385_v1 }
  0xd7   :  { %v367_v31 = vadd.f32 %v851_v44, %v366_v27  ;;  %v415_v32 = vpop.f32.mrf.mxu1 }
  0xd9   :  { %v416_v34 = vadd.f32 %v415_v32, %v367_v31 }
  0xdb   :  { %v465_v35 = vadd.f32 %v464_v13, %v416_v34 }
  0xdd   :  { %494 = vst [vmem:[%s920_s3 + $0x38] sm:$0xff] %v465_v35  ;;  %v472_v36 = vpop.f32.mrf.mxu2  ;;  %v435_v9 = vpop.f32.mrf.mxu3 }
  0xde   :  { %v369_v28 = vpop.f32.mrf.mxu0  ;;  %v436_v10 = vadd.f32 %v435_v9, %v387_v8 }
  0xdf   :  { %v370_v29 = vadd.f32 %v851_v44, %v369_v28  ;;  %v418_v30 = vpop.f32.mrf.mxu1 }
  0xe1   :  { %v419_v37 = vadd.f32 %v418_v30, %v370_v29 }
  0xe3   :  { %v468_v39 = vadd.f32 %v467_v20, %v419_v37 }
  0xe5   :  { %495 = vst [vmem:[%s920_s3 + $0x40] sm:$0xff] %v468_v39  ;;  %v474_v40 = vpop.f32.mrf.mxu2 }
  0xe6   :  { %v371_v41 = vpop.f32.mrf.mxu0 }
  0xe7   :  { %v372_v42 = vadd.f32 %v851_v44, %v371_v41  ;;  %v420_v43 = vpop.f32.mrf.mxu1 }
  0xe9   :  { %v421_v46 = vadd.f32 %v420_v43, %v372_v42 }
  0xeb   :  { %v470_v47 = vadd.f32 %v469_v26, %v421_v46 }
  0xed   :  { %496 = vst [vmem:[%s920_s3 + $0x48] sm:$0xff] %v470_v47  ;;  %v477_v50 = vpop.f32.mrf.mxu2 }
  0xee   :  { %v478_v51 = vadd.f32 %v477_v50, %v429_v48  ;;  %v374_v52 = vpop.f32.mrf.mxu0 }
  0xef   :  { %v375_v53 = vadd.f32 %v851_v44, %v374_v52  ;;  %v423_v54 = vpop.f32.mrf.mxu1 }
  0xf0   :  { %499 = vst [vmem:[%s920_s3 + $0x60] sm:$0xff] %v478_v51 }
  0xf1   :  { %v424_v56 = vadd.f32 %v423_v54, %v375_v53 }
  0xf3   :  { %v473_v57 = vadd.f32 %v472_v36, %v424_v56 }
  0xf5   :  { %497 = vst [vmem:[%s920_s3 + $0x50] sm:$0xff] %v473_v57  ;;  %v479_v59 = vpop.f32.mrf.mxu2 }
  0xf6   :  { %v480_v61 = vadd.f32 %v479_v59, %v431_v58  ;;  %v376_v60 = vpop.f32.mrf.mxu0 }
  0xf7   :  { %v377_v63 = vadd.f32 %v851_v44, %v376_v60  ;;  %v425_v0 = vpop.f32.mrf.mxu1 }
  0xf8   :  { %500 = vst [vmem:[%s920_s3 + $0x68] sm:$0xff] %v480_v61 }
  0xf9   :  { %v426_v2 = vadd.f32 %v425_v0, %v377_v63 }
  0xfb   :  { %v475_v3 = vadd.f32 %v474_v40, %v426_v2 }
  0xfd   :  { %498 = vst [vmem:[%s920_s3 + $0x58] sm:$0xff] %v475_v3  ;;  %v482_v5 = vpop.f32.mrf.mxu2 }
  0xfe   :  { %v483_v6 = vadd.f32 %v482_v5, %v434_v4 }
 0x100   :  { %501 = vst [vmem:[%s920_s3 + $0x70] sm:$0xff] %v483_v6 }
 0x105   :  { %v484_v7 = vpop.f32.mrf.mxu2 }
 0x106   :  { %v485_v11 = vadd.f32 %v484_v7, %v436_v10 }
 0x108   :  { %502 = vst [vmem:[%s920_s3 + $0x78] sm:$0xff] %v485_v11 }

// kernel: unet_forward.45
= control target key start
LH: loop header
LB: loop body
LE: loop exit
PB: predicated region body
PF: predicated region fallthrough
CT: control target
= control target key end

     0   :  { %vm78_vm0 = vcmask 57344   ;;  %vm82_vm1 = vcmask 64512   ;;  %v428_v1 = vmov 0.0   ;;  %s786_s0 = inlined_call_operand.vmem [shape: f32[512,8], index: 0, kind: input, shape index: {}]   ;;  %s787_s1 = inlined_call_operand.vmem [shape: f32[1,8], index: 1, kind: output, shape index: {0}]   ;;  %s788_s2 = inlined_call_operand.vmem [shape: f32[1,8], index: 2, kind: output, shape index: {1}]  }
   0x1   :  { %v10_v0 = vld [vmem:[%s786_s0] sm:$0xff]  ;;  %79 = vst.msk [vmem:[%s787_s1] sm:$0x1] %vm78_vm0, %v428_v1  ;;  %v11_v2 = vld [vmem:[%s786_s0 + $0x8] sm:$0xff]  ;;  %v12_v3 = vld [vmem:[%s786_s0 + $0x10] sm:$0xff] }
   0x2   :  { %80 = vst.msk [vmem:[%s788_s2] sm:$0x1] %vm78_vm0, %v428_v1  ;;  %v83_v4 = vsel %vm82_vm1, %v10_v0, 0.0  ;;  %v84_v5 = vsel %vm82_vm1, %v11_v2, 0.0  ;;  %v86_v6 = vsel %vm82_vm1, %v12_v3, 0.0  ;;  %v13_v7 = vld [vmem:[%s786_s0 + $0x18] sm:$0xff]  ;;  %v220_v19 = vmul.f32 %v10_v0, %v10_v0 }
   0x3   :  { %v85_v8 = vadd.f32 %v84_v5, %v83_v4  ;;  %v88_v9 = vsel %vm82_vm1, %v13_v7, 0.0  ;;  %v14_v10 = vld [vmem:[%s786_s0 + $0x20] sm:$0xff]  ;;  %v15_v13 = vld [vmem:[%s786_s0 + $0x28] sm:$0xff]  ;;  %v16_v16 = vld [vmem:[%s786_s0 + $0x30] sm:$0xff]  ;;  %v221_v20 = vmul.f32 %v11_v2, %v11_v2  ;;  %v222_v24 = vmul.f32 %v12_v3, %v12_v3 }
   0x4   :  { %v90_v12 = vsel %vm82_vm1, %v14_v10, 0.0  ;;  %v92_v15 = vsel %vm82_vm1, %v15_v13, 0.0  ;;  %v94_v18 = vsel %vm82_vm1, %v16_v16, 0.0  ;;  %v17_v21 = vld [vmem:[%s786_s0 + $0x38] sm:$0xff]  ;;  %v223_v25 = vmul.f32 %v13_v7, %v13_v7  ;;  %v18_v26 = vld [vmem:[%s786_s0 + $0x40] sm:$0xff]  ;;  %v19_v32 = vld [vmem:[%s786_s0 + $0x48] sm:$0xff] }
   0x5   :  { %v87_v11 = vadd.f32 %v86_v6, %v85_v8  ;;  %v96_v23 = vsel %vm82_vm1, %v17_v21, 0.0  ;;  %v98_v28 = vsel %vm82_vm1, %v18_v26, 0.0  ;;  %v224_v29 = vmul.f32 %v14_v10, %v14_v10  ;;  %v20_v39 = vld [vmem:[%s786_s0 + $0x50] sm:$0xff]  ;;  %v21_v45 = vld [vmem:[%s786_s0 + $0x58] sm:$0xff]  ;;  %v22_v51 = vld [vmem:[%s786_s0 + $0x60] sm:$0xff] }
   0x6   :  { %v284_v30 = vsel %vm82_vm1, %v220_v19, 0.0  ;;  %v285_v31 = vsel %vm82_vm1, %v221_v20, 0.0  ;;  %v100_v35 = vsel %vm82_vm1, %v19_v32, 0.0  ;;  %v225_v36 = vmul.f32 %v15_v13, %v15_v13  ;;  %v23_v57 = vld [vmem:[%s786_s0 + $0x68] sm:$0xff]  ;;  %v24_v63 = vld [vmem:[%s786_s0 + $0x70] sm:$0xff]  ;;  %v25_v5 = vld [vmem:[%s786_s0 + $0x78] sm:$0xff] }
   0x7   :  { %v89_v14 = vadd.f32 %v88_v9, %v87_v11  ;;  %v286_v34 = vadd.f32 %v285_v31, %v284_v30  ;;  %v287_v37 = vsel %vm82_vm1, %v222_v24, 0.0  ;;  %v289_v38 = vsel %vm82_vm1, %v223_v25, 0.0  ;;  %v26_v11 = vld [vmem:[%s786_s0 + $0x80] sm:$0xff] }
   0x8   :  { %v102_v42 = vsel %vm82_vm1, %v20_v39, 0.0  ;;  %v226_v43 = vmul.f32 %v16_v16, %v16_v16  ;;  %v291_v44 = vsel %vm82_vm1, %v224_v29, 0.0  ;;  %v104_v48 = vsel %vm82_vm1, %v21_v45, 0.0  ;;  %v29_v29 = vld [vmem:[%s786_s0 + $0x98] sm:$0xff] }
   0x9   :  { %v91_v17 = vadd.f32 %v90_v12, %v89_v14  ;;  %v288_v41 = vadd.f32 %v287_v37, %v286_v34  ;;  %v227_v49 = vmul.f32 %v17_v21, %v17_v21  ;;  %v293_v50 = vsel %vm82_vm1, %v225_v36, 0.0 }
   0xa   :  { %v106_v54 = vsel %vm82_vm1, %v22_v51, 0.0  ;;  %v228_v55 = vmul.f32 %v18_v26, %v18_v26  ;;  %v295_v56 = vsel %vm82_vm1, %v226_v43, 0.0  ;;  %v108_v60 = vsel %vm82_vm1, %v23_v57, 0.0 }
   0xb   :  { %v93_v22 = vadd.f32 %v92_v15, %v91_v17  ;;  %v290_v47 = vadd.f32 %v289_v38, %v288_v41  ;;  %v229_v61 = vmul.f32 %v19_v32, %v19_v32  ;;  %v297_v62 = vsel %vm82_vm1, %v227_v49, 0.0  ;;  %v27_v17 = vld [vmem:[%s786_s0 + $0x88] sm:$0xff] }
   0xc   :  { %v110_v2 = vsel %vm82_vm1, %v24_v63, 0.0  ;;  %v230_v3 = vmul.f32 %v20_v39, %v20_v39  ;;  %v299_v4 = vsel %vm82_vm1, %v228_v55, 0.0  ;;  %v112_v8 = vsel %vm82_vm1, %v25_v5, 0.0  ;;  %v31_v41 = vld [vmem:[%s786_s0 + $0xa8] sm:$0xff] }
   0xd   :  { %v95_v27 = vadd.f32 %v94_v18, %v93_v22  ;;  %v292_v53 = vadd.f32 %v291_v44, %v290_v47  ;;  %v231_v9 = vmul.f32 %v21_v45, %v21_v45  ;;  %v301_v10 = vsel %vm82_vm1, %v229_v61, 0.0  ;;  %v32_v47 = vld [vmem:[%s786_s0 + $0xb0] sm:$0xff] }
   0xe   :  { %v114_v14 = vsel %vm82_vm1, %v26_v11, 0.0  ;;  %v232_v15 = vmul.f32 %v22_v51, %v22_v51  ;;  %v303_v16 = vsel %vm82_vm1, %v230_v3, 0.0  ;;  %v116_v20 = vsel %vm82_vm1, %v27_v17, 0.0 }
   0xf   :  { %v97_v33 = vadd.f32 %v96_v23, %v95_v27  ;;  %v294_v59 = vadd.f32 %v293_v50, %v292_v53  ;;  %v233_v21 = vmul.f32 %v23_v57, %v23_v57  ;;  %v305_v22 = vsel %vm82_vm1, %v231_v9, 0.0  ;;  %v28_v23 = vld [vmem:[%s786_s0 + $0x90] sm:$0xff]  ;;  %v33_v53 = vld [vmem:[%s786_s0 + $0xb8] sm:$0xff] }
  0x10   :  { %v118_v26 = vsel %vm82_vm1, %v28_v23, 0.0  ;;  %v234_v27 = vmul.f32 %v24_v63, %v24_v63  ;;  %v120_v32 = vsel %vm82_vm1, %v29_v29, 0.0  ;;  %v236_v39 = vmul.f32 %v26_v11, %v26_v11 }
  0x11   :  { %v99_v40 = vadd.f32 %v98_v28, %v97_v33  ;;  %v296_v1 = vadd.f32 %v295_v56, %v294_v59  ;;  %v307_v28 = vsel %vm82_vm1, %v232_v15, 0.0  ;;  %v235_v33 = vmul.f32 %v25_v5, %v25_v5  ;;  %v34_v59 = vld [vmem:[%s786_s0 + $0xc0] sm:$0xff] }
  0x12   :  { %v309_v34 = vsel %vm82_vm1, %v233_v21, 0.0  ;;  %v124_v44 = vsel %vm82_vm1, %v31_v41, 0.0  ;;  %v237_v45 = vmul.f32 %v27_v17, %v27_v17  ;;  %v126_v50 = vsel %vm82_vm1, %v32_v47, 0.0 }
  0x13   :  { %v101_v46 = vadd.f32 %v100_v35, %v99_v40  ;;  %v298_v7 = vadd.f32 %v297_v62, %v296_v1  ;;  %v30_v35 = vld [vmem:[%s786_s0 + $0xa0] sm:$0xff]  ;;  %v311_v40 = vsel %vm82_vm1, %v234_v27, 0.0  ;;  %v238_v51 = vmul.f32 %v28_v23, %v28_v23  ;;  %v35_v1 = vld [vmem:[%s786_s0 + $0xc8] sm:$0xff] }
  0x14   :  { %v122_v38 = vsel %vm82_vm1, %v30_v35, 0.0  ;;  %v128_v56 = vsel %vm82_vm1, %v33_v53, 0.0  ;;  %v239_v57 = vmul.f32 %v29_v29, %v29_v29  ;;  %v130_v62 = vsel %vm82_vm1, %v34_v59, 0.0 }
  0x15   :  { %v103_v52 = vadd.f32 %v102_v42, %v101_v46  ;;  %v300_v13 = vadd.f32 %v299_v4, %v298_v7  ;;  %v313_v46 = vsel %vm82_vm1, %v235_v33, 0.0  ;;  %v240_v63 = vmul.f32 %v30_v35, %v30_v35  ;;  %v36_v7 = vld [vmem:[%s786_s0 + $0xd0] sm:$0xff] }
  0x16   :  { %v132_v4 = vsel %vm82_vm1, %v35_v1, 0.0  ;;  %v241_v5 = vmul.f32 %v31_v41, %v31_v41  ;;  %v242_v11 = vmul.f32 %v32_v47, %v32_v47  ;;  %v243_v17 = vmul.f32 %v33_v53, %v33_v53 }
  0x17   :  { %v105_v58 = vadd.f32 %v104_v48, %v103_v52  ;;  %v302_v19 = vadd.f32 %v301_v10, %v300_v13  ;;  %v315_v52 = vsel %vm82_vm1, %v236_v39, 0.0  ;;  %v134_v10 = vsel %vm82_vm1, %v36_v7, 0.0  ;;  %v37_v13 = vld [vmem:[%s786_s0 + $0xd8] sm:$0xff] }
  0x18   :  { %v244_v23 = vmul.f32 %v34_v59, %v34_v59  ;;  %v245_v29 = vmul.f32 %v35_v1, %v35_v1  ;;  %v246_v35 = vmul.f32 %v36_v7, %v36_v7  ;;  %v247_v41 = vmul.f32 %v37_v13, %v37_v13 }
  0x19   :  { %v107_v0 = vadd.f32 %v106_v54, %v105_v58  ;;  %v304_v25 = vadd.f32 %v303_v16, %v302_v19  ;;  %v317_v58 = vsel %vm82_vm1, %v237_v45, 0.0  ;;  %v136_v16 = vsel %vm82_vm1, %v37_v13, 0.0  ;;  %v38_v19 = vld [vmem:[%s786_s0 + $0xe0] sm:$0xff] }
  0x1a   :  { %v248_v47 = vmul.f32 %v38_v19, %v38_v19 }
  0x1b   :  { %v109_v6 = vadd.f32 %v108_v60, %v107_v0  ;;  %v306_v31 = vadd.f32 %v305_v22, %v304_v25  ;;  %v319_v0 = vsel %vm82_vm1, %v238_v51, 0.0  ;;  %v138_v22 = vsel %vm82_vm1, %v38_v19, 0.0  ;;  %v39_v25 = vld [vmem:[%s786_s0 + $0xe8] sm:$0xff] }
  0x1c   :  { %v249_v53 = vmul.f32 %v39_v25, %v39_v25 }
  0x1d   :  { %v111_v12 = vadd.f32 %v110_v2, %v109_v6  ;;  %v308_v37 = vadd.f32 %v307_v28, %v306_v31  ;;  %v321_v6 = vsel %vm82_vm1, %v239_v57, 0.0  ;;  %v140_v28 = vsel %vm82_vm1, %v39_v25, 0.0  ;;  %v40_v31 = vld [vmem:[%s786_s0 + $0xf0] sm:$0xff] }
  0x1e   :  { %v250_v59 = vmul.f32 %v40_v31, %v40_v31 }
  0x1f   :  { %v113_v18 = vadd.f32 %v112_v8, %v111_v12  ;;  %v310_v43 = vadd.f32 %v309_v34, %v308_v37  ;;  %v323_v12 = vsel %vm82_vm1, %v240_v63, 0.0  ;;  %v142_v34 = vsel %vm82_vm1, %v40_v31, 0.0  ;;  %v41_v37 = vld [vmem:[%s786_s0 + $0xf8] sm:$0xff] }
  0x20   :  { %v251_v1 = vmul.f32 %v41_v37, %v41_v37 }
  0x21   :  { %v115_v24 = vadd.f32 %v114_v14, %v113_v18  ;;  %v312_v49 = vadd.f32 %v311_v40, %v310_v43  ;;  %v325_v18 = vsel %vm82_vm1, %v241_v5, 0.0  ;;  %v144_v40 = vsel %vm82_vm1, %v41_v37, 0.0  ;;  %v42_v43 = vld [vmem:[%s786_s0 + $0x100] sm:$0xff] }
  0x22   :  { %v252_v7 = vmul.f32 %v42_v43, %v42_v43 }
  0x23   :  { %v117_v30 = vadd.f32 %v116_v20, %v115_v24  ;;  %v314_v55 = vadd.f32 %v313_v46, %v312_v49  ;;  %v327_v24 = vsel %vm82_vm1, %v242_v11, 0.0  ;;  %v146_v46 = vsel %vm82_vm1, %v42_v43, 0.0  ;;  %v43_v49 = vld [vmem:[%s786_s0 + $0x108] sm:$0xff] }
  0x24   :  { %v253_v13 = vmul.f32 %v43_v49, %v43_v49 }
  0x25   :  { %v119_v36 = vadd.f32 %v118_v26, %v117_v30  ;;  %v316_v61 = vadd.f32 %v315_v52, %v314_v55  ;;  %v329_v30 = vsel %vm82_vm1, %v243_v17, 0.0  ;;  %v148_v52 = vsel %vm82_vm1, %v43_v49, 0.0  ;;  %v44_v55 = vld [vmem:[%s786_s0 + $0x110] sm:$0xff] }
  0x26   :  { %v254_v19 = vmul.f32 %v44_v55, %v44_v55 }
  0x27   :  { %v121_v42 = vadd.f32 %v120_v32, %v119_v36  ;;  %v318_v3 = vadd.f32 %v317_v58, %v316_v61  ;;  %v331_v36 = vsel %vm82_vm1, %v244_v23, 0.0  ;;  %v150_v58 = vsel %vm82_vm1, %v44_v55, 0.0  ;;  %v45_v61 = vld [vmem:[%s786_s0 + $0x118] sm:$0xff] }
  0x28   :  { %v255_v25 = vmul.f32 %v45_v61, %v45_v61 }
  0x29   :  { %v123_v48 = vadd.f32 %v122_v38, %v121_v42  ;;  %v320_v9 = vadd.f32 %v319_v0, %v318_v3  ;;  %v333_v42 = vsel %vm82_vm1, %v245_v29, 0.0  ;;  %v152_v0 = vsel %vm82_vm1, %v45_v61, 0.0  ;;  %v46_v3 = vld [vmem:[%s786_s0 + $0x120] sm:$0xff] }
  0x2a   :  { %v256_v31 = vmul.f32 %v46_v3, %v46_v3 }
  0x2b   :  { %v125_v54 = vadd.f32 %v124_v44, %v123_v48  ;;  %v322_v15 = vadd.f32 %v321_v6, %v320_v9  ;;  %v335_v48 = vsel %vm82_vm1, %v246_v35, 0.0  ;;  %v154_v6 = vsel %vm82_vm1, %v46_v3, 0.0  ;;  %v47_v9 = vld [vmem:[%s786_s0 + $0x128] sm:$0xff] }
  0x2c   :  { %v257_v37 = vmul.f32 %v47_v9, %v47_v9 }
  0x2d   :  { %v127_v60 = vadd.f32 %v126_v50, %v125_v54  ;;  %v324_v21 = vadd.f32 %v323_v12, %v322_v15  ;;  %v337_v54 = vsel %vm82_vm1, %v247_v41, 0.0  ;;  %v156_v12 = vsel %vm82_vm1, %v47_v9, 0.0  ;;  %v48_v15 = vld [vmem:[%s786_s0 + $0x130] sm:$0xff] }
  0x2e   :  { %v258_v43 = vmul.f32 %v48_v15, %v48_v15 }
  0x2f   :  { %v129_v2 = vadd.f32 %v128_v56, %v127_v60  ;;  %v326_v27 = vadd.f32 %v325_v18, %v324_v21  ;;  %v339_v60 = vsel %vm82_vm1, %v248_v47, 0.0  ;;  %v158_v18 = vsel %vm82_vm1, %v48_v15, 0.0  ;;  %v49_v21 = vld [vmem:[%s786_s0 + $0x138] sm:$0xff] }
  0x30   :  { %v259_v49 = vmul.f32 %v49_v21, %v49_v21 }
  0x31   :  { %v131_v8 = vadd.f32 %v130_v62, %v129_v2  ;;  %v328_v33 = vadd.f32 %v327_v24, %v326_v27  ;;  %v341_v2 = vsel %vm82_vm1, %v249_v53, 0.0  ;;  %v160_v24 = vsel %vm82_vm1, %v49_v21, 0.0  ;;  %v50_v27 = vld [vmem:[%s786_s0 + $0x140] sm:$0xff] }
  0x32   :  { %v260_v55 = vmul.f32 %v50_v27, %v50_v27 }
  0x33   :  { %v133_v14 = vadd.f32 %v132_v4, %v131_v8  ;;  %v330_v39 = vadd.f32 %v329_v30, %v328_v33  ;;  %v343_v8 = vsel %vm82_vm1, %v250_v59, 0.0  ;;  %v162_v30 = vsel %vm82_vm1, %v50_v27, 0.0  ;;  %v51_v33 = vld [vmem:[%s786_s0 + $0x148] sm:$0xff] }
  0x34   :  { %v261_v61 = vmul.f32 %v51_v33, %v51_v33 }
  0x35   :  { %v135_v20 = vadd.f32 %v134_v10, %v133_v14  ;;  %v332_v45 = vadd.f32 %v331_v36, %v330_v39  ;;  %v345_v14 = vsel %vm82_vm1, %v251_v1, 0.0  ;;  %v164_v36 = vsel %vm82_vm1, %v51_v33, 0.0  ;;  %v52_v39 = vld [vmem:[%s786_s0 + $0x150] sm:$0xff] }
  0x36   :  { %v262_v3 = vmul.f32 %v52_v39, %v52_v39 }
  0x37   :  { %v137_v26 = vadd.f32 %v136_v16, %v135_v20  ;;  %v334_v51 = vadd.f32 %v333_v42, %v332_v45  ;;  %v347_v20 = vsel %vm82_vm1, %v252_v7, 0.0  ;;  %v166_v42 = vsel %vm82_vm1, %v52_v39, 0.0  ;;  %v53_v45 = vld [vmem:[%s786_s0 + $0x158] sm:$0xff] }
  0x38   :  { %v263_v9 = vmul.f32 %v53_v45, %v53_v45 }
  0x39   :  { %v139_v32 = vadd.f32 %v138_v22, %v137_v26  ;;  %v336_v57 = vadd.f32 %v335_v48, %v334_v51  ;;  %v349_v26 = vsel %vm82_vm1, %v253_v13, 0.0  ;;  %v168_v48 = vsel %vm82_vm1, %v53_v45, 0.0  ;;  %v54_v51 = vld [vmem:[%s786_s0 + $0x160] sm:$0xff] }
  0x3a   :  { %v264_v15 = vmul.f32 %v54_v51, %v54_v51 }
  0x3b   :  { %v141_v38 = vadd.f32 %v140_v28, %v139_v32  ;;  %v338_v63 = vadd.f32 %v337_v54, %v336_v57  ;;  %v351_v32 = vsel %vm82_vm1, %v254_v19, 0.0  ;;  %v170_v54 = vsel %vm82_vm1, %v54_v51, 0.0  ;;  %v55_v57 = vld [vmem:[%s786_s0 + $0x168] sm:$0xff] }
  0x3c   :  { %v265_v21 = vmul.f32 %v55_v57, %v55_v57 }
  0x3d   :  { %v143_v44 = vadd.f32 %v142_v34, %v141_v38  ;;  %v340_v5 = vadd.f32 %v339_v60, %v338_v63  ;;  %v353_v38 = vsel %vm82_vm1, %v255_v25, 0.0  ;;  %v172_v60 = vsel %vm82_vm1, %v55_v57, 0.0  ;;  %v56_v63 = vld [vmem:[%s786_s0 + $0x170] sm:$0xff] }
  0x3e   :  { %v266_v27 = vmul.f32 %v56_v63, %v56_v63 }
  0x3f   :  { %v145_v50 = vadd.f32 %v144_v40, %v143_v44  ;;  %v342_v11 = vadd.f32 %v341_v2, %v340_v5  ;;  %v355_v44 = vsel %vm82_vm1, %v256_v31, 0.0  ;;  %v174_v2 = vsel %vm82_vm1, %v56_v63, 0.0  ;;  %v57_v5 = vld [vmem:[%s786_s0 + $0x178] sm:$0xff] }
  0x40   :  { %v267_v33 = vmul.f32 %v57_v5, %v57_v5 }
  0x41   :  { %v147_v56 = vadd.f32 %v146_v46, %v145_v50  ;;  %v344_v17 = vadd.f32 %v343_v8, %v342_v11  ;;  %v357_v50 = vsel %vm82_vm1, %v257_v37, 0.0  ;;  %v176_v8 = vsel %vm82_vm1, %v57_v5, 0.0  ;;  %v58_v11 = vld [vmem:[%s786_s0 + $0x180] sm:$0xff] }
  0x42   :  { %v268_v39 = vmul.f32 %v58_v11, %v58_v11 }
  0x43   :  { %v149_v62 = vadd.f32 %v148_v52, %v147_v56  ;;  %v346_v23 = vadd.f32 %v345_v14, %v344_v17  ;;  %v359_v56 = vsel %vm82_vm1, %v258_v43, 0.0  ;;  %v178_v14 = vsel %vm82_vm1, %v58_v11, 0.0  ;;  %v59_v17 = vld [vmem:[%s786_s0 + $0x188] sm:$0xff] }
  0x44   :  { %v269_v45 = vmul.f32 %v59_v17, %v59_v17 }
  0x45   :  { %v151_v4 = vadd.f32 %v150_v58, %v149_v62  ;;  %v348_v29 = vadd.f32 %v347_v20, %v346_v23  ;;  %v361_v62 = vsel %vm82_vm1, %v259_v49, 0.0  ;;  %v180_v20 = vsel %vm82_vm1, %v59_v17, 0.0  ;;  %v60_v23 = vld [vmem:[%s786_s0 + $0x190] sm:$0xff] }
  0x46   :  { %v270_v51 = vmul.f32 %v60_v23, %v60_v23 }
  0x47   :  { %v153_v10 = vadd.f32 %v152_v0, %v151_v4  ;;  %v350_v35 = vadd.f32 %v349_v26, %v348_v29  ;;  %v363_v4 = vsel %vm82_vm1, %v260_v55, 0.0  ;;  %v182_v26 = vsel %vm82_vm1, %v60_v23, 0.0  ;;  %v61_v29 = vld [vmem:[%s786_s0 + $0x198] sm:$0xff] }
  0x48   :  { %v271_v57 = vmul.f32 %v61_v29, %v61_v29 }
  0x49   :  { %v155_v16 = vadd.f32 %v154_v6, %v153_v10  ;;  %v352_v41 = vadd.f32 %v351_v32, %v350_v35  ;;  %v365_v10 = vsel %vm82_vm1, %v261_v61, 0.0  ;;  %v184_v32 = vsel %vm82_vm1, %v61_v29, 0.0  ;;  %v62_v35 = vld [vmem:[%s786_s0 + $0x1a0] sm:$0xff] }
  0x4a   :  { %v272_v63 = vmul.f32 %v62_v35, %v62_v35 }
  0x4b   :  { %v157_v22 = vadd.f32 %v156_v12, %v155_v16  ;;  %v354_v47 = vadd.f32 %v353_v38, %v352_v41  ;;  %v367_v16 = vsel %vm82_vm1, %v262_v3, 0.0  ;;  %v186_v38 = vsel %vm82_vm1, %v62_v35, 0.0  ;;  %v63_v41 = vld [vmem:[%s786_s0 + $0x1a8] sm:$0xff] }
  0x4c   :  { %v273_v5 = vmul.f32 %v63_v41, %v63_v41 }
  0x4d   :  { %v159_v28 = vadd.f32 %v158_v18, %v157_v22  ;;  %v356_v53 = vadd.f32 %v355_v44, %v354_v47  ;;  %v369_v22 = vsel %vm82_vm1, %v263_v9, 0.0  ;;  %v188_v44 = vsel %vm82_vm1, %v63_v41, 0.0  ;;  %v64_v47 = vld [vmem:[%s786_s0 + $0x1b0] sm:$0xff] }
  0x4e   :  { %v274_v11 = vmul.f32 %v64_v47, %v64_v47 }
  0x4f   :  { %v161_v34 = vadd.f32 %v160_v24, %v159_v28  ;;  %v358_v59 = vadd.f32 %v357_v50, %v356_v53  ;;  %v371_v28 = vsel %vm82_vm1, %v264_v15, 0.0  ;;  %v190_v50 = vsel %vm82_vm1, %v64_v47, 0.0  ;;  %v65_v53 = vld [vmem:[%s786_s0 + $0x1b8] sm:$0xff] }
  0x50   :  { %v275_v17 = vmul.f32 %v65_v53, %v65_v53 }
  0x51   :  { %v163_v40 = vadd.f32 %v162_v30, %v161_v34  ;;  %v360_v1 = vadd.f32 %v359_v56, %v358_v59  ;;  %v373_v34 = vsel %vm82_vm1, %v265_v21, 0.0  ;;  %v192_v56 = vsel %vm82_vm1, %v65_v53, 0.0  ;;  %v66_v59 = vld [vmem:[%s786_s0 + $0x1c0] sm:$0xff] }
  0x52   :  { %v276_v23 = vmul.f32 %v66_v59, %v66_v59 }
  0x53   :  { %v165_v46 = vadd.f32 %v164_v36, %v163_v40  ;;  %v362_v7 = vadd.f32 %v361_v62, %v360_v1  ;;  %v375_v40 = vsel %vm82_vm1, %v266_v27, 0.0  ;;  %v194_v62 = vsel %vm82_vm1, %v66_v59, 0.0  ;;  %v67_v1 = vld [vmem:[%s786_s0 + $0x1c8] sm:$0xff] }
  0x54   :  { %v277_v29 = vmul.f32 %v67_v1, %v67_v1 }
  0x55   :  { %v167_v52 = vadd.f32 %v166_v42, %v165_v46  ;;  %v364_v13 = vadd.f32 %v363_v4, %v362_v7  ;;  %v377_v46 = vsel %vm82_vm1, %v267_v33, 0.0  ;;  %v196_v4 = vsel %vm82_vm1, %v67_v1, 0.0  ;;  %v68_v7 = vld [vmem:[%s786_s0 + $0x1d0] sm:$0xff] }
  0x56   :  { %v278_v35 = vmul.f32 %v68_v7, %v68_v7 }
  0x57   :  { %v169_v58 = vadd.f32 %v168_v48, %v167_v52  ;;  %v366_v19 = vadd.f32 %v365_v10, %v364_v13  ;;  %v379_v52 = vsel %vm82_vm1, %v268_v39, 0.0  ;;  %v198_v10 = vsel %vm82_vm1, %v68_v7, 0.0  ;;  %v69_v13 = vld [vmem:[%s786_s0 + $0x1d8] sm:$0xff] }
  0x58   :  { %v279_v41 = vmul.f32 %v69_v13, %v69_v13 }
  0x59   :  { %v171_v0 = vadd.f32 %v170_v54, %v169_v58  ;;  %v368_v25 = vadd.f32 %v367_v16, %v366_v19  ;;  %v381_v58 = vsel %vm82_vm1, %v269_v45, 0.0  ;;  %v200_v16 = vsel %vm82_vm1, %v69_v13, 0.0  ;;  %v70_v19 = vld [vmem:[%s786_s0 + $0x1e0] sm:$0xff] }
  0x5a   :  { %v280_v45 = vmul.f32 %v70_v19, %v70_v19 }
  0x5b   :  { %v173_v6 = vadd.f32 %v172_v60, %v171_v0  ;;  %v370_v31 = vadd.f32 %v369_v22, %v368_v25  ;;  %v383_v0 = vsel %vm82_vm1, %v270_v51, 0.0  ;;  %v202_v22 = vsel %vm82_vm1, %v70_v19, 0.0  ;;  %v71_v25 = vld [vmem:[%s786_s0 + $0x1e8] sm:$0xff] }
  0x5d   :  { %v175_v12 = vadd.f32 %v174_v2, %v173_v6  ;;  %v372_v37 = vadd.f32 %v371_v28, %v370_v31  ;;  %v385_v6 = vsel %vm82_vm1, %v271_v57, 0.0  ;;  %v204_v28 = vsel %vm82_vm1, %v71_v25, 0.0  ;;  %v72_v31 = vld [vmem:[%s786_s0 + $0x1f0] sm:$0xff] }
  0x5e   :  { %v282_v53 = vmul.f32 %v72_v31, %v72_v31 }
  0x5f   :  { %v177_v18 = vadd.f32 %v176_v8, %v175_v12  ;;  %v374_v43 = vadd.f32 %v373_v34, %v372_v37  ;;  %v387_v12 = vsel %vm82_vm1, %v272_v63, 0.0  ;;  %v206_v34 = vsel %vm82_vm1, %v72_v31, 0.0  ;;  %v73_v37 = vld [vmem:[%s786_s0 + $0x1f8] sm:$0xff] }
  0x60   :  { %v283_v57 = vmul.f32 %v73_v37, %v73_v37 }
  0x61   :  { %v179_v24 = vadd.f32 %v178_v14, %v177_v18  ;;  %v376_v49 = vadd.f32 %v375_v40, %v374_v43  ;;  %v389_v18 = vsel %vm82_vm1, %v273_v5, 0.0  ;;  %v208_v40 = vsel %vm82_vm1, %v73_v37, 0.0 }
  0x63   :  { %v181_v30 = vadd.f32 %v180_v20, %v179_v24  ;;  %v378_v55 = vadd.f32 %v377_v46, %v376_v49  ;;  %v391_v24 = vsel %vm82_vm1, %v274_v11, 0.0  ;;  %v399_v46 = vsel %vm82_vm1, %v278_v35, 0.0 }
  0x64   :  { %v281_v49 = vmul.f32 %v71_v25, %v71_v25 }
  0x65   :  { %v183_v36 = vadd.f32 %v182_v26, %v181_v30  ;;  %v380_v61 = vadd.f32 %v379_v52, %v378_v55  ;;  %v393_v30 = vsel %vm82_vm1, %v275_v17, 0.0 }
  0x67   :  { %v185_v42 = vadd.f32 %v184_v32, %v183_v36  ;;  %v382_v3 = vadd.f32 %v381_v58, %v380_v61  ;;  %v395_v36 = vsel %vm82_vm1, %v276_v23, 0.0  ;;  %v405_v58 = vsel %vm82_vm1, %v281_v49, 0.0 }
  0x68   :  { %v407_v61 = vsel %vm82_vm1, %v282_v53, 0.0 }
  0x69   :  { %v187_v48 = vadd.f32 %v186_v38, %v185_v42  ;;  %v384_v9 = vadd.f32 %v383_v0, %v382_v3  ;;  %v397_v42 = vsel %vm82_vm1, %v277_v29, 0.0  ;;  %v409_v0 = vsel %vm82_vm1, %v283_v57, 0.0  ;;  %v81_v3 = vld [vmem:[%s787_s1] sm:$0x1] }
  0x6b   :  { %v189_v54 = vadd.f32 %v188_v44, %v187_v48  ;;  %v386_v15 = vadd.f32 %v385_v6, %v384_v9 }
  0x6d   :  { %v191_v60 = vadd.f32 %v190_v50, %v189_v54  ;;  %v388_v21 = vadd.f32 %v387_v12, %v386_v15  ;;  %v401_v50 = vsel %vm82_vm1, %v279_v41, 0.0  ;;  %v403_v54 = vsel %vm82_vm1, %v280_v45, 0.0  ;;  %v219_v12 = vld [vmem:[%s788_s2] sm:$0x1] }
  0x6f   :  { %v193_v2 = vadd.f32 %v192_v56, %v191_v60  ;;  %v390_v27 = vadd.f32 %v389_v18, %v388_v21 }
  0x71   :  { %v195_v8 = vadd.f32 %v194_v62, %v193_v2  ;;  %v392_v33 = vadd.f32 %v391_v24, %v390_v27 }
  0x73   :  { %v197_v14 = vadd.f32 %v196_v4, %v195_v8  ;;  %v394_v39 = vadd.f32 %v393_v30, %v392_v33 }
  0x75   :  { %v199_v20 = vadd.f32 %v198_v10, %v197_v14  ;;  %v396_v44 = vadd.f32 %v395_v36, %v394_v39 }
  0x77   :  { %v201_v26 = vadd.f32 %v200_v16, %v199_v20  ;;  %v398_v48 = vadd.f32 %v397_v42, %v396_v44 }
  0x79   :  { %v203_v32 = vadd.f32 %v202_v22, %v201_v26  ;;  %v400_v52 = vadd.f32 %v399_v46, %v398_v48 }
  0x7b   :  { %v205_v38 = vadd.f32 %v204_v28, %v203_v32  ;;  %v402_v56 = vadd.f32 %v401_v50, %v400_v52 }
  0x7d   :  { %v207_v43 = vadd.f32 %v206_v34, %v205_v38  ;;  %v404_v60 = vadd.f32 %v403_v54, %v402_v56 }
  0x7f   :  { %v209_v47 = vadd.f32 %v208_v40, %v207_v43  ;;  %v406_v63 = vadd.f32 %v405_v58, %v404_v60 }
  0x81   :  { %v210_v51 = vrot.slane %v209_v47, 4  ;;  %v408_v2 = vadd.f32 %v407_v61, %v406_v63 }
  0x83   :  { %v211_v55 = vadd.f32 %v210_v51, %v209_v47  ;;  %v410_v5 = vadd.f32 %v409_v0, %v408_v2 }
  0x85   :  { %v212_v59 = vrot.slane %v211_v55, 2  ;;  %v411_v7 = vrot.slane %v410_v5, 4 }
  0x87   :  { %v213_v62 = vadd.f32 %v212_v59, %v211_v55  ;;  %v412_v8 = vadd.f32 %v411_v7, %v410_v5 }
  0x89   :  { %v214_v1 = vrot.slane %v213_v62, 1  ;;  %v413_v9 = vrot.slane %v412_v8, 2 }
  0x8b   :  { %v215_v4 = vadd.f32 %v214_v1, %v213_v62  ;;  %v414_v10 = vadd.f32 %v413_v9, %v412_v8 }
  0x8d   :  { %v216_v6 = vadd.f32 %v215_v4, %v81_v3  ;;  %v415_v11 = vrot.slane %v414_v10, 1 }
  0x8f   :  { %218 = vst.msk [vmem:[%s787_s1] sm:$0x1] %vm78_vm0, %v216_v6  ;;  %v416_v13 = vadd.f32 %v415_v11, %v414_v10 }
  0x91   :  { %v417_v14 = vadd.f32 %v416_v13, %v219_v12 }
  0x93   :  { %418 = vst.msk [vmem:[%s788_s2] sm:$0x1] %vm78_vm0, %v417_v14 }

// kernel: unet_forward.46
= control target key start
LH: loop header
LB: loop body
LE: loop exit
PB: predicated region body
PF: predicated region fallthrough
CT: control target
= control target key end

     0   :  { %vm537_vm0 = vcmask 64512   ;;  %vm602_vm1 = vcmask 130048   ;;  %s1606_s1 = inlined_call_operand.vmem [shape: f32[512,8], index: 1, kind: input, shape index: {}]   ;;  %s1607_s2 = inlined_call_operand.vmem [shape: f32[1,8], index: 2, kind: input, shape index: {}]   ;;  %s1608_s3 = inlined_call_operand.vmem [shape: f32[1,8], index: 3, kind: input, shape index: {}]   ;;  %s1609_s0 = inlined_call_operand.vmem [shape: f32[512,8], index: 0, kind: input, shape index: {}]   ;;  %s1610_s4 = inlined_call_operand.vmem [shape: f32[512,16], index: 4, kind: output, shape index: {}]  }
   0x1   :  { %v17_v0 = vld [vmem:[%s1606_s1] sm:$0xff]  ;;  %v19_v3 = vld [vmem:[%s1606_s1 + $0x10] sm:$0xff]  ;;  %v18_v6 = vld [vmem:[%s1606_s1 + $0x8] sm:$0xff] }
   0x2   :  { %v706_v1 = vld [vmem:[%s1607_s2] ss:$0 sm:$0xff]  ;;  %v20_v7 = vld [vmem:[%s1606_s1 + $0x18] sm:$0xff]  ;;  %v22_v14 = vld [vmem:[%s1606_s1 + $0x28] sm:$0xff] }
   0x3   :  { %v711_v2 = vld [vmem:[%s1608_s3] ss:$0 sm:$0xff]  ;;  %v85_v4 = vmul.f32 %v706_v1, %v17_v0  ;;  %v87_v5 = vmul.f32 %v706_v1, %v19_v3  ;;  %s674_s3 = smov 8   ;;  %v86_v12 = vmul.f32 %v706_v1, %v18_v6  ;;  %v88_v13 = vmul.f32 %v706_v1, %v20_v7  ;;  %v23_v19 = vld [vmem:[%s1606_s1 + $0x30] sm:$0xff]  ;;  %v24_v20 = vld [vmem:[%s1606_s1 + $0x38] sm:$0xff] }
   0x4   :  { %v21_v8 = vld [vmem:[%s1606_s1 + $0x20] sm:$0xff]  ;;  %v90_v16 = vmul.f32 %v706_v1, %v22_v14  ;;  %v91_v22 = vmul.f32 %v706_v1, %v23_v19  ;;  %v92_v23 = vmul.f32 %v706_v1, %v24_v20  ;;  %v26_v28 = vld [vmem:[%s1606_s1 + $0x48] sm:$0xff]  ;;  %v27_v29 = vld [vmem:[%s1606_s1 + $0x50] sm:$0xff] }
   0x5   :  { %v153_v9 = vadd.f32 %v711_v2, %v85_v4  ;;  %v155_v10 = vadd.f32 %v711_v2, %v87_v5  ;;  %v89_v11 = vmul.f32 %v706_v1, %v21_v8  ;;  %v154_v17 = vadd.f32 %v711_v2, %v86_v12  ;;  %v25_v24 = vld [vmem:[%s1606_s1 + $0x40] sm:$0xff]  ;;  %v28_v33 = vld [vmem:[%s1606_s1 + $0x58] sm:$0xff]  ;;  %v30_v38 = vld [vmem:[%s1606_s1 + $0x68] sm:$0xff] }
   0x6   :  { %v156_v18 = vadd.f32 %v711_v2, %v88_v13  ;;  %v158_v21 = vadd.f32 %v711_v2, %v90_v16  ;;  %v93_v25 = vmul.f32 %v706_v1, %v25_v24  ;;  %v159_v26 = vadd.f32 %v711_v2, %v91_v22  ;;  %v29_v37 = vld [vmem:[%s1606_s1 + $0x60] sm:$0xff]  ;;  %v31_v42 = vld [vmem:[%s1606_s1 + $0x70] sm:$0xff]  ;;  %v32_v46 = vld [vmem:[%s1606_s1 + $0x78] sm:$0xff] }
   0x7   :  { %345 = vrot.lane.b32.xlu0 %v153_v9, %s674_s3  ;;  %349 = vrot.lane.b32.xlu1 %v155_v10, %s674_s3  ;;  %v157_v15 = vadd.f32 %v711_v2, %v89_v11  ;;  %v160_v27 = vadd.f32 %v711_v2, %v92_v23  ;;  %v94_v31 = vmul.f32 %v706_v1, %v26_v28  ;;  %v33_v47 = vld [vmem:[%s1606_s1 + $0x80] sm:$0xff]  ;;  %v34_v51 = vld [vmem:[%s1606_s1 + $0x88] sm:$0xff] }
   0x8   :  { %v161_v30 = vadd.f32 %v711_v2, %v93_v25  ;;  %v95_v32 = vmul.f32 %v706_v1, %v27_v29  ;;  %v96_v34 = vmul.f32 %v706_v1, %v28_v33  ;;  %v97_v40 = vmul.f32 %v706_v1, %v29_v37  ;;  %v35_v55 = vld [vmem:[%s1606_s1 + $0x90] sm:$0xff]  ;;  %v36_v56 = vld [vmem:[%s1606_s1 + $0x98] sm:$0xff]  ;;  %v37_v60 = vld [vmem:[%s1606_s1 + $0xa0] sm:$0xff] }
   0x9   :  { %353 = vrot.lane.b32.xlu2 %v157_v15, %s674_s3  ;;  %v162_v35 = vadd.f32 %v711_v2, %v94_v31  ;;  %v98_v41 = vmul.f32 %v706_v1, %v30_v38  ;;  %v99_v43 = vmul.f32 %v706_v1, %v31_v42  ;;  %v100_v49 = vmul.f32 %v706_v1, %v32_v46  ;;  %v38_v0 = vld [vmem:[%s1606_s1 + $0xa8] sm:$0xff]  ;;  %v39_v3 = vld [vmem:[%s1606_s1 + $0xb0] sm:$0xff]  ;;  %v40_v7 = vld [vmem:[%s1606_s1 + $0xb8] sm:$0xff] }
   0xa   :  { %v163_v36 = vadd.f32 %v711_v2, %v95_v32  ;;  %v164_v39 = vadd.f32 %v711_v2, %v96_v34  ;;  %v165_v44 = vadd.f32 %v711_v2, %v97_v40  ;;  %v101_v50 = vmul.f32 %v706_v1, %v33_v47  ;;  %v41_v11 = vld [vmem:[%s1606_s1 + $0xc0] sm:$0xff]  ;;  %v42_v12 = vld [vmem:[%s1606_s1 + $0xc8] sm:$0xff]  ;;  %v43_v16 = vld [vmem:[%s1606_s1 + $0xd0] sm:$0xff] }
   0xb   :  { %v166_v45 = vadd.f32 %v711_v2, %v98_v41  ;;  %v167_v48 = vadd.f32 %v711_v2, %v99_v43  ;;  %v102_v52 = vmul.f32 %v706_v1, %v34_v51  ;;  %v168_v53 = vadd.f32 %v711_v2, %v100_v49  ;;  %v44_v20 = vld [vmem:[%s1606_s1 + $0xd8] sm:$0xff]  ;;  %v46_v25 = vld [vmem:[%s1606_s1 + $0xe8] sm:$0xff]  ;;  %v47_v29 = vld [vmem:[%s1606_s1 + $0xf0] sm:$0xff] }
   0xc   :  { %v169_v54 = vadd.f32 %v711_v2, %v101_v50  ;;  %v103_v58 = vmul.f32 %v706_v1, %v35_v55  ;;  %v104_v59 = vmul.f32 %v706_v1, %v36_v56  ;;  %v105_v61 = vmul.f32 %v706_v1, %v37_v60  ;;  %v49_v34 = vld [vmem:[%s1606_s1 + $0x100] sm:$0xff]  ;;  %v50_v38 = vld [vmem:[%s1606_s1 + $0x108] sm:$0xff]  ;;  %v52_v43 = vld [vmem:[%s1606_s1 + $0x118] sm:$0xff] }
   0xd   :  { %v170_v57 = vadd.f32 %v711_v2, %v102_v52  ;;  %v106_v5 = vmul.f32 %v706_v1, %v38_v0  ;;  %v107_v6 = vmul.f32 %v706_v1, %v39_v3  ;;  %v108_v8 = vmul.f32 %v706_v1, %v40_v7  ;;  %v53_v47 = vld [vmem:[%s1606_s1 + $0x120] sm:$0xff]  ;;  %v222_v0 = vld [vmem:[%s1609_s0 + $0x28] sm:$0xff]  ;;  %v59_v7 = vld [vmem:[%s1606_s1 + $0x150] sm:$0xff] }
   0xe   :  { %v171_v62 = vadd.f32 %v711_v2, %v103_v58  ;;  %v172_v63 = vadd.f32 %v711_v2, %v104_v59  ;;  %v173_v4 = vadd.f32 %v711_v2, %v105_v61  ;;  %v109_v14 = vmul.f32 %v706_v1, %v41_v11  ;;  %v221_v52 = vld [vmem:[%s1609_s0 + $0x20] sm:$0xff]  ;;  %v58_v3 = vld [vmem:[%s1606_s1 + $0x148] sm:$0xff] }
   0xf   :  { %347 = vrot.lane.b32.xlu0 %v154_v17, %s674_s3  ;;  %351 = vrot.lane.b32.xlu1 %v156_v18, %s674_s3  ;;  %v174_v9 = vadd.f32 %v711_v2, %v106_v5  ;;  %v175_v10 = vadd.f32 %v711_v2, %v107_v6  ;;  %v176_v13 = vadd.f32 %v711_v2, %v108_v8  ;;  %v57_v58 = vld [vmem:[%s1606_s1 + $0x140] sm:$0xff]  ;;  %v60_v8 = vld [vmem:[%s1606_s1 + $0x158] sm:$0xff] }
  0x10   :  { %v110_v15 = vmul.f32 %v706_v1, %v42_v12  ;;  %v111_v17 = vmul.f32 %v706_v1, %v43_v16  ;;  %v177_v18 = vadd.f32 %v711_v2, %v109_v14  ;;  %v112_v23 = vmul.f32 %v706_v1, %v44_v20  ;;  %v225_v14 = vld [vmem:[%s1609_s0 + $0x40] sm:$0xff]  ;;  %v63_v20 = vld [vmem:[%s1606_s1 + $0x170] sm:$0xff] }
  0x11   :  { %355 = vrot.lane.b32.xlu2 %v158_v21, %s674_s3  ;;  %v45_v21 = vld [vmem:[%s1606_s1 + $0xe0] sm:$0xff]  ;;  %v115_v32 = vmul.f32 %v706_v1, %v47_v29  ;;  %v118_v41 = vmul.f32 %v706_v1, %v50_v38  ;;  %v120_v46 = vmul.f32 %v706_v1, %v52_v43  ;;  %v121_v50 = vmul.f32 %v706_v1, %v53_v47  ;;  %v66_v38 = vld [vmem:[%s1606_s1 + $0x188] sm:$0xff] }
  0x12   :  { %v178_v19 = vadd.f32 %v711_v2, %v110_v15  ;;  %v179_v22 = vadd.f32 %v711_v2, %v111_v17  ;;  %v113_v24 = vmul.f32 %v706_v1, %v45_v21  ;;  %v126_v6 = vmul.f32 %v706_v1, %v58_v3  ;;  %v61_v15 = vld [vmem:[%s1606_s1 + $0x160] sm:$0xff] }
  0x13   :  { %v188_v49 = vadd.f32 %v711_v2, %v120_v46  ;;  %v127_v12 = vmul.f32 %v706_v1, %v59_v7  ;;  %v70_v7 = vld [vmem:[%s1606_s1 + $0x1a8] sm:$0xff] }
  0x14   :  { %v181_v28 = vadd.f32 %v711_v2, %v113_v24  ;;  %v194_v11 = vadd.f32 %v711_v2, %v126_v6  ;;  %v217_v24 = vld [vmem:[%s1609_s0] sm:$0xff]  ;;  %v234_v6 = vld [vmem:[%s1609_s0 + $0x88] sm:$0xff] }
  0x15   :  { %v195_v16 = vadd.f32 %v711_v2, %v127_v12  ;;  %v72_v12 = vld [vmem:[%s1606_s1 + $0x1b8] sm:$0xff] }
  0x17   :  { %357 = vrot.lane.b32.xlu0 %v159_v26, %s674_s3  ;;  %359 = vrot.lane.b32.xlu1 %v160_v27, %s674_s3  ;;  %v114_v26 = vmul.f32 %v706_v1, %v46_v25  ;;  %v180_v27 = vadd.f32 %v711_v2, %v112_v23 }
  0x19   :  { %361 = vrot.lane.b32.xlu2 %v161_v30, %s674_s3  ;;  %v48_v30 = vld [vmem:[%s1606_s1 + $0xf8] sm:$0xff]  ;;  %v182_v31 = vadd.f32 %v711_v2, %v114_v26  ;;  %v219_v26 = vld [vmem:[%s1609_s0 + $0x10] sm:$0xff] }
  0x1a   :  { %v116_v33 = vmul.f32 %v706_v1, %v48_v30 }
  0x1c   :  { %v184_v37 = vadd.f32 %v711_v2, %v116_v33  ;;  %v64_v33 = vld [vmem:[%s1606_s1 + $0x178] sm:$0xff] }
  0x1f   :  { %363 = vrot.lane.b32.xlu0 %v162_v35, %s674_s3  ;;  %365 = vrot.lane.b32.xlu1 %v163_v36, %s674_s3  ;;  %v117_v35 = vmul.f32 %v706_v1, %v49_v34  ;;  %v183_v36 = vadd.f32 %v711_v2, %v115_v32  ;;  %v228_v32 = vld [vmem:[%s1609_s0 + $0x58] sm:$0xff] }
  0x21   :  { %367 = vrot.lane.b32.xlu2 %v164_v39, %s674_s3  ;;  %v51_v39 = vld [vmem:[%s1606_s1 + $0x110] sm:$0xff]  ;;  %v185_v40 = vadd.f32 %v711_v2, %v117_v35 }
  0x22   :  { %v119_v42 = vmul.f32 %v706_v1, %v51_v39 }
  0x27   :  { %369 = vrot.lane.b32.xlu0 %v165_v44, %s674_s3  ;;  %371 = vrot.lane.b32.xlu1 %v166_v45, %s674_s3  ;;  %v186_v44 = vadd.f32 %v711_v2, %v118_v41  ;;  %v187_v45 = vadd.f32 %v711_v2, %v119_v42  ;;  %v218_v42 = vld [vmem:[%s1609_s0 + $0x8] sm:$0xff] }
  0x29   :  { %373 = vrot.lane.b32.xlu2 %v167_v48, %s674_s3  ;;  %v54_v48 = vld [vmem:[%s1606_s1 + $0x128] sm:$0xff] }
  0x2a   :  { %v122_v51 = vmul.f32 %v706_v1, %v54_v48 }
  0x2c   :  { %v190_v55 = vadd.f32 %v711_v2, %v122_v51  ;;  %v67_v51 = vld [vmem:[%s1606_s1 + $0x190] sm:$0xff] }
  0x2f   :  { %375 = vrot.lane.b32.xlu0 %v168_v53, %s674_s3  ;;  %377 = vrot.lane.b32.xlu1 %v169_v54, %s674_s3  ;;  %v55_v53 = vld [vmem:[%s1606_s1 + $0x130] sm:$0xff]  ;;  %v189_v54 = vadd.f32 %v711_v2, %v121_v50 }
  0x30   :  { %v123_v56 = vmul.f32 %v706_v1, %v55_v53  ;;  %v231_v50 = vld [vmem:[%s1609_s0 + $0x70] sm:$0xff] }
  0x31   :  { %379 = vrot.lane.b32.xlu2 %v170_v57, %s674_s3  ;;  %v56_v57 = vld [vmem:[%s1606_s1 + $0x138] sm:$0xff] }
  0x32   :  { %v191_v61 = vadd.f32 %v711_v2, %v123_v56  ;;  %v69_v56 = vld [vmem:[%s1606_s1 + $0x1a0] sm:$0xff] }
  0x37   :  { %381 = vrot.lane.b32.xlu0 %v171_v62, %s674_s3  ;;  %383 = vrot.lane.b32.xlu1 %v172_v63, %s674_s3  ;;  %v124_v62 = vmul.f32 %v706_v1, %v56_v57  ;;  %v125_v63 = vmul.f32 %v706_v1, %v57_v58 }
  0x39   :  { %385 = vrot.lane.b32.xlu2 %v173_v4, %s674_s3  ;;  %v192_v4 = vadd.f32 %v711_v2, %v124_v62  ;;  %v193_v5 = vadd.f32 %v711_v2, %v125_v63  ;;  %v224_v62 = vld [vmem:[%s1609_s0 + $0x38] sm:$0xff]  ;;  %v137_v63 = vmul.f32 %v706_v1, %v69_v56 }
  0x3f   :  { %387 = vrot.lane.b32.xlu0 %v174_v9, %s674_s3  ;;  %389 = vrot.lane.b32.xlu1 %v175_v10, %s674_s3 }
  0x41   :  { %391 = vrot.lane.b32.xlu2 %v176_v13, %s674_s3  ;;  %v128_v13 = vmul.f32 %v706_v1, %v60_v8 }
  0x43   :  { %v196_v17 = vadd.f32 %v711_v2, %v128_v13 }
  0x47   :  { %393 = vrot.lane.b32.xlu0 %v177_v18, %s674_s3  ;;  %395 = vrot.lane.b32.xlu1 %v178_v19, %s674_s3  ;;  %v129_v18 = vmul.f32 %v706_v1, %v61_v15  ;;  %v62_v19 = vld [vmem:[%s1606_s1 + $0x168] sm:$0xff] }
  0x48   :  { %v130_v25 = vmul.f32 %v706_v1, %v62_v19  ;;  %v140_v19 = vmul.f32 %v706_v1, %v72_v12 }
  0x49   :  { %397 = vrot.lane.b32.xlu2 %v179_v22, %s674_s3  ;;  %v197_v23 = vadd.f32 %v711_v2, %v129_v18  ;;  %v227_v18 = vld [vmem:[%s1609_s0 + $0x50] sm:$0xff] }
  0x4a   :  { %v198_v34 = vadd.f32 %v711_v2, %v130_v25  ;;  %v73_v25 = vld [vmem:[%s1606_s1 + $0x1c0] sm:$0xff] }
  0x4f   :  { %399 = vrot.lane.b32.xlu0 %v180_v27, %s674_s3  ;;  %401 = vrot.lane.b32.xlu1 %v181_v28, %s674_s3  ;;  %v131_v27 = vmul.f32 %v706_v1, %v63_v20 }
  0x51   :  { %403 = vrot.lane.b32.xlu2 %v182_v31, %s674_s3  ;;  %v199_v35 = vadd.f32 %v711_v2, %v131_v27  ;;  %v208_v27 = vadd.f32 %v711_v2, %v140_v19 }
  0x57   :  { %405 = vrot.lane.b32.xlu0 %v183_v36, %s674_s3  ;;  %407 = vrot.lane.b32.xlu1 %v184_v37, %s674_s3  ;;  %v132_v36 = vmul.f32 %v706_v1, %v64_v33  ;;  %v65_v37 = vld [vmem:[%s1606_s1 + $0x180] sm:$0xff] }
  0x58   :  { %v133_v43 = vmul.f32 %v706_v1, %v65_v37 }
  0x59   :  { %409 = vrot.lane.b32.xlu2 %v185_v40, %s674_s3  ;;  %v200_v41 = vadd.f32 %v711_v2, %v132_v36  ;;  %v230_v36 = vld [vmem:[%s1609_s0 + $0x68] sm:$0xff] }
  0x5f   :  { %411 = vrot.lane.b32.xlu0 %v186_v44, %s674_s3  ;;  %413 = vrot.lane.b32.xlu1 %v187_v45, %s674_s3  ;;  %v220_v44 = vld [vmem:[%s1609_s0 + $0x18] sm:$0xff]  ;;  %v134_v45 = vmul.f32 %v706_v1, %v66_v38 }
  0x61   :  { %415 = vrot.lane.b32.xlu2 %v188_v49, %s674_s3  ;;  %v202_v53 = vadd.f32 %v711_v2, %v134_v45 }
  0x63   :  { %v354_v59 = vpop.permute.xlu2 %353 }
  0x64   :  { %v542_v60 = vsel %vm537_vm0, %v221_v52, %v354_v59  ;;  %v201_v52 = vadd.f32 %v711_v2, %v133_v43  ;;  %v76_v43 = vld [vmem:[%s1606_s1 + $0x1d8] sm:$0xff] }
  0x65   :  { %607 = vst.msk [vmem:[%s1610_s4 + $0x20] sm:$0xff] %vm602_vm1, %v542_v60  ;;  %v223_v60 = vld [vmem:[%s1609_s0 + $0x30] sm:$0xff] }
  0x67   :  { %417 = vrot.lane.b32.xlu0 %v189_v54, %s674_s3  ;;  %419 = vrot.lane.b32.xlu1 %v190_v55, %s674_s3  ;;  %v135_v54 = vmul.f32 %v706_v1, %v67_v51  ;;  %v68_v55 = vld [vmem:[%s1606_s1 + $0x198] sm:$0xff] }
  0x69   :  { %421 = vrot.lane.b32.xlu2 %v191_v61, %s674_s3  ;;  %v203_v59 = vadd.f32 %v711_v2, %v135_v54  ;;  %v136_v61 = vmul.f32 %v706_v1, %v68_v55  ;;  %v233_v54 = vld [vmem:[%s1609_s0 + $0x80] sm:$0xff] }
  0x6b   :  { %v356_v9 = vpop.permute.xlu2 %355  ;;  %v204_v8 = vadd.f32 %v711_v2, %v136_v61  ;;  %v79_v61 = vld [vmem:[%s1606_s1 + $0x1f0] sm:$0xff] }
  0x6c   :  { %v543_v10 = vsel %vm537_vm0, %v222_v0, %v356_v9  ;;  %v205_v9 = vadd.f32 %v711_v2, %v137_v63 }
  0x6d   :  { %608 = vst.msk [vmem:[%s1610_s4 + $0x28] sm:$0xff] %vm602_vm1, %v543_v10  ;;  %v138_v10 = vmul.f32 %v706_v1, %v70_v7  ;;  %v235_v7 = vld [vmem:[%s1609_s0 + $0x90] sm:$0xff] }
  0x6f   :  { %423 = vrot.lane.b32.xlu0 %v192_v4, %s674_s3  ;;  %425 = vrot.lane.b32.xlu1 %v193_v5, %s674_s3  ;;  %v206_v15 = vadd.f32 %v711_v2, %v138_v10 }
  0x71   :  { %427 = vrot.lane.b32.xlu2 %v194_v11, %s674_s3  ;;  %v71_v11 = vld [vmem:[%s1606_s1 + $0x1b0] sm:$0xff] }
  0x73   :  { %v362_v21 = vpop.permute.xlu2 %361 }
  0x74   :  { %v546_v22 = vsel %vm537_vm0, %v225_v14, %v362_v21 }
  0x75   :  { %611 = vst.msk [vmem:[%s1610_s4 + $0x40] sm:$0xff] %vm602_vm1, %v546_v22 }
  0x77   :  { %429 = vrot.lane.b32.xlu0 %v195_v16, %s674_s3  ;;  %431 = vrot.lane.b32.xlu1 %v196_v17, %s674_s3  ;;  %v226_v16 = vld [vmem:[%s1609_s0 + $0x48] sm:$0xff]  ;;  %v139_v17 = vmul.f32 %v706_v1, %v71_v11 }
  0x79   :  { %v346_v28 = vpop.permute.xlu0 %345  ;;  %v350_v29 = vpop.permute.xlu1 %349  ;;  %433 = vrot.lane.b32.xlu2 %v197_v23, %s674_s3 }
  0x7a   :  { %v538_v30 = vsel %vm537_vm0, %v217_v24, %v346_v28  ;;  %v540_v31 = vsel %vm537_vm0, %v219_v26, %v350_v29  ;;  %v237_v24 = vld [vmem:[%s1609_s0 + $0xa0] sm:$0xff]  ;;  %v207_v26 = vadd.f32 %v711_v2, %v139_v17  ;;  %v141_v28 = vmul.f32 %v706_v1, %v73_v25  ;;  %v74_v29 = vld [vmem:[%s1606_s1 + $0x1c8] sm:$0xff] }
  0x7b   :  { %603 = vst.msk [vmem:[%s1610_s4] sm:$0xff] %vm602_vm1, %v538_v30  ;;  %v368_v39 = vpop.permute.xlu2 %367  ;;  %v75_v30 = vld [vmem:[%s1606_s1 + $0x1d0] sm:$0xff]  ;;  %v238_v17 = vld [vmem:[%s1609_s0 + $0xa8] sm:$0xff]  ;;  %v241_v25 = vld [vmem:[%s1609_s0 + $0xc0] sm:$0xff] }
  0x7c   :  { %605 = vst.msk [vmem:[%s1610_s4 + $0x10] sm:$0xff] %vm602_vm1, %v540_v31  ;;  %v549_v40 = vsel %vm537_vm0, %v228_v32, %v368_v39  ;;  %v209_v33 = vadd.f32 %v711_v2, %v141_v28  ;;  %v143_v37 = vmul.f32 %v706_v1, %v75_v30 }
  0x7d   :  { %614 = vst.msk [vmem:[%s1610_s4 + $0x58] sm:$0xff] %vm602_vm1, %v549_v40 }
  0x7e   :  { %v211_v45 = vadd.f32 %v711_v2, %v143_v37 }
  0x7f   :  { %435 = vrot.lane.b32.xlu0 %v198_v34, %s674_s3  ;;  %437 = vrot.lane.b32.xlu1 %v199_v35, %s674_s3  ;;  %v229_v34 = vld [vmem:[%s1609_s0 + $0x60] sm:$0xff]  ;;  %v142_v35 = vmul.f32 %v706_v1, %v74_v29 }
  0x81   :  { %v348_v46 = vpop.permute.xlu0 %347  ;;  %v352_v47 = vpop.permute.xlu1 %351  ;;  %439 = vrot.lane.b32.xlu2 %v200_v41, %s674_s3 }
  0x82   :  { %v539_v48 = vsel %vm537_vm0, %v218_v42, %v348_v46  ;;  %v541_v49 = vsel %vm537_vm0, %v220_v44, %v352_v47  ;;  %v240_v42 = vld [vmem:[%s1609_s0 + $0xb8] sm:$0xff]  ;;  %v210_v44 = vadd.f32 %v711_v2, %v142_v35  ;;  %v144_v46 = vmul.f32 %v706_v1, %v76_v43  ;;  %v77_v47 = vld [vmem:[%s1606_s1 + $0x1e0] sm:$0xff]  ;;  %v247_v43 = vld [vmem:[%s1609_s0 + $0xf0] sm:$0xff] }
  0x83   :  { %604 = vst.msk [vmem:[%s1610_s4 + $0x8] sm:$0xff] %vm602_vm1, %v539_v48  ;;  %v374_v57 = vpop.permute.xlu2 %373  ;;  %v78_v48 = vld [vmem:[%s1606_s1 + $0x1e8] sm:$0xff]  ;;  %v245_v35 = vld [vmem:[%s1609_s0 + $0xe0] sm:$0xff] }
  0x84   :  { %606 = vst.msk [vmem:[%s1610_s4 + $0x18] sm:$0xff] %vm602_vm1, %v541_v49  ;;  %v552_v58 = vsel %vm537_vm0, %v231_v50, %v374_v57  ;;  %v212_v51 = vadd.f32 %v711_v2, %v144_v46  ;;  %v146_v55 = vmul.f32 %v706_v1, %v78_v48 }
  0x85   :  { %617 = vst.msk [vmem:[%s1610_s4 + $0x70] sm:$0xff] %vm602_vm1, %v552_v58 }
  0x86   :  { %v214_v63 = vadd.f32 %v711_v2, %v146_v55 }
  0x87   :  { %441 = vrot.lane.b32.xlu0 %v201_v52, %s674_s3  ;;  %443 = vrot.lane.b32.xlu1 %v202_v53, %s674_s3  ;;  %v232_v52 = vld [vmem:[%s1609_s0 + $0x78] sm:$0xff]  ;;  %v145_v53 = vmul.f32 %v706_v1, %v77_v47 }
  0x89   :  { %v358_v0 = vpop.permute.xlu0 %357  ;;  %v360_v3 = vpop.permute.xlu1 %359  ;;  %445 = vrot.lane.b32.xlu2 %v203_v59, %s674_s3 }
  0x8a   :  { %v544_v4 = vsel %vm537_vm0, %v223_v60, %v358_v0  ;;  %v545_v5 = vsel %vm537_vm0, %v224_v62, %v360_v3  ;;  %v243_v60 = vld [vmem:[%s1609_s0 + $0xd0] sm:$0xff]  ;;  %v213_v62 = vadd.f32 %v711_v2, %v145_v53  ;;  %v147_v0 = vmul.f32 %v706_v1, %v79_v61  ;;  %v80_v3 = vld [vmem:[%s1606_s1 + $0x1f8] sm:$0xff]  ;;  %v253_v61 = vld [vmem:[%s1609_s0 + $0x120] sm:$0xff] }
  0x8b   :  { %609 = vst.msk [vmem:[%s1610_s4 + $0x30] sm:$0xff] %vm602_vm1, %v544_v4  ;;  %v380_v13 = vpop.permute.xlu2 %379  ;;  %v251_v53 = vld [vmem:[%s1609_s0 + $0x110] sm:$0xff] }
  0x8c   :  { %610 = vst.msk [vmem:[%s1610_s4 + $0x38] sm:$0xff] %vm602_vm1, %v545_v5  ;;  %v555_v14 = vsel %vm537_vm0, %v234_v6, %v380_v13  ;;  %v215_v6 = vadd.f32 %v711_v2, %v147_v0 }
  0x8d   :  { %620 = vst.msk [vmem:[%s1610_s4 + $0x88] sm:$0xff] %vm602_vm1, %v555_v14  ;;  %v246_v14 = vld [vmem:[%s1609_s0 + $0xe8] sm:$0xff] }
  0x8f   :  { %447 = vrot.lane.b32.xlu0 %v204_v8, %s674_s3  ;;  %449 = vrot.lane.b32.xlu1 %v205_v9, %s674_s3  ;;  %v148_v8 = vmul.f32 %v706_v1, %v80_v3  ;;  %v236_v9 = vld [vmem:[%s1609_s0 + $0x98] sm:$0xff] }
  0x91   :  { %v364_v20 = vpop.permute.xlu0 %363  ;;  %v366_v21 = vpop.permute.xlu1 %365  ;;  %451 = vrot.lane.b32.xlu2 %v206_v15, %s674_s3  ;;  %v216_v1 = vadd.f32 %v711_v2, %v148_v8  ;;  %v239_v2 = vld [vmem:[%s1609_s0 + $0xb0] sm:$0xff]  ;;  %v256_v8 = vld [vmem:[%s1609_s0 + $0x138] sm:$0xff] }
  0x92   :  { %v547_v22 = vsel %vm537_vm0, %v226_v16, %v364_v20  ;;  %v548_v23 = vsel %vm537_vm0, %v227_v18, %v366_v21 }
  0x93   :  { %612 = vst.msk [vmem:[%s1610_s4 + $0x48] sm:$0xff] %vm602_vm1, %v547_v22  ;;  %v386_v31 = vpop.permute.xlu2 %385  ;;  %v249_v22 = vld [vmem:[%s1609_s0 + $0x100] sm:$0xff] }
  0x94   :  { %613 = vst.msk [vmem:[%s1610_s4 + $0x50] sm:$0xff] %vm602_vm1, %v548_v23  ;;  %v558_v32 = vsel %vm537_vm0, %v237_v24, %v386_v31  ;;  %v252_v31 = vld [vmem:[%s1609_s0 + $0x118] sm:$0xff] }
  0x95   :  { %623 = vst.msk [vmem:[%s1610_s4 + $0xa0] sm:$0xff] %vm602_vm1, %v558_v32 }
  0x97   :  { %453 = vrot.lane.b32.xlu0 %v207_v26, %s674_s3  ;;  %455 = vrot.lane.b32.xlu1 %v208_v27, %s674_s3  ;;  %v242_v26 = vld [vmem:[%s1609_s0 + $0xc8] sm:$0xff] }
  0x99   :  { %v370_v38 = vpop.permute.xlu0 %369  ;;  %v372_v39 = vpop.permute.xlu1 %371  ;;  %457 = vrot.lane.b32.xlu2 %v209_v33, %s674_s3 }
  0x9a   :  { %v550_v40 = vsel %vm537_vm0, %v229_v34, %v370_v38  ;;  %v551_v41 = vsel %vm537_vm0, %v230_v36, %v372_v39  ;;  %v244_v34 = vld [vmem:[%s1609_s0 + $0xd8] sm:$0xff] }
  0x9b   :  { %615 = vst.msk [vmem:[%s1610_s4 + $0x60] sm:$0xff] %vm602_vm1, %v550_v40  ;;  %v392_v49 = vpop.permute.xlu2 %391  ;;  %v255_v40 = vld [vmem:[%s1609_s0 + $0x130] sm:$0xff] }
  0x9c   :  { %616 = vst.msk [vmem:[%s1610_s4 + $0x68] sm:$0xff] %vm602_vm1, %v551_v41  ;;  %v561_v50 = vsel %vm537_vm0, %v240_v42, %v392_v49  ;;  %v258_v49 = vld [vmem:[%s1609_s0 + $0x148] sm:$0xff] }
  0x9d   :  { %626 = vst.msk [vmem:[%s1610_s4 + $0xb8] sm:$0xff] %vm602_vm1, %v561_v50 }
  0x9f   :  { %459 = vrot.lane.b32.xlu0 %v210_v44, %s674_s3  ;;  %461 = vrot.lane.b32.xlu1 %v211_v45, %s674_s3  ;;  %v248_v44 = vld [vmem:[%s1609_s0 + $0xf8] sm:$0xff] }
  0xa1   :  { %v376_v56 = vpop.permute.xlu0 %375  ;;  %v378_v57 = vpop.permute.xlu1 %377  ;;  %463 = vrot.lane.b32.xlu2 %v212_v51, %s674_s3 }
  0xa2   :  { %v553_v58 = vsel %vm537_vm0, %v232_v52, %v376_v56  ;;  %v554_v59 = vsel %vm537_vm0, %v233_v54, %v378_v57  ;;  %v250_v52 = vld [vmem:[%s1609_s0 + $0x108] sm:$0xff] }
  0xa3   :  { %618 = vst.msk [vmem:[%s1610_s4 + $0x78] sm:$0xff] %vm602_vm1, %v553_v58  ;;  %v398_v4 = vpop.permute.xlu2 %397  ;;  %v261_v58 = vld [vmem:[%s1609_s0 + $0x160] sm:$0xff] }
  0xa4   :  { %619 = vst.msk [vmem:[%s1610_s4 + $0x80] sm:$0xff] %vm602_vm1, %v554_v59  ;;  %v564_v5 = vsel %vm537_vm0, %v243_v60, %v398_v4 }
  0xa5   :  { %629 = vst.msk [vmem:[%s1610_s4 + $0xd0] sm:$0xff] %vm602_vm1, %v564_v5  ;;  %v264_v5 = vld [vmem:[%s1609_s0 + $0x178] sm:$0xff] }
  0xa7   :  { %465 = vrot.lane.b32.xlu0 %v213_v62, %s674_s3  ;;  %467 = vrot.lane.b32.xlu1 %v214_v63, %s674_s3  ;;  %v254_v62 = vld [vmem:[%s1609_s0 + $0x128] sm:$0xff] }
  0xa9   :  { %v382_v10 = vpop.permute.xlu0 %381  ;;  %v384_v11 = vpop.permute.xlu1 %383  ;;  %469 = vrot.lane.b32.xlu2 %v215_v6, %s674_s3 }
  0xaa   :  { %v556_v12 = vsel %vm537_vm0, %v235_v7, %v382_v10  ;;  %v557_v13 = vsel %vm537_vm0, %v236_v9, %v384_v11  ;;  %v257_v9 = vld [vmem:[%s1609_s0 + $0x140] sm:$0xff] }
  0xab   :  { %621 = vst.msk [vmem:[%s1610_s4 + $0x90] sm:$0xff] %vm602_vm1, %v556_v12  ;;  %v404_v15 = vpop.permute.xlu2 %403 }
  0xac   :  { %622 = vst.msk [vmem:[%s1610_s4 + $0x98] sm:$0xff] %vm602_vm1, %v557_v13  ;;  %v567_v16 = vsel %vm537_vm0, %v246_v14, %v404_v15  ;;  %v267_v14 = vld [vmem:[%s1609_s0 + $0x190] sm:$0xff] }
  0xad   :  { %632 = vst.msk [vmem:[%s1610_s4 + $0xe8] sm:$0xff] %vm602_vm1, %v567_v16  ;;  %v259_v16 = vld [vmem:[%s1609_s0 + $0x150] sm:$0xff] }
  0xaf   :  { %471 = vrot.lane.b32.xlu0 %v216_v1, %s674_s3 }
  0xb1   :  { %v388_v18 = vpop.permute.xlu0 %387  ;;  %v390_v19 = vpop.permute.xlu1 %389 }
  0xb2   :  { %v559_v20 = vsel %vm537_vm0, %v238_v17, %v388_v18  ;;  %v560_v21 = vsel %vm537_vm0, %v239_v2, %v390_v19  ;;  %v260_v17 = vld [vmem:[%s1609_s0 + $0x158] sm:$0xff] }
  0xb3   :  { %624 = vst.msk [vmem:[%s1610_s4 + $0xa8] sm:$0xff] %vm602_vm1, %v559_v20  ;;  %v410_v23 = vpop.permute.xlu2 %409 }
  0xb4   :  { %625 = vst.msk [vmem:[%s1610_s4 + $0xb0] sm:$0xff] %vm602_vm1, %v560_v21  ;;  %v570_v24 = vsel %vm537_vm0, %v249_v22, %v410_v23  ;;  %v270_v21 = vld [vmem:[%s1609_s0 + $0x1a8] sm:$0xff] }
  0xb5   :  { %635 = vst.msk [vmem:[%s1610_s4 + $0x100] sm:$0xff] %vm602_vm1, %v570_v24  ;;  %v262_v24 = vld [vmem:[%s1609_s0 + $0x168] sm:$0xff] }
  0xb9   :  { %v394_v27 = vpop.permute.xlu0 %393  ;;  %v396_v28 = vpop.permute.xlu1 %395 }
  0xba   :  { %v562_v29 = vsel %vm537_vm0, %v241_v25, %v394_v27  ;;  %v563_v30 = vsel %vm537_vm0, %v242_v26, %v396_v28  ;;  %v263_v25 = vld [vmem:[%s1609_s0 + $0x170] sm:$0xff] }
  0xbb   :  { %627 = vst.msk [vmem:[%s1610_s4 + $0xc0] sm:$0xff] %vm602_vm1, %v562_v29  ;;  %v416_v32 = vpop.permute.xlu2 %415 }
  0xbc   :  { %628 = vst.msk [vmem:[%s1610_s4 + $0xc8] sm:$0xff] %vm602_vm1, %v563_v30  ;;  %v573_v33 = vsel %vm537_vm0, %v252_v31, %v416_v32  ;;  %v273_v30 = vld [vmem:[%s1609_s0 + $0x1c0] sm:$0xff] }
  0xbd   :  { %638 = vst.msk [vmem:[%s1610_s4 + $0x118] sm:$0xff] %vm602_vm1, %v573_v33  ;;  %v265_v33 = vld [vmem:[%s1609_s0 + $0x180] sm:$0xff] }
  0xc1   :  { %v400_v36 = vpop.permute.xlu0 %399  ;;  %v402_v37 = vpop.permute.xlu1 %401 }
  0xc2   :  { %v565_v38 = vsel %vm537_vm0, %v244_v34, %v400_v36  ;;  %v566_v39 = vsel %vm537_vm0, %v245_v35, %v402_v37  ;;  %v266_v34 = vld [vmem:[%s1609_s0 + $0x188] sm:$0xff] }
  0xc3   :  { %630 = vst.msk [vmem:[%s1610_s4 + $0xd8] sm:$0xff] %vm602_vm1, %v565_v38  ;;  %v422_v41 = vpop.permute.xlu2 %421 }
  0xc4   :  { %631 = vst.msk [vmem:[%s1610_s4 + $0xe0] sm:$0xff] %vm602_vm1, %v566_v39  ;;  %v576_v42 = vsel %vm537_vm0, %v255_v40, %v422_v41  ;;  %v276_v39 = vld [vmem:[%s1609_s0 + $0x1d8] sm:$0xff] }
  0xc5   :  { %641 = vst.msk [vmem:[%s1610_s4 + $0x130] sm:$0xff] %vm602_vm1, %v576_v42  ;;  %v268_v42 = vld [vmem:[%s1609_s0 + $0x198] sm:$0xff] }
  0xc9   :  { %v406_v45 = vpop.permute.xlu0 %405  ;;  %v408_v46 = vpop.permute.xlu1 %407 }
  0xca   :  { %v568_v47 = vsel %vm537_vm0, %v247_v43, %v406_v45  ;;  %v569_v48 = vsel %vm537_vm0, %v248_v44, %v408_v46  ;;  %v269_v43 = vld [vmem:[%s1609_s0 + $0x1a0] sm:$0xff] }
  0xcb   :  { %633 = vst.msk [vmem:[%s1610_s4 + $0xf0] sm:$0xff] %vm602_vm1, %v568_v47  ;;  %v428_v50 = vpop.permute.xlu2 %427 }
  0xcc   :  { %634 = vst.msk [vmem:[%s1610_s4 + $0xf8] sm:$0xff] %vm602_vm1, %v569_v48  ;;  %v579_v51 = vsel %vm537_vm0, %v258_v49, %v428_v50  ;;  %v279_v48 = vld [vmem:[%s1609_s0 + $0x1f0] sm:$0xff] }
  0xcd   :  { %644 = vst.msk [vmem:[%s1610_s4 + $0x148] sm:$0xff] %vm602_vm1, %v579_v51  ;;  %v271_v51 = vld [vmem:[%s1609_s0 + $0x1b0] sm:$0xff] }
  0xd1   :  { %v412_v54 = vpop.permute.xlu0 %411  ;;  %v414_v55 = vpop.permute.xlu1 %413 }
  0xd2   :  { %v571_v56 = vsel %vm537_vm0, %v250_v52, %v412_v54  ;;  %v572_v57 = vsel %vm537_vm0, %v251_v53, %v414_v55  ;;  %v272_v52 = vld [vmem:[%s1609_s0 + $0x1b8] sm:$0xff] }
  0xd3   :  { %636 = vst.msk [vmem:[%s1610_s4 + $0x108] sm:$0xff] %vm602_vm1, %v571_v56  ;;  %v434_v59 = vpop.permute.xlu2 %433 }
  0xd4   :  { %637 = vst.msk [vmem:[%s1610_s4 + $0x110] sm:$0xff] %vm602_vm1, %v572_v57  ;;  %v582_v60 = vsel %vm537_vm0, %v261_v58, %v434_v59  ;;  %v274_v57 = vld [vmem:[%s1609_s0 + $0x1c8] sm:$0xff]  ;;  %v275_v58 = vld [vmem:[%s1609_s0 + $0x1d0] sm:$0xff] }
  0xd5   :  { %647 = vst.msk [vmem:[%s1610_s4 + $0x160] sm:$0xff] %vm602_vm1, %v582_v60 }
  0xd9   :  { %v418_v63 = vpop.permute.xlu0 %417  ;;  %v420_v0 = vpop.permute.xlu1 %419 }
  0xda   :  { %v574_v3 = vsel %vm537_vm0, %v253_v61, %v418_v63  ;;  %v575_v4 = vsel %vm537_vm0, %v254_v62, %v420_v0  ;;  %v277_v63 = vld [vmem:[%s1609_s0 + $0x1e0] sm:$0xff]  ;;  %v278_v0 = vld [vmem:[%s1609_s0 + $0x1e8] sm:$0xff] }
  0xdb   :  { %639 = vst.msk [vmem:[%s1610_s4 + $0x120] sm:$0xff] %vm602_vm1, %v574_v3  ;;  %v440_v6 = vpop.permute.xlu2 %439 }
  0xdc   :  { %640 = vst.msk [vmem:[%s1610_s4 + $0x128] sm:$0xff] %vm602_vm1, %v575_v4  ;;  %v585_v7 = vsel %vm537_vm0, %v264_v5, %v440_v6 }
  0xdd   :  { %650 = vst.msk [vmem:[%s1610_s4 + $0x178] sm:$0xff] %vm602_vm1, %v585_v7  ;;  %v280_v7 = vld [vmem:[%s1609_s0 + $0x1f8] sm:$0xff] }
  0xe1   :  { %v424_v10 = vpop.permute.xlu0 %423  ;;  %v426_v11 = vpop.permute.xlu1 %425 }
  0xe2   :  { %v577_v12 = vsel %vm537_vm0, %v256_v8, %v424_v10  ;;  %v578_v13 = vsel %vm537_vm0, %v257_v9, %v426_v11 }
  0xe3   :  { %642 = vst.msk [vmem:[%s1610_s4 + $0x138] sm:$0xff] %vm602_vm1, %v577_v12  ;;  %v446_v1 = vpop.permute.xlu2 %445 }
  0xe4   :  { %643 = vst.msk [vmem:[%s1610_s4 + $0x140] sm:$0xff] %vm602_vm1, %v578_v13  ;;  %v588_v15 = vsel %vm537_vm0, %v267_v14, %v446_v1 }
  0xe5   :  { %653 = vst.msk [vmem:[%s1610_s4 + $0x190] sm:$0xff] %vm602_vm1, %v588_v15 }
  0xe9   :  { %v430_v2 = vpop.permute.xlu0 %429  ;;  %v432_v18 = vpop.permute.xlu1 %431 }
  0xea   :  { %v580_v19 = vsel %vm537_vm0, %v259_v16, %v430_v2  ;;  %v581_v20 = vsel %vm537_vm0, %v260_v17, %v432_v18 }
  0xeb   :  { %645 = vst.msk [vmem:[%s1610_s4 + $0x150] sm:$0xff] %vm602_vm1, %v580_v19  ;;  %v452_v22 = vpop.permute.xlu2 %451 }
  0xec   :  { %646 = vst.msk [vmem:[%s1610_s4 + $0x158] sm:$0xff] %vm602_vm1, %v581_v20  ;;  %v591_v23 = vsel %vm537_vm0, %v270_v21, %v452_v22 }
  0xed   :  { %656 = vst.msk [vmem:[%s1610_s4 + $0x1a8] sm:$0xff] %vm602_vm1, %v591_v23 }
  0xf1   :  { %v436_v26 = vpop.permute.xlu0 %435  ;;  %v438_v27 = vpop.permute.xlu1 %437 }
  0xf2   :  { %v583_v28 = vsel %vm537_vm0, %v262_v24, %v436_v26  ;;  %v584_v29 = vsel %vm537_vm0, %v263_v25, %v438_v27 }
  0xf3   :  { %648 = vst.msk [vmem:[%s1610_s4 + $0x168] sm:$0xff] %vm602_vm1, %v583_v28  ;;  %v458_v31 = vpop.permute.xlu2 %457 }
  0xf4   :  { %649 = vst.msk [vmem:[%s1610_s4 + $0x170] sm:$0xff] %vm602_vm1, %v584_v29  ;;  %v594_v32 = vsel %vm537_vm0, %v273_v30, %v458_v31 }
  0xf5   :  { %659 = vst.msk [vmem:[%s1610_s4 + $0x1c0] sm:$0xff] %vm602_vm1, %v594_v32 }
  0xf9   :  { %v442_v35 = vpop.permute.xlu0 %441  ;;  %v444_v36 = vpop.permute.xlu1 %443 }
  0xfa   :  { %v586_v37 = vsel %vm537_vm0, %v265_v33, %v442_v35  ;;  %v587_v38 = vsel %vm537_vm0, %v266_v34, %v444_v36 }
  0xfb   :  { %651 = vst.msk [vmem:[%s1610_s4 + $0x180] sm:$0xff] %vm602_vm1, %v586_v37  ;;  %v464_v40 = vpop.permute.xlu2 %463 }
  0xfc   :  { %652 = vst.msk [vmem:[%s1610_s4 + $0x188] sm:$0xff] %vm602_vm1, %v587_v38  ;;  %v597_v41 = vsel %vm537_vm0, %v276_v39, %v464_v40 }
  0xfd   :  { %662 = vst.msk [vmem:[%s1610_s4 + $0x1d8] sm:$0xff] %vm602_vm1, %v597_v41 }
 0x101   :  { %v448_v44 = vpop.permute.xlu0 %447  ;;  %v450_v45 = vpop.permute.xlu1 %449 }
 0x102   :  { %v589_v46 = vsel %vm537_vm0, %v268_v42, %v448_v44  ;;  %v590_v47 = vsel %vm537_vm0, %v269_v43, %v450_v45 }
 0x103   :  { %654 = vst.msk [vmem:[%s1610_s4 + $0x198] sm:$0xff] %vm602_vm1, %v589_v46  ;;  %v470_v49 = vpop.permute.xlu2 %469 }
 0x104   :  { %655 = vst.msk [vmem:[%s1610_s4 + $0x1a0] sm:$0xff] %vm602_vm1, %v590_v47  ;;  %v600_v50 = vsel %vm537_vm0, %v279_v48, %v470_v49 }
 0x105   :  { %665 = vst.msk [vmem:[%s1610_s4 + $0x1f0] sm:$0xff] %vm602_vm1, %v600_v50 }
 0x109   :  { %v454_v53 = vpop.permute.xlu0 %453  ;;  %v456_v54 = vpop.permute.xlu1 %455 }
 0x10a   :  { %v592_v55 = vsel %vm537_vm0, %v271_v51, %v454_v53  ;;  %v593_v56 = vsel %vm537_vm0, %v272_v52, %v456_v54 }
 0x10b   :  { %657 = vst.msk [vmem:[%s1610_s4 + $0x1b0] sm:$0xff] %vm602_vm1, %v592_v55 }
 0x10c   :  { %658 = vst.msk [vmem:[%s1610_s4 + $0x1b8] sm:$0xff] %vm602_vm1, %v593_v56 }
 0x111   :  { %v460_v59 = vpop.permute.xlu0 %459  ;;  %v462_v60 = vpop.permute.xlu1 %461 }
 0x112   :  { %v595_v61 = vsel %vm537_vm0, %v274_v57, %v460_v59  ;;  %v596_v62 = vsel %vm537_vm0, %v275_v58, %v462_v60 }
 0x113   :  { %660 = vst.msk [vmem:[%s1610_s4 + $0x1c8] sm:$0xff] %vm602_vm1, %v595_v61 }
 0x114   :  { %661 = vst.msk [vmem:[%s1610_s4 + $0x1d0] sm:$0xff] %vm602_vm1, %v596_v62 }
 0x119   :  { %v466_v3 = vpop.permute.xlu0 %465  ;;  %v468_v4 = vpop.permute.xlu1 %467 }
 0x11a   :  { %v598_v5 = vsel %vm537_vm0, %v277_v63, %v466_v3  ;;  %v599_v6 = vsel %vm537_vm0, %v278_v0, %v468_v4 }
 0x11b   :  { %663 = vst.msk [vmem:[%s1610_s4 + $0x1e0] sm:$0xff] %vm602_vm1, %v598_v5 }
 0x11c   :  { %664 = vst.msk [vmem:[%s1610_s4 + $0x1e8] sm:$0xff] %vm602_vm1, %v599_v6 }
 0x121   :  { %v472_v8 = vpop.permute.xlu0 %471 }
 0x122   :  { %v601_v9 = vsel %vm537_vm0, %v280_v7, %v472_v8 }
 0x123   :  { %666 = vst.msk [vmem:[%s1610_s4 + $0x1f8] sm:$0xff] %vm602_vm1, %v601_v9 }

// kernel: tile.10
= control target key start
LH: loop header
LB: loop body
LE: loop exit
PB: predicated region body
PF: predicated region fallthrough
CT: control target
= control target key end

     0   :  { %s22_s0 = inlined_call_operand.vmem [shape: f32[3], index: 0, kind: input, shape index: {}]   ;;  %s23_s1 = inlined_call_operand.vmem [shape: f32[4,3], index: 1, kind: output, shape index: {}]  }
   0x1   :  { %v4_v0 = vld [vmem:[%s22_s0] ss:$0 sm:$0xff] }
   0x2   :  { %5 = vst [vmem:[%s23_s1] sm:$0xf] %v4_v0 }

// kernel: tile.11
= control target key start
LH: loop header
LB: loop body
LE: loop exit
PB: predicated region body
PF: predicated region fallthrough
CT: control target
= control target key end

     0   :  { %s37_s8 = smov 3   ;;  %s38_s9 = smov 6   ;;  %vm7_vm0 = vcmask 23552   ;;  %vm13_vm1 = vcmask 97352   ;;  %vm19_vm2 = vcmask 72752   ;;  %vm25_vm3 = vcmask 48152   ;;  %s55_s0 = inlined_call_operand.vmem [shape: f32[4,3], index: 0, kind: input, shape index: {}]   ;;  %s56_s1 = inlined_call_operand.vmem [shape: f32[1,12], index: 1, kind: output, shape index: {}]  }
   0x1   :  { %v4_v0 = vld [vmem:[%s55_s0] sm:$0xf]  ;;  %s36_s0 = smov 9  }
   0x2   :  { %5 = vst [vmem:[#allocation1] sm:$0xf] %v4_v0 }
   0x9   :  { %v10_v1 = vld [vmem:[#allocation1 + $0x3] sm:$0x1]   ;;  %v22_v2 = vld [vmem:[#allocation1 + $0x1] sm:$0x1]   ;;  %v16_v3 = vld [vmem:[#allocation1 + $0x2] sm:$0x1]  }
   0xa   :  { %11 = vrot.lane.b32.xlu0 %v10_v1, %s36_s0  ;;  %23 = vrot.lane.b32.xlu1 %v22_v2, %s37_s8  ;;  %v6_v4 = vld [vmem:[#allocation1] sm:$0x1]  }
   0xb   :  { %8 = vst.msk [vmem:[#allocation0] sm:$0x1] %vm7_vm0, %v6_v4  }
  0x12   :  { %17 = vrot.lane.b32.xlu0 %v16_v3, %s38_s9 }
  0x7c   :  { %v12_v5 = vpop.permute.xlu0 %11   ;;  %v24_v6 = vpop.permute.xlu1 %23  }
  0x7d   :  { %14 = vst.msk [vmem:[#allocation0] sm:$0x1] %vm13_vm1, %v12_v5  }
  0x84   :  { %v18_v7 = vpop.permute.xlu0 %17  }
  0x85   :  { %20 = vst.msk [vmem:[#allocation0] sm:$0x1] %vm19_vm2, %v18_v7  }
  0x86   :  { %26 = vst.msk [vmem:[#allocation0] sm:$0x1] %vm25_vm3, %v24_v6  }
  0x8d   :  { %v29_v8 = vld [vmem:[#allocation0] sm:$0x1] }
  0x8e   :  { %32 = vst [vmem:[%s56_s1] sm:$0x1] %v29_v8 }

// kernel: unet_forward.47
= control target key start
LH: loop header
LB: loop body
LE: loop exit
PB: predicated region body
PF: predicated region fallthrough
CT: control target
= control target key end

     0   :  { %s977_s12 = smov 0   ;;  %s1211_s0 = inlined_call_operand.vmem [shape: bf16[512,144], index: 0, kind: input, shape index: {}]   ;;  %s1212_s1 = inlined_call_operand.vmem [shape: bf16[144,128], index: 1, kind: input, shape index: {}]   ;;  %s1213_s2 = inlined_call_operand.vmem [shape: f32[1,128], index: 2, kind: input, shape index: {}]   ;;  %s1214_s3 = inlined_call_operand.vmem [shape: f32[512,128], index: 3, kind: output, shape index: {}]  }
   0x1 LB: > { %s793_s13 = sadd.s32 4294967295, %s955_s12   ;;  %p797_p0 = scmp.ge.s32.totalorder %s955_s12, 1  ;;  %s955_s12 = sphi %s977_s12, %s13_s12  }
   0x2   : > { %p139_p1 = scmp.lt.s32.totalorder %s955_s12, 3 }
   0x4   : > { %p140_p2 = pnand %p797_p0, %p139_p1 }
   0x5   : > { %s798_s16 = sshll.u32 (!%p140_p2), %s793_s13, 5 }
   0x6   : > { %143 = sbr.rel (%p140_p2) target bundleno = 307 (0x133), region = 32  ;;  %p165_p3 = scmp.lt.s32.totalorder (!%p140_p2), %s798_s16, 63 }
   0xb   : > { %v865_v0 = vld [vmem:[%s1212_s1 + $0x38] sm:$0xff]  ;;  %v866_v1 = vld [vmem:[%s1212_s1 + $0x40] sm:$0xff]  ;;  %v864_v2 = vld [vmem:[%s1212_s1 + $0x30] sm:$0xff]  ;;  %s1216_s16 = smov (!%p165_p3, %s798_s16), 63  ;;  %vm446_vm0 = vcmask 130048  }
   0xc   : > { %495 = vmatpush.bf16.msra.mxu0 %v865_v0  ;;  %867 = vmatpush.bf16.msra.mxu2 %v865_v0  ;;  %s857_s21 = sshll.u32 %s1216_s16, 3  ;;  %v863_v3 = vld [vmem:[%s1212_s1 + $0x28] sm:$0xff]  ;;  %v862_v12 = vld [vmem:[%s1212_s1 + $0x20] sm:$0xff]  ;;  %v861_v16 = vld [vmem:[%s1212_s1 + $0x18] sm:$0xff] }
   0xd   : > { %591 = vmatpush.bf16.msra.mxu1 %v866_v1  ;;  %875 = vmatpush.bf16.msra.mxu3 %v866_v1  ;;  %s1005_s26 = scalar_lea.vmem %s1211_s0, %s857_s21  ;;  %v860_v23 = vld [vmem:[%s1212_s1 + $0x10] sm:$0xff]  ;;  %v859_v33 = vld [vmem:[%s1212_s1 + $0x8] sm:$0xff]  ;;  %v858_v42 = vld [vmem:[%s1212_s1] sm:$0xff]  ;;  %s1139_s15 = scalar_lea.vmem %s1214_s3, %s857_s21 }
   0xe   : > { %v178_v4 = vld [vmem:[%s1005_s26] sm:$0xff]  ;;  %v179_v5 = vld [vmem:[%s1005_s26 + $0x8] sm:$0xff]  ;;  %v1010_v8 = vld [vmem:[%s1005_s26 + $0x90] sm:$0xff] }
   0xf   : > { %v211_v6 = vunpack.c.h.bf16 %v178_v4  ;;  %v213_v7 = vunpack.c.h.bf16 %v179_v5  ;;  %v1013_v9 = vld [vmem:[%s1005_s26 + $0x98] sm:$0xff]  ;;  %v247_v14 = vunpack.c.h.bf16 %v1010_v8  ;;  %v180_v17 = vld [vmem:[%s1005_s26 + $0x10] sm:$0xff]  ;;  %v1030_v25 = vld [vmem:[%s1005_s26 + $0x80] sm:$0xff]  ;;  %v210_v30 = vunpack.c.l.bf16 %v178_v4 }
  0x10   : > { %496 = vmatpush.bf16.msra.mxu0 %v864_v2  ;;  %868 = vmatpush.bf16.msra.mxu2 %v864_v2  ;;  %v249_v15 = vunpack.c.h.bf16 %v1013_v9  ;;  %v181_v20 = vld [vmem:[%s1005_s26 + $0x18] sm:$0xff]  ;;  %v215_v22 = vunpack.c.h.bf16 %v180_v17  ;;  %v1034_v26 = vld [vmem:[%s1005_s26 + $0x88] sm:$0xff]  ;;  %v1037_v27 = vld [vmem:[%s1005_s26 + $0xa0] sm:$0xff]  ;;  %v212_v31 = vunpack.c.l.bf16 %v179_v5  ;;  %v242_v32 = vunpack.c.l.bf16 %v1030_v25 }
  0x11   : > { %v275_v10 = vmax.f32 %v211_v6, 0.0  ;;  %v277_v11 = vmax.f32 %v213_v7, 0.0  ;;  %v311_v18 = vmax.f32 %v247_v14, 0.0  ;;  %v217_v24 = vunpack.c.h.bf16 %v181_v20  ;;  %v1040_v28 = vld [vmem:[%s1005_s26 + $0xa8] sm:$0xff]  ;;  %v182_v48 = vld [vmem:[%s1005_s26 + $0x20] sm:$0xff]  ;;  %v1057_v53 = vld [vmem:[%s1005_s26 + $0xb0] sm:$0xff] }
  0x12   : > { %v313_v19 = vmax.f32 %v249_v15, 0.0  ;;  %v279_v29 = vmax.f32 %v215_v22, 0.0  ;;  %v244_v35 = vunpack.c.l.bf16 %v1034_v26  ;;  %v251_v36 = vunpack.c.h.bf16 %v1037_v27  ;;  %v183_v50 = vld [vmem:[%s1005_s26 + $0x28] sm:$0xff]  ;;  %v1060_v54 = vld [vmem:[%s1005_s26 + $0xb8] sm:$0xff] }
  0x13   : > { %v339_v13 = vpack.c.bf16 %v277_v11, %v275_v10  ;;  %v281_v34 = vmax.f32 %v217_v24, 0.0  ;;  %v253_v37 = vunpack.c.h.bf16 %v1040_v28  ;;  %v274_v38 = vmax.f32 %v210_v30, 0.0  ;;  %v185_v10 = vld [vmem:[%s1005_s26 + $0x38] sm:$0xff]  ;;  %v1074_v14 = vld [vmem:[%s1005_s26 + $0xc8] sm:$0xff] }
  0x14   : > { %497 = vmatpush.bf16.msra.mxu0 %v863_v3  ;;  %869 = vmatpush.bf16.msra.mxu2 %v863_v3  ;;  %v357_v21 = vpack.c.bf16 %v313_v19, %v311_v18  ;;  %v276_v39 = vmax.f32 %v212_v31, 0.0  ;;  %v306_v40 = vmax.f32 %v242_v32, 0.0  ;;  %v308_v43 = vmax.f32 %v244_v35, 0.0 }
  0x15   : > { %839 = vmatmul.msk.bf16.vlgmr.msra.gmra.mxu1 %vm446_vm0, %v339_v13  ;;  %v341_v41 = vpack.c.bf16 %v281_v34, %v279_v29  ;;  %v315_v44 = vmax.f32 %v251_v36, 0.0  ;;  %v317_v45 = vmax.f32 %v253_v37, 0.0  ;;  %v219_v51 = vunpack.c.h.bf16 %v182_v48  ;;  %v1071_v13 = vld [vmem:[%s1005_s26 + $0xc0] sm:$0xff]  ;;  %v187_v36 = vld [vmem:[%s1005_s26 + $0x48] sm:$0xff] }
  0x16   : > { %848 = vmatmul.msk.bf16.vlgmr.msra.gmra.mxu3 %vm446_vm0, %v357_v21  ;;  %v338_v46 = vpack.c.bf16 %v276_v39, %v274_v38  ;;  %v354_v47 = vpack.c.bf16 %v308_v43, %v306_v40  ;;  %v221_v52 = vunpack.c.h.bf16 %v183_v50  ;;  %v214_v56 = vunpack.c.l.bf16 %v180_v17  ;;  %v1085_v39 = vld [vmem:[%s1005_s26 + $0xd0] sm:$0xff]  ;;  %v1088_v40 = vld [vmem:[%s1005_s26 + $0xd8] sm:$0xff] }
  0x17   : > { %v359_v49 = vpack.c.bf16 %v317_v45, %v315_v44  ;;  %v283_v55 = vmax.f32 %v219_v51, 0.0  ;;  %v216_v57 = vunpack.c.l.bf16 %v181_v20  ;;  %v246_v58 = vunpack.c.l.bf16 %v1010_v8  ;;  %v184_v8 = vld [vmem:[%s1005_s26 + $0x30] sm:$0xff] }
  0x18   : > { %498 = vmatpush.bf16.msra.mxu0 %v862_v12  ;;  %870 = vmatpush.bf16.msra.mxu2 %v862_v12  ;;  %v285_v59 = vmax.f32 %v221_v52, 0.0  ;;  %v248_v60 = vunpack.c.l.bf16 %v1013_v9  ;;  %v255_v61 = vunpack.c.h.bf16 %v1057_v53  ;;  %v257_v62 = vunpack.c.h.bf16 %v1060_v54 }
  0x19   : > { %v278_v63 = vmax.f32 %v214_v56, 0.0  ;;  %v280_v0 = vmax.f32 %v216_v57, 0.0  ;;  %v310_v1 = vmax.f32 %v246_v58, 0.0  ;;  %v223_v11 = vunpack.c.h.bf16 %v184_v8 }
  0x1a   : > { %v343_v2 = vpack.c.bf16 %v285_v59, %v283_v55  ;;  %v312_v3 = vmax.f32 %v248_v60, 0.0  ;;  %v319_v4 = vmax.f32 %v255_v61, 0.0  ;;  %v321_v5 = vmax.f32 %v257_v62, 0.0  ;;  %v189_v60 = vld [vmem:[%s1005_s26 + $0x58] sm:$0xff] }
  0x1b   : > { %v340_v6 = vpack.c.bf16 %v280_v0, %v278_v63  ;;  %v225_v12 = vunpack.c.h.bf16 %v185_v10  ;;  %v287_v15 = vmax.f32 %v223_v11, 0.0  ;;  %v218_v17 = vunpack.c.l.bf16 %v182_v48  ;;  %v1099_v63 = vld [vmem:[%s1005_s26 + $0xe0] sm:$0xff]  ;;  %v1102_v0 = vld [vmem:[%s1005_s26 + $0xe8] sm:$0xff] }
  0x1c   : > { %499 = vmatpush.bf16.msra.mxu0 %v861_v16  ;;  %871 = vmatpush.bf16.msra.mxu2 %v861_v16  ;;  %v356_v7 = vpack.c.bf16 %v312_v3, %v310_v1  ;;  %v361_v9 = vpack.c.bf16 %v321_v5, %v319_v4  ;;  %v220_v18 = vunpack.c.l.bf16 %v183_v50  ;;  %v250_v19 = vunpack.c.l.bf16 %v1037_v27  ;;  %v186_v27 = vld [vmem:[%s1005_s26 + $0x40] sm:$0xff] }
  0x1d   : > { %v289_v16 = vmax.f32 %v225_v12, 0.0  ;;  %v252_v20 = vunpack.c.l.bf16 %v1040_v28  ;;  %v259_v21 = vunpack.c.h.bf16 %v1071_v13  ;;  %v261_v22 = vunpack.c.h.bf16 %v1074_v14 }
  0x1e   : > { %v282_v24 = vmax.f32 %v218_v17, 0.0  ;;  %v284_v29 = vmax.f32 %v220_v18, 0.0  ;;  %v314_v30 = vmax.f32 %v250_v19, 0.0  ;;  %v227_v37 = vunpack.c.h.bf16 %v186_v27 }
  0x1f   : > { %v316_v31 = vmax.f32 %v252_v20, 0.0  ;;  %v323_v32 = vmax.f32 %v259_v21, 0.0  ;;  %v229_v38 = vunpack.c.h.bf16 %v187_v36  ;;  %v222_v43 = vunpack.c.l.bf16 %v184_v8  ;;  %v191_v20 = vld [vmem:[%s1005_s26 + $0x68] sm:$0xff] }
  0x20   : > { %500 = vmatpush.bf16.msra.mxu0 %v860_v23  ;;  %872 = vmatpush.bf16.msra.mxu2 %v860_v23  ;;  %v345_v23 = vpack.c.bf16 %v289_v16, %v287_v15  ;;  %v342_v34 = vpack.c.bf16 %v284_v29, %v282_v24  ;;  %v224_v44 = vunpack.c.l.bf16 %v185_v10  ;;  %v254_v45 = vunpack.c.l.bf16 %v1057_v53  ;;  %v188_v53 = vld [vmem:[%s1005_s26 + $0x50] sm:$0xff] }
  0x21   : > { %v358_v35 = vpack.c.bf16 %v316_v31, %v314_v30  ;;  %v265_v48 = vunpack.c.h.bf16 %v1088_v40  ;;  %v286_v50 = vmax.f32 %v222_v43, 0.0  ;;  %v231_v61 = vunpack.c.h.bf16 %v188_v53  ;;  %v208_v31 = vld [vmem:[%s1005_s26 + $0xf0] sm:$0xff] }
  0x22   : > { %v288_v51 = vmax.f32 %v224_v44, 0.0  ;;  %v318_v52 = vmax.f32 %v254_v45, 0.0  ;;  %v233_v62 = vunpack.c.h.bf16 %v189_v60  ;;  %v226_v3 = vunpack.c.l.bf16 %v186_v27 }
  0x23   : > { %v329_v57 = vmax.f32 %v265_v48, 0.0  ;;  %v295_v1 = vmax.f32 %v231_v61, 0.0  ;;  %v228_v4 = vunpack.c.l.bf16 %v187_v36  ;;  %v258_v5 = vunpack.c.l.bf16 %v1071_v13  ;;  %v190_v13 = vld [vmem:[%s1005_s26 + $0x60] sm:$0xff] }
  0x24   : > { %501 = vmatpush.bf16.msra.mxu0 %v859_v33  ;;  %873 = vmatpush.bf16.msra.mxu2 %v859_v33  ;;  %v325_v33 = vmax.f32 %v261_v22, 0.0  ;;  %v344_v58 = vpack.c.bf16 %v288_v51, %v286_v50  ;;  %v269_v8 = vunpack.c.h.bf16 %v1102_v0  ;;  %v235_v21 = vunpack.c.h.bf16 %v190_v13  ;;  %v193_v50 = vld [vmem:[%s1005_s26 + $0x78] sm:$0xff] }
  0x25   : > { %840 = vmatmul.msk.bf16.gmra.mxu1 %vm446_vm0, %v341_v41  ;;  %v291_v41 = vmax.f32 %v227_v37, 0.0  ;;  %v292_v11 = vmax.f32 %v228_v4, 0.0  ;;  %v322_v12 = vmax.f32 %v258_v5, 0.0  ;;  %v237_v22 = vunpack.c.h.bf16 %v191_v20 }
  0x26   : > { %849 = vmatmul.msk.bf16.gmra.mxu3 %vm446_vm0, %v359_v49  ;;  %v363_v28 = vpack.c.bf16 %v325_v33, %v323_v32  ;;  %v333_v17 = vmax.f32 %v269_v8, 0.0  ;;  %v230_v29 = vunpack.c.l.bf16 %v188_v53  ;;  %v232_v30 = vunpack.c.l.bf16 %v189_v60  ;;  %v209_v32 = vld [vmem:[%s1005_s26 + $0xf8] sm:$0xff] }
  0x27   : > { %v301_v24 = vmax.f32 %v237_v22, 0.0  ;;  %v262_v33 = vunpack.c.l.bf16 %v1085_v39  ;;  %v273_v27 = vunpack.c.h.bf16 %v209_v32  ;;  %v243_v36 = vunpack.c.h.bf16 %v1030_v25  ;;  %v192_v25 = vld [vmem:[%s1005_s26 + $0x70] sm:$0xff] }
  0x28   : > { %502 = vmatpush.bf16.msra.mxu0 %v858_v42  ;;  %874 = vmatpush.bf16.msra.mxu2 %v858_v42  ;;  %v293_v42 = vmax.f32 %v229_v38, 0.0  ;;  %v294_v38 = vmax.f32 %v230_v29, 0.0  ;;  %v241_v51 = vunpack.c.h.bf16 %v193_v50  ;;  %v240_v4 = vunpack.c.l.bf16 %v193_v50 }
  0x29   : > { %v337_v45 = vmax.f32 %v273_v27, 0.0  ;;  %v270_v5 = vunpack.c.l.bf16 %v208_v31 }
  0x2a   : > { %v347_v49 = vpack.c.bf16 %v293_v42, %v291_v41  ;;  %v296_v41 = vmax.f32 %v232_v30, 0.0  ;;  %v326_v42 = vmax.f32 %v262_v33, 0.0  ;;  %v304_v8 = vmax.f32 %v240_v4, 0.0 }
  0x2b   : > { %503 = vmatmul.bf16.vlgmr.msra.gmra.mxu0 %v338_v46  ;;  %543 = vmatmul.bf16.vlgmr.msra.gmra.mxu2 %v354_v47  ;;  %v256_v46 = vunpack.c.l.bf16 %v1060_v54  ;;  %v263_v47 = vunpack.c.h.bf16 %v1085_v39 }
  0x2c   : > { %v348_v39 = vpack.c.bf16 %v296_v41, %v294_v38 }
  0x2d   : > { %v320_v55 = vmax.f32 %v256_v46, 0.0  ;;  %v327_v56 = vmax.f32 %v263_v47, 0.0  ;;  %v307_v46 = vmax.f32 %v243_v36, 0.0 }
  0x2f   : > { %v360_v59 = vpack.c.bf16 %v320_v55, %v318_v52  ;;  %v365_v54 = vpack.c.bf16 %v329_v57, %v327_v56  ;;  %v234_v52 = vunpack.c.l.bf16 %v190_v13  ;;  %v236_v55 = vunpack.c.l.bf16 %v191_v20 }
  0x30   : > { %v305_v57 = vmax.f32 %v241_v51, 0.0 }
  0x31   : > { %v298_v53 = vmax.f32 %v234_v52, 0.0  ;;  %v300_v60 = vmax.f32 %v236_v55, 0.0 }
  0x35   : > { %841 = vmatmul.msk.bf16.gmra.mxu1 %vm446_vm0, %v343_v2  ;;  %v297_v2 = vmax.f32 %v233_v62, 0.0 }
  0x36   : > { %850 = vmatmul.msk.bf16.gmra.mxu3 %vm446_vm0, %v361_v9  ;;  %v290_v9 = vmax.f32 %v226_v3, 0.0  ;;  %v238_v3 = vunpack.c.l.bf16 %v192_v25 }
  0x37   : > { %v349_v10 = vpack.c.bf16 %v297_v2, %v295_v1  ;;  %v350_v1 = vpack.c.bf16 %v300_v60, %v298_v53 }
  0x38   : > { %v346_v18 = vpack.c.bf16 %v292_v11, %v290_v9 }
  0x3b   : > { %508 = vmatmul.bf16.gmra.mxu0 %v340_v6  ;;  %548 = vmatmul.bf16.gmra.mxu2 %v356_v7  ;;  %v260_v6 = vunpack.c.l.bf16 %v1074_v14  ;;  %v267_v7 = vunpack.c.h.bf16 %v1099_v63 }
  0x3d   : > { %v324_v15 = vmax.f32 %v260_v6, 0.0  ;;  %v331_v16 = vmax.f32 %v267_v7, 0.0  ;;  %v272_v6 = vunpack.c.l.bf16 %v209_v32  ;;  %v302_v7 = vmax.f32 %v238_v3, 0.0 }
  0x3f   : > { %v362_v19 = vpack.c.bf16 %v324_v15, %v322_v12  ;;  %v367_v14 = vpack.c.bf16 %v333_v17, %v331_v16  ;;  %v352_v9 = vpack.c.bf16 %v304_v8, %v302_v7  ;;  %v1129_v16 = vld [vmem:[%s1213_s2] ss:$0 sm:$0xff] }
  0x45   : > { %842 = vmatmul.msk.bf16.gmra.mxu1 %vm446_vm0, %v345_v23  ;;  %v299_v23 = vmax.f32 %v235_v21, 0.0 }
  0x46   : > { %851 = vmatmul.msk.bf16.gmra.mxu3 %vm446_vm0, %v363_v28  ;;  %v245_v28 = vunpack.c.h.bf16 %v1034_v26  ;;  %v239_v26 = vunpack.c.h.bf16 %v192_v25 }
  0x47   : > { %v351_v37 = vpack.c.bf16 %v301_v24, %v299_v23 }
  0x48   : > { %v309_v47 = vmax.f32 %v245_v28, 0.0  ;;  %v303_v56 = vmax.f32 %v239_v26, 0.0 }
  0x4a   : > { %v355_v48 = vpack.c.bf16 %v309_v47, %v307_v46 }
  0x4b   : > { %513 = vmatmul.bf16.gmra.mxu0 %v342_v34  ;;  %553 = vmatmul.bf16.gmra.mxu2 %v358_v35  ;;  %v264_v34 = vunpack.c.l.bf16 %v1088_v40  ;;  %v271_v35 = vunpack.c.h.bf16 %v208_v31 }
  0x4d   : > { %v328_v43 = vmax.f32 %v264_v34, 0.0  ;;  %v335_v44 = vmax.f32 %v271_v35, 0.0 }
  0x4f   : > { %v364_v40 = vpack.c.bf16 %v328_v43, %v326_v42 }
  0x55   : > { %843 = vmatmul.msk.bf16.gmra.mxu1 %vm446_vm0, %v347_v49  ;;  %v369_v49 = vpack.c.bf16 %v337_v45, %v335_v44 }
  0x56   : > { %852 = vmatmul.msk.bf16.gmra.mxu3 %vm446_vm0, %v365_v54  ;;  %v353_v54 = vpack.c.bf16 %v305_v57, %v303_v56 }
  0x5b   : > { %518 = vmatmul.bf16.gmra.mxu0 %v344_v58  ;;  %558 = vmatmul.bf16.gmra.mxu2 %v360_v59  ;;  %v266_v58 = vunpack.c.l.bf16 %v1099_v63  ;;  %v268_v59 = vunpack.c.l.bf16 %v1102_v0  ;;  %v334_v63 = vmax.f32 %v270_v5, 0.0 }
  0x5d   : > { %v330_v61 = vmax.f32 %v266_v58, 0.0  ;;  %v332_v62 = vmax.f32 %v268_v59, 0.0 }
  0x5f   : > { %v366_v2 = vpack.c.bf16 %v332_v62, %v330_v61 }
  0x65   : > { %844 = vmatmul.msk.bf16.gmra.mxu1 %vm446_vm0, %v349_v10  ;;  %v336_v10 = vmax.f32 %v272_v6, 0.0 }
  0x66   : > { %853 = vmatmul.msk.bf16.gmra.mxu3 %vm446_vm0, %v367_v14 }
  0x67   : > { %v368_v11 = vpack.c.bf16 %v336_v10, %v334_v63 }
  0x6b   : > { %523 = vmatmul.bf16.gmra.mxu0 %v346_v18  ;;  %563 = vmatmul.bf16.gmra.mxu2 %v362_v19 }
  0x75   : > { %845 = vmatmul.msk.bf16.gmra.mxu1 %vm446_vm0, %v351_v37 }
  0x76   : > { %854 = vmatmul.msk.bf16.gmra.mxu3 %vm446_vm0, %v369_v49 }
  0x7b   : > { %528 = vmatmul.bf16.gmra.mxu0 %v348_v39  ;;  %568 = vmatmul.bf16.gmra.mxu2 %v364_v40 }
  0x85   : > { %846 = vmatmul.msk.bf16.gmra.mxu1 %vm446_vm0, %v353_v54 }
  0x8b   : > { %533 = vmatmul.bf16.gmra.mxu0 %v350_v1  ;;  %573 = vmatmul.bf16.gmra.mxu2 %v366_v2 }
  0x92   : > { %v593_v0 = vpop.f32.mrf.mxu1 }
  0x95   : > { %847 = vmatmul.msk.bf16.gmra.mxu1 %vm446_vm0, %v355_v48 }
  0x99   : > { %v638_v17 = vpop.f32.mrf.mxu3 }
  0x9a   : > { %v595_v12 = vpop.f32.mrf.mxu1 }
  0x9b   : > { %538 = vmatmul.bf16.gmra.mxu0 %v352_v9  ;;  %578 = vmatmul.bf16.gmra.mxu2 %v368_v11 }
  0xa1   : > { %v640_v23 = vpop.f32.mrf.mxu3 }
  0xa2   : > { %v598_v15 = vpop.f32.mrf.mxu1 }
  0xa8   : > { %v504_v18 = vpop.f32.mrf.mxu0 }
  0xa9   : > { %v505_v19 = vadd.f32 %v1129_v16, %v504_v18  ;;  %v643_v27 = vpop.f32.mrf.mxu3 }
  0xaa   : > { %v600_v20 = vpop.f32.mrf.mxu1 }
  0xab   : > { %v594_v13 = vadd.f32 %v593_v0, %v505_v19 }
  0xad   : > { %885 = vtanh.f32 %v594_v13 }
  0xae   : > { %v1132_v14 = vpop.f32.mrf.mxu2 }
  0xb0   : > { %v506_v21 = vpop.f32.mrf.mxu0 }
  0xb1   : > { %v507_v22 = vadd.f32 %v1129_v16, %v506_v21  ;;  %v645_v46 = vpop.f32.mrf.mxu3 }
  0xb2   : > { %v603_v30 = vpop.f32.mrf.mxu1 }
  0xb3   : > { %v886_v24 = vpop.eup %885  ;;  %v596_v29 = vadd.f32 %v595_v12, %v507_v22 }
  0xb4   : > { %705 = vst [vmem:[%s1139_s15] sm:$0xff] %v886_v24 }
  0xb5   : > { %887 = vtanh.f32 %v596_v29 }
  0xb6   : > { %v1143_v31 = vpop.f32.mrf.mxu2 }
  0xb8   : > { %v509_v32 = vpop.f32.mrf.mxu0 }
  0xb9   : > { %v510_v33 = vadd.f32 %v1129_v16, %v509_v32  ;;  %v648_v55 = vpop.f32.mrf.mxu3 }
  0xba   : > { %v605_v36 = vpop.f32.mrf.mxu1 }
  0xbb   : > { %v888_v34 = vpop.eup %887  ;;  %v599_v35 = vadd.f32 %v598_v15, %v510_v33 }
  0xbc   : > { %706 = vst [vmem:[%s1139_s15 + $0x8] sm:$0xff] %v888_v34 }
  0xbd   : > { %889 = vtanh.f32 %v599_v35 }
  0xbe   : > { %v549_v28 = vpop.f32.mrf.mxu2 }
  0xbf   : > { %v550_v37 = vadd.f32 %v1129_v16, %v549_v28 }
  0xc0   : > { %v511_v38 = vpop.f32.mrf.mxu0 }
  0xc1   : > { %v512_v41 = vadd.f32 %v1129_v16, %v511_v38  ;;  %v639_v42 = vadd.f32 %v638_v17, %v550_v37  ;;  %v650_v4 = vpop.f32.mrf.mxu3 }
  0xc2   : > { %v608_v45 = vpop.f32.mrf.mxu1 }
  0xc3   : > { %v890_v43 = vpop.eup %889  ;;  %v601_v44 = vadd.f32 %v600_v20, %v512_v41  ;;  %891 = vtanh.f32 %v639_v42 }
  0xc4   : > { %707 = vst [vmem:[%s1139_s15 + $0x10] sm:$0xff] %v890_v43 }
  0xc5   : > { %893 = vtanh.f32 %v601_v44 }
  0xc6   : > { %v551_v47 = vpop.f32.mrf.mxu2 }
  0xc7   : > { %v552_v39 = vadd.f32 %v1129_v16, %v551_v47 }
  0xc8   : > { %v514_v48 = vpop.f32.mrf.mxu0 }
  0xc9   : > { %v515_v40 = vadd.f32 %v1129_v16, %v514_v48  ;;  %v892_v49 = vpop.eup %891  ;;  %v641_v25 = vadd.f32 %v640_v23, %v552_v39  ;;  %v653_v19 = vpop.f32.mrf.mxu3 }
  0xca   : > { %723 = vst [vmem:[%s1139_s15 + $0x90] sm:$0xff] %v892_v49  ;;  %v610_v51 = vpop.f32.mrf.mxu1 }
  0xcb   : > { %v894_v50 = vpop.eup %893  ;;  %v604_v26 = vadd.f32 %v603_v30, %v515_v40  ;;  %895 = vtanh.f32 %v641_v25 }
  0xcc   : > { %708 = vst [vmem:[%s1139_s15 + $0x18] sm:$0xff] %v894_v50 }
  0xcd   : > { %897 = vtanh.f32 %v604_v26 }
  0xce   : > { %v554_v52 = vpop.f32.mrf.mxu2 }
  0xcf   : > { %v555_v56 = vadd.f32 %v1129_v16, %v554_v52 }
  0xd0   : > { %v516_v57 = vpop.f32.mrf.mxu0 }
  0xd1   : > { %v517_v58 = vadd.f32 %v1129_v16, %v516_v57  ;;  %v896_v59 = vpop.eup %895  ;;  %v644_v53 = vadd.f32 %v643_v27, %v555_v56  ;;  %v655_v34 = vpop.f32.mrf.mxu3 }
  0xd2   : > { %724 = vst [vmem:[%s1139_s15 + $0x98] sm:$0xff] %v896_v59  ;;  %v613_v61 = vpop.f32.mrf.mxu1 }
  0xd3   : > { %v898_v60 = vpop.eup %897  ;;  %v606_v54 = vadd.f32 %v605_v36, %v517_v58  ;;  %899 = vtanh.f32 %v644_v53 }
  0xd4   : > { %709 = vst [vmem:[%s1139_s15 + $0x20] sm:$0xff] %v898_v60 }
  0xd5   : > { %901 = vtanh.f32 %v606_v54 }
  0xd6   : > { %v556_v62 = vpop.f32.mrf.mxu2 }
  0xd7   : > { %v557_v1 = vadd.f32 %v1129_v16, %v556_v62 }
  0xd8   : > { %v519_v2 = vpop.f32.mrf.mxu0 }
  0xd9   : > { %v520_v3 = vadd.f32 %v1129_v16, %v519_v2  ;;  %v900_v5 = vpop.eup %899  ;;  %v646_v6 = vadd.f32 %v645_v46, %v557_v1 }
  0xda   : > { %725 = vst [vmem:[%s1139_s15 + $0xa0] sm:$0xff] %v900_v5  ;;  %v615_v63 = vpop.f32.mrf.mxu1 }
  0xdb   : > { %v902_v7 = vpop.eup %901  ;;  %v609_v8 = vadd.f32 %v608_v45, %v520_v3  ;;  %903 = vtanh.f32 %v646_v6  ;;  %v658_v45 = vpop.f32.mrf.mxu3 }
  0xdc   : > { %710 = vst [vmem:[%s1139_s15 + $0x28] sm:$0xff] %v902_v7 }
  0xdd   : > { %905 = vtanh.f32 %v609_v8 }
  0xde   : > { %v559_v10 = vpop.f32.mrf.mxu2 }
  0xdf   : > { %v560_v0 = vadd.f32 %v1129_v16, %v559_v10 }
  0xe0   : > { %v521_v9 = vpop.f32.mrf.mxu0 }
  0xe1   : > { %v522_v11 = vadd.f32 %v1129_v16, %v521_v9  ;;  %v904_v12 = vpop.eup %903  ;;  %v649_v15 = vadd.f32 %v648_v55, %v560_v0 }
  0xe2   : > { %726 = vst [vmem:[%s1139_s15 + $0xa8] sm:$0xff] %v904_v12  ;;  %v618_v13 = vpop.f32.mrf.mxu1 }
  0xe3   : > { %v906_v17 = vpop.eup %905  ;;  %v611_v18 = vadd.f32 %v610_v51, %v522_v11  ;;  %907 = vtanh.f32 %v649_v15  ;;  %v660_v56 = vpop.f32.mrf.mxu3 }
  0xe4   : > { %711 = vst [vmem:[%s1139_s15 + $0x30] sm:$0xff] %v906_v17  ;;  %v545_v17 = vadd.f32 %v1129_v16, %v1132_v14 }
  0xe5   : > { %909 = vtanh.f32 %v611_v18 }
  0xe6   : > { %v561_v20 = vpop.f32.mrf.mxu2 }
  0xe7   : > { %v562_v21 = vadd.f32 %v1129_v16, %v561_v20 }
  0xe8   : > { %v524_v22 = vpop.f32.mrf.mxu0 }
  0xe9   : > { %v525_v23 = vadd.f32 %v1129_v16, %v524_v22  ;;  %v908_v24 = vpop.eup %907  ;;  %v651_v29 = vadd.f32 %v650_v4, %v562_v21 }
  0xea   : > { %727 = vst [vmem:[%s1139_s15 + $0xb0] sm:$0xff] %v908_v24  ;;  %v620_v33 = vpop.f32.mrf.mxu1 }
  0xeb   : > { %v910_v30 = vpop.eup %909  ;;  %v614_v32 = vadd.f32 %v613_v61, %v525_v23  ;;  %911 = vtanh.f32 %v651_v29  ;;  %v663_v6 = vpop.f32.mrf.mxu3 }
  0xec   : > { %712 = vst [vmem:[%s1139_s15 + $0x38] sm:$0xff] %v910_v30 }
  0xed   : > { %913 = vtanh.f32 %v614_v32  ;;  %v547_v32 = vadd.f32 %v1129_v16, %v1143_v31 }
  0xee   : > { %v564_v35 = vpop.f32.mrf.mxu2 }
  0xef   : > { %v565_v27 = vadd.f32 %v1129_v16, %v564_v35 }
  0xf0   : > { %v526_v36 = vpop.f32.mrf.mxu0 }
  0xf1   : > { %v527_v28 = vadd.f32 %v1129_v16, %v526_v36  ;;  %v912_v37 = vpop.eup %911  ;;  %v654_v38 = vadd.f32 %v653_v19, %v565_v27 }
  0xf2   : > { %728 = vst [vmem:[%s1139_s15 + $0xb8] sm:$0xff] %v912_v37  ;;  %v623_v43 = vpop.f32.mrf.mxu1 }
  0xf3   : > { %v914_v41 = vpop.eup %913  ;;  %v616_v42 = vadd.f32 %v615_v63, %v527_v28  ;;  %915 = vtanh.f32 %v654_v38  ;;  %v665_v18 = vpop.f32.mrf.mxu3 }
  0xf4   : > { %713 = vst [vmem:[%s1139_s15 + $0x40] sm:$0xff] %v914_v41 }
  0xf5   : > { %917 = vtanh.f32 %v616_v42 }
  0xf6   : > { %v566_v44 = vpop.f32.mrf.mxu2 }
  0xf7   : > { %v567_v46 = vadd.f32 %v1129_v16, %v566_v44 }
  0xf8   : > { %v529_v47 = vpop.f32.mrf.mxu0 }
  0xf9   : > { %v530_v39 = vadd.f32 %v1129_v16, %v529_v47  ;;  %v916_v48 = vpop.eup %915  ;;  %v656_v40 = vadd.f32 %v655_v34, %v567_v46 }
  0xfa   : > { %729 = vst [vmem:[%s1139_s15 + $0xc0] sm:$0xff] %v916_v48  ;;  %v625_v50 = vpop.f32.mrf.mxu1 }
  0xfb   : > { %v918_v49 = vpop.eup %917  ;;  %v619_v25 = vadd.f32 %v618_v13, %v530_v39  ;;  %919 = vtanh.f32 %v656_v40  ;;  %v668_v27 = vpop.f32.mrf.mxu3 }
  0xfc   : > { %714 = vst [vmem:[%s1139_s15 + $0x48] sm:$0xff] %v918_v49 }
  0xfd   : > { %921 = vtanh.f32 %v619_v25 }
  0xfe   : > { %v569_v26 = vpop.f32.mrf.mxu2 }
  0xff   : > { %v570_v51 = vadd.f32 %v1129_v16, %v569_v26 }
 0x100   : > { %v531_v52 = vpop.f32.mrf.mxu0 }
 0x101   : > { %v532_v55 = vadd.f32 %v1129_v16, %v531_v52  ;;  %v920_v57 = vpop.eup %919  ;;  %v659_v58 = vadd.f32 %v658_v45, %v570_v51 }
 0x102   : > { %730 = vst [vmem:[%s1139_s15 + $0xc8] sm:$0xff] %v920_v57  ;;  %v628_v60 = vpop.f32.mrf.mxu1 }
 0x103   : > { %v922_v59 = vpop.eup %921  ;;  %v621_v53 = vadd.f32 %v620_v33, %v532_v55  ;;  %923 = vtanh.f32 %v659_v58  ;;  %v670_v47 = vpop.f32.mrf.mxu3 }
 0x104   : > { %715 = vst [vmem:[%s1139_s15 + $0x50] sm:$0xff] %v922_v59 }
 0x105   : > { %925 = vtanh.f32 %v621_v53 }
 0x106   : > { %v571_v54 = vpop.f32.mrf.mxu2 }
 0x107   : > { %v572_v61 = vadd.f32 %v1129_v16, %v571_v54 }
 0x108   : > { %v534_v62 = vpop.f32.mrf.mxu0 }
 0x109   : > { %v535_v1 = vadd.f32 %v1129_v16, %v534_v62  ;;  %v924_v2 = vpop.eup %923  ;;  %v661_v3 = vadd.f32 %v660_v56, %v572_v61 }
 0x10a   : > { %731 = vst [vmem:[%s1139_s15 + $0xd0] sm:$0xff] %v924_v2  ;;  %v630_v7 = vpop.f32.mrf.mxu1 }
 0x10b   : > { %v926_v4 = vpop.eup %925  ;;  %v624_v5 = vadd.f32 %v623_v43, %v535_v1  ;;  %927 = vtanh.f32 %v661_v3 }
 0x10c   : > { %716 = vst [vmem:[%s1139_s15 + $0x58] sm:$0xff] %v926_v4 }
 0x10d   : > { %929 = vtanh.f32 %v624_v5 }
 0x10e   : > { %v574_v8 = vpop.f32.mrf.mxu2 }
 0x10f   : > { %v575_v63 = vadd.f32 %v1129_v16, %v574_v8 }
 0x110   : > { %v536_v10 = vpop.f32.mrf.mxu0 }
 0x111   : > { %v537_v0 = vadd.f32 %v1129_v16, %v536_v10  ;;  %v928_v9 = vpop.eup %927  ;;  %v664_v11 = vadd.f32 %v663_v6, %v575_v63 }
 0x112   : > { %732 = vst [vmem:[%s1139_s15 + $0xd8] sm:$0xff] %v928_v9  ;;  %v633_v19 = vpop.f32.mrf.mxu1 }
 0x113   : > { %v930_v12 = vpop.eup %929  ;;  %v626_v15 = vadd.f32 %v625_v50, %v537_v0  ;;  %931 = vtanh.f32 %v664_v11  ;;  %v634_v13 = vadd.f32 %v633_v19, %v545_v17 }
 0x114   : > { %717 = vst [vmem:[%s1139_s15 + $0x60] sm:$0xff] %v930_v12 }
 0x115   : > { %933 = vtanh.f32 %v626_v15 }
 0x116   : > { %v576_v20 = vpop.f32.mrf.mxu2  ;;  %935 = vtanh.f32 %v634_v13 }
 0x117   : > { %v577_v21 = vadd.f32 %v1129_v16, %v576_v20 }
 0x118   : > { %v539_v22 = vpop.f32.mrf.mxu0 }
 0x119   : > { %v540_v23 = vadd.f32 %v1129_v16, %v539_v22  ;;  %v932_v24 = vpop.eup %931  ;;  %v666_v29 = vadd.f32 %v665_v18, %v577_v21 }
 0x11a   : > { %733 = vst [vmem:[%s1139_s15 + $0xe0] sm:$0xff] %v932_v24  ;;  %v635_v33 = vpop.f32.mrf.mxu1 }
 0x11b   : > { %v934_v30 = vpop.eup %933  ;;  %v629_v14 = vadd.f32 %v628_v60, %v540_v23  ;;  %937 = vtanh.f32 %v666_v29  ;;  %v636_v35 = vadd.f32 %v635_v33, %v547_v32 }
 0x11c   : > { %718 = vst [vmem:[%s1139_s15 + $0x68] sm:$0xff] %v934_v30  ;;  %v936_v34 = vpop.eup %935 }
 0x11d   : > { %939 = vtanh.f32 %v629_v14  ;;  %721 = vst [vmem:[%s1139_s15 + $0x80] sm:$0xff] %v936_v34 }
 0x11e   : > { %v579_v36 = vpop.f32.mrf.mxu2  ;;  %941 = vtanh.f32 %v636_v35 }
 0x11f   : > { %v580_v28 = vadd.f32 %v1129_v16, %v579_v36 }
 0x120   : > { %v541_v37 = vpop.f32.mrf.mxu0 }
 0x121   : > { %v542_v38 = vadd.f32 %v1129_v16, %v541_v37  ;;  %v938_v41 = vpop.eup %937  ;;  %v669_v31 = vadd.f32 %v668_v27, %v580_v28 }
 0x122   : > { %734 = vst [vmem:[%s1139_s15 + $0xe8] sm:$0xff] %v938_v41 }
 0x123   : > { %v940_v42 = vpop.eup %939  ;;  %v631_v43 = vadd.f32 %v630_v7, %v542_v38  ;;  %943 = vtanh.f32 %v669_v31 }
 0x124   : > { %719 = vst [vmem:[%s1139_s15 + $0x70] sm:$0xff] %v940_v42  ;;  %v942_v44 = vpop.eup %941 }
 0x125   : > { %945 = vtanh.f32 %v631_v43  ;;  %722 = vst [vmem:[%s1139_s15 + $0x88] sm:$0xff] %v942_v44 }
 0x126   : > { %v581_v45 = vpop.f32.mrf.mxu2 }
 0x127   : > { %v582_v46 = vadd.f32 %v1129_v16, %v581_v45 }
 0x129   : > { %v944_v39 = vpop.eup %943  ;;  %v671_v48 = vadd.f32 %v670_v47, %v582_v46 }
 0x12a   : > { %735 = vst [vmem:[%s1139_s15 + $0xf0] sm:$0xff] %v944_v39 }
 0x12b   : > { %v946_v40 = vpop.eup %945  ;;  %947 = vtanh.f32 %v671_v48 }
 0x12c   : > { %720 = vst [vmem:[%s1139_s15 + $0x78] sm:$0xff] %v946_v40 }
 0x131   : > { %v948_v49 = vpop.eup %947 }
 0x132   : > { %736 = vst [vmem:[%s1139_s15 + $0xf8] sm:$0xff] %v948_v49 }
 0x133 PF: > { %s13_s12 = sadd.s32 1, %s955_s12  }
 0x134   : > { %p10_p4 = scmp.ge.s32.totalorder %s13_s12, 4  }
 0x136   :  { %12 = sbr.rel (!%p10_p4) target bundleno = 1 (0x1), region = 62 }

</bundles_post_ra>
